<compile_context>
chip_gen: v7x
topology: tpu7x:2x2x1
jax: 0.10.0
libtpu: 0.0.40
codegen_flags: <defaults>
</compile_context>

<pallas_src>
import functools

import jax
import jax.numpy as jnp
import numpy as np
from jax import lax
from jax.experimental import pallas as pl
from jax.experimental.pallas import tpu as pltpu


def _round_up(x, m):
    return (x + m - 1) // m * m


# ---------------------------------------------------------------------------
# Generation-aware VMEM budgeting (v5e/v6e: 128 MiB physical; v7x: 64 MiB).
# ---------------------------------------------------------------------------
def _vmem_capacity_bytes():
    try:
        return int(pltpu.get_tpu_info().vmem_capacity_bytes)
    except Exception:  # non-TPU tracing / older jax: assume the small (v7x) size
        return 64 * 1024 * 1024


_VMEM_CAP = _vmem_capacity_bytes()
_SMALL_VMEM = _VMEM_CAP <= 64 * 1024 * 1024            # v7x-class TensorCore
_VMEM_LIMIT = (32 if _SMALL_VMEM else 64) * 1024 * 1024
# Budget for the conv input block: 2 pipeline bufs x 4 quadrants x tm x K x 4B.
_CONV_IN_BUDGET = (12 if _SMALL_VMEM else 32) * 1024 * 1024


def _tm_max_for_k(k_dim):
    """K-dependent row-tile cap that keeps the double-buffered input block
    within the per-generation VMEM budget."""
    t = _CONV_IN_BUDGET // (2 * 4 * k_dim * 4)
    return int(min(4096, max(64, (t // 8) * 8)))


def _tile_rows(m, tmax):
    """Pick a row tile (multiple of 8) and padded extent.  Prefers >= 2 grid
    steps so ("parallel",) dimension semantics can split tiles across v7x's two
    TensorCores; single-TC v5e/v6e are unaffected."""
    m8 = _round_up(max(m, 1), 8)
    if m8 >= 16:
        t = min(tmax, _round_up(m8 // 2, 8))
    else:
        t = min(tmax, m8)
    t = max(t, 8)
    return t, _round_up(m8, t)


# ---------------------------------------------------------------------------
# Pallas kernels
# ---------------------------------------------------------------------------
def _conv_pool_kernel(p_ref, w_ref, b_ref, o_ref, *, use_mxu):
    """Fused 3x3 "valid" conv (im2col matmul) + bias + ReLU + 2x2/2 max-pool.

    p_ref: (4, tm, K)  patch rows for the four pooling quadrants of this tile
    w_ref: (K, Cout)   VMEM-resident weights
    b_ref: (1, Cout)   VMEM-resident bias
    o_ref: (tm, Cout)  pooled output rows
    """
    tm = o_ref.shape[0]
    k_dim, cout = w_ref.shape
    w = w_ref[...]
    # Merge the 4 quadrants into the sublane dim (layout no-op: tm % 8 == 0) so
    # the contraction is one matmul instead of 4 MXU fill/drain phases.
    p = p_ref[...].reshape(4 * tm, k_dim)
    if use_mxu:
        y = jnp.dot(p, w, preferred_element_type=jnp.float32)
    else:
        # conv1: K=9 is pure MXU fill/drain, so contract with unrolled rank-1
        # VPU multiply-adds instead.
        y = jnp.zeros((4 * tm, cout), jnp.float32)
        for kk in range(k_dim):
            y = y + p[:, kk:kk + 1] * w[kk:kk + 1, :]
    # 2x2 max-pool across quadrants, then a SINGLE bias+ReLU epilogue
    # (relu(max_q(.) + b) == max_q(relu(. + b)) since the bias is shared).
    out = jnp.maximum(jnp.maximum(y[0:tm], y[tm:2 * tm]),
                      jnp.maximum(y[2 * tm:3 * tm], y[3 * tm:4 * tm]))
    o_ref[...] = jnp.maximum(out + b_ref[...], 0.0).astype(o_ref.dtype)


def _conv3_fc_kernel(p_ref, w3_ref, b3_ref, w1_ref, b1_ref, w2_ref, b2_ref, o_ref):
    """conv3 (+bias+ReLU+2x2 pool) + flatten + fc1 + ReLU + fc2 in one kernel.

    p_ref: (4, tb, K3)  conv3 patch rows per pooling quadrant (K3 = 9*64)
    o_ref: (tb, Np)     logits, N padded to 128 lanes
    The conv3 pooled output is (tb, 128) == the flattened fc input, so the
    hidden activations never leave VMEM.
    """
    tb = o_ref.shape[0]
    k3 = w3_ref.shape[0]
    p = p_ref[...].reshape(4 * tb, k3)
    y = jnp.dot(p, w3_ref[...], preferred_element_type=jnp.float32)  # (4*tb, 128)
    feat = jnp.maximum(jnp.maximum(y[0:tb], y[tb:2 * tb]),
                       jnp.maximum(y[2 * tb:3 * tb], y[3 * tb:4 * tb]))
    feat = jnp.maximum(feat + b3_ref[...], 0.0)
    h = jnp.maximum(
        jnp.dot(feat, w1_ref[...], preferred_element_type=jnp.float32) + b1_ref[...],
        0.0)
    o_ref[...] = (jnp.dot(h, w2_ref[...], preferred_element_type=jnp.float32)
                  + b2_ref[...]).astype(o_ref.dtype)


# ---------------------------------------------------------------------------
# Wrappers (JAX glue is layout-only; all FLOPs happen inside the kernels)
# ---------------------------------------------------------------------------
def _pool_quadrant_patches(x, hp, wp):
    """Build (4, B*Hp*Wp, 9*Cin) im2col rows for the four 2x2-pool quadrants
    directly from strided slices of x; the full (B, Ho, Wo, 9*Cin) im2col
    tensor is never materialized.  Feature order is (dy, dx, cin), matching
    w_hwio.reshape(9*Cin, Cout)."""
    B, _, _, cin = x.shape
    k_dim = 9 * cin
    mp = B * hp * wp
    quads = []
    for p in range(2):
        for r in range(2):
            cols = [x[:, p + dy:p + dy + 2 * hp:2, r + dx:r + dx + 2 * wp:2, :]
                    for dy in range(3) for dx in range(3)]
            quads.append(jnp.concatenate(cols, axis=-1).reshape(mp, k_dim))
    return jnp.stack(quads, axis=0)


def conv3x3_relu_pool(x, w_hwio, b):
    """x: (B, H, W, Cin) f32 -> pooled (B, Hp, Wp, Cout)."""
    B, H, W, cin = x.shape
    cout = w_hwio.shape[3]
    ho, wo = H - 2, W - 2
    hp, wp = ho // 2, wo // 2                    # floor, like MaxPool2d(2, 2)
    k_dim = 9 * cin
    mp = B * hp * wp

    quads = _pool_quadrant_patches(x, hp, wp)    # (4, mp, k_dim)
    tm, mp_pad = _tile_rows(mp, _tm_max_for_k(k_dim))
    if mp_pad != mp:
        quads = jnp.pad(quads, ((0, 0), (0, mp_pad - mp), (0, 0)))

    w2 = w_hwio.reshape(k_dim, cout)
    b2 = b.reshape(1, cout)

    kernel = functools.partial(_conv_pool_kernel, use_mxu=(k_dim >= 32))
    flops = 2 * 4 * mp_pad * k_dim * cout
    bytes_accessed = 4 * (4 * mp_pad * k_dim + k_dim * cout + cout + mp_pad * cout)

    out = pl.pallas_call(
        kernel,
        grid=(mp_pad // tm,),
        in_specs=[
            pl.BlockSpec((4, tm, k_dim), lambda i: (0, i, 0)),
            pl.BlockSpec((k_dim, cout), lambda i: (0, 0)),   # resident weights
            pl.BlockSpec((1, cout), lambda i: (0, 0)),       # resident bias
        ],
        out_specs=pl.BlockSpec((tm, cout), lambda i: (i, 0)),
        out_shape=jax.ShapeDtypeStruct((mp_pad, cout), jnp.float32),
        compiler_params=pltpu.CompilerParams(
            dimension_semantics=("parallel",),
            vmem_limit_bytes=_VMEM_LIMIT),
        cost_estimate=pl.CostEstimate(
            flops=flops, transcendentals=0, bytes_accessed=bytes_accessed),
    )(quads, w2, b2)

    return out[:mp].reshape(B, hp, wp, cout)


def conv3_pool_fc(x, w3_hwio, b3, wf1, bf1, wf2, bf2):
    """Fused conv3 + ReLU + 2x2 pool + flatten + fc1 + ReLU + fc2.

    x: (B, 5, 5, 64) -> logits (B, 10).  conv3's pooled output is (B,1,1,128),
    i.e. exactly the flattened fc input, so the whole tail is one pallas_call.
    """
    B, H, W, cin = x.shape
    cout3 = w3_hwio.shape[3]
    hp, wp = (H - 2) // 2, (W - 2) // 2
    k3 = 9 * cin
    hid = wf1.shape[1]
    n = wf2.shape[1]
    n_pad = _round_up(n, 128)                    # lane-dense final store

    quads = _pool_quadrant_patches(x, hp, wp)    # (4, B*hp*wp, k3) == (4, B, k3)
    tb, b_pad = _tile_rows(B * hp * wp, min(1024, _tm_max_for_k(k3)))
    if b_pad != B * hp * wp:
        quads = jnp.pad(quads, ((0, 0), (0, b_pad - B * hp * wp), (0, 0)))

    w3 = w3_hwio.reshape(k3, cout3)
    b3r = b3.reshape(1, cout3)
    bf1r = bf1.reshape(1, hid)
    wf2p = jnp.pad(wf2, ((0, 0), (0, n_pad - n)))
    bf2p = jnp.pad(bf2.reshape(1, n), ((0, 0), (0, n_pad - n)))

    flops = 2 * b_pad * (4 * k3 * cout3 + cout3 * hid + hid * n_pad)
    bytes_accessed = 4 * (4 * b_pad * k3 + k3 * cout3 + cout3 + cout3 * hid + hid
                          + hid * n_pad + n_pad + b_pad * n_pad)

    out = pl.pallas_call(
        _conv3_fc_kernel,
        grid=(b_pad // tb,),
        in_specs=[
            pl.BlockSpec((4, tb, k3), lambda i: (0, i, 0)),
            pl.BlockSpec((k3, cout3), lambda i: (0, 0)),
            pl.BlockSpec((1, cout3), lambda i: (0, 0)),
            pl.BlockSpec((cout3, hid), lambda i: (0, 0)),
            pl.BlockSpec((1, hid), lambda i: (0, 0)),
            pl.BlockSpec((hid, n_pad), lambda i: (0, 0)),
            pl.BlockSpec((1, n_pad), lambda i: (0, 0)),
        ],
        out_specs=pl.BlockSpec((tb, n_pad), lambda i: (i, 0)),
        out_shape=jax.ShapeDtypeStruct((b_pad, n_pad), jnp.float32),
        compiler_params=pltpu.CompilerParams(
            dimension_semantics=("parallel",),
            vmem_limit_bytes=_VMEM_LIMIT),
        cost_estimate=pl.CostEstimate(
            flops=flops, transcendentals=0, bytes_accessed=bytes_accessed),
    )(quads, w3, b3r, wf1, bf1r, wf2p, bf2p)

    return out[:B, :n]


def cnn_forward(params, x_nchw):
    x = jnp.transpose(x_nchw, (0, 2, 3, 1)).astype(jnp.float32)   # NCHW -> NHWC
    x = conv3x3_relu_pool(x, params["w1"], params["b1"])          # 28 -> 26 -> 13
    # dropout(0.25): inference identity
    x = conv3x3_relu_pool(x, params["w2"], params["b2"])          # 13 -> 11 -> 5
    return conv3_pool_fc(x, params["w3"], params["b3"],           # 5 -> 3 -> 1
                         params["wf1"], params["bf1"],            # + fc1/relu/fc2
                         params["wf2"], params["bf2"])


# ---------------------------------------------------------------------------
# Pure-JAX reference (for correctness check only)
# ---------------------------------------------------------------------------
def cnn_reference(params, x_nchw):
    x = jnp.transpose(x_nchw, (0, 2, 3, 1)).astype(jnp.float32)

    def conv_block(x, w, b):
        y = lax.conv_general_dilated(
            x, w, (1, 1), "VALID",
            dimension_numbers=("NHWC", "HWIO", "NHWC"),
            precision=lax.Precision.HIGHEST) + b
        y = jnp.maximum(y, 0.0)
        return lax.reduce_window(y, -jnp.inf, lax.max,
                                 (1, 2, 2, 1), (1, 2, 2, 1), "VALID")

    x = conv_block(x, params["w1"], params["b1"])
    x = conv_block(x, params["w2"], params["b2"])
    x = conv_block(x, params["w3"], params["b3"])
    x = x.reshape(x.shape[0], -1)
    x = jnp.maximum(x @ params["wf1"] + params["bf1"], 0.0)
    return x @ params["wf2"] + params["bf2"]


# ---------------------------------------------------------------------------
# Deterministic parameter init (synthetic weights, torch-like uniform fan-in)
# ---------------------------------------------------------------------------
def init_params(key):
    ks = jax.random.split(key, 10)

    def uni(k, shape, fan_in):
        bound = 1.0 / np.sqrt(fan_in)
        return jax.random.uniform(k, shape, jnp.float32, -bound, bound)

    return {
        "w1": uni(ks[0], (3, 3, 1, 32), 9 * 1),     "b1": uni(ks[1], (32,), 9 * 1),
        "w2": uni(ks[2], (3, 3, 32, 64), 9 * 32),   "b2": uni(ks[3], (64,), 9 * 32),
        "w3": uni(ks[4], (3, 3, 64, 128), 9 * 64),  "b3": uni(ks[5], (128,), 9 * 64),
        "wf1": uni(ks[6], (128, 512), 128),         "bf1": uni(ks[7], (512,), 128),
        "wf2": uni(ks[8], (512, 10), 512),          "bf2": uni(ks[9], (10,), 512),
    }


if __name__ == "__main__":
    key = jax.random.PRNGKey(0)
    pkey, xkey = jax.random.split(key)
    params = init_params(pkey)

    # fc1's input size is fixed by the 28x28 sample in __init__, so spatial=28.
    x = jax.random.normal(xkey, (2, 1, 28, 28), jnp.float32)

    out = jax.jit(cnn_forward)(params, x)
    out = jax.block_until_ready(out)
    assert out.shape == (2, 10) and out.dtype == jnp.float32

    ref = cnn_reference(params, x)
    np.testing.assert_allclose(np.asarray(out), np.asarray(ref), rtol=1e-3, atol=1e-3)

    print("KERNEL_OK")
</pallas_src>

<mosaic_0001>
module attributes {stable_mosaic.version = 11 : i64} {
  func.func @_conv_pool_kernel(%arg0: i32, %arg1: memref<4x176x9xf32, #tpu.memory_space<vmem>>, %arg2: memref<9x32xf32, #tpu.memory_space<vmem>>, %arg3: memref<1x32xf32, #tpu.memory_space<vmem>>, %arg4: memref<176x32xf32, #tpu.memory_space<vmem>>) attributes {dimension_semantics = [#tpu.dimension_semantics<parallel>], iteration_bounds = array<i64: 2>, scalar_prefetch = 0 : i64, scratch_operands = 0 : i64, tpu.core_type = #tpu.core_type<tc>, window_params = [{transform_indices = @transform_0, window_bounds = array<i64: 4, 176, 9>}, {pipeline_mode = #tpu.pipeline_mode<synchronous>, transform_indices = @transform_1, window_bounds = array<i64: 9, 32>}, {pipeline_mode = #tpu.pipeline_mode<synchronous>, transform_indices = @transform_2, window_bounds = array<i64: 1, 32>}, {transform_indices = @transform_3, window_bounds = array<i64: 176, 32>}]} {
    %c0 = arith.constant 0 : index
    %c0_0 = arith.constant 0 : index
    %0 = vector.load %arg2[%c0, %c0_0] : memref<9x32xf32, #tpu.memory_space<vmem>>, vector<9x32xf32>
    %c0_1 = arith.constant 0 : index
    %c0_2 = arith.constant 0 : index
    %c0_3 = arith.constant 0 : index
    %1 = vector.load %arg1[%c0_1, %c0_2, %c0_3] : memref<4x176x9xf32, #tpu.memory_space<vmem>>, vector<4x176x9xf32>
    %2 = vector.shape_cast %1 : vector<4x176x9xf32> to vector<704x9xf32>
    %cst = arith.constant 0.000000e+00 : f32
    %3 = vector.broadcast %cst : f32 to vector<704x32xf32>
    %4 = vector.extract_strided_slice %2 {offsets = [0, 0], sizes = [704, 1], strides = [1, 1]} : vector<704x9xf32> to vector<704x1xf32>
    %5 = vector.extract_strided_slice %0 {offsets = [0, 0], sizes = [1, 32], strides = [1, 1]} : vector<9x32xf32> to vector<1x32xf32>
    %6 = vector.broadcast %4 : vector<704x1xf32> to vector<704x32xf32>
    %7 = vector.broadcast %5 : vector<1x32xf32> to vector<704x32xf32>
    %8 = arith.mulf %6, %7 : vector<704x32xf32>
    %9 = arith.addf %3, %8 : vector<704x32xf32>
    %10 = vector.extract_strided_slice %2 {offsets = [0, 1], sizes = [704, 1], strides = [1, 1]} : vector<704x9xf32> to vector<704x1xf32>
    %11 = vector.extract_strided_slice %0 {offsets = [1, 0], sizes = [1, 32], strides = [1, 1]} : vector<9x32xf32> to vector<1x32xf32>
    %12 = vector.broadcast %10 : vector<704x1xf32> to vector<704x32xf32>
    %13 = vector.broadcast %11 : vector<1x32xf32> to vector<704x32xf32>
    %14 = arith.mulf %12, %13 : vector<704x32xf32>
    %15 = arith.addf %9, %14 : vector<704x32xf32>
    %16 = vector.extract_strided_slice %2 {offsets = [0, 2], sizes = [704, 1], strides = [1, 1]} : vector<704x9xf32> to vector<704x1xf32>
    %17 = vector.extract_strided_slice %0 {offsets = [2, 0], sizes = [1, 32], strides = [1, 1]} : vector<9x32xf32> to vector<1x32xf32>
    %18 = vector.broadcast %16 : vector<704x1xf32> to vector<704x32xf32>
    %19 = vector.broadcast %17 : vector<1x32xf32> to vector<704x32xf32>
    %20 = arith.mulf %18, %19 : vector<704x32xf32>
    %21 = arith.addf %15, %20 : vector<704x32xf32>
    %22 = vector.extract_strided_slice %2 {offsets = [0, 3], sizes = [704, 1], strides = [1, 1]} : vector<704x9xf32> to vector<704x1xf32>
    %23 = vector.extract_strided_slice %0 {offsets = [3, 0], sizes = [1, 32], strides = [1, 1]} : vector<9x32xf32> to vector<1x32xf32>
    %24 = vector.broadcast %22 : vector<704x1xf32> to vector<704x32xf32>
    %25 = vector.broadcast %23 : vector<1x32xf32> to vector<704x32xf32>
    %26 = arith.mulf %24, %25 : vector<704x32xf32>
    %27 = arith.addf %21, %26 : vector<704x32xf32>
    %28 = vector.extract_strided_slice %2 {offsets = [0, 4], sizes = [704, 1], strides = [1, 1]} : vector<704x9xf32> to vector<704x1xf32>
    %29 = vector.extract_strided_slice %0 {offsets = [4, 0], sizes = [1, 32], strides = [1, 1]} : vector<9x32xf32> to vector<1x32xf32>
    %30 = vector.broadcast %28 : vector<704x1xf32> to vector<704x32xf32>
    %31 = vector.broadcast %29 : vector<1x32xf32> to vector<704x32xf32>
    %32 = arith.mulf %30, %31 : vector<704x32xf32>
    %33 = arith.addf %27, %32 : vector<704x32xf32>
    %34 = vector.extract_strided_slice %2 {offsets = [0, 5], sizes = [704, 1], strides = [1, 1]} : vector<704x9xf32> to vector<704x1xf32>
    %35 = vector.extract_strided_slice %0 {offsets = [5, 0], sizes = [1, 32], strides = [1, 1]} : vector<9x32xf32> to vector<1x32xf32>
    %36 = vector.broadcast %34 : vector<704x1xf32> to vector<704x32xf32>
    %37 = vector.broadcast %35 : vector<1x32xf32> to vector<704x32xf32>
    %38 = arith.mulf %36, %37 : vector<704x32xf32>
    %39 = arith.addf %33, %38 : vector<704x32xf32>
    %40 = vector.extract_strided_slice %2 {offsets = [0, 6], sizes = [704, 1], strides = [1, 1]} : vector<704x9xf32> to vector<704x1xf32>
    %41 = vector.extract_strided_slice %0 {offsets = [6, 0], sizes = [1, 32], strides = [1, 1]} : vector<9x32xf32> to vector<1x32xf32>
    %42 = vector.broadcast %40 : vector<704x1xf32> to vector<704x32xf32>
    %43 = vector.broadcast %41 : vector<1x32xf32> to vector<704x32xf32>
    %44 = arith.mulf %42, %43 : vector<704x32xf32>
    %45 = arith.addf %39, %44 : vector<704x32xf32>
    %46 = vector.extract_strided_slice %2 {offsets = [0, 7], sizes = [704, 1], strides = [1, 1]} : vector<704x9xf32> to vector<704x1xf32>
    %47 = vector.extract_strided_slice %0 {offsets = [7, 0], sizes = [1, 32], strides = [1, 1]} : vector<9x32xf32> to vector<1x32xf32>
    %48 = vector.broadcast %46 : vector<704x1xf32> to vector<704x32xf32>
    %49 = vector.broadcast %47 : vector<1x32xf32> to vector<704x32xf32>
    %50 = arith.mulf %48, %49 : vector<704x32xf32>
    %51 = arith.addf %45, %50 : vector<704x32xf32>
    %52 = vector.extract_strided_slice %2 {offsets = [0, 8], sizes = [704, 1], strides = [1, 1]} : vector<704x9xf32> to vector<704x1xf32>
    %53 = vector.extract_strided_slice %0 {offsets = [8, 0], sizes = [1, 32], strides = [1, 1]} : vector<9x32xf32> to vector<1x32xf32>
    %54 = vector.broadcast %52 : vector<704x1xf32> to vector<704x32xf32>
    %55 = vector.broadcast %53 : vector<1x32xf32> to vector<704x32xf32>
    %56 = arith.mulf %54, %55 : vector<704x32xf32>
    %57 = arith.addf %51, %56 : vector<704x32xf32>
    %58 = vector.extract_strided_slice %57 {offsets = [0, 0], sizes = [176, 32], strides = [1, 1]} : vector<704x32xf32> to vector<176x32xf32>
    %59 = vector.extract_strided_slice %57 {offsets = [176, 0], sizes = [176, 32], strides = [1, 1]} : vector<704x32xf32> to vector<176x32xf32>
    %60 = arith.maximumf %58, %59 : vector<176x32xf32>
    %61 = vector.extract_strided_slice %57 {offsets = [352, 0], sizes = [176, 32], strides = [1, 1]} : vector<704x32xf32> to vector<176x32xf32>
    %62 = vector.extract_strided_slice %57 {offsets = [528, 0], sizes = [176, 32], strides = [1, 1]} : vector<704x32xf32> to vector<176x32xf32>
    %63 = arith.maximumf %61, %62 : vector<176x32xf32>
    %64 = arith.maximumf %60, %63 : vector<176x32xf32>
    %c0_4 = arith.constant 0 : index
    %c0_5 = arith.constant 0 : index
    %65 = vector.load %arg3[%c0_4, %c0_5] : memref<1x32xf32, #tpu.memory_space<vmem>>, vector<1x32xf32>
    %66 = vector.broadcast %65 : vector<1x32xf32> to vector<176x32xf32>
    %67 = arith.addf %64, %66 : vector<176x32xf32>
    %cst_6 = arith.constant 0.000000e+00 : f32
    %68 = vector.broadcast %cst_6 : f32 to vector<176x32xf32>
    %69 = arith.maximumf %67, %68 : vector<176x32xf32>
    %c0_7 = arith.constant 0 : index
    %c0_8 = arith.constant 0 : index
    %70 = vector.load %arg4[%c0_7, %c0_8] : memref<176x32xf32, #tpu.memory_space<vmem>>, vector<176x32xf32>
    tpu.vector_store %arg4[%c0_7, %c0_8], %69 {strides = array<i32>} : memref<176x32xf32, #tpu.memory_space<vmem>>, vector<176x32xf32>,
    return
  }
  func.func @transform_0(%arg0: i32) -> (i32, i32, i32) {
    %c0_i32 = arith.constant 0 : i32
    %c0_i32_0 = arith.constant 0 : i32
    %c0_i32_1 = arith.constant 0 : i32
    return %c0_i32, %arg0, %c0_i32_0 : i32, i32, i32
  }
  func.func @transform_1(%arg0: i32) -> (i32, i32) {
    %c0_i32 = arith.constant 0 : i32
    %c0_i32_0 = arith.constant 0 : i32
    %c0_i32_1 = arith.constant 0 : i32
    return %c0_i32, %c0_i32_0 : i32, i32
  }
  func.func @transform_2(%arg0: i32) -> (i32, i32) {
    %c0_i32 = arith.constant 0 : i32
    %c0_i32_0 = arith.constant 0 : i32
    %c0_i32_1 = arith.constant 0 : i32
    return %c0_i32, %c0_i32_0 : i32, i32
  }
  func.func @transform_3(%arg0: i32) -> (i32, i32) {
    %c0_i32 = arith.constant 0 : i32
    %c0_i32_0 = arith.constant 0 : i32
    return %arg0, %c0_i32 : i32, i32
  }
}

module attributes {stable_mosaic.version = 11 : i64} {
  func.func @_conv_pool_kernel(%arg0: i32, %arg1: memref<4x32x288xf32, #tpu.memory_space<vmem>>, %arg2: memref<288x64xf32, #tpu.memory_space<vmem>>, %arg3: memref<1x64xf32, #tpu.memory_space<vmem>>, %arg4: memref<32x64xf32, #tpu.memory_space<vmem>>) attributes {dimension_semantics = [#tpu.dimension_semantics<parallel>], iteration_bounds = array<i64: 2>, scalar_prefetch = 0 : i64, scratch_operands = 0 : i64, tpu.core_type = #tpu.core_type<tc>, window_params = [{transform_indices = @transform_0, window_bounds = array<i64: 4, 32, 288>}, {pipeline_mode = #tpu.pipeline_mode<synchronous>, transform_indices = @transform_1, window_bounds = array<i64: 288, 64>}, {pipeline_mode = #tpu.pipeline_mode<synchronous>, transform_indices = @transform_2, window_bounds = array<i64: 1, 64>}, {transform_indices = @transform_3, window_bounds = array<i64: 32, 64>}]} {
    %c0 = arith.constant 0 : index
    %c0_0 = arith.constant 0 : index
    %0 = vector.load %arg2[%c0, %c0_0] : memref<288x64xf32, #tpu.memory_space<vmem>>, vector<288x64xf32>
    %c0_1 = arith.constant 0 : index
    %c0_2 = arith.constant 0 : index
    %c0_3 = arith.constant 0 : index
    %1 = vector.load %arg1[%c0_1, %c0_2, %c0_3] : memref<4x32x288xf32, #tpu.memory_space<vmem>>, vector<4x32x288xf32>
    %2 = vector.shape_cast %1 : vector<4x32x288xf32> to vector<128x288xf32>
    %cst = arith.constant dense<0.000000e+00> : vector<128x64xf32>
    %3 = tpu.matmul %2, %0, %cst {dimension_numbers = #tpu.dot_dimension_numbers<[1], [0], [0], [1], [0, 0, 1, 1], [], []>} : vector<128x288xf32>, vector<288x64xf32>, vector<128x64xf32> -> vector<128x64xf32>
    %4 = vector.extract_strided_slice %3 {offsets = [0, 0], sizes = [32, 64], strides = [1, 1]} : vector<128x64xf32> to vector<32x64xf32>
    %5 = vector.extract_strided_slice %3 {offsets = [32, 0], sizes = [32, 64], strides = [1, 1]} : vector<128x64xf32> to vector<32x64xf32>
    %6 = arith.maximumf %4, %5 : vector<32x64xf32>
    %7 = vector.extract_strided_slice %3 {offsets = [64, 0], sizes = [32, 64], strides = [1, 1]} : vector<128x64xf32> to vector<32x64xf32>
    %8 = vector.extract_strided_slice %3 {offsets = [96, 0], sizes = [32, 64], strides = [1, 1]} : vector<128x64xf32> to vector<32x64xf32>
    %9 = arith.maximumf %7, %8 : vector<32x64xf32>
    %10 = arith.maximumf %6, %9 : vector<32x64xf32>
    %c0_4 = arith.constant 0 : index
    %c0_5 = arith.constant 0 : index
    %11 = vector.load %arg3[%c0_4, %c0_5] : memref<1x64xf32, #tpu.memory_space<vmem>>, vector<1x64xf32>
    %12 = vector.broadcast %11 : vector<1x64xf32> to vector<32x64xf32>
    %13 = arith.addf %10, %12 : vector<32x64xf32>
    %cst_6 = arith.constant 0.000000e+00 : f32
    %14 = vector.broadcast %cst_6 : f32 to vector<32x64xf32>
    %15 = arith.maximumf %13, %14 : vector<32x64xf32>
    %c0_7 = arith.constant 0 : index
    %c0_8 = arith.constant 0 : index
    %16 = vector.load %arg4[%c0_7, %c0_8] : memref<32x64xf32, #tpu.memory_space<vmem>>, vector<32x64xf32>
    tpu.vector_store %arg4[%c0_7, %c0_8], %15 {strides = array<i32>} : memref<32x64xf32, #tpu.memory_space<vmem>>, vector<32x64xf32>,
    return
  }
  func.func @transform_0(%arg0: i32) -> (i32, i32, i32) {
    %c0_i32 = arith.constant 0 : i32
    %c0_i32_0 = arith.constant 0 : i32
    %c0_i32_1 = arith.constant 0 : i32
    return %c0_i32, %arg0, %c0_i32_0 : i32, i32, i32
  }
  func.func @transform_1(%arg0: i32) -> (i32, i32) {
    %c0_i32 = arith.constant 0 : i32
    %c0_i32_0 = arith.constant 0 : i32
    %c0_i32_1 = arith.constant 0 : i32
    return %c0_i32, %c0_i32_0 : i32, i32
  }
  func.func @transform_2(%arg0: i32) -> (i32, i32) {
    %c0_i32 = arith.constant 0 : i32
    %c0_i32_0 = arith.constant 0 : i32
    %c0_i32_1 = arith.constant 0 : i32
    return %c0_i32, %c0_i32_0 : i32, i32
  }
  func.func @transform_3(%arg0: i32) -> (i32, i32) {
    %c0_i32 = arith.constant 0 : i32
    %c0_i32_0 = arith.constant 0 : i32
    return %arg0, %c0_i32 : i32, i32
  }
}

module attributes {stable_mosaic.version = 11 : i64} {
  func.func @_conv3_fc_kernel(%arg0: i32, %arg1: memref<4x8x576xf32, #tpu.memory_space<vmem>>, %arg2: memref<576x128xf32, #tpu.memory_space<vmem>>, %arg3: memref<1x128xf32, #tpu.memory_space<vmem>>, %arg4: memref<128x512xf32, #tpu.memory_space<vmem>>, %arg5: memref<1x512xf32, #tpu.memory_space<vmem>>, %arg6: memref<512x128xf32, #tpu.memory_space<vmem>>, %arg7: memref<1x128xf32, #tpu.memory_space<vmem>>, %arg8: memref<8x128xf32, #tpu.memory_space<vmem>>) attributes {dimension_semantics = [#tpu.dimension_semantics<parallel>], iteration_bounds = array<i64: 1>, scalar_prefetch = 0 : i64, scratch_operands = 0 : i64, tpu.core_type = #tpu.core_type<tc>, window_params = [{transform_indices = @transform_0, window_bounds = array<i64: 4, 8, 576>}, {pipeline_mode = #tpu.pipeline_mode<synchronous>, transform_indices = @transform_1, window_bounds = array<i64: 576, 128>}, {pipeline_mode = #tpu.pipeline_mode<synchronous>, transform_indices = @transform_2, window_bounds = array<i64: 1, 128>}, {pipeline_mode = #tpu.pipeline_mode<synchronous>, transform_indices = @transform_3, window_bounds = array<i64: 128, 512>}, {pipeline_mode = #tpu.pipeline_mode<synchronous>, transform_indices = @transform_4, window_bounds = array<i64: 1, 512>}, {pipeline_mode = #tpu.pipeline_mode<synchronous>, transform_indices = @transform_5, window_bounds = array<i64: 512, 128>}, {pipeline_mode = #tpu.pipeline_mode<synchronous>, transform_indices = @transform_6, window_bounds = array<i64: 1, 128>}, {transform_indices = @transform_7, window_bounds = array<i64: 8, 128>}]} {
    %c0 = arith.constant 0 : index
    %c0_0 = arith.constant 0 : index
    %c0_1 = arith.constant 0 : index
    %0 = vector.load %arg1[%c0, %c0_0, %c0_1] : memref<4x8x576xf32, #tpu.memory_space<vmem>>, vector<4x8x576xf32>
    %1 = vector.shape_cast %0 : vector<4x8x576xf32> to vector<32x576xf32>
    %c0_2 = arith.constant 0 : index
    %c0_3 = arith.constant 0 : index
    %2 = vector.load %arg2[%c0_2, %c0_3] : memref<576x128xf32, #tpu.memory_space<vmem>>, vector<576x128xf32>
    %cst = arith.constant dense<0.000000e+00> : vector<32x128xf32>
    %3 = tpu.matmul %1, %2, %cst {dimension_numbers = #tpu.dot_dimension_numbers<[1], [0], [0], [1], [0, 0, 1, 1], [], []>} : vector<32x576xf32>, vector<576x128xf32>, vector<32x128xf32> -> vector<32x128xf32>
    %4 = vector.extract_strided_slice %3 {offsets = [0, 0], sizes = [8, 128], strides = [1, 1]} : vector<32x128xf32> to vector<8x128xf32>
    %5 = vector.extract_strided_slice %3 {offsets = [8, 0], sizes = [8, 128], strides = [1, 1]} : vector<32x128xf32> to vector<8x128xf32>
    %6 = arith.maximumf %4, %5 : vector<8x128xf32>
    %7 = vector.extract_strided_slice %3 {offsets = [16, 0], sizes = [8, 128], strides = [1, 1]} : vector<32x128xf32> to vector<8x128xf32>
    %8 = vector.extract_strided_slice %3 {offsets = [24, 0], sizes = [8, 128], strides = [1, 1]} : vector<32x128xf32> to vector<8x128xf32>
    %9 = arith.maximumf %7, %8 : vector<8x128xf32>
    %10 = arith.maximumf %6, %9 : vector<8x128xf32>
    %c0_4 = arith.constant 0 : index
    %c0_5 = arith.constant 0 : index
    %11 = vector.load %arg3[%c0_4, %c0_5] : memref<1x128xf32, #tpu.memory_space<vmem>>, vector<1x128xf32>
    %12 = vector.broadcast %11 : vector<1x128xf32> to vector<8x128xf32>
    %13 = arith.addf %10, %12 : vector<8x128xf32>
    %cst_6 = arith.constant 0.000000e+00 : f32
    %14 = vector.broadcast %cst_6 : f32 to vector<8x128xf32>
    %15 = arith.maximumf %13, %14 : vector<8x128xf32>
    %c0_7 = arith.constant 0 : index
    %c0_8 = arith.constant 0 : index
    %16 = vector.load %arg4[%c0_7, %c0_8] : memref<128x512xf32, #tpu.memory_space<vmem>>, vector<128x512xf32>
    %cst_9 = arith.constant dense<0.000000e+00> : vector<8x512xf32>
    %17 = tpu.matmul %15, %16, %cst_9 {dimension_numbers = #tpu.dot_dimension_numbers<[1], [0], [0], [1], [0, 0, 1, 1], [], []>} : vector<8x128xf32>, vector<128x512xf32>, vector<8x512xf32> -> vector<8x512xf32>
    %c0_10 = arith.constant 0 : index
    %c0_11 = arith.constant 0 : index
    %18 = vector.load %arg5[%c0_10, %c0_11] : memref<1x512xf32, #tpu.memory_space<vmem>>, vector<1x512xf32>
    %19 = vector.broadcast %18 : vector<1x512xf32> to vector<8x512xf32>
    %20 = arith.addf %17, %19 : vector<8x512xf32>
    %cst_12 = arith.constant 0.000000e+00 : f32
    %21 = vector.broadcast %cst_12 : f32 to vector<8x512xf32>
    %22 = arith.maximumf %20, %21 : vector<8x512xf32>
    %c0_13 = arith.constant 0 : index
    %c0_14 = arith.constant 0 : index
    %23 = vector.load %arg6[%c0_13, %c0_14] : memref<512x128xf32, #tpu.memory_space<vmem>>, vector<512x128xf32>
    %cst_15 = arith.constant dense<0.000000e+00> : vector<8x128xf32>
    %24 = tpu.matmul %22, %23, %cst_15 {dimension_numbers = #tpu.dot_dimension_numbers<[1], [0], [0], [1], [0, 0, 1, 1], [], []>} : vector<8x512xf32>, vector<512x128xf32>, vector<8x128xf32> -> vector<8x128xf32>
    %c0_16 = arith.constant 0 : index
    %c0_17 = arith.constant 0 : index
    %25 = vector.load %arg7[%c0_16, %c0_17] : memref<1x128xf32, #tpu.memory_space<vmem>>, vector<1x128xf32>
    %26 = vector.broadcast %25 : vector<1x128xf32> to vector<8x128xf32>
    %27 = arith.addf %24, %26 : vector<8x128xf32>
    %c0_18 = arith.constant 0 : index
    %c0_19 = arith.constant 0 : index
    %28 = vector.load %arg8[%c0_18, %c0_19] : memref<8x128xf32, #tpu.memory_space<vmem>>, vector<8x128xf32>
    tpu.vector_store %arg8[%c0_18, %c0_19], %27 {strides = array<i32>} : memref<8x128xf32, #tpu.memory_space<vmem>>, vector<8x128xf32>,
    return
  }
  func.func @transform_0(%arg0: i32) -> (i32, i32, i32) {
    %c0_i32 = arith.constant 0 : i32
    %c0_i32_0 = arith.constant 0 : i32
    %c0_i32_1 = arith.constant 0 : i32
    return %c0_i32, %arg0, %c0_i32_0 : i32, i32, i32
  }
  func.func @transform_1(%arg0: i32) -> (i32, i32) {
    %c0_i32 = arith.constant 0 : i32
    %c0_i32_0 = arith.constant 0 : i32
    %c0_i32_1 = arith.constant 0 : i32
    return %c0_i32, %c0_i32_0 : i32, i32
  }
  func.func @transform_2(%arg0: i32) -> (i32, i32) {
    %c0_i32 = arith.constant 0 : i32
    %c0_i32_0 = arith.constant 0 : i32
    %c0_i32_1 = arith.constant 0 : i32
    return %c0_i32, %c0_i32_0 : i32, i32
  }
  func.func @transform_3(%arg0: i32) -> (i32, i32) {
    %c0_i32 = arith.constant 0 : i32
    %c0_i32_0 = arith.constant 0 : i32
    %c0_i32_1 = arith.constant 0 : i32
    return %c0_i32, %c0_i32_0 : i32, i32
  }
  func.func @transform_4(%arg0: i32) -> (i32, i32) {
    %c0_i32 = arith.constant 0 : i32
    %c0_i32_0 = arith.constant 0 : i32
    %c0_i32_1 = arith.constant 0 : i32
    return %c0_i32, %c0_i32_0 : i32, i32
  }
  func.func @transform_5(%arg0: i32) -> (i32, i32) {
    %c0_i32 = arith.constant 0 : i32
    %c0_i32_0 = arith.constant 0 : i32
    %c0_i32_1 = arith.constant 0 : i32
    return %c0_i32, %c0_i32_0 : i32, i32
  }
  func.func @transform_6(%arg0: i32) -> (i32, i32) {
    %c0_i32 = arith.constant 0 : i32
    %c0_i32_0 = arith.constant 0 : i32
    %c0_i32_1 = arith.constant 0 : i32
    return %c0_i32, %c0_i32_0 : i32, i32
  }
  func.func @transform_7(%arg0: i32) -> (i32, i32) {
    %c0_i32 = arith.constant 0 : i32
    %c0_i32_0 = arith.constant 0 : i32
    return %arg0, %c0_i32 : i32, i32
  }
}

</mosaic_0001>

<bundles_post_ra>
// kernel: cnn_forward.4
= control target key start
LH: loop header
LB: loop body
LE: loop exit
PB: predicated region body
PF: predicated region fallthrough
CT: control target
= control target key end

     0   :  { %s1093_s12 = smov 0   ;;  %s1095_s13 = smov 0   ;;  %s1434_s0 = inlined_call_operand.vmem [shape: f32[4,64,288], index: 0, kind: input, shape index: {}]   ;;  %s1435_s1 = inlined_call_operand.vmem [shape: f32[288,64], index: 1, kind: input, shape index: {}]   ;;  %s1436_s2 = inlined_call_operand.vmem [shape: f32[1,64], index: 2, kind: input, shape index: {}]   ;;  %s1437_s3 = inlined_call_operand.vmem [shape: f32[64,64], index: 3, kind: output, shape index: {}]  }
   0x1   :  { %s1097_s14 = smov 0  }
   0x2 LB: > { %s805_s15 = sadd.s32 4294967295, %s1071_s14   ;;  %s1110_s16 = sadd.s32 1, %s1071_s14   ;;  %s1071_s14 = sphi %s1097_s14, %s1440_s14   ;;  %s1067_s13 = sphi %s1095_s13, %s1439_s13   ;;  %s1063_s12 = sphi %s1093_s12, %s1438_s12  }
   0x3   : > { %s17_s17 = ssub.s32 %s1071_s14, %s1110_s16  ;;  %s20_s18 = sadd.s32 1, %s1067_s13 }
   0x4   : > { %p18_p0 = scmp.eq.s32.totalorder %s17_s17, 0  ;;  %p27_p1 = scmp.ne.s32.totalorder %s1067_s13, %s1063_s12 }
   0x5   : > { %p28_p2 = scmp.eq.s32.totalorder %s1071_s14, 0  ;;  %p808_p4 = scmp.ge.s32.totalorder %s1071_s14, 2 }
   0x6   : > { %s1119_s19 = scalar_select %p18_p0, %s1067_s13, %s20_s18  }
   0x7   : > { %p29_p3 = por %p28_p2, %p27_p1  ;;  %127 = sbr.rel (%p808_p4) target bundleno = 43 (0x2b), region = 24 }
   0xe   : > { %130 = sbr.rel (!%p29_p3) target bundleno = 43 (0x2b), region = 28  ;;  %s132_s20 = sand.u32 (%p29_p3), 1, %s1067_s13  }
   0xf   : > { %s1023_s21 = smul.u32 (%p29_p3), 96, %s1071_s14 }
  0x10   : > { %s1022_s22 = smul.u32 (%p29_p3), 384, %s132_s20 }
  0x11   : > { %s1127_s25 = scalar_lea.vmem (%p29_p3), %s1434_s0, %s1023_s21 }
  0x12   : > { %v151_v0 = vld [vmem:[%s1127_s25] sm:$0xff] (%p29_p3)  ;;  %v153_v1 = vld [vmem:[%s1127_s25 + $0x8] sm:$0xff] (%p29_p3)  ;;  %v155_v2 = vld [vmem:[%s1127_s25 + $0x10] sm:$0xff] (%p29_p3)  ;;  %s1132_s26 = scalar_lea.vmem (%p29_p3), [#allocation2], %s1022_s22 }
  0x13   : > { %152 = vst [vmem:[%s1132_s26] sm:$0xff] (%p29_p3), %v151_v0  ;;  %154 = vst [vmem:[%s1132_s26 + $0x8] sm:$0xff] (%p29_p3), %v153_v1  ;;  %v157_v3 = vld [vmem:[%s1127_s25 + $0x18] sm:$0xff] (%p29_p3)  ;;  %v159_v4 = vld [vmem:[%s1127_s25 + $0x20] sm:$0xff] (%p29_p3) }
  0x14   : > { %156 = vst [vmem:[%s1132_s26 + $0x10] sm:$0xff] (%p29_p3), %v155_v2  ;;  %v161_v5 = vld [vmem:[%s1127_s25 + $0x28] sm:$0xff] (%p29_p3)  ;;  %158 = vst [vmem:[%s1132_s26 + $0x18] sm:$0xff] (%p29_p3), %v157_v3  ;;  %v163_v6 = vld [vmem:[%s1127_s25 + $0x30] sm:$0xff] (%p29_p3) }
  0x15   : > { %160 = vst [vmem:[%s1132_s26 + $0x20] sm:$0xff] %v159_v4  ;;  %162 = vst [vmem:[%s1132_s26 + $0x28] sm:$0xff] %v161_v5  ;;  %v165_v7 = vld [vmem:[%s1127_s25 + $0x38] sm:$0xff]  ;;  %v167_v8 = vld [vmem:[%s1127_s25 + $0x40] sm:$0xff] }
  0x16   : > { %164 = vst [vmem:[%s1132_s26 + $0x30] sm:$0xff] %v163_v6  ;;  %166 = vst [vmem:[%s1132_s26 + $0x38] sm:$0xff] %v165_v7  ;;  %v169_v9 = vld [vmem:[%s1127_s25 + $0x48] sm:$0xff]  ;;  %v171_v10 = vld [vmem:[%s1127_s25 + $0x50] sm:$0xff] }
  0x17   : > { %168 = vst [vmem:[%s1132_s26 + $0x40] sm:$0xff] %v167_v8  ;;  %v173_v11 = vld [vmem:[%s1127_s25 + $0x58] sm:$0xff]  ;;  %170 = vst [vmem:[%s1132_s26 + $0x48] sm:$0xff] %v169_v9  ;;  %v175_v12 = vld [vmem:[%s1127_s25 + $0xc0] sm:$0xff] }
  0x18   : > { %172 = vst [vmem:[%s1132_s26 + $0x50] sm:$0xff] %v171_v10  ;;  %174 = vst [vmem:[%s1132_s26 + $0x58] sm:$0xff] %v173_v11  ;;  %v177_v13 = vld [vmem:[%s1127_s25 + $0xc8] sm:$0xff]  ;;  %v179_v14 = vld [vmem:[%s1127_s25 + $0xd0] sm:$0xff] }
  0x19   : > { %176 = vst [vmem:[%s1132_s26 + $0x60] sm:$0xff] %v175_v12  ;;  %178 = vst [vmem:[%s1132_s26 + $0x68] sm:$0xff] %v177_v13  ;;  %v181_v15 = vld [vmem:[%s1127_s25 + $0xd8] sm:$0xff]  ;;  %v183_v16 = vld [vmem:[%s1127_s25 + $0xe0] sm:$0xff] }
  0x1a   : > { %180 = vst [vmem:[%s1132_s26 + $0x70] sm:$0xff] %v179_v14  ;;  %v185_v17 = vld [vmem:[%s1127_s25 + $0xe8] sm:$0xff]  ;;  %182 = vst [vmem:[%s1132_s26 + $0x78] sm:$0xff] %v181_v15  ;;  %v187_v18 = vld [vmem:[%s1127_s25 + $0xf0] sm:$0xff] }
  0x1b   : > { %184 = vst [vmem:[%s1132_s26 + $0x80] sm:$0xff] %v183_v16  ;;  %186 = vst [vmem:[%s1132_s26 + $0x88] sm:$0xff] %v185_v17  ;;  %v189_v19 = vld [vmem:[%s1127_s25 + $0xf8] sm:$0xff]  ;;  %v191_v20 = vld [vmem:[%s1127_s25 + $0x100] sm:$0xff] }
  0x1c   : > { %188 = vst [vmem:[%s1132_s26 + $0x90] sm:$0xff] %v187_v18  ;;  %190 = vst [vmem:[%s1132_s26 + $0x98] sm:$0xff] %v189_v19  ;;  %v193_v21 = vld [vmem:[%s1127_s25 + $0x108] sm:$0xff]  ;;  %v195_v22 = vld [vmem:[%s1127_s25 + $0x110] sm:$0xff] }
  0x1d   : > { %192 = vst [vmem:[%s1132_s26 + $0xa0] sm:$0xff] %v191_v20  ;;  %v197_v23 = vld [vmem:[%s1127_s25 + $0x118] sm:$0xff]  ;;  %194 = vst [vmem:[%s1132_s26 + $0xa8] sm:$0xff] %v193_v21  ;;  %v199_v24 = vld [vmem:[%s1127_s25 + $0x180] sm:$0xff] }
  0x1e   : > { %196 = vst [vmem:[%s1132_s26 + $0xb0] sm:$0xff] %v195_v22  ;;  %198 = vst [vmem:[%s1132_s26 + $0xb8] sm:$0xff] %v197_v23  ;;  %v201_v25 = vld [vmem:[%s1127_s25 + $0x188] sm:$0xff]  ;;  %v203_v26 = vld [vmem:[%s1127_s25 + $0x190] sm:$0xff] }
  0x1f   : > { %200 = vst [vmem:[%s1132_s26 + $0xc0] sm:$0xff] %v199_v24  ;;  %202 = vst [vmem:[%s1132_s26 + $0xc8] sm:$0xff] %v201_v25  ;;  %v205_v27 = vld [vmem:[%s1127_s25 + $0x198] sm:$0xff]  ;;  %v207_v28 = vld [vmem:[%s1127_s25 + $0x1a0] sm:$0xff] }
  0x20   : > { %204 = vst [vmem:[%s1132_s26 + $0xd0] sm:$0xff] %v203_v26  ;;  %v209_v29 = vld [vmem:[%s1127_s25 + $0x1a8] sm:$0xff]  ;;  %206 = vst [vmem:[%s1132_s26 + $0xd8] sm:$0xff] %v205_v27  ;;  %v211_v30 = vld [vmem:[%s1127_s25 + $0x1b0] sm:$0xff] }
  0x21   : > { %208 = vst [vmem:[%s1132_s26 + $0xe0] sm:$0xff] %v207_v28  ;;  %210 = vst [vmem:[%s1132_s26 + $0xe8] sm:$0xff] %v209_v29  ;;  %v213_v31 = vld [vmem:[%s1127_s25 + $0x1b8] sm:$0xff]  ;;  %v215_v32 = vld [vmem:[%s1127_s25 + $0x1c0] sm:$0xff] }
  0x22   : > { %212 = vst [vmem:[%s1132_s26 + $0xf0] sm:$0xff] %v211_v30  ;;  %214 = vst [vmem:[%s1132_s26 + $0xf8] sm:$0xff] %v213_v31  ;;  %v217_v33 = vld [vmem:[%s1127_s25 + $0x1c8] sm:$0xff]  ;;  %v219_v34 = vld [vmem:[%s1127_s25 + $0x1d0] sm:$0xff] }
  0x23   : > { %216 = vst [vmem:[%s1132_s26 + $0x100] sm:$0xff] %v215_v32  ;;  %v221_v35 = vld [vmem:[%s1127_s25 + $0x1d8] sm:$0xff]  ;;  %218 = vst [vmem:[%s1132_s26 + $0x108] sm:$0xff] %v217_v33  ;;  %v223_v36 = vld [vmem:[%s1127_s25 + $0x240] sm:$0xff] }
  0x24   : > { %220 = vst [vmem:[%s1132_s26 + $0x110] sm:$0xff] %v219_v34  ;;  %222 = vst [vmem:[%s1132_s26 + $0x118] sm:$0xff] %v221_v35  ;;  %v225_v37 = vld [vmem:[%s1127_s25 + $0x248] sm:$0xff]  ;;  %v227_v38 = vld [vmem:[%s1127_s25 + $0x250] sm:$0xff] }
  0x25   : > { %224 = vst [vmem:[%s1132_s26 + $0x120] sm:$0xff] %v223_v36  ;;  %226 = vst [vmem:[%s1132_s26 + $0x128] sm:$0xff] %v225_v37  ;;  %v229_v39 = vld [vmem:[%s1127_s25 + $0x258] sm:$0xff]  ;;  %v231_v40 = vld [vmem:[%s1127_s25 + $0x260] sm:$0xff] }
  0x26   : > { %228 = vst [vmem:[%s1132_s26 + $0x130] sm:$0xff] %v227_v38  ;;  %v233_v41 = vld [vmem:[%s1127_s25 + $0x268] sm:$0xff]  ;;  %230 = vst [vmem:[%s1132_s26 + $0x138] sm:$0xff] %v229_v39  ;;  %v235_v42 = vld [vmem:[%s1127_s25 + $0x270] sm:$0xff] }
  0x27   : > { %232 = vst [vmem:[%s1132_s26 + $0x140] sm:$0xff] %v231_v40  ;;  %234 = vst [vmem:[%s1132_s26 + $0x148] sm:$0xff] %v233_v41  ;;  %v237_v43 = vld [vmem:[%s1127_s25 + $0x278] sm:$0xff]  ;;  %v239_v44 = vld [vmem:[%s1127_s25 + $0x280] sm:$0xff] }
  0x28   : > { %236 = vst [vmem:[%s1132_s26 + $0x150] sm:$0xff] %v235_v42  ;;  %238 = vst [vmem:[%s1132_s26 + $0x158] sm:$0xff] %v237_v43  ;;  %v241_v45 = vld [vmem:[%s1127_s25 + $0x288] sm:$0xff]  ;;  %v243_v46 = vld [vmem:[%s1127_s25 + $0x290] sm:$0xff] }
  0x29   : > { %240 = vst [vmem:[%s1132_s26 + $0x160] sm:$0xff] %v239_v44  ;;  %v245_v47 = vld [vmem:[%s1127_s25 + $0x298] sm:$0xff]  ;;  %242 = vst [vmem:[%s1132_s26 + $0x168] sm:$0xff] %v241_v45 }
  0x2a   : > { %244 = vst [vmem:[%s1132_s26 + $0x170] sm:$0xff] %v243_v46  ;;  %246 = vst [vmem:[%s1132_s26 + $0x178] sm:$0xff] %v245_v47 }
  0x2b PF: > { %p812_p5 = scmp.ge.s32.totalorder %s1071_s14, 1  ;;  %p251_p6 = scmp.lt.s32.totalorder %s1071_s14, 3 }
  0x2d   : > { %p252_p7 = pnand %p812_p5, %p251_p6 }
  0x2e   : > { %v304_v48 = vld [vmem:[%s1435_s1 + $0x80] sm:$0xff] (!%p252_p7)  ;;  %v305_v49 = vld [vmem:[%s1435_s1 + $0x88] sm:$0xff] (!%p252_p7)  ;;  %s258_s6 = sand.u32 (!%p252_p7), 1, %s1063_s12   ;;  %v306_v53 = vld [vmem:[%s1435_s1 + $0x90] sm:$0xff] (!%p252_p7)  ;;  %vm372_vm0 = vcmask (!%p252_p7), 261120   ;;  %vm738_vm1 = vcmask (!%p252_p7), 523264  }
  0x2f   : > { %255 = sbr.rel (%p252_p7) target bundleno = 351 (0x15f), region = 51  ;;  %v288_v50 = vld [vmem:[%s1435_s1] sm:$0xff] (!%p252_p7)  ;;  %v966_v51 = vpack.c.bf16 (!%p252_p7), %v305_v49, %v304_v48  ;;  %v289_v52 = vld [vmem:[%s1435_s1 + $0x8] sm:$0xff] (!%p252_p7)  ;;  %v307_v54 = vld [vmem:[%s1435_s1 + $0x98] sm:$0xff] (!%p252_p7) }
  0x30   : > { %v968_v55 = vpack.c.bf16 (!%p252_p7), %v289_v52, %v288_v50  ;;  %v970_v56 = vpack.c.bf16 (!%p252_p7), %v307_v54, %v306_v53  ;;  %v290_v57 = vld [vmem:[%s1435_s1 + $0x10] sm:$0xff] (!%p252_p7)  ;;  %v291_v58 = vld [vmem:[%s1435_s1 + $0x18] sm:$0xff] (!%p252_p7)  ;;  %v308_v59 = vld [vmem:[%s1435_s1 + $0xa0] sm:$0xff] (!%p252_p7)  ;;  %s1024_s26 = smul.u32 (!%p252_p7), 384, %s258_s6 }
  0x31   : > { %967 = vmatprep.subr.bf16.mxu0 (!%p252_p7), %v966_v51  ;;  %1006 = vmatprep.subr.bf16.mxu1 (!%p252_p7), %v966_v51  ;;  %v309_v60 = vld [vmem:[%s1435_s1 + $0xa8] sm:$0xff] (!%p252_p7)  ;;  %v972_v61 = vpack.c.bf16 (!%p252_p7), %v291_v58, %v290_v57  ;;  %v292_v63 = vld [vmem:[%s1435_s1 + $0x20] sm:$0xff] (!%p252_p7)  ;;  %v310_v1 = vld [vmem:[%s1435_s1 + $0xb0] sm:$0xff] (!%p252_p7) }
  0x32   : > { %969 = vmatpush3.bf16.msra.mxu0 (!%p252_p7), %v968_v55  ;;  %1014 = vmatpush3.bf16.msra.mxu1 (!%p252_p7), %v968_v55  ;;  %v974_v62 = vpack.c.bf16 (!%p252_p7), %v309_v60, %v308_v59  ;;  %v293_v0 = vld [vmem:[%s1435_s1 + $0x28] sm:$0xff] (!%p252_p7)  ;;  %v311_v2 = vld [vmem:[%s1435_s1 + $0xb8] sm:$0xff] (!%p252_p7)  ;;  %v294_v5 = vld [vmem:[%s1435_s1 + $0x30] sm:$0xff] (!%p252_p7)  ;;  %s1284_s21 = scalar_lea.vmem (!%p252_p7), [#allocation2], %s1024_s26 }
  0x33   : > { %971 = vmatprep.subr.bf16.mxu0 (!%p252_p7), %v970_v56  ;;  %1007 = vmatprep.subr.bf16.mxu1 (!%p252_p7), %v970_v56  ;;  %v976_v3 = vpack.c.bf16 (!%p252_p7), %v293_v0, %v292_v63  ;;  %v978_v4 = vpack.c.bf16 (!%p252_p7), %v311_v2, %v310_v1  ;;  %v295_v6 = vld [vmem:[%s1435_s1 + $0x38] sm:$0xff] (!%p252_p7)  ;;  %v312_v7 = vld [vmem:[%s1435_s1 + $0xc0] sm:$0xff] (!%p252_p7)  ;;  %v313_v8 = vld [vmem:[%s1435_s1 + $0xc8] sm:$0xff] (!%p252_p7) }
  0x34   : > { %v325_v9 = vld [vmem:[%s1284_s21 + $0x8] sm:$0xff] (!%p252_p7)  ;;  %v980_v11 = vpack.c.bf16 (!%p252_p7), %v295_v6, %v294_v5  ;;  %v982_v12 = vpack.c.bf16 (!%p252_p7), %v313_v8, %v312_v7  ;;  %v296_v13 = vld [vmem:[%s1435_s1 + $0x40] sm:$0xff] (!%p252_p7)  ;;  %v314_v15 = vld [vmem:[%s1435_s1 + $0xd0] sm:$0xff] (!%p252_p7) }
  0x35   : > { %485 = vmatprep.mubr.f32.mxu0 (!%p252_p7), %v325_v9  ;;  %v361_v10 = vld [vmem:[%s1284_s21 + $0x128] sm:$0xff] (!%p252_p7)  ;;  %v315_v16 = vld [vmem:[%s1435_s1 + $0xd8] sm:$0xff] (!%p252_p7)  ;;  %v298_v19 = vld [vmem:[%s1435_s1 + $0x50] sm:$0xff] (!%p252_p7) }
  0x36   : > { %973 = vmatpush3.bf16.msra.mxu0 %v972_v61  ;;  %1015 = vmatpush3.bf16.msra.mxu1 %v972_v61  ;;  %v297_v14 = vld [vmem:[%s1435_s1 + $0x48] sm:$0xff]  ;;  %v986_v18 = vpack.c.bf16 %v315_v16, %v314_v15  ;;  %v299_v20 = vld [vmem:[%s1435_s1 + $0x58] sm:$0xff]  ;;  %v316_v21 = vld [vmem:[%s1435_s1 + $0xe0] sm:$0xff] }
  0x37   : > { %975 = vmatprep.subr.bf16.mxu0 %v974_v62  ;;  %1008 = vmatprep.subr.bf16.mxu1 %v974_v62  ;;  %v984_v17 = vpack.c.bf16 %v297_v14, %v296_v13  ;;  %v317_v22 = vld [vmem:[%s1435_s1 + $0xe8] sm:$0xff]  ;;  %v988_v23 = vpack.c.bf16 %v299_v20, %v298_v19  ;;  %v300_v25 = vld [vmem:[%s1435_s1 + $0x60] sm:$0xff]  ;;  %v318_v27 = vld [vmem:[%s1435_s1 + $0xf0] sm:$0xff] }
  0x38   : > { %545 = vmatprep.mubr.f32.mxu1 %v361_v10  ;;  %v990_v24 = vpack.c.bf16 %v317_v22, %v316_v21  ;;  %v301_v26 = vld [vmem:[%s1435_s1 + $0x68] sm:$0xff]  ;;  %v319_v28 = vld [vmem:[%s1435_s1 + $0xf8] sm:$0xff]  ;;  %v302_v31 = vld [vmem:[%s1435_s1 + $0x70] sm:$0xff] }
  0x39   : > { %v992_v29 = vpack.c.bf16 %v301_v26, %v300_v25  ;;  %v994_v30 = vpack.c.bf16 %v319_v28, %v318_v27  ;;  %v303_v32 = vld [vmem:[%s1435_s1 + $0x78] sm:$0xff]  ;;  %v320_v33 = vld [vmem:[%s1435_s1 + $0x100] sm:$0xff]  ;;  %v321_v34 = vld [vmem:[%s1435_s1 + $0x108] sm:$0xff] }
  0x3a   : > { %977 = vmatpush3.bf16.msra.mxu0 %v976_v3  ;;  %1016 = vmatpush3.bf16.msra.mxu1 %v976_v3  ;;  %v996_v35 = vpack.c.bf16 %v303_v32, %v302_v31  ;;  %v998_v36 = vpack.c.bf16 %v321_v34, %v320_v33  ;;  %v322_v37 = vld [vmem:[%s1435_s1 + $0x110] sm:$0xff]  ;;  %v323_v38 = vld [vmem:[%s1435_s1 + $0x118] sm:$0xff]  ;;  %v324_v39 = vld [vmem:[%s1284_s21] sm:$0xff] }
  0x3b   : > { %979 = vmatprep.subr.bf16.mxu0 %v978_v4  ;;  %1009 = vmatprep.subr.bf16.mxu1 %v978_v4  ;;  %v360_v40 = vld [vmem:[%s1284_s21 + $0x120] sm:$0xff]  ;;  %v1002_v42 = vpack.c.bf16 %v323_v38, %v322_v37  ;;  %v327_v44 = vld [vmem:[%s1284_s21 + $0x18] sm:$0xff]  ;;  %v330_v48 = vld [vmem:[%s1284_s21 + $0x30] sm:$0xff] }
  0x3c   : > { %v328_v41 = vld [vmem:[%s1284_s21 + $0x20] sm:$0xff]  ;;  %v363_v45 = vld [vmem:[%s1284_s21 + $0x138] sm:$0xff]  ;;  %v366_v49 = vld [vmem:[%s1284_s21 + $0x150] sm:$0xff] }
  0x3d   : > { %v364_v43 = vld [vmem:[%s1284_s21 + $0x140] sm:$0xff]  ;;  %v331_v46 = vld [vmem:[%s1284_s21 + $0x38] sm:$0xff]  ;;  %v334_v50 = vld [vmem:[%s1284_s21 + $0x50] sm:$0xff] }
  0x3e   : > { %981 = vmatpush3.bf16.msra.mxu0 %v980_v11  ;;  %1017 = vmatpush3.bf16.msra.mxu1 %v980_v11  ;;  %v367_v47 = vld [vmem:[%s1284_s21 + $0x158] sm:$0xff]  ;;  %v370_v51 = vld [vmem:[%s1284_s21 + $0x170] sm:$0xff]  ;;  %v333_v52 = vld [vmem:[%s1284_s21 + $0x48] sm:$0xff] }
  0x3f   : > { %983 = vmatprep.subr.bf16.mxu0 %v982_v12  ;;  %1010 = vmatprep.subr.bf16.mxu1 %v982_v12  ;;  %v369_v53 = vld [vmem:[%s1284_s21 + $0x168] sm:$0xff]  ;;  %v326_v55 = vld [vmem:[%s1284_s21 + $0x10] sm:$0xff]  ;;  %v336_v56 = vld [vmem:[%s1284_s21 + $0x60] sm:$0xff] }
  0x40   : > { %v337_v54 = vld [vmem:[%s1284_s21 + $0x68] sm:$0xff]  ;;  %v340_v58 = vld [vmem:[%s1284_s21 + $0x80] sm:$0xff]  ;;  %v339_v60 = vld [vmem:[%s1284_s21 + $0x78] sm:$0xff] }
  0x41   : > { %v329_v57 = vld [vmem:[%s1284_s21 + $0x28] sm:$0xff]  ;;  %v332_v59 = vld [vmem:[%s1284_s21 + $0x40] sm:$0xff]  ;;  %v335_v61 = vld [vmem:[%s1284_s21 + $0x58] sm:$0xff] }
  0x42   : > { %985 = vmatpush3.bf16.msra.mxu0 %v984_v17  ;;  %1018 = vmatpush3.bf16.msra.mxu1 %v984_v17  ;;  %v343_v62 = vld [vmem:[%s1284_s21 + $0x98] sm:$0xff]  ;;  %v338_v63 = vld [vmem:[%s1284_s21 + $0x70] sm:$0xff]  ;;  %v341_v1 = vld [vmem:[%s1284_s21 + $0x88] sm:$0xff] }
  0x43   : > { %987 = vmatprep.subr.bf16.mxu0 %v986_v18  ;;  %1011 = vmatprep.subr.bf16.mxu1 %v986_v18  ;;  %v342_v0 = vld [vmem:[%s1284_s21 + $0x90] sm:$0xff]  ;;  %v344_v3 = vld [vmem:[%s1284_s21 + $0xa0] sm:$0xff]  ;;  %v345_v4 = vld [vmem:[%s1284_s21 + $0xa8] sm:$0xff] }
  0x44   : > { %v346_v2 = vld [vmem:[%s1284_s21 + $0xb0] sm:$0xff]  ;;  %v347_v5 = vld [vmem:[%s1284_s21 + $0xb8] sm:$0xff]  ;;  %v349_v6 = vld [vmem:[%s1284_s21 + $0xc8] sm:$0xff] }
  0x45   : > { %v350_v7 = vld [vmem:[%s1284_s21 + $0xd0] sm:$0xff]  ;;  %v348_v8 = vld [vmem:[%s1284_s21 + $0xc0] sm:$0xff]  ;;  %v353_v9 = vld [vmem:[%s1284_s21 + $0xe8] sm:$0xff] }
  0x46   : > { %989 = vmatpush3.bf16.msra.mxu0 %v988_v23  ;;  %1019 = vmatpush3.bf16.msra.mxu1 %v988_v23  ;;  %v352_v10 = vld [vmem:[%s1284_s21 + $0xe0] sm:$0xff]  ;;  %v351_v12 = vld [vmem:[%s1284_s21 + $0xd8] sm:$0xff]  ;;  %v362_v15 = vld [vmem:[%s1284_s21 + $0x130] sm:$0xff] }
  0x47   : > { %991 = vmatprep.subr.bf16.mxu0 %v990_v24  ;;  %1012 = vmatprep.subr.bf16.mxu1 %v990_v24  ;;  %v356_v11 = vld [vmem:[%s1284_s21 + $0x100] sm:$0xff]  ;;  %v359_v13 = vld [vmem:[%s1284_s21 + $0x118] sm:$0xff]  ;;  %v354_v16 = vld [vmem:[%s1284_s21 + $0xf0] sm:$0xff] }
  0x48   : > { %v355_v14 = vld [vmem:[%s1284_s21 + $0xf8] sm:$0xff]  ;;  %v365_v17 = vld [vmem:[%s1284_s21 + $0x148] sm:$0xff]  ;;  %v358_v18 = vld [vmem:[%s1284_s21 + $0x110] sm:$0xff] }
  0x49   : > { %v368_v19 = vld [vmem:[%s1284_s21 + $0x160] sm:$0xff]  ;;  %v357_v20 = vld [vmem:[%s1284_s21 + $0x108] sm:$0xff]  ;;  %v371_v21 = vld [vmem:[%s1284_s21 + $0x178] sm:$0xff]  ;;  %s813_s21 = sshll.u32 %s805_s15, 2 }
  0x4a   : > { %993 = vmatpush3.bf16.msra.mxu0 %v992_v29  ;;  %1020 = vmatpush3.bf16.msra.mxu1 %v992_v29  ;;  %p283_p8 = scmp.lt.s32.totalorder %s813_s21, 7 }
  0x4b   : > { %995 = vmatprep.subr.bf16.mxu0 %v994_v30  ;;  %1013 = vmatprep.subr.bf16.mxu1 %v994_v30 }
  0x4c   : > { %s1442_s21 = smov (!%p283_p8, %s813_s21), 7 }
  0x4d   : > { %s814_s10 = sshll.u32 %s1442_s21, 3 }
  0x4e   : > { %997 = vmatpush3.bf16.msra.mxu0 %v996_v35  ;;  %1021 = vmatpush3.bf16.msra.mxu1 %v996_v35  ;;  %s286_s18 = scalar_lea.vmem %s1437_s3, %s814_s10 }
  0x4f   : > { %999 = vmatprep.subr.bf16.mxu1 %v998_v36 }
  0x51   : > { %486 = vmatmul.mubr.f32.vlgmr.msra.gmra.mrb[0].mxu0 %v324_v39  ;;  %546 = vmatmul.mubr.f32.vlgmr.msra.gmra.mrb[0].mxu1 %v360_v40 }
  0x52   : > { %1001 = vmatpush3.bf16.msra.mxu1 %v998_v36  ;;  %490 = vmatprep.mubr.f32.mxu0 %v328_v41 }
  0x53   : > { %550 = vmatprep.mubr.f32.mxu1 %v364_v43  ;;  %1003 = vmatprep.subr.bf16.mxu1 %v1002_v42 }
  0x55   : > { %491 = vmatmul.mubr.f32.gmra.mrb[2].mxu0 %v327_v44  ;;  %551 = vmatmul.mubr.f32.gmra.mrb[2].mxu1 %v363_v45 }
  0x56   : > { %495 = vmatprep.mubr.f32.mxu0 %v331_v46  ;;  %555 = vmatprep.mubr.f32.mxu1 %v367_v47 }
  0x57   : > { %1005 = vmatpush3.bf16.msra.mxu1 %v1002_v42 }
  0x59   : > { %496 = vmatmul.mubr.f32.gmra.mrb[4].mxu0 %v330_v48  ;;  %556 = vmatmul.mubr.f32.gmra.mrb[4].mxu1 %v366_v49 }
  0x5a   : > { %500 = vmatprep.mubr.f32.mxu0 %v334_v50  ;;  %560 = vmatprep.mubr.f32.mxu1 %v370_v51 }
  0x5d   : > { %501 = vmatmul.mubr.f32.gmra.mrb[6].mxu0 %v333_v52  ;;  %561 = vmatmul.mubr.f32.gmra.mrb[6].mxu1 %v369_v53 }
  0x5e   : > { %505 = vmatprep.mubr.f32.mxu0 %v337_v54  ;;  %942 = vmatprep.mubr.msk.f32.mxu1 %vm372_vm0, %v326_v55 }
  0x61   : > { %506 = vmatmul.mubr.f32.gmra.mrb[8].mxu0 %v336_v56  ;;  %943 = vmatmul.mubr.msk.f32.vlgmr.msra.gmra.mrb[8].mxu1 %vm372_vm0, %v329_v57 }
  0x62   : > { %510 = vmatprep.mubr.f32.mxu0 %v340_v58  ;;  %945 = vmatprep.mubr.msk.f32.mxu1 %vm372_vm0, %v332_v59 }
  0x65   : > { %511 = vmatmul.mubr.f32.gmra.mrb[10].mxu0 %v339_v60  ;;  %946 = vmatmul.mubr.msk.f32.gmra.mrb[10].mxu1 %vm372_vm0, %v335_v61 }
  0x66   : > { %515 = vmatprep.mubr.f32.mxu0 %v343_v62  ;;  %948 = vmatprep.mubr.msk.f32.mxu1 %vm372_vm0, %v338_v63 }
  0x69   : > { %516 = vmatmul.mubr.f32.gmra.mrb[12].mxu0 %v342_v0  ;;  %949 = vmatmul.mubr.msk.f32.gmra.mrb[12].mxu1 %vm372_vm0, %v341_v1 }
  0x6a   : > { %520 = vmatprep.mubr.f32.mxu0 %v346_v2  ;;  %951 = vmatprep.mubr.msk.f32.mxu1 %vm372_vm0, %v344_v3 }
  0x6d   : > { %521 = vmatmul.mubr.f32.gmra.mrb[14].mxu0 %v345_v4  ;;  %952 = vmatmul.mubr.msk.f32.gmra.mrb[14].mxu1 %vm372_vm0, %v347_v5 }
  0x6e   : > { %525 = vmatprep.mubr.f32.mxu0 %v349_v6  ;;  %954 = vmatprep.mubr.msk.f32.mxu1 %vm372_vm0, %v350_v7 }
  0x71   : > { %526 = vmatmul.mubr.f32.gmra.mrb[16].mxu0 %v348_v8  ;;  %955 = vmatmul.mubr.msk.f32.gmra.mrb[16].mxu1 %vm372_vm0, %v353_v9 }
  0x72   : > { %530 = vmatprep.mubr.f32.mxu0 %v352_v10  ;;  %957 = vmatprep.mubr.msk.f32.mxu1 %vm372_vm0, %v356_v11 }
  0x75   : > { %531 = vmatmul.mubr.f32.gmra.mrb[18].mxu0 %v351_v12  ;;  %958 = vmatmul.mubr.msk.f32.gmra.mrb[18].mxu1 %vm372_vm0, %v359_v13 }
  0x76   : > { %535 = vmatprep.mubr.f32.mxu0 %v355_v14  ;;  %960 = vmatprep.mubr.msk.f32.mxu1 %vm372_vm0, %v362_v15 }
  0x79   : > { %536 = vmatmul.mubr.f32.gmra.mrb[20].mxu0 %v354_v16  ;;  %961 = vmatmul.mubr.msk.f32.gmra.mrb[20].mxu1 %vm372_vm0, %v365_v17 }
  0x7a   : > { %540 = vmatprep.mubr.f32.mxu0 %v358_v18  ;;  %963 = vmatprep.mubr.msk.f32.mxu1 %vm372_vm0, %v368_v19 }
  0x7d   : > { %541 = vmatmul.mubr.f32.gmra.mrb[22].mxu0 %v357_v20  ;;  %964 = vmatmul.mubr.msk.f32.gmra.mrb[22].mxu1 %vm372_vm0, %v371_v21 }
 0x124   : > { %v866_v22 = vpop.f32.mrb[0].mxu0  ;;  %v902_v23 = vpop.f32.mrb[0].mxu1 }
 0x125   : > { %v867_v24 = vpop.f32.mrb[1].mxu0  ;;  %v903_v25 = vpop.f32.mrb[1].mxu1 }
 0x126   : > { %v868_v26 = vadd.f32 %v867_v24, %v866_v22  ;;  %v1404_v27 = vadd.f32 %v903_v25, %v902_v23 }
 0x128   : > { %v869_v28 = vpop.f32.mrb[2].mxu0  ;;  %v905_v29 = vpop.f32.mrb[2].mxu1 }
 0x129   : > { %v870_v30 = vpop.f32.mrb[3].mxu0  ;;  %v906_v31 = vpop.f32.mrb[3].mxu1 }
 0x12a   : > { %v871_v32 = vadd.f32 %v870_v30, %v869_v28  ;;  %v907_v33 = vadd.f32 %v906_v31, %v905_v29 }
 0x12c   : > { %v872_v34 = vpop.f32.mrb[4].mxu0  ;;  %v908_v35 = vpop.f32.mrb[4].mxu1 }
 0x12d   : > { %v873_v36 = vpop.f32.mrb[5].mxu0  ;;  %v909_v37 = vpop.f32.mrb[5].mxu1 }
 0x12e   : > { %v874_v38 = vadd.f32 %v873_v36, %v872_v34  ;;  %v1406_v39 = vadd.f32 %v909_v37, %v908_v35  ;;  %v831_v36 = vld [vmem:[%s1436_s2] ss:$0 sm:$0xff] }
 0x130   : > { %v875_v40 = vpop.f32.mrb[6].mxu0  ;;  %v911_v41 = vpop.f32.mrb[6].mxu1 }
 0x131   : > { %v876_v42 = vpop.f32.mrb[7].mxu0  ;;  %v912_v43 = vpop.f32.mrb[7].mxu1 }
 0x132   : > { %v877_v44 = vadd.f32 %v876_v42, %v875_v40  ;;  %v913_v45 = vadd.f32 %v912_v43, %v911_v41 }
 0x134   : > { %v878_v46 = vpop.f32.mrb[8].mxu0  ;;  %v944_v47 = vpop.f32.mrb[8].mxu1 }
 0x135   : > { %v638_v48 = vadd.f32 %v944_v47, %v871_v32  ;;  %v879_v49 = vpop.f32.mrb[9].mxu0  ;;  %v632_v50 = vpop.f32.mrb[9].mxu1 }
 0x136   : > { %v880_v51 = vadd.f32 %v879_v49, %v878_v46  ;;  %v633_v52 = vadd.f32 %v868_v26, %v632_v50 }
 0x138   : > { %v881_v53 = vpop.f32.mrb[10].mxu0  ;;  %v947_v54 = vpop.f32.mrb[10].mxu1 }
 0x139   : > { %v1408_v55 = vadd.f32 %v947_v54, %v877_v44  ;;  %v882_v56 = vpop.f32.mrb[11].mxu0  ;;  %v642_v57 = vpop.f32.mrb[11].mxu1 }
 0x13a   : > { %v883_v58 = vadd.f32 %v882_v56, %v881_v53  ;;  %v1410_v59 = vadd.f32 %v874_v38, %v642_v57 }
 0x13c   : > { %v884_v60 = vpop.f32.mrb[12].mxu0  ;;  %v950_v61 = vpop.f32.mrb[12].mxu1 }
 0x13d   : > { %v658_v62 = vadd.f32 %v950_v61, %v883_v58  ;;  %v885_v63 = vpop.f32.mrb[13].mxu0  ;;  %v652_v0 = vpop.f32.mrb[13].mxu1 }
 0x13e   : > { %v886_v1 = vadd.f32 %v885_v63, %v884_v60  ;;  %v653_v2 = vadd.f32 %v880_v51, %v652_v0 }
 0x13f   : > { %v712_v3 = vmax.f32 %v638_v48, %v658_v62 }
 0x140   : > { %v711_v4 = vmax.f32 %v633_v52, %v653_v2  ;;  %v887_v5 = vpop.f32.mrb[14].mxu0  ;;  %v953_v6 = vpop.f32.mrb[14].mxu1 }
 0x141   : > { %v888_v7 = vpop.f32.mrb[15].mxu0  ;;  %v662_v8 = vpop.f32.mrb[15].mxu1 }
 0x142   : > { %v889_v9 = vadd.f32 %v888_v7, %v887_v5  ;;  %v663_v10 = vadd.f32 %v886_v1, %v662_v8 }
 0x144   : > { %v668_v11 = vadd.f32 %v953_v6, %v889_v9  ;;  %v713_v12 = vmax.f32 %v1410_v59, %v663_v10  ;;  %v890_v13 = vpop.f32.mrb[16].mxu0  ;;  %v956_v14 = vpop.f32.mrb[16].mxu1 }
 0x145   : > { %v891_v15 = vpop.f32.mrb[17].mxu0  ;;  %v672_v16 = vpop.f32.mrb[17].mxu1 }
 0x146   : > { %v714_v17 = vmax.f32 %v1408_v55, %v668_v11  ;;  %v892_v18 = vadd.f32 %v891_v15, %v890_v13 }
 0x148   : > { %v673_v19 = vadd.f32 %v892_v18, %v672_v16  ;;  %v893_v20 = vpop.f32.mrb[18].mxu0  ;;  %v959_v21 = vpop.f32.mrb[18].mxu1 }
 0x149   : > { %v894_v22 = vpop.f32.mrb[19].mxu0  ;;  %v682_v23 = vpop.f32.mrb[19].mxu1 }
 0x14a   : > { %v895_v24 = vadd.f32 %v894_v22, %v893_v20 }
 0x14c   : > { %v678_v25 = vadd.f32 %v956_v14, %v895_v24  ;;  %v896_v26 = vpop.f32.mrb[20].mxu0  ;;  %v962_v28 = vpop.f32.mrb[20].mxu1 }
 0x14d   : > { %v698_v29 = vadd.f32 %v962_v28, %v907_v33  ;;  %v897_v30 = vpop.f32.mrb[21].mxu0  ;;  %v692_v31 = vpop.f32.mrb[21].mxu1 }
 0x14e   : > { %v898_v32 = vadd.f32 %v897_v30, %v896_v26  ;;  %v693_v34 = vadd.f32 %v1404_v27, %v692_v31 }
 0x14f   : > { %v716_v35 = vmax.f32 %v678_v25, %v698_v29 }
 0x150   : > { %v683_v37 = vadd.f32 %v898_v32, %v682_v23  ;;  %v715_v38 = vmax.f32 %v673_v19, %v693_v34  ;;  %v899_v40 = vpop.f32.mrb[22].mxu0  ;;  %v965_v41 = vpop.f32.mrb[22].mxu1 }
 0x151   : > { %v720_v42 = vmax.f32 %v712_v3, %v716_v35  ;;  %v708_v43 = vadd.f32 %v965_v41, %v913_v45  ;;  %v900_v44 = vpop.f32.mrb[23].mxu0  ;;  %v702_v46 = vpop.f32.mrb[23].mxu1 }
 0x152   : > { %v719_v33 = vmax.f32 %v711_v4, %v715_v38  ;;  %v901_v47 = vadd.f32 %v900_v44, %v899_v40  ;;  %v703_v48 = vadd.f32 %v1406_v39, %v702_v46 }
 0x153   : > { %v731_v49 = vadd.f32 %v831_v36, %v720_v42 }
 0x154   : > { %v730_v27 = vadd.f32 %v831_v36, %v719_v33  ;;  %v688_v50 = vadd.f32 %v959_v21, %v901_v47  ;;  %v717_v51 = vmax.f32 %v683_v37, %v703_v48 }
 0x155   : > { %v735_v45 = vmax.f32 %v731_v49, 0.0 }
 0x156   : > { %v734_v52 = vmax.f32 %v730_v27, 0.0  ;;  %v718_v53 = vmax.f32 %v688_v50, %v708_v43  ;;  %v721_v54 = vmax.f32 %v713_v12, %v717_v51 }
 0x157   : > { %740 = vst.msk [vmem:[%s286_s18 + $0x8] sm:$0xff] %vm738_vm1, %v735_v45 }
 0x158   : > { %739 = vst.msk [vmem:[%s286_s18] sm:$0xff] %vm738_vm1, %v734_v52  ;;  %v722_v55 = vmax.f32 %v714_v17, %v718_v53  ;;  %v732_v56 = vadd.f32 %v831_v36, %v721_v54 }
 0x15a   : > { %v733_v57 = vadd.f32 %v831_v36, %v722_v55  ;;  %v736_v58 = vmax.f32 %v732_v56, 0.0 }
 0x15c   : > { %v737_v39 = vmax.f32 %v733_v57, 0.0  ;;  %741 = vst.msk [vmem:[%s286_s18 + $0x10] sm:$0xff] %vm738_vm1, %v736_v58 }
 0x15e   : > { %742 = vst.msk [vmem:[%s286_s18 + $0x18] sm:$0xff] %vm738_vm1, %v737_v39 }
 0x15f PF: > { %p10_p9 = scmp.ge.s32.totalorder %s1110_s16, 4   ;;  %s1438_s12 = smov %s1067_s13 }
 0x160   : > { %s1439_s13 = smov %s1119_s19  ;;  %s1440_s14 = smov %s1110_s16 }
 0x161   :  { %12 = sbr.rel (!%p10_p9) target bundleno = 2 (0x2), region = 90 }

// kernel: cnn_forward.5
= control target key start
LH: loop header
LB: loop body
LE: loop exit
PB: predicated region body
PF: predicated region fallthrough
CT: control target
= control target key end

     0   :  { %vm118_vm0 = vcmask 523264   ;;  %s1966_s1 = inlined_call_operand.vmem [shape: f32[576,128], index: 1, kind: input, shape index: {}]   ;;  %s1967_s0 = inlined_call_operand.vmem [shape: f32[4,8,576], index: 0, kind: input, shape index: {}]   ;;  %s1968_s3 = inlined_call_operand.vmem [shape: f32[128,512], index: 3, kind: input, shape index: {}]   ;;  %s1969_s5 = inlined_call_operand.vmem [shape: f32[512,128], index: 5, kind: input, shape index: {}]   ;;  %s1970_s2 = inlined_call_operand.vmem [shape: f32[1,128], index: 2, kind: input, shape index: {}]   ;;  %s1971_s4 = inlined_call_operand.vmem [shape: f32[1,512], index: 4, kind: input, shape index: {}]   ;;  %s1972_s6 = inlined_call_operand.vmem [shape: f32[1,128], index: 6, kind: input, shape index: {}]   ;;  %s1973_s7 = inlined_call_operand.vmem [shape: f32[8,128], index: 7, kind: output, shape index: {}]  }
   0x1   :  { %v62_v0 = vld [vmem:[%s1966_s1 + $0x80] sm:$0xff]  ;;  %v63_v1 = vld [vmem:[%s1966_s1 + $0x88] sm:$0xff]  ;;  %v64_v11 = vld [vmem:[%s1966_s1 + $0x90] sm:$0xff] }
   0x2   :  { %v94_v2 = vld [vmem:[%s1966_s1 + $0x180] sm:$0xff]  ;;  %v1044_v3 = vpack.c.bf16 %v63_v1, %v62_v0  ;;  %v95_v4 = vld [vmem:[%s1966_s1 + $0x188] sm:$0xff]  ;;  %v65_v13 = vld [vmem:[%s1966_s1 + $0x98] sm:$0xff] }
   0x3   :  { %v46_v5 = vld [vmem:[%s1966_s1] sm:$0xff]  ;;  %v47_v6 = vld [vmem:[%s1966_s1 + $0x8] sm:$0xff]  ;;  %v1076_v7 = vpack.c.bf16 %v95_v4, %v94_v2  ;;  %v96_v14 = vld [vmem:[%s1966_s1 + $0x190] sm:$0xff]  ;;  %v1048_v16 = vpack.c.bf16 %v65_v13, %v64_v11 }
   0x4   :  { %v1046_v8 = vpack.c.bf16 %v47_v6, %v46_v5  ;;  %v78_v9 = vld [vmem:[%s1966_s1 + $0x100] sm:$0xff]  ;;  %v79_v10 = vld [vmem:[%s1966_s1 + $0x108] sm:$0xff]  ;;  %1045 = vmatprep.subr.bf16.mxu0 %v1044_v3  ;;  %v97_v15 = vld [vmem:[%s1966_s1 + $0x198] sm:$0xff] }
   0x5   :  { %v1078_v12 = vpack.c.bf16 %v79_v10, %v78_v9  ;;  %1077 = vmatprep.subr.bf16.mxu1 %v1076_v7  ;;  %v1080_v17 = vpack.c.bf16 %v97_v15, %v96_v14  ;;  %v48_v18 = vld [vmem:[%s1966_s1 + $0x10] sm:$0xff]  ;;  %v49_v19 = vld [vmem:[%s1966_s1 + $0x18] sm:$0xff]  ;;  %v66_v23 = vld [vmem:[%s1966_s1 + $0xa0] sm:$0xff] }
   0x6   :  { %1047 = vmatpush3.bf16.msra.mxu0 %v1046_v8  ;;  %v80_v20 = vld [vmem:[%s1966_s1 + $0x110] sm:$0xff]  ;;  %v1050_v21 = vpack.c.bf16 %v49_v19, %v48_v18  ;;  %v81_v22 = vld [vmem:[%s1966_s1 + $0x118] sm:$0xff]  ;;  %v67_v24 = vld [vmem:[%s1966_s1 + $0xa8] sm:$0xff] }
   0x7   :  { %1079 = vmatpush3.bf16.msra.mxu1 %v1078_v12  ;;  %1049 = vmatprep.subr.bf16.mxu0 %v1048_v16  ;;  %v1082_v25 = vpack.c.bf16 %v81_v22, %v80_v20  ;;  %v1052_v26 = vpack.c.bf16 %v67_v24, %v66_v23  ;;  %v98_v27 = vld [vmem:[%s1966_s1 + $0x1a0] sm:$0xff]  ;;  %v99_v28 = vld [vmem:[%s1966_s1 + $0x1a8] sm:$0xff]  ;;  %v68_v35 = vld [vmem:[%s1966_s1 + $0xb0] sm:$0xff] }
   0x8   :  { %1081 = vmatprep.subr.bf16.mxu1 %v1080_v17  ;;  %v50_v29 = vld [vmem:[%s1966_s1 + $0x20] sm:$0xff]  ;;  %v1084_v30 = vpack.c.bf16 %v99_v28, %v98_v27  ;;  %v51_v31 = vld [vmem:[%s1966_s1 + $0x28] sm:$0xff]  ;;  %v69_v36 = vld [vmem:[%s1966_s1 + $0xb8] sm:$0xff] }
   0x9   :  { %v82_v32 = vld [vmem:[%s1966_s1 + $0x120] sm:$0xff]  ;;  %v83_v33 = vld [vmem:[%s1966_s1 + $0x128] sm:$0xff]  ;;  %v1054_v34 = vpack.c.bf16 %v51_v31, %v50_v29  ;;  %v100_v37 = vld [vmem:[%s1966_s1 + $0x1b0] sm:$0xff]  ;;  %v1056_v39 = vpack.c.bf16 %v69_v36, %v68_v35 }
   0xa   :  { %1051 = vmatpush3.bf16.msra.mxu0 %v1050_v21  ;;  %v1086_v38 = vpack.c.bf16 %v83_v33, %v82_v32  ;;  %v101_v40 = vld [vmem:[%s1966_s1 + $0x1b8] sm:$0xff]  ;;  %v52_v41 = vld [vmem:[%s1966_s1 + $0x30] sm:$0xff]  ;;  %v70_v46 = vld [vmem:[%s1966_s1 + $0xc0] sm:$0xff] }
   0xb   :  { %1083 = vmatpush3.bf16.msra.mxu1 %v1082_v25  ;;  %1053 = vmatprep.subr.bf16.mxu0 %v1052_v26  ;;  %v53_v42 = vld [vmem:[%s1966_s1 + $0x38] sm:$0xff]  ;;  %v1088_v43 = vpack.c.bf16 %v101_v40, %v100_v37  ;;  %v84_v44 = vld [vmem:[%s1966_s1 + $0x130] sm:$0xff]  ;;  %v71_v47 = vld [vmem:[%s1966_s1 + $0xc8] sm:$0xff] }
   0xc   :  { %1085 = vmatprep.subr.bf16.mxu1 %v1084_v30  ;;  %v85_v45 = vld [vmem:[%s1966_s1 + $0x138] sm:$0xff]  ;;  %v102_v48 = vld [vmem:[%s1966_s1 + $0x1c0] sm:$0xff]  ;;  %v103_v49 = vld [vmem:[%s1966_s1 + $0x1c8] sm:$0xff]  ;;  %v1058_v50 = vpack.c.bf16 %v53_v42, %v52_v41  ;;  %v1060_v52 = vpack.c.bf16 %v71_v47, %v70_v46 }
   0xd   :  { %v1090_v51 = vpack.c.bf16 %v85_v45, %v84_v44  ;;  %v54_v53 = vld [vmem:[%s1966_s1 + $0x40] sm:$0xff]  ;;  %v55_v54 = vld [vmem:[%s1966_s1 + $0x48] sm:$0xff]  ;;  %v1092_v56 = vpack.c.bf16 %v103_v49, %v102_v48  ;;  %v72_v58 = vld [vmem:[%s1966_s1 + $0xd0] sm:$0xff] }
   0xe   :  { %1055 = vmatpush3.bf16.msra.mxu0 %v1054_v34  ;;  %v86_v55 = vld [vmem:[%s1966_s1 + $0x140] sm:$0xff]  ;;  %v87_v57 = vld [vmem:[%s1966_s1 + $0x148] sm:$0xff]  ;;  %v73_v59 = vld [vmem:[%s1966_s1 + $0xd8] sm:$0xff]  ;;  %v1062_v62 = vpack.c.bf16 %v55_v54, %v54_v53 }
   0xf   :  { %1087 = vmatpush3.bf16.msra.mxu1 %v1086_v38  ;;  %1057 = vmatprep.subr.bf16.mxu0 %v1056_v39  ;;  %v104_v60 = vld [vmem:[%s1966_s1 + $0x1d0] sm:$0xff]  ;;  %v105_v61 = vld [vmem:[%s1966_s1 + $0x1d8] sm:$0xff]  ;;  %v1094_v63 = vpack.c.bf16 %v87_v57, %v86_v55  ;;  %v1064_v0 = vpack.c.bf16 %v73_v59, %v72_v58  ;;  %v74_v6 = vld [vmem:[%s1966_s1 + $0xe0] sm:$0xff] }
  0x10   :  { %1089 = vmatprep.subr.bf16.mxu1 %v1088_v43  ;;  %v56_v1 = vld [vmem:[%s1966_s1 + $0x50] sm:$0xff]  ;;  %v57_v2 = vld [vmem:[%s1966_s1 + $0x58] sm:$0xff]  ;;  %v1096_v4 = vpack.c.bf16 %v105_v61, %v104_v60  ;;  %v75_v7 = vld [vmem:[%s1966_s1 + $0xe8] sm:$0xff] }
  0x11   :  { %v88_v3 = vld [vmem:[%s1966_s1 + $0x150] sm:$0xff]  ;;  %v89_v5 = vld [vmem:[%s1966_s1 + $0x158] sm:$0xff]  ;;  %v106_v8 = vld [vmem:[%s1966_s1 + $0x1e0] sm:$0xff]  ;;  %v1066_v10 = vpack.c.bf16 %v57_v2, %v56_v1  ;;  %v1068_v14 = vpack.c.bf16 %v75_v7, %v74_v6 }
  0x12   :  { %1059 = vmatpush3.bf16.msra.mxu0 %v1058_v50  ;;  %v107_v9 = vld [vmem:[%s1966_s1 + $0x1e8] sm:$0xff]  ;;  %v58_v11 = vld [vmem:[%s1966_s1 + $0x60] sm:$0xff]  ;;  %v1098_v13 = vpack.c.bf16 %v89_v5, %v88_v3  ;;  %v29_v17 = vld [vmem:[%s1967_s0 + $0x18] sm:$0xff] }
  0x13   :  { %1091 = vmatpush3.bf16.msra.mxu1 %v1090_v51  ;;  %1061 = vmatprep.subr.bf16.mxu0 %v1060_v52  ;;  %v59_v12 = vld [vmem:[%s1966_s1 + $0x68] sm:$0xff]  ;;  %v90_v15 = vld [vmem:[%s1966_s1 + $0x160] sm:$0xff]  ;;  %v1100_v18 = vpack.c.bf16 %v107_v9, %v106_v8  ;;  %v76_v20 = vld [vmem:[%s1966_s1 + $0xf0] sm:$0xff] }
  0x14   :  { %1093 = vmatprep.subr.bf16.mxu1 %v1092_v56  ;;  %v27_v16 = vld [vmem:[%s1967_s0 + $0x8] sm:$0xff]  ;;  %v77_v21 = vld [vmem:[%s1966_s1 + $0xf8] sm:$0xff]  ;;  %v108_v22 = vld [vmem:[%s1966_s1 + $0x1f0] sm:$0xff]  ;;  %280 = vmatprep.mubr.f32.mxu1 %v29_v17  ;;  %v1070_v24 = vpack.c.bf16 %v59_v12, %v58_v11 }
  0x15   :  { %v91_v19 = vld [vmem:[%s1966_s1 + $0x168] sm:$0xff]  ;;  %195 = vmatprep.mubr.f32.mxu0 %v27_v16  ;;  %v109_v23 = vld [vmem:[%s1966_s1 + $0x1f8] sm:$0xff]  ;;  %v1072_v26 = vpack.c.bf16 %v77_v21, %v76_v20  ;;  %v60_v27 = vld [vmem:[%s1966_s1 + $0x70] sm:$0xff] }
  0x16   :  { %1063 = vmatpush3.bf16.msra.mxu0 %v1062_v62  ;;  %v1102_v25 = vpack.c.bf16 %v91_v19, %v90_v15  ;;  %v61_v28 = vld [vmem:[%s1966_s1 + $0x78] sm:$0xff]  ;;  %v92_v29 = vld [vmem:[%s1966_s1 + $0x170] sm:$0xff]  ;;  %v1104_v30 = vpack.c.bf16 %v109_v23, %v108_v22  ;;  %v110_v32 = vld [vmem:[%s1966_s1 + $0x200] sm:$0xff] }
  0x17   :  { %1095 = vmatpush3.bf16.msra.mxu1 %v1094_v63  ;;  %1065 = vmatprep.subr.bf16.mxu0 %v1064_v0  ;;  %v93_v31 = vld [vmem:[%s1966_s1 + $0x178] sm:$0xff]  ;;  %v111_v33 = vld [vmem:[%s1966_s1 + $0x208] sm:$0xff]  ;;  %v1074_v34 = vpack.c.bf16 %v61_v28, %v60_v27  ;;  %v112_v37 = vld [vmem:[%s1966_s1 + $0x210] sm:$0xff] }
  0x18   :  { %1097 = vmatprep.subr.bf16.mxu1 %v1096_v4  ;;  %v1106_v35 = vpack.c.bf16 %v93_v31, %v92_v29  ;;  %v1108_v36 = vpack.c.bf16 %v111_v33, %v110_v32  ;;  %v113_v38 = vld [vmem:[%s1966_s1 + $0x218] sm:$0xff]  ;;  %v26_v39 = vld [vmem:[%s1967_s0] sm:$0xff]  ;;  %v28_v40 = vld [vmem:[%s1967_s0 + $0x10] sm:$0xff] }
  0x19   :  { %v32_v41 = vld [vmem:[%s1967_s0 + $0x30] sm:$0xff]  ;;  %v34_v42 = vld [vmem:[%s1967_s0 + $0x40] sm:$0xff]  ;;  %v1112_v43 = vpack.c.bf16 %v113_v38, %v112_v37  ;;  %v115_v45 = vld [vmem:[%s1966_s1 + $0x228] sm:$0xff] }
  0x1a   :  { %1067 = vmatpush3.bf16.msra.mxu0 %v1066_v10  ;;  %v114_v44 = vld [vmem:[%s1966_s1 + $0x220] sm:$0xff]  ;;  %v31_v46 = vld [vmem:[%s1967_s0 + $0x28] sm:$0xff]  ;;  %v33_v47 = vld [vmem:[%s1967_s0 + $0x38] sm:$0xff] }
  0x1b   :  { %1099 = vmatpush3.bf16.msra.mxu1 %v1098_v13  ;;  %1069 = vmatprep.subr.bf16.mxu0 %v1068_v14  ;;  %v37_v48 = vld [vmem:[%s1967_s0 + $0x58] sm:$0xff]  ;;  %v39_v49 = vld [vmem:[%s1967_s0 + $0x68] sm:$0xff]  ;;  %v1116_v50 = vpack.c.bf16 %v115_v45, %v114_v44  ;;  %v116_v51 = vld [vmem:[%s1966_s1 + $0x230] sm:$0xff] }
  0x1c   :  { %1101 = vmatprep.subr.bf16.mxu1 %v1100_v18  ;;  %v117_v52 = vld [vmem:[%s1966_s1 + $0x238] sm:$0xff]  ;;  %v36_v53 = vld [vmem:[%s1967_s0 + $0x50] sm:$0xff]  ;;  %v38_v54 = vld [vmem:[%s1967_s0 + $0x60] sm:$0xff] }
  0x1d   :  { %v42_v55 = vld [vmem:[%s1967_s0 + $0x80] sm:$0xff]  ;;  %v44_v56 = vld [vmem:[%s1967_s0 + $0x90] sm:$0xff]  ;;  %v1120_v57 = vpack.c.bf16 %v117_v52, %v116_v51  ;;  %v41_v58 = vld [vmem:[%s1967_s0 + $0x78] sm:$0xff] }
  0x1e   :  { %1071 = vmatpush3.bf16.msra.mxu0 %v1070_v24  ;;  %v43_v59 = vld [vmem:[%s1967_s0 + $0x88] sm:$0xff]  ;;  %v30_v60 = vld [vmem:[%s1967_s0 + $0x20] sm:$0xff]  ;;  %v40_v62 = vld [vmem:[%s1967_s0 + $0x70] sm:$0xff] }
  0x1f   :  { %1103 = vmatpush3.bf16.msra.mxu1 %v1102_v25  ;;  %1073 = vmatprep.subr.bf16.mxu0 %v1072_v26  ;;  %v35_v61 = vld [vmem:[%s1967_s0 + $0x48] sm:$0xff]  ;;  %v45_v63 = vld [vmem:[%s1967_s0 + $0x98] sm:$0xff]  ;;  %v398_v5 = vld [vmem:[%s1968_s3] sm:$0xff] }
  0x20   :  { %1105 = vmatprep.subr.bf16.mxu1 %v1104_v30  ;;  %v399_v0 = vld [vmem:[%s1968_s3 + $0x8] sm:$0xff]  ;;  %v401_v2 = vld [vmem:[%s1968_s3 + $0x18] sm:$0xff]  ;;  %v402_v6 = vld [vmem:[%s1968_s3 + $0x20] sm:$0xff] }
  0x21   :  { %v403_v1 = vld [vmem:[%s1968_s3 + $0x28] sm:$0xff]  ;;  %v405_v4 = vld [vmem:[%s1968_s3 + $0x38] sm:$0xff]  ;;  %v1126_v8 = vpack.c.bf16 %v402_v6, %v398_v5  ;;  %v400_v9 = vld [vmem:[%s1968_s3 + $0x10] sm:$0xff] }
  0x22   :  { %1075 = vmatpush3.bf16.msra.mxu0 %v1074_v34  ;;  %v1124_v3 = vpack.c.bf16 %v403_v1, %v399_v0  ;;  %v1156_v7 = vpack.c.bf16 %v405_v4, %v401_v2  ;;  %v404_v10 = vld [vmem:[%s1968_s3 + $0x30] sm:$0xff]  ;;  %v407_v12 = vld [vmem:[%s1968_s3 + $0x48] sm:$0xff]  ;;  %v409_v14 = vld [vmem:[%s1968_s3 + $0x58] sm:$0xff] }
  0x23   :  { %1107 = vmatpush3.bf16.msra.mxu1 %v1106_v35  ;;  %1109 = vmatprep.subr.bf16.mxu0 %v1108_v36  ;;  %v1158_v11 = vpack.c.bf16 %v404_v10, %v400_v9  ;;  %v411_v13 = vld [vmem:[%s1968_s3 + $0x68] sm:$0xff]  ;;  %v413_v16 = vld [vmem:[%s1968_s3 + $0x78] sm:$0xff]  ;;  %v406_v17 = vld [vmem:[%s1968_s3 + $0x40] sm:$0xff] }
  0x24   :  { %1125 = vmatprep.subr.bf16.mxu1 %v1124_v3  ;;  %v1128_v15 = vpack.c.bf16 %v411_v13, %v407_v12  ;;  %v410_v18 = vld [vmem:[%s1968_s3 + $0x60] sm:$0xff]  ;;  %v1160_v19 = vpack.c.bf16 %v413_v16, %v409_v14  ;;  %v408_v21 = vld [vmem:[%s1968_s3 + $0x50] sm:$0xff]  ;;  %v415_v24 = vld [vmem:[%s1968_s3 + $0x88] sm:$0xff] }
  0x25   :  { %196 = vmatmul.mubr.f32.vlgmr.msra.gmra.mrb[0].mxu0 %v26_v39  ;;  %v1130_v20 = vpack.c.bf16 %v410_v18, %v406_v17  ;;  %v412_v22 = vld [vmem:[%s1968_s3 + $0x70] sm:$0xff]  ;;  %v419_v25 = vld [vmem:[%s1968_s3 + $0xa8] sm:$0xff]  ;;  %v417_v26 = vld [vmem:[%s1968_s3 + $0x98] sm:$0xff] }
  0x26   :  { %281 = vmatmul.mubr.f32.vlgmr.msra.gmra.mrb[0].mxu1 %v28_v40  ;;  %1111 = vmatpush3.bf16.msra.mxu0 %v1108_v36  ;;  %v1162_v23 = vpack.c.bf16 %v412_v22, %v408_v21  ;;  %v1132_v27 = vpack.c.bf16 %v419_v25, %v415_v24  ;;  %v421_v28 = vld [vmem:[%s1968_s3 + $0xb8] sm:$0xff]  ;;  %v414_v29 = vld [vmem:[%s1968_s3 + $0x80] sm:$0xff]  ;;  %v416_v33 = vld [vmem:[%s1968_s3 + $0x90] sm:$0xff] }
  0x27   :  { %200 = vmatprep.mubr.f32.mxu0 %v32_v41  ;;  %285 = vmatprep.mubr.f32.mxu1 %v34_v42  ;;  %v418_v30 = vld [vmem:[%s1968_s3 + $0xa0] sm:$0xff]  ;;  %v1164_v31 = vpack.c.bf16 %v421_v28, %v417_v26  ;;  %v420_v34 = vld [vmem:[%s1968_s3 + $0xb0] sm:$0xff]  ;;  %v423_v36 = vld [vmem:[%s1968_s3 + $0xc8] sm:$0xff] }
  0x28   :  { %1113 = vmatprep.subr.bf16.mxu0 %v1112_v43  ;;  %1127 = vmatpush1.bf16.msra.mxu1 %v1126_v8  ;;  %v1134_v32 = vpack.c.bf16 %v418_v30, %v414_v29  ;;  %v1166_v35 = vpack.c.bf16 %v420_v34, %v416_v33  ;;  %v427_v37 = vld [vmem:[%s1968_s3 + $0xe8] sm:$0xff]  ;;  %v425_v38 = vld [vmem:[%s1968_s3 + $0xd8] sm:$0xff]  ;;  %v422_v41 = vld [vmem:[%s1968_s3 + $0xc0] sm:$0xff] }
  0x29   :  { %201 = vmatmul.mubr.f32.gmra.mrb[2].mxu0 %v31_v46  ;;  %1129 = vmatprep.subr.bf16.mxu1 %v1128_v15  ;;  %v1136_v39 = vpack.c.bf16 %v427_v37, %v423_v36  ;;  %v429_v40 = vld [vmem:[%s1968_s3 + $0xf8] sm:$0xff]  ;;  %v426_v42 = vld [vmem:[%s1968_s3 + $0xe0] sm:$0xff]  ;;  %v424_v45 = vld [vmem:[%s1968_s3 + $0xd0] sm:$0xff] }
  0x2a   :  { %286 = vmatmul.mubr.f32.gmra.mrb[2].mxu1 %v33_v47  ;;  %1115 = vmatpush3.bf16.msra.mxu0 %v1112_v43  ;;  %v1168_v43 = vpack.c.bf16 %v429_v40, %v425_v38  ;;  %v1138_v44 = vpack.c.bf16 %v426_v42, %v422_v41  ;;  %v428_v46 = vld [vmem:[%s1968_s3 + $0xf0] sm:$0xff]  ;;  %v437_v52 = vld [vmem:[%s1968_s3 + $0x138] sm:$0xff]  ;;  %v438_v1 = vld [vmem:[%s1968_s3 + $0x140] sm:$0xff] }
  0x2b   :  { %205 = vmatprep.mubr.f32.mxu0 %v37_v48  ;;  %290 = vmatprep.mubr.f32.mxu1 %v39_v49  ;;  %v1170_v47 = vpack.c.bf16 %v428_v46, %v424_v45  ;;  %v431_v48 = vld [vmem:[%s1968_s3 + $0x108] sm:$0xff]  ;;  %v445_v0 = vld [vmem:[%s1968_s3 + $0x178] sm:$0xff]  ;;  %v442_v2 = vld [vmem:[%s1968_s3 + $0x160] sm:$0xff] }
  0x2c   :  { %1117 = vmatprep.subr.bf16.mxu0 %v1116_v50  ;;  %1131 = vmatpush1.bf16.msra.mxu1 %v1130_v20  ;;  %v435_v49 = vld [vmem:[%s1968_s3 + $0x128] sm:$0xff]  ;;  %v1146_v4 = vpack.c.bf16 %v442_v2, %v438_v1  ;;  %v440_v5 = vld [vmem:[%s1968_s3 + $0x150] sm:$0xff]  ;;  %v449_v10 = vld [vmem:[%s1968_s3 + $0x198] sm:$0xff] }
  0x2d   :  { %206 = vmatmul.mubr.f32.gmra.mrb[4].mxu0 %v36_v53  ;;  %1133 = vmatprep.subr.bf16.mxu1 %v1132_v27  ;;  %v1140_v51 = vpack.c.bf16 %v435_v49, %v431_v48  ;;  %v430_v53 = vld [vmem:[%s1968_s3 + $0x100] sm:$0xff]  ;;  %v444_v6 = vld [vmem:[%s1968_s3 + $0x170] sm:$0xff]  ;;  %v447_v8 = vld [vmem:[%s1968_s3 + $0x188] sm:$0xff] }
  0x2e   :  { %291 = vmatmul.mubr.f32.gmra.mrb[4].mxu1 %v38_v54  ;;  %1119 = vmatpush3.bf16.msra.mxu0 %v1116_v50  ;;  %v433_v50 = vld [vmem:[%s1968_s3 + $0x118] sm:$0xff]  ;;  %v434_v54 = vld [vmem:[%s1968_s3 + $0x120] sm:$0xff]  ;;  %v451_v9 = vld [vmem:[%s1968_s3 + $0x1a8] sm:$0xff] }
  0x2f   :  { %210 = vmatprep.mubr.f32.mxu0 %v42_v55  ;;  %295 = vmatprep.mubr.f32.mxu1 %v44_v56  ;;  %v1172_v55 = vpack.c.bf16 %v437_v52, %v433_v50  ;;  %v1142_v56 = vpack.c.bf16 %v434_v54, %v430_v53  ;;  %v453_v12 = vld [vmem:[%s1968_s3 + $0x1b8] sm:$0xff]  ;;  %v446_v13 = vld [vmem:[%s1968_s3 + $0x180] sm:$0xff]  ;;  %v448_v17 = vld [vmem:[%s1968_s3 + $0x190] sm:$0xff] }
  0x30   :  { %1121 = vmatprep.subr.bf16.mxu0 %v1120_v57  ;;  %1135 = vmatpush1.bf16.msra.mxu1 %v1134_v32  ;;  %v450_v14 = vld [vmem:[%s1968_s3 + $0x1a0] sm:$0xff]  ;;  %v1180_v15 = vpack.c.bf16 %v453_v12, %v449_v10  ;;  %v452_v18 = vld [vmem:[%s1968_s3 + $0x1b0] sm:$0xff]  ;;  %v455_v20 = vld [vmem:[%s1968_s3 + $0x1c8] sm:$0xff]  ;;  %v1253_v32 = vmov 0.0  }
  0x31   :  { %211 = vmatmul.mubr.f32.gmra.mrb[6].mxu0 %v41_v58  ;;  %1137 = vmatprep.subr.bf16.mxu1 %v1136_v39  ;;  %v436_v58 = vld [vmem:[%s1968_s3 + $0x130] sm:$0xff]  ;;  %v1150_v16 = vpack.c.bf16 %v450_v14, %v446_v13  ;;  %v459_v21 = vld [vmem:[%s1968_s3 + $0x1e8] sm:$0xff]  ;;  %v461_v24 = vld [vmem:[%s1968_s3 + $0x1f8] sm:$0xff] }
  0x32   :  { %296 = vmatmul.mubr.f32.gmra.mrb[6].mxu1 %v43_v59  ;;  %1123 = vmatpush3.bf16.msra.mxu0 %v1120_v57  ;;  %v432_v57 = vld [vmem:[%s1968_s3 + $0x110] sm:$0xff]  ;;  %v1152_v22 = vpack.c.bf16 %v459_v21, %v455_v20  ;;  %v454_v25 = vld [vmem:[%s1968_s3 + $0x1c0] sm:$0xff]  ;;  %v647_v34 = vld [vmem:[%s1969_s5 + $0x88] sm:$0xff] }
  0x33   :  { %1038 = vmatprep.mubr.msk.f32.mxu0 %vm118_vm0, %v30_v60  ;;  %1157 = vmatprep.subr.bf16.mxu0 %v1156_v7  ;;  %v1174_v59 = vpack.c.bf16 %v436_v58, %v432_v57  ;;  %v439_v60 = vld [vmem:[%s1968_s3 + $0x148] sm:$0xff]  ;;  %v1178_v7 = vpack.c.bf16 %v444_v6, %v440_v5  ;;  %v458_v27 = vld [vmem:[%s1968_s3 + $0x1e0] sm:$0xff]  ;;  %v456_v28 = vld [vmem:[%s1968_s3 + $0x1d0] sm:$0xff] }
  0x34   :  { %1139 = vmatpush1.bf16.msra.mxu1 %v1138_v44  ;;  %v460_v29 = vld [vmem:[%s1968_s3 + $0x1f0] sm:$0xff]  ;;  %v1154_v30 = vpack.c.bf16 %v458_v27, %v454_v25  ;;  %548 = vmatprep.mubr.f32.mxu1 %v1253_v32  ;;  %v646_v33 = vld [vmem:[%s1969_s5 + $0x80] sm:$0xff]  ;;  %v679_v37 = vld [vmem:[%s1969_s5 + $0x188] sm:$0xff] }
  0x35   :  { %1039 = vmatmul.mubr.msk.f32.vlgmr.msra.gmra.mrb[8].mxu0 %vm118_vm0, %v35_v61  ;;  %1141 = vmatprep.subr.bf16.mxu1 %v1140_v51  ;;  %v443_v61 = vld [vmem:[%s1968_s3 + $0x168] sm:$0xff]  ;;  %v1188_v36 = vpack.c.bf16 %v647_v34, %v646_v33  ;;  %v850_v13 = vld [vmem:[%s1970_s2] ss:$0 sm:$0xff]  ;;  %v649_v20 = vld [vmem:[%s1969_s5 + $0x98] sm:$0xff] }
  0x36   :  { %1041 = vmatprep.mubr.msk.f32.mxu0 %vm118_vm0, %v40_v62  ;;  %1159 = vmatpush1.bf16.msra.mxu0 %v1158_v11  ;;  %v441_v62 = vld [vmem:[%s1968_s3 + $0x158] sm:$0xff]  ;;  %v1148_v11 = vpack.c.bf16 %v451_v9, %v447_v8  ;;  %v630_v14 = vld [vmem:[%s1969_s5] sm:$0xff]  ;;  %v680_v21 = vld [vmem:[%s1969_s5 + $0x190] sm:$0xff] }
  0x37   :  { %1161 = vmatprep.subr.bf16.mxu0 %v1160_v19  ;;  %v1176_v3 = vpack.c.bf16 %v445_v0, %v441_v62  ;;  %v1182_v19 = vpack.c.bf16 %v452_v18, %v448_v17  ;;  %v662_v17 = vld [vmem:[%s1969_s5 + $0x100] sm:$0xff]  ;;  %v663_v18 = vld [vmem:[%s1969_s5 + $0x108] sm:$0xff]  ;;  %v633_v27 = vld [vmem:[%s1969_s5 + $0x18] sm:$0xff] }
  0x38   :  { %1143 = vmatpush1.bf16.msra.mxu1 %v1142_v56  ;;  %v1222_v25 = vpack.c.bf16 %v663_v18, %v662_v17  ;;  %v650_v33 = vld [vmem:[%s1969_s5 + $0xa0] sm:$0xff]  ;;  %v651_v34 = vld [vmem:[%s1969_s5 + $0xa8] sm:$0xff] }
  0x39   :  { %1042 = vmatmul.mubr.msk.f32.gmra.mrb[10].mxu0 %vm118_vm0, %v45_v63  ;;  %v1144_v63 = vpack.c.bf16 %v443_v61, %v439_v60  ;;  %v658_v17 = vld [vmem:[%s1969_s5 + $0xe0] sm:$0xff]  ;;  %v659_v18 = vld [vmem:[%s1969_s5 + $0xe8] sm:$0xff] }
  0x3a   :  { %1163 = vmatpush1.bf16.msra.mxu0 %v1162_v23  ;;  %v457_v23 = vld [vmem:[%s1968_s3 + $0x1d8] sm:$0xff]  ;;  %619 = vmatprep.mubr.f32.mxu0 %v1253_v32 }
  0x3b   :  { %1165 = vmatprep.subr.bf16.mxu0 %v1164_v31  ;;  %1145 = vmatprep.subr.bf16.mxu1 %v1144_v63  ;;  %v1184_v26 = vpack.c.bf16 %v461_v24, %v457_v23  ;;  %v1186_v31 = vpack.c.bf16 %v460_v29, %v456_v28  ;;  %v665_v32 = vld [vmem:[%s1969_s5 + $0x118] sm:$0xff] }
  0x3c   :  { %1147 = vmatpush1.bf16.msra.mxu1 %v1146_v4 }
  0x3d   :  { %1149 = vmatprep.subr.bf16.mxu1 %v1148_v11 }
  0x3e   :  { %1167 = vmatpush1.bf16.msra.mxu0 %v1166_v35  ;;  %v678_v35 = vld [vmem:[%s1969_s5 + $0x180] sm:$0xff] }
  0x3f   :  { %1169 = vmatprep.subr.bf16.mxu0 %v1168_v43  ;;  %v1220_v38 = vpack.c.bf16 %v679_v37, %v678_v35  ;;  %v682_v35 = vld [vmem:[%s1969_s5 + $0x1a0] sm:$0xff] }
  0x40   :  { %1151 = vmatpush1.bf16.msra.mxu1 %v1150_v16 }
  0x41   :  { %1153 = vmatprep.subr.bf16.mxu1 %v1152_v22  ;;  %v681_v22 = vld [vmem:[%s1969_s5 + $0x198] sm:$0xff] }
  0x42   :  { %1171 = vmatpush1.bf16.msra.mxu0 %v1170_v47 }
  0x43   :  { %1173 = vmatprep.subr.bf16.mxu0 %v1172_v55 }
  0x44   :  { %1155 = vmatpush1.bf16.msra.mxu1 %v1154_v30  ;;  %v1224_v30 = vpack.c.bf16 %v681_v22, %v680_v21 }
  0x45   :  { %1189 = vmatprep.subr.bf16.mxu1 %v1188_v36  ;;  %v683_v36 = vld [vmem:[%s1969_s5 + $0x1a8] sm:$0xff] }
  0x46   :  { %1175 = vmatpush1.bf16.msra.mxu0 %v1174_v59 }
  0x47   :  { %1177 = vmatprep.subr.bf16.mxu0 %v1176_v3 }
  0x4a   :  { %1179 = vmatpush1.bf16.msra.mxu0 %v1178_v7 }
  0x4b   :  { %1181 = vmatprep.subr.bf16.mxu0 %v1180_v15  ;;  %v631_v15 = vld [vmem:[%s1969_s5 + $0x8] sm:$0xff] }
  0x4c   :  { %v1190_v24 = vpack.c.bf16 %v631_v15, %v630_v14  ;;  %v672_v15 = vld [vmem:[%s1969_s5 + $0x150] sm:$0xff] }
  0x4e   :  { %1183 = vmatpush1.bf16.msra.mxu0 %v1182_v19  ;;  %v648_v19 = vld [vmem:[%s1969_s5 + $0x90] sm:$0xff] }
  0x4f   :  { %1185 = vmatprep.subr.bf16.mxu0 %v1184_v26  ;;  %v632_v26 = vld [vmem:[%s1969_s5 + $0x10] sm:$0xff]  ;;  %v1192_v29 = vpack.c.bf16 %v649_v20, %v648_v19  ;;  %v690_v19 = vld [vmem:[%s1969_s5 + $0x1e0] sm:$0xff]  ;;  %v691_v20 = vld [vmem:[%s1969_s5 + $0x1e8] sm:$0xff] }
  0x50   :  { %v1194_v37 = vpack.c.bf16 %v633_v27, %v632_v26  ;;  %v643_v26 = vld [vmem:[%s1969_s5 + $0x68] sm:$0xff]  ;;  %v674_v27 = vld [vmem:[%s1969_s5 + $0x160] sm:$0xff] }
  0x52   :  { %1187 = vmatpush1.bf16.msra.mxu0 %v1186_v31  ;;  %v664_v31 = vld [vmem:[%s1969_s5 + $0x110] sm:$0xff] }
  0x53   :  { %1221 = vmatprep.subr.bf16.mxu0 %v1220_v38  ;;  %v1226_v38 = vpack.c.bf16 %v665_v32, %v664_v31  ;;  %v660_v31 = vld [vmem:[%s1969_s5 + $0xf0] sm:$0xff]  ;;  %v661_v32 = vld [vmem:[%s1969_s5 + $0xf8] sm:$0xff] }
  0xf8   :  { %v884_v39 = vpop.f32.mrb[0].mxu0 }
  0xf9   :  { %v928_v40 = vpop.f32.mrb[0].mxu1  ;;  %v885_v41 = vpop.f32.mrb[1].mxu0 }
  0xfa   :  { %v886_v42 = vadd.f32 %v885_v41, %v884_v39  ;;  %v929_v43 = vpop.f32.mrb[1].mxu1  ;;  %v634_v39 = vld [vmem:[%s1969_s5 + $0x20] sm:$0xff]  ;;  %v1196_v41 = vpack.c.bf16 %v651_v34, %v650_v33  ;;  %v692_v33 = vld [vmem:[%s1969_s5 + $0x1f0] sm:$0xff]  ;;  %v1216_v34 = vpack.c.bf16 %v661_v32, %v660_v31 }
  0xfb   :  { %v930_v44 = vadd.f32 %v929_v43, %v928_v40  ;;  %v635_v40 = vld [vmem:[%s1969_s5 + $0x28] sm:$0xff]  ;;  %v666_v43 = vld [vmem:[%s1969_s5 + $0x120] sm:$0xff] }
  0xfc   :  { %v887_v45 = vpop.f32.mrb[2].mxu0 }
  0xfd   :  { %v931_v46 = vpop.f32.mrb[2].mxu1  ;;  %v888_v47 = vpop.f32.mrb[3].mxu0  ;;  %v283_v48 = vadd.f32 %v930_v44, %v886_v42  ;;  %v1228_v42 = vpack.c.bf16 %v683_v36, %v682_v35  ;;  %v667_v44 = vld [vmem:[%s1969_s5 + $0x128] sm:$0xff]  ;;  %v693_v35 = vld [vmem:[%s1969_s5 + $0x1f8] sm:$0xff]  ;;  %v644_v36 = vld [vmem:[%s1969_s5 + $0x70] sm:$0xff] }
  0xfe   :  { %v889_v49 = vadd.f32 %v888_v47, %v887_v45  ;;  %v932_v50 = vpop.f32.mrb[3].mxu1  ;;  %v652_v45 = vld [vmem:[%s1969_s5 + $0xb0] sm:$0xff] }
  0xff   :  { %v933_v51 = vadd.f32 %v932_v50, %v931_v46  ;;  %v653_v46 = vld [vmem:[%s1969_s5 + $0xb8] sm:$0xff]  ;;  %v684_v47 = vld [vmem:[%s1969_s5 + $0x1b0] sm:$0xff]  ;;  %v1230_v50 = vpack.c.bf16 %v667_v44, %v666_v43  ;;  %v464_v43 = vlaneseq }
 0x100   :  { %v890_v52 = vpop.f32.mrb[4].mxu0 }
 0x101   :  { %v934_v53 = vpop.f32.mrb[4].mxu1  ;;  %v891_v54 = vpop.f32.mrb[5].mxu0  ;;  %v288_v55 = vadd.f32 %v933_v51, %v889_v49  ;;  %v1198_v49 = vpack.c.bf16 %v635_v40, %v634_v39  ;;  %v636_v51 = vld [vmem:[%s1969_s5 + $0x30] sm:$0xff]  ;;  %v465_v44 = vshrl.u32 %v464_v43, 7 }
 0x102   :  { %v892_v56 = vadd.f32 %v891_v54, %v890_v52  ;;  %v935_v57 = vpop.f32.mrb[5].mxu1  ;;  %v637_v52 = vld [vmem:[%s1969_s5 + $0x38] sm:$0xff]  ;;  %v676_v40 = vld [vmem:[%s1969_s5 + $0x170] sm:$0xff] }
 0x103   :  { %v936_v58 = vadd.f32 %v935_v57, %v934_v53  ;;  %v1200_v53 = vpack.c.bf16 %v653_v46, %v652_v45  ;;  %v654_v57 = vld [vmem:[%s1969_s5 + $0xc0] sm:$0xff]  ;;  %v466_v45 = vsub.s32 0, %v465_v44  ;;  %v474_v46 = vsub.s32 2, %v465_v44 }
 0x104   :  { %v893_v59 = vpop.f32.mrb[6].mxu0 }
 0x105   :  { %v937_v60 = vpop.f32.mrb[6].mxu1  ;;  %v894_v61 = vpop.f32.mrb[7].mxu0  ;;  %v293_v62 = vadd.f32 %v936_v58, %v892_v56  ;;  %v669_v56 = vld [vmem:[%s1969_s5 + $0x138] sm:$0xff]  ;;  %v655_v58 = vld [vmem:[%s1969_s5 + $0xc8] sm:$0xff] }
 0x106   :  { %v895_v63 = vadd.f32 %v894_v61, %v893_v59  ;;  %v938_v0 = vpop.f32.mrb[7].mxu1  ;;  %v686_v59 = vld [vmem:[%s1969_s5 + $0x1c0] sm:$0xff]  ;;  %v1202_v61 = vpack.c.bf16 %v637_v52, %v636_v51 }
 0x107   :  { %v939_v1 = vadd.f32 %v938_v0, %v937_v60  ;;  %v687_v60 = vld [vmem:[%s1969_s5 + $0x1c8] sm:$0xff] }
 0x108   :  { %v1040_v2 = vpop.f32.mrb[8].mxu0  ;;  %v639_v0 = vld [vmem:[%s1969_s5 + $0x48] sm:$0xff] }
 0x109   :  { %v373_v3 = vadd.f32 %v1040_v2, %v288_v55  ;;  %v367_v4 = vpop.f32.mrb[9].mxu0  ;;  %v298_v5 = vadd.f32 %v939_v1, %v895_v63  ;;  %v668_v55 = vld [vmem:[%s1969_s5 + $0x130] sm:$0xff]  ;;  %v638_v63 = vld [vmem:[%s1969_s5 + $0x40] sm:$0xff]  ;;  %v1204_v1 = vpack.c.bf16 %v655_v58, %v654_v57  ;;  %v1236_v2 = vpack.c.bf16 %v687_v60, %v686_v59 }
 0x10a   :  { %v368_v6 = vadd.f32 %v367_v4, %v283_v48  ;;  %v685_v48 = vld [vmem:[%s1969_s5 + $0x1b8] sm:$0xff]  ;;  %v671_v4 = vld [vmem:[%s1969_s5 + $0x148] sm:$0xff] }
 0x10b   :  { %v1232_v54 = vpack.c.bf16 %v685_v48, %v684_v47  ;;  %v462_v47 = vld [vmem:[%s1971_s4] sm:$0xf]  ;;  %v470_v48 = vsub.s32 1, %v465_v44 }
 0x10c   :  { %v386_v7 = vmax.f32 %v368_v6, %v373_v3  ;;  %v1043_v8 = vpop.f32.mrb[10].mxu0  ;;  %v670_v3 = vld [vmem:[%s1969_s5 + $0x140] sm:$0xff]  ;;  %v657_v6 = vld [vmem:[%s1969_s5 + $0xd8] sm:$0xff]  ;;  %v475_v51 = vrot.slane %v462_v47, %v474_v46 }
 0x10d   :  { %v383_v9 = vadd.f32 %v1043_v8, %v298_v5  ;;  %v377_v10 = vpop.f32.mrb[11].mxu0  ;;  %v656_v5 = vld [vmem:[%s1969_s5 + $0xd0] sm:$0xff]  ;;  %v689_v8 = vld [vmem:[%s1969_s5 + $0x1d8] sm:$0xff]  ;;  %v471_v52 = vrot.slane %v462_v47, %v470_v48 }
 0x10e   :  { %v378_v11 = vadd.f32 %v377_v10, %v293_v62  ;;  %v1234_v62 = vpack.c.bf16 %v669_v56, %v668_v55  ;;  %v1238_v10 = vpack.c.bf16 %v671_v4, %v670_v3  ;;  %v851_v4 = vld [vmem:[%s1972_s6] ss:$0 sm:$0xff] }
 0x110   :  { %v387_v12 = vmax.f32 %v378_v11, %v383_v9  ;;  %v1206_v9 = vpack.c.bf16 %v639_v0, %v638_v63  ;;  %v640_v11 = vld [vmem:[%s1969_s5 + $0x50] sm:$0xff] }
 0x112   :  { %v388_v16 = vmax.f32 %v386_v7, %v387_v12  ;;  %v688_v7 = vld [vmem:[%s1969_s5 + $0x1d0] sm:$0xff]  ;;  %v641_v12 = vld [vmem:[%s1969_s5 + $0x58] sm:$0xff] }
 0x113   :  { %v1240_v14 = vpack.c.bf16 %v689_v8, %v688_v7  ;;  %v1210_v21 = vpack.c.bf16 %v641_v12, %v640_v11 }
 0x114   :  { %v396_v23 = vadd.f32 %v850_v13, %v388_v16  ;;  %v1208_v13 = vpack.c.bf16 %v657_v6, %v656_v5  ;;  %v673_v16 = vld [vmem:[%s1969_s5 + $0x158] sm:$0xff] }
 0x115   :  { %v1242_v22 = vpack.c.bf16 %v673_v16, %v672_v15 }
 0x116   :  { %v397_v28 = vmax.f32 %v396_v23, 0.0  ;;  %v1212_v23 = vpack.c.bf16 %v659_v18, %v658_v17 }
 0x118   :  { %549 = vmatmul.mubr.f32.vlgmr.msra.gmra.mrb[8].mxu1 %v397_v28  ;;  %620 = vmatmul.mubr.f32.vlgmr.msra.gmra.mrb[12].mxu0 %v397_v28 }
 0x119   :  { %1191 = vmatpush3.bf16.msra.mxu1 %v1190_v24  ;;  %1223 = vmatpush3.bf16.msra.mxu0 %v1222_v25  ;;  %v1244_v24 = vpack.c.bf16 %v691_v20, %v690_v19  ;;  %v642_v25 = vld [vmem:[%s1969_s5 + $0x60] sm:$0xff] }
 0x11a   :  { %1193 = vmatprep.subr.bf16.mxu1 %v1192_v29  ;;  %1225 = vmatprep.subr.bf16.mxu0 %v1224_v30  ;;  %v1214_v28 = vpack.c.bf16 %v643_v26, %v642_v25  ;;  %v675_v29 = vld [vmem:[%s1969_s5 + $0x168] sm:$0xff] }
 0x11b   :  { %v1246_v30 = vpack.c.bf16 %v675_v29, %v674_v27 }
 0x11d   :  { %1195 = vmatpush3.bf16.msra.mxu1 %v1194_v37  ;;  %1227 = vmatpush3.bf16.msra.mxu0 %v1226_v38  ;;  %v645_v37 = vld [vmem:[%s1969_s5 + $0x78] sm:$0xff]  ;;  %v1248_v38 = vpack.c.bf16 %v693_v35, %v692_v33 }
 0x11e   :  { %1197 = vmatprep.subr.bf16.mxu1 %v1196_v41  ;;  %1229 = vmatprep.subr.bf16.mxu0 %v1228_v42  ;;  %v1218_v39 = vpack.c.bf16 %v645_v37, %v644_v36  ;;  %v677_v41 = vld [vmem:[%s1969_s5 + $0x178] sm:$0xff] }
 0x11f   :  { %v1250_v42 = vpack.c.bf16 %v677_v41, %v676_v40 }
 0x121   :  { %1199 = vmatpush3.bf16.msra.mxu1 %v1198_v49  ;;  %1231 = vmatpush3.bf16.msra.mxu0 %v1230_v50  ;;  %v478_v49 = vsub.s32 3, %v465_v44  ;;  %v467_v50 = vrot.slane %v462_v47, %v466_v45 }
 0x122   :  { %1201 = vmatprep.subr.bf16.mxu1 %v1200_v53  ;;  %1233 = vmatprep.subr.bf16.mxu0 %v1232_v54 }
 0x123   :  { %v479_v53 = vrot.slane %v462_v47, %v478_v49 }
 0x125   :  { %1203 = vmatpush3.bf16.msra.mxu1 %v1202_v61  ;;  %1235 = vmatpush3.bf16.msra.mxu0 %v1234_v62 }
 0x126   :  { %1205 = vmatprep.subr.bf16.mxu1 %v1204_v1  ;;  %1237 = vmatprep.subr.bf16.mxu0 %v1236_v2 }
 0x129   :  { %1207 = vmatpush3.bf16.msra.mxu1 %v1206_v9  ;;  %1239 = vmatpush3.bf16.msra.mxu0 %v1238_v10 }
 0x12a   :  { %1209 = vmatprep.subr.bf16.mxu1 %v1208_v13  ;;  %1241 = vmatprep.subr.bf16.mxu0 %v1240_v14 }
 0x12d   :  { %1211 = vmatpush3.bf16.msra.mxu1 %v1210_v21  ;;  %1243 = vmatpush3.bf16.msra.mxu0 %v1242_v22 }
 0x12e   :  { %1213 = vmatprep.subr.bf16.mxu1 %v1212_v23  ;;  %1245 = vmatprep.subr.bf16.mxu0 %v1244_v24 }
 0x131   :  { %1215 = vmatpush3.bf16.msra.mxu1 %v1214_v28  ;;  %1247 = vmatpush3.bf16.msra.mxu0 %v1246_v30 }
 0x132   :  { %1217 = vmatprep.subr.bf16.mxu1 %v1216_v34  ;;  %1249 = vmatprep.subr.bf16.mxu0 %v1248_v38 }
 0x135   :  { %1219 = vmatpush3.bf16.msra.mxu1 %v1218_v39  ;;  %1251 = vmatpush3.bf16.msra.mxu0 %v1250_v42 }
 0x1eb   :  { %v550_v54 = vpop.f32.mrb[8].mxu1  ;;  %v621_v55 = vpop.f32.mrb[12].mxu0 }
 0x1ec   :  { %v551_v56 = vadd.f32 %v550_v54, %v467_v50  ;;  %v622_v57 = vadd.f32 %v621_v55, %v475_v51  ;;  %v552_v58 = vpop.f32.mrb[9].mxu1  ;;  %v623_v59 = vpop.f32.mrb[13].mxu0 }
 0x1ed   :  { %v553_v60 = vadd.f32 %v552_v58, %v471_v52  ;;  %v624_v61 = vadd.f32 %v623_v59, %v479_v53 }
 0x1ee   :  { %v626_v0 = vmax.f32 %v551_v56, 0.0  ;;  %v628_v1 = vmax.f32 %v622_v57, 0.0 }
 0x1ef   :  { %v627_v62 = vmax.f32 %v553_v60, 0.0  ;;  %v629_v63 = vmax.f32 %v624_v61, 0.0 }
 0x1f1   :  { %765 = vmatprep.mubr.f32.mxu1 %v627_v62  ;;  %835 = vmatprep.mubr.f32.mxu0 %v629_v63 }
 0x1f2   :  { %766 = vmatmul.mubr.f32.vlgmr.msra.gmra.mrb[10].mxu1 %v626_v0  ;;  %836 = vmatmul.mubr.f32.vlgmr.msra.gmra.mrb[14].mxu0 %v628_v1 }
 0x2c5   :  { %v984_v2 = vpop.f32.mrb[10].mxu1  ;;  %v1019_v3 = vpop.f32.mrb[14].mxu0 }
 0x2c6   :  { %v985_v5 = vpop.f32.mrb[11].mxu1  ;;  %v1020_v6 = vpop.f32.mrb[15].mxu0 }
 0x2c7   :  { %v986_v7 = vadd.f32 %v985_v5, %v984_v2  ;;  %v1021_v8 = vadd.f32 %v1020_v6, %v1019_v3 }
 0x2c9   :  { %v768_v9 = vadd.f32 %v986_v7, %v851_v4 }
 0x2cb   :  { %v838_v10 = vadd.f32 %v1021_v8, %v768_v9 }
 0x2cd   :  { %841 = vst [vmem:[%s1973_s7] sm:$0xff] %v838_v10 }

// kernel: cnn_forward.3
= control target key start
LH: loop header
LB: loop body
LE: loop exit
PB: predicated region body
PF: predicated region fallthrough
CT: control target
= control target key end

     0   :  { %s6117_s12 = smov 0   ;;  %s6119_s13 = smov 0   ;;  %s13025_s0 = inlined_call_operand.vmem [shape: f32[4,352,9], index: 0, kind: input, shape index: {}]   ;;  %s13026_s1 = inlined_call_operand.vmem [shape: f32[9,32], index: 1, kind: input, shape index: {}]   ;;  %s13027_s2 = inlined_call_operand.vmem [shape: f32[1,32], index: 2, kind: input, shape index: {}]   ;;  %s13028_s3 = inlined_call_operand.vmem [shape: f32[352,32], index: 3, kind: output, shape index: {}]  }
   0x1   :  { %s6121_s14 = smov 0  }
   0x2 LB: > { %s5724_s15 = sadd.s32 4294967295, %s6086_s14   ;;  %s6134_s16 = sadd.s32 1, %s6086_s14   ;;  %s6086_s14 = sphi %s6121_s14, %s15581_s14   ;;  %s6082_s13 = sphi %s6119_s13, %s15580_s13   ;;  %s6078_s12 = sphi %s6117_s12, %s15579_s12  }
   0x3   : > { %s17_s17 = ssub.s32 %s6086_s14, %s6134_s16  ;;  %s20_s18 = sadd.s32 1, %s6082_s13 }
   0x4   : > { %p18_p0 = scmp.eq.s32.totalorder %s17_s17, 0  ;;  %p27_p1 = scmp.ne.s32.totalorder %s6082_s13, %s6078_s12 }
   0x5   : > { %p28_p2 = scmp.eq.s32.totalorder %s6086_s14, 0  ;;  %p5727_p4 = scmp.ge.s32.totalorder %s6086_s14, 2 }
   0x6   : > { %s6143_s19 = scalar_select %p18_p0, %s6082_s13, %s20_s18  }
   0x7   : > { %p29_p3 = por %p28_p2, %p27_p1  ;;  %127 = sbr.rel (%p5727_p4) target bundleno = 63 (0x3f), region = 24 }
   0xe   : > { %130 = sbr.rel (!%p29_p3) target bundleno = 63 (0x3f), region = 28  ;;  %s132_s20 = sand.u32 (%p29_p3), 1, %s6082_s13  }
   0xf   : > { %s5735_s21 = smul.u32 (%p29_p3), 176, %s6086_s14 }
  0x10   : > { %s5736_s22 = smul.u32 (%p29_p3), 704, %s132_s20 }
  0x11   : > { %s6151_s25 = scalar_lea.vmem (%p29_p3), %s13025_s0, %s5735_s21 }
  0x12   : > { %v339_v0 = vld [vmem:[%s6151_s25] sm:$0xff] (%p29_p3)  ;;  %v341_v1 = vld [vmem:[%s6151_s25 + $0x8] sm:$0xff] (%p29_p3)  ;;  %v343_v2 = vld [vmem:[%s6151_s25 + $0x10] sm:$0xff] (%p29_p3)  ;;  %s6156_s26 = scalar_lea.vmem (%p29_p3), [#allocation2], %s5736_s22 }
  0x13   : > { %340 = vst [vmem:[%s6156_s26] sm:$0xff] (%p29_p3), %v339_v0  ;;  %342 = vst [vmem:[%s6156_s26 + $0x8] sm:$0xff] (%p29_p3), %v341_v1  ;;  %v345_v3 = vld [vmem:[%s6151_s25 + $0x18] sm:$0xff] (%p29_p3)  ;;  %v347_v4 = vld [vmem:[%s6151_s25 + $0x20] sm:$0xff] (%p29_p3) }
  0x14   : > { %344 = vst [vmem:[%s6156_s26 + $0x10] sm:$0xff] (%p29_p3), %v343_v2  ;;  %v349_v5 = vld [vmem:[%s6151_s25 + $0x28] sm:$0xff] (%p29_p3)  ;;  %346 = vst [vmem:[%s6156_s26 + $0x18] sm:$0xff] (%p29_p3), %v345_v3  ;;  %v351_v6 = vld [vmem:[%s6151_s25 + $0x30] sm:$0xff] (%p29_p3) }
  0x15   : > { %348 = vst [vmem:[%s6156_s26 + $0x20] sm:$0xff] %v347_v4  ;;  %350 = vst [vmem:[%s6156_s26 + $0x28] sm:$0xff] %v349_v5  ;;  %v353_v7 = vld [vmem:[%s6151_s25 + $0x38] sm:$0xff]  ;;  %v355_v8 = vld [vmem:[%s6151_s25 + $0x40] sm:$0xff] }
  0x16   : > { %352 = vst [vmem:[%s6156_s26 + $0x30] sm:$0xff] %v351_v6  ;;  %354 = vst [vmem:[%s6156_s26 + $0x38] sm:$0xff] %v353_v7  ;;  %v357_v9 = vld [vmem:[%s6151_s25 + $0x48] sm:$0xff]  ;;  %v359_v10 = vld [vmem:[%s6151_s25 + $0x50] sm:$0xff] }
  0x17   : > { %356 = vst [vmem:[%s6156_s26 + $0x40] sm:$0xff] %v355_v8  ;;  %v361_v11 = vld [vmem:[%s6151_s25 + $0x58] sm:$0xff]  ;;  %358 = vst [vmem:[%s6156_s26 + $0x48] sm:$0xff] %v357_v9  ;;  %v363_v12 = vld [vmem:[%s6151_s25 + $0x60] sm:$0xff] }
  0x18   : > { %360 = vst [vmem:[%s6156_s26 + $0x50] sm:$0xff] %v359_v10  ;;  %362 = vst [vmem:[%s6156_s26 + $0x58] sm:$0xff] %v361_v11  ;;  %v365_v13 = vld [vmem:[%s6151_s25 + $0x68] sm:$0xff]  ;;  %v367_v14 = vld [vmem:[%s6151_s25 + $0x70] sm:$0xff] }
  0x19   : > { %364 = vst [vmem:[%s6156_s26 + $0x60] sm:$0xff] %v363_v12  ;;  %366 = vst [vmem:[%s6156_s26 + $0x68] sm:$0xff] %v365_v13  ;;  %v369_v15 = vld [vmem:[%s6151_s25 + $0x78] sm:$0xff]  ;;  %v371_v16 = vld [vmem:[%s6151_s25 + $0x80] sm:$0xff] }
  0x1a   : > { %368 = vst [vmem:[%s6156_s26 + $0x70] sm:$0xff] %v367_v14  ;;  %v373_v17 = vld [vmem:[%s6151_s25 + $0x88] sm:$0xff]  ;;  %370 = vst [vmem:[%s6156_s26 + $0x78] sm:$0xff] %v369_v15  ;;  %v375_v18 = vld [vmem:[%s6151_s25 + $0x90] sm:$0xff] }
  0x1b   : > { %372 = vst [vmem:[%s6156_s26 + $0x80] sm:$0xff] %v371_v16  ;;  %374 = vst [vmem:[%s6156_s26 + $0x88] sm:$0xff] %v373_v17  ;;  %v377_v19 = vld [vmem:[%s6151_s25 + $0x98] sm:$0xff]  ;;  %v379_v20 = vld [vmem:[%s6151_s25 + $0xa0] sm:$0xff] }
  0x1c   : > { %376 = vst [vmem:[%s6156_s26 + $0x90] sm:$0xff] %v375_v18  ;;  %378 = vst [vmem:[%s6156_s26 + $0x98] sm:$0xff] %v377_v19  ;;  %v381_v21 = vld [vmem:[%s6151_s25 + $0xa8] sm:$0xff]  ;;  %v383_v22 = vld [vmem:[%s6151_s25 + $0x160] sm:$0xff] }
  0x1d   : > { %380 = vst [vmem:[%s6156_s26 + $0xa0] sm:$0xff] %v379_v20  ;;  %v385_v23 = vld [vmem:[%s6151_s25 + $0x168] sm:$0xff]  ;;  %382 = vst [vmem:[%s6156_s26 + $0xa8] sm:$0xff] %v381_v21  ;;  %v387_v24 = vld [vmem:[%s6151_s25 + $0x170] sm:$0xff] }
  0x1e   : > { %384 = vst [vmem:[%s6156_s26 + $0xb0] sm:$0xff] %v383_v22  ;;  %386 = vst [vmem:[%s6156_s26 + $0xb8] sm:$0xff] %v385_v23  ;;  %v389_v25 = vld [vmem:[%s6151_s25 + $0x178] sm:$0xff]  ;;  %v391_v26 = vld [vmem:[%s6151_s25 + $0x180] sm:$0xff] }
  0x1f   : > { %388 = vst [vmem:[%s6156_s26 + $0xc0] sm:$0xff] %v387_v24  ;;  %390 = vst [vmem:[%s6156_s26 + $0xc8] sm:$0xff] %v389_v25  ;;  %v393_v27 = vld [vmem:[%s6151_s25 + $0x188] sm:$0xff]  ;;  %v395_v28 = vld [vmem:[%s6151_s25 + $0x190] sm:$0xff] }
  0x20   : > { %392 = vst [vmem:[%s6156_s26 + $0xd0] sm:$0xff] %v391_v26  ;;  %v397_v29 = vld [vmem:[%s6151_s25 + $0x198] sm:$0xff]  ;;  %394 = vst [vmem:[%s6156_s26 + $0xd8] sm:$0xff] %v393_v27  ;;  %v399_v30 = vld [vmem:[%s6151_s25 + $0x1a0] sm:$0xff] }
  0x21   : > { %396 = vst [vmem:[%s6156_s26 + $0xe0] sm:$0xff] %v395_v28  ;;  %398 = vst [vmem:[%s6156_s26 + $0xe8] sm:$0xff] %v397_v29  ;;  %v401_v31 = vld [vmem:[%s6151_s25 + $0x1a8] sm:$0xff]  ;;  %v403_v32 = vld [vmem:[%s6151_s25 + $0x1b0] sm:$0xff] }
  0x22   : > { %400 = vst [vmem:[%s6156_s26 + $0xf0] sm:$0xff] %v399_v30  ;;  %402 = vst [vmem:[%s6156_s26 + $0xf8] sm:$0xff] %v401_v31  ;;  %v405_v33 = vld [vmem:[%s6151_s25 + $0x1b8] sm:$0xff]  ;;  %v407_v34 = vld [vmem:[%s6151_s25 + $0x1c0] sm:$0xff] }
  0x23   : > { %404 = vst [vmem:[%s6156_s26 + $0x100] sm:$0xff] %v403_v32  ;;  %v409_v35 = vld [vmem:[%s6151_s25 + $0x1c8] sm:$0xff]  ;;  %406 = vst [vmem:[%s6156_s26 + $0x108] sm:$0xff] %v405_v33  ;;  %v411_v36 = vld [vmem:[%s6151_s25 + $0x1d0] sm:$0xff] }
  0x24   : > { %408 = vst [vmem:[%s6156_s26 + $0x110] sm:$0xff] %v407_v34  ;;  %410 = vst [vmem:[%s6156_s26 + $0x118] sm:$0xff] %v409_v35  ;;  %v413_v37 = vld [vmem:[%s6151_s25 + $0x1d8] sm:$0xff]  ;;  %v415_v38 = vld [vmem:[%s6151_s25 + $0x1e0] sm:$0xff] }
  0x25   : > { %412 = vst [vmem:[%s6156_s26 + $0x120] sm:$0xff] %v411_v36  ;;  %414 = vst [vmem:[%s6156_s26 + $0x128] sm:$0xff] %v413_v37  ;;  %v417_v39 = vld [vmem:[%s6151_s25 + $0x1e8] sm:$0xff]  ;;  %v419_v40 = vld [vmem:[%s6151_s25 + $0x1f0] sm:$0xff] }
  0x26   : > { %416 = vst [vmem:[%s6156_s26 + $0x130] sm:$0xff] %v415_v38  ;;  %v421_v41 = vld [vmem:[%s6151_s25 + $0x1f8] sm:$0xff]  ;;  %418 = vst [vmem:[%s6156_s26 + $0x138] sm:$0xff] %v417_v39  ;;  %v423_v42 = vld [vmem:[%s6151_s25 + $0x200] sm:$0xff] }
  0x27   : > { %420 = vst [vmem:[%s6156_s26 + $0x140] sm:$0xff] %v419_v40  ;;  %422 = vst [vmem:[%s6156_s26 + $0x148] sm:$0xff] %v421_v41  ;;  %v425_v43 = vld [vmem:[%s6151_s25 + $0x208] sm:$0xff]  ;;  %v427_v44 = vld [vmem:[%s6151_s25 + $0x2c0] sm:$0xff] }
  0x28   : > { %424 = vst [vmem:[%s6156_s26 + $0x150] sm:$0xff] %v423_v42  ;;  %426 = vst [vmem:[%s6156_s26 + $0x158] sm:$0xff] %v425_v43  ;;  %v429_v45 = vld [vmem:[%s6151_s25 + $0x2c8] sm:$0xff]  ;;  %v431_v46 = vld [vmem:[%s6151_s25 + $0x2d0] sm:$0xff] }
  0x29   : > { %428 = vst [vmem:[%s6156_s26 + $0x160] sm:$0xff] %v427_v44  ;;  %v433_v47 = vld [vmem:[%s6151_s25 + $0x2d8] sm:$0xff]  ;;  %430 = vst [vmem:[%s6156_s26 + $0x168] sm:$0xff] %v429_v45  ;;  %v435_v48 = vld [vmem:[%s6151_s25 + $0x2e0] sm:$0xff] }
  0x2a   : > { %432 = vst [vmem:[%s6156_s26 + $0x170] sm:$0xff] %v431_v46  ;;  %434 = vst [vmem:[%s6156_s26 + $0x178] sm:$0xff] %v433_v47  ;;  %v437_v49 = vld [vmem:[%s6151_s25 + $0x2e8] sm:$0xff]  ;;  %v439_v50 = vld [vmem:[%s6151_s25 + $0x2f0] sm:$0xff] }
  0x2b   : > { %436 = vst [vmem:[%s6156_s26 + $0x180] sm:$0xff] %v435_v48  ;;  %438 = vst [vmem:[%s6156_s26 + $0x188] sm:$0xff] %v437_v49  ;;  %v441_v51 = vld [vmem:[%s6151_s25 + $0x2f8] sm:$0xff]  ;;  %v443_v52 = vld [vmem:[%s6151_s25 + $0x300] sm:$0xff] }
  0x2c   : > { %440 = vst [vmem:[%s6156_s26 + $0x190] sm:$0xff] %v439_v50  ;;  %v445_v53 = vld [vmem:[%s6151_s25 + $0x308] sm:$0xff]  ;;  %442 = vst [vmem:[%s6156_s26 + $0x198] sm:$0xff] %v441_v51  ;;  %v447_v54 = vld [vmem:[%s6151_s25 + $0x310] sm:$0xff] }
  0x2d   : > { %444 = vst [vmem:[%s6156_s26 + $0x1a0] sm:$0xff] %v443_v52  ;;  %446 = vst [vmem:[%s6156_s26 + $0x1a8] sm:$0xff] %v445_v53  ;;  %v449_v55 = vld [vmem:[%s6151_s25 + $0x318] sm:$0xff]  ;;  %v451_v56 = vld [vmem:[%s6151_s25 + $0x320] sm:$0xff] }
  0x2e   : > { %448 = vst [vmem:[%s6156_s26 + $0x1b0] sm:$0xff] %v447_v54  ;;  %450 = vst [vmem:[%s6156_s26 + $0x1b8] sm:$0xff] %v449_v55  ;;  %v453_v57 = vld [vmem:[%s6151_s25 + $0x328] sm:$0xff]  ;;  %v455_v58 = vld [vmem:[%s6151_s25 + $0x330] sm:$0xff] }
  0x2f   : > { %452 = vst [vmem:[%s6156_s26 + $0x1c0] sm:$0xff] %v451_v56  ;;  %v457_v59 = vld [vmem:[%s6151_s25 + $0x338] sm:$0xff]  ;;  %454 = vst [vmem:[%s6156_s26 + $0x1c8] sm:$0xff] %v453_v57  ;;  %v459_v60 = vld [vmem:[%s6151_s25 + $0x340] sm:$0xff] }
  0x30   : > { %456 = vst [vmem:[%s6156_s26 + $0x1d0] sm:$0xff] %v455_v58  ;;  %458 = vst [vmem:[%s6156_s26 + $0x1d8] sm:$0xff] %v457_v59  ;;  %v461_v61 = vld [vmem:[%s6151_s25 + $0x348] sm:$0xff]  ;;  %v463_v62 = vld [vmem:[%s6151_s25 + $0x350] sm:$0xff] }
  0x31   : > { %460 = vst [vmem:[%s6156_s26 + $0x1e0] sm:$0xff] %v459_v60  ;;  %462 = vst [vmem:[%s6156_s26 + $0x1e8] sm:$0xff] %v461_v61  ;;  %v465_v63 = vld [vmem:[%s6151_s25 + $0x358] sm:$0xff]  ;;  %v467_v0 = vld [vmem:[%s6151_s25 + $0x360] sm:$0xff] }
  0x32   : > { %464 = vst [vmem:[%s6156_s26 + $0x1f0] sm:$0xff] %v463_v62  ;;  %v469_v1 = vld [vmem:[%s6151_s25 + $0x368] sm:$0xff]  ;;  %466 = vst [vmem:[%s6156_s26 + $0x1f8] sm:$0xff] %v465_v63  ;;  %v471_v2 = vld [vmem:[%s6151_s25 + $0x420] sm:$0xff] }
  0x33   : > { %468 = vst [vmem:[%s6156_s26 + $0x200] sm:$0xff] %v467_v0  ;;  %470 = vst [vmem:[%s6156_s26 + $0x208] sm:$0xff] %v469_v1  ;;  %v473_v3 = vld [vmem:[%s6151_s25 + $0x428] sm:$0xff]  ;;  %v475_v4 = vld [vmem:[%s6151_s25 + $0x430] sm:$0xff] }
  0x34   : > { %472 = vst [vmem:[%s6156_s26 + $0x210] sm:$0xff] %v471_v2  ;;  %474 = vst [vmem:[%s6156_s26 + $0x218] sm:$0xff] %v473_v3  ;;  %v477_v5 = vld [vmem:[%s6151_s25 + $0x438] sm:$0xff]  ;;  %v479_v6 = vld [vmem:[%s6151_s25 + $0x440] sm:$0xff] }
  0x35   : > { %476 = vst [vmem:[%s6156_s26 + $0x220] sm:$0xff] %v475_v4  ;;  %v481_v7 = vld [vmem:[%s6151_s25 + $0x448] sm:$0xff]  ;;  %478 = vst [vmem:[%s6156_s26 + $0x228] sm:$0xff] %v477_v5  ;;  %v483_v8 = vld [vmem:[%s6151_s25 + $0x450] sm:$0xff] }
  0x36   : > { %480 = vst [vmem:[%s6156_s26 + $0x230] sm:$0xff] %v479_v6  ;;  %482 = vst [vmem:[%s6156_s26 + $0x238] sm:$0xff] %v481_v7  ;;  %v485_v9 = vld [vmem:[%s6151_s25 + $0x458] sm:$0xff]  ;;  %v487_v10 = vld [vmem:[%s6151_s25 + $0x460] sm:$0xff] }
  0x37   : > { %484 = vst [vmem:[%s6156_s26 + $0x240] sm:$0xff] %v483_v8  ;;  %486 = vst [vmem:[%s6156_s26 + $0x248] sm:$0xff] %v485_v9  ;;  %v489_v11 = vld [vmem:[%s6151_s25 + $0x468] sm:$0xff]  ;;  %v491_v12 = vld [vmem:[%s6151_s25 + $0x470] sm:$0xff] }
  0x38   : > { %488 = vst [vmem:[%s6156_s26 + $0x250] sm:$0xff] %v487_v10  ;;  %v493_v13 = vld [vmem:[%s6151_s25 + $0x478] sm:$0xff]  ;;  %490 = vst [vmem:[%s6156_s26 + $0x258] sm:$0xff] %v489_v11  ;;  %v495_v14 = vld [vmem:[%s6151_s25 + $0x480] sm:$0xff] }
  0x39   : > { %492 = vst [vmem:[%s6156_s26 + $0x260] sm:$0xff] %v491_v12  ;;  %494 = vst [vmem:[%s6156_s26 + $0x268] sm:$0xff] %v493_v13  ;;  %v497_v15 = vld [vmem:[%s6151_s25 + $0x488] sm:$0xff]  ;;  %v499_v16 = vld [vmem:[%s6151_s25 + $0x490] sm:$0xff] }
  0x3a   : > { %496 = vst [vmem:[%s6156_s26 + $0x270] sm:$0xff] %v495_v14  ;;  %498 = vst [vmem:[%s6156_s26 + $0x278] sm:$0xff] %v497_v15  ;;  %v501_v17 = vld [vmem:[%s6151_s25 + $0x498] sm:$0xff]  ;;  %v503_v18 = vld [vmem:[%s6151_s25 + $0x4a0] sm:$0xff] }
  0x3b   : > { %500 = vst [vmem:[%s6156_s26 + $0x280] sm:$0xff] %v499_v16  ;;  %v505_v19 = vld [vmem:[%s6151_s25 + $0x4a8] sm:$0xff]  ;;  %502 = vst [vmem:[%s6156_s26 + $0x288] sm:$0xff] %v501_v17  ;;  %v507_v20 = vld [vmem:[%s6151_s25 + $0x4b0] sm:$0xff] }
  0x3c   : > { %504 = vst [vmem:[%s6156_s26 + $0x290] sm:$0xff] %v503_v18  ;;  %506 = vst [vmem:[%s6156_s26 + $0x298] sm:$0xff] %v505_v19  ;;  %v509_v21 = vld [vmem:[%s6151_s25 + $0x4b8] sm:$0xff]  ;;  %v511_v22 = vld [vmem:[%s6151_s25 + $0x4c0] sm:$0xff] }
  0x3d   : > { %508 = vst [vmem:[%s6156_s26 + $0x2a0] sm:$0xff] %v507_v20  ;;  %510 = vst [vmem:[%s6156_s26 + $0x2a8] sm:$0xff] %v509_v21  ;;  %v513_v23 = vld [vmem:[%s6151_s25 + $0x4c8] sm:$0xff] }
  0x3e   : > { %512 = vst [vmem:[%s6156_s26 + $0x2b0] sm:$0xff] %v511_v22  ;;  %514 = vst [vmem:[%s6156_s26 + $0x2b8] sm:$0xff] %v513_v23 }
  0x3f PF: > { %p5729_p5 = scmp.ge.s32.totalorder %s6086_s14, 1  ;;  %p519_p6 = scmp.lt.s32.totalorder %s6086_s14, 3 }
  0x41   : > { %p520_p7 = pnand %p5729_p5, %p519_p6 }
  0x43   : > { %523 = sbr.rel (%p520_p7) target bundleno = 1914 (0x77a), region = 66 }
  0x4a   : > { %s526_s27 = sand.u32 1, %s6078_s12   ;;  %v6088_v24 = vmov 0   ;;  %s12519_s11 = smul.u32 22, %s5724_s15  ;;  %vm5639_vm0 = vcmask 261120  }
  0x4b   : > { %5772 = vset.pattern.permute.xlu1 %v6088_v24  ;;  %5771 = vset.pattern.permute.xlu0 %v6088_v24  ;;  %s5737_s28 = smul.u32 704, %s526_s27 }
  0x4c   : > { %p551_p8 = scmp.lt.s32.totalorder %s12519_s11, 43 }
  0x4d   : > { %s6334_s29 = scalar_lea.vmem [#allocation2], %s5737_s28 }
  0x4e   : > { %v6337_v25 = vld [vmem:[%s6334_s29 + $0x10] sm:$0xff]  ;;  %v6340_v26 = vld [vmem:[%s6334_s29] sm:$0xff]  ;;  %v6345_v27 = vld [vmem:[%s6334_s29 + $0x18] sm:$0xff]  ;;  %s15583_s11 = smov (!%p551_p8, %s12519_s11), 43 }
  0x4f   : > { %658 = vperm.xlu1 %5772, %v6337_v25   ;;  %648 = vperm.xlu0 %5771, %v6340_v26   ;;  %v6348_v28 = vld [vmem:[%s6334_s29 + $0x8] sm:$0xff]  ;;  %v6356_v30 = vld [vmem:[%s6334_s29 + $0x20] sm:$0xff]  ;;  %v6361_v31 = vld [vmem:[%s6334_s29 + $0x38] sm:$0xff]  ;;  %s5730_s15 = sshll.u32 %s15583_s11, 3 }
  0x50   : > { %v6353_v29 = vld [vmem:[%s6334_s29 + $0x28] sm:$0xff]  ;;  %v6364_v32 = vld [vmem:[%s6334_s29 + $0x30] sm:$0xff]  ;;  %v6372_v34 = vld [vmem:[%s6334_s29 + $0x40] sm:$0xff]  ;;  %s12652_s20 = scalar_lea.vmem %s13028_s3, %s5730_s15 }
  0x51   : > { %v6369_v33 = vld [vmem:[%s6334_s29 + $0x48] sm:$0xff]  ;;  %v6377_v35 = vld [vmem:[%s6334_s29 + $0x58] sm:$0xff]  ;;  %v6380_v36 = vld [vmem:[%s6334_s29 + $0x50] sm:$0xff] }
  0x52   : > { %v6385_v37 = vld [vmem:[%s6334_s29 + $0x68] sm:$0xff]  ;;  %v6388_v38 = vld [vmem:[%s6334_s29 + $0x60] sm:$0xff]  ;;  %v6393_v39 = vld [vmem:[%s6334_s29 + $0x78] sm:$0xff] }
  0x53   : > { %663 = vperm.xlu1 %5772, %v6345_v27   ;;  %653 = vperm.xlu0 %5771, %v6348_v28   ;;  %v6396_v40 = vld [vmem:[%s6334_s29 + $0x70] sm:$0xff]  ;;  %v6401_v41 = vld [vmem:[%s6334_s29 + $0x88] sm:$0xff]  ;;  %v6404_v42 = vld [vmem:[%s6334_s29 + $0x80] sm:$0xff] }
  0x54   : > { %v6409_v43 = vld [vmem:[%s6334_s29 + $0x98] sm:$0xff]  ;;  %v6412_v44 = vld [vmem:[%s6334_s29 + $0x90] sm:$0xff]  ;;  %v6417_v45 = vld [vmem:[%s6334_s29 + $0xa8] sm:$0xff] }
  0x55   : > { %v6420_v46 = vld [vmem:[%s6334_s29 + $0xa0] sm:$0xff]  ;;  %v6425_v47 = vld [vmem:[%s6334_s29 + $0xb8] sm:$0xff]  ;;  %v6428_v48 = vld [vmem:[%s6334_s29 + $0xb0] sm:$0xff] }
  0x56   : > { %v6433_v49 = vld [vmem:[%s6334_s29 + $0xc8] sm:$0xff]  ;;  %v6436_v50 = vld [vmem:[%s6334_s29 + $0xc0] sm:$0xff]  ;;  %v6441_v51 = vld [vmem:[%s6334_s29 + $0xd8] sm:$0xff] }
  0x57   : > { %673 = vperm.xlu1 %5772, %v6353_v29   ;;  %668 = vperm.xlu0 %5771, %v6356_v30   ;;  %v6444_v52 = vld [vmem:[%s6334_s29 + $0xd0] sm:$0xff]  ;;  %v6449_v53 = vld [vmem:[%s6334_s29 + $0xe8] sm:$0xff]  ;;  %v6452_v54 = vld [vmem:[%s6334_s29 + $0xe0] sm:$0xff] }
  0x58   : > { %v6457_v55 = vld [vmem:[%s6334_s29 + $0xf8] sm:$0xff]  ;;  %v6460_v56 = vld [vmem:[%s6334_s29 + $0xf0] sm:$0xff]  ;;  %v6465_v57 = vld [vmem:[%s6334_s29 + $0x108] sm:$0xff] }
  0x59   : > { %v6468_v58 = vld [vmem:[%s6334_s29 + $0x100] sm:$0xff]  ;;  %v6473_v59 = vld [vmem:[%s6334_s29 + $0x118] sm:$0xff]  ;;  %v6476_v60 = vld [vmem:[%s6334_s29 + $0x110] sm:$0xff] }
  0x5a   : > { %v6481_v61 = vld [vmem:[%s6334_s29 + $0x128] sm:$0xff]  ;;  %v6484_v62 = vld [vmem:[%s6334_s29 + $0x120] sm:$0xff]  ;;  %v6489_v63 = vld [vmem:[%s6334_s29 + $0x138] sm:$0xff] }
  0x5b   : > { %683 = vperm.xlu1 %5772, %v6361_v31   ;;  %678 = vperm.xlu0 %5771, %v6364_v32   ;;  %v6492_v0 = vld [vmem:[%s6334_s29 + $0x130] sm:$0xff]  ;;  %v6497_v1 = vld [vmem:[%s6334_s29 + $0x148] sm:$0xff]  ;;  %v6500_v2 = vld [vmem:[%s6334_s29 + $0x140] sm:$0xff] }
  0x5c   : > { %v6505_v3 = vld [vmem:[%s6334_s29 + $0x158] sm:$0xff]  ;;  %v6508_v4 = vld [vmem:[%s6334_s29 + $0x150] sm:$0xff]  ;;  %v6513_v5 = vld [vmem:[%s6334_s29 + $0x168] sm:$0xff] }
  0x5d   : > { %v6516_v6 = vld [vmem:[%s6334_s29 + $0x160] sm:$0xff]  ;;  %v6521_v7 = vld [vmem:[%s6334_s29 + $0x178] sm:$0xff]  ;;  %v6524_v8 = vld [vmem:[%s6334_s29 + $0x170] sm:$0xff] }
  0x5e   : > { %v6529_v9 = vld [vmem:[%s6334_s29 + $0x188] sm:$0xff]  ;;  %v6532_v10 = vld [vmem:[%s6334_s29 + $0x180] sm:$0xff]  ;;  %v6537_v11 = vld [vmem:[%s6334_s29 + $0x198] sm:$0xff] }
  0x5f   : > { %693 = vperm.xlu1 %5772, %v6369_v33   ;;  %688 = vperm.xlu0 %5771, %v6372_v34   ;;  %13225 = vst [vmem:[#allocation3_spill] sm:$0xff] %v6529_v9  ;;  %13226 = vst [vmem:[#allocation4_spill] sm:$0xff] %v6537_v11  ;;  %v6540_v12 = vld [vmem:[%s6334_s29 + $0x190] sm:$0xff]  ;;  %v6545_v13 = vld [vmem:[%s6334_s29 + $0x1a8] sm:$0xff] }
  0x60   : > { %13227 = vst [vmem:[#allocation5_spill] sm:$0xff] %v6545_v13  ;;  %v6548_v14 = vld [vmem:[%s6334_s29 + $0x1a0] sm:$0xff]  ;;  %v6553_v15 = vld [vmem:[%s6334_s29 + $0x1b8] sm:$0xff]  ;;  %v6556_v16 = vld [vmem:[%s6334_s29 + $0x1b0] sm:$0xff] }
  0x61   : > { %13228 = vst [vmem:[#allocation6_spill] sm:$0xff] %v6548_v14  ;;  %13229 = vst [vmem:[#allocation7_spill] sm:$0xff] %v6553_v15  ;;  %v6561_v17 = vld [vmem:[%s6334_s29 + $0x1c8] sm:$0xff]  ;;  %v6564_v18 = vld [vmem:[%s6334_s29 + $0x1c0] sm:$0xff] }
  0x62   : > { %13230 = vst [vmem:[#allocation8_spill] sm:$0xff] %v6556_v16  ;;  %13231 = vst [vmem:[#allocation9_spill] sm:$0xff] %v6561_v17  ;;  %v6569_v19 = vld [vmem:[%s6334_s29 + $0x1d8] sm:$0xff]  ;;  %v6572_v20 = vld [vmem:[%s6334_s29 + $0x1d0] sm:$0xff] }
  0x63   : > { %703 = vperm.xlu1 %5772, %v6377_v35   ;;  %698 = vperm.xlu0 %5771, %v6380_v36   ;;  %13232 = vst [vmem:[#allocation10_spill] sm:$0xff] %v6564_v18  ;;  %13233 = vst [vmem:[#allocation11_spill] sm:$0xff] %v6569_v19  ;;  %v6577_v21 = vld [vmem:[%s6334_s29 + $0x1e8] sm:$0xff]  ;;  %v6580_v22 = vld [vmem:[%s6334_s29 + $0x1e0] sm:$0xff] }
  0x64   : > { %13234 = vst [vmem:[#allocation12_spill] sm:$0xff] %v6572_v20  ;;  %13235 = vst [vmem:[#allocation13_spill] sm:$0xff] %v6577_v21  ;;  %v6585_v23 = vld [vmem:[%s6334_s29 + $0x1f8] sm:$0xff]  ;;  %v6588_v24 = vld [vmem:[%s6334_s29 + $0x1f0] sm:$0xff] }
  0x65   : > { %13236 = vst [vmem:[#allocation14_spill] sm:$0xff] %v6580_v22  ;;  %13237 = vst [vmem:[#allocation15_spill] sm:$0xff] %v6585_v23 }
  0x66   : > { %13238 = vst [vmem:[#allocation16_spill] sm:$0xff] %v6588_v24 }
  0x67   : > { %713 = vperm.xlu1 %5772, %v6385_v37   ;;  %708 = vperm.xlu0 %5771, %v6388_v38  }
  0x6b   : > { %723 = vperm.xlu1 %5772, %v6393_v39   ;;  %718 = vperm.xlu0 %5771, %v6396_v40  }
  0x6f   : > { %733 = vperm.xlu1 %5772, %v6401_v41   ;;  %728 = vperm.xlu0 %5771, %v6404_v42  }
  0x73   : > { %743 = vperm.xlu1 %5772, %v6409_v43   ;;  %738 = vperm.xlu0 %5771, %v6412_v44  }
  0x77   : > { %753 = vperm.xlu1 %5772, %v6417_v45   ;;  %748 = vperm.xlu0 %5771, %v6420_v46  }
  0x7b   : > { %763 = vperm.xlu1 %5772, %v6425_v47   ;;  %758 = vperm.xlu0 %5771, %v6428_v48  }
  0x7f   : > { %773 = vperm.xlu1 %5772, %v6433_v49   ;;  %768 = vperm.xlu0 %5771, %v6436_v50  }
  0x83   : > { %783 = vperm.xlu1 %5772, %v6441_v51   ;;  %778 = vperm.xlu0 %5771, %v6444_v52  }
  0x87   : > { %793 = vperm.xlu1 %5772, %v6449_v53   ;;  %788 = vperm.xlu0 %5771, %v6452_v54  }
  0x8b   : > { %803 = vperm.xlu1 %5772, %v6457_v55   ;;  %798 = vperm.xlu0 %5771, %v6460_v56  }
  0x8f   : > { %813 = vperm.xlu1 %5772, %v6465_v57   ;;  %808 = vperm.xlu0 %5771, %v6468_v58  }
  0x93   : > { %823 = vperm.xlu1 %5772, %v6473_v59   ;;  %818 = vperm.xlu0 %5771, %v6476_v60  }
  0x97   : > { %833 = vperm.xlu1 %5772, %v6481_v61   ;;  %828 = vperm.xlu0 %5771, %v6484_v62  }
  0x9b   : > { %843 = vperm.xlu1 %5772, %v6489_v63   ;;  %838 = vperm.xlu0 %5771, %v6492_v0  }
  0x9f   : > { %853 = vperm.xlu1 %5772, %v6497_v1   ;;  %848 = vperm.xlu0 %5771, %v6500_v2  }
  0xa3   : > { %863 = vperm.xlu1 %5772, %v6505_v3   ;;  %858 = vperm.xlu0 %5771, %v6508_v4  }
  0xa7   : > { %873 = vperm.xlu1 %5772, %v6513_v5   ;;  %868 = vperm.xlu0 %5771, %v6516_v6  }
  0xab   : > { %883 = vperm.xlu1 %5772, %v6521_v7   ;;  %878 = vperm.xlu0 %5771, %v6524_v8  }
  0xaf   : > { %893 = vperm.xlu1 %5772, %v6529_v9   ;;  %888 = vperm.xlu0 %5771, %v6532_v10  }
  0xb3   : > { %903 = vperm.xlu1 %5772, %v6537_v11   ;;  %898 = vperm.xlu0 %5771, %v6540_v12  }
  0xb7   : > { %913 = vperm.xlu1 %5772, %v6545_v13   ;;  %908 = vperm.xlu0 %5771, %v6548_v14  }
  0xbb   : > { %923 = vperm.xlu1 %5772, %v6553_v15   ;;  %918 = vperm.xlu0 %5771, %v6556_v16  }
  0xbf   : > { %933 = vperm.xlu1 %5772, %v6561_v17   ;;  %928 = vperm.xlu0 %5771, %v6564_v18   ;;  %v6608_v18 = vld [vmem:[%s6334_s29 + $0x210] sm:$0xff] }
  0xc0   : > { %13244 = vst [vmem:[#allocation22_spill] sm:$0xff] %v6608_v18 }
  0xc3   : > { %943 = vperm.xlu1 %5772, %v6569_v19   ;;  %938 = vperm.xlu0 %5771, %v6572_v20   ;;  %v6593_v19 = vld [vmem:[%s6334_s29 + $0x208] sm:$0xff]  ;;  %v6596_v20 = vld [vmem:[%s6334_s29 + $0x200] sm:$0xff] }
  0xc4   : > { %13239 = vst [vmem:[#allocation17_spill] sm:$0xff] %v6593_v19  ;;  %13240 = vst [vmem:[#allocation18_spill] sm:$0xff] %v6596_v20 }
  0xc7   : > { %953 = vperm.xlu1 %5772, %v6577_v21   ;;  %948 = vperm.xlu0 %5771, %v6580_v22   ;;  %v6605_v22 = vld [vmem:[%s6334_s29 + $0x218] sm:$0xff] }
  0xc8   : > { %13243 = vst [vmem:[#allocation21_spill] sm:$0xff] %v6605_v22 }
  0xcb   : > { %963 = vperm.xlu1 %5772, %v6585_v23   ;;  %958 = vperm.xlu0 %5771, %v6588_v24  }
  0xce   : > { %v6598_v17 = vpop.permute.xlu1 %658  ;;  %v6600_v21 = vpop.permute.xlu0 %648 }
  0xcf   : > { %13241 = vst [vmem:[#allocation19_spill] sm:$0xff] %v6598_v17  ;;  %13242 = vst [vmem:[#allocation20_spill] sm:$0xff] %v6600_v21  ;;  %973 = vperm.xlu1 %5772, %v6593_v19   ;;  %968 = vperm.xlu0 %5771, %v6596_v20   ;;  %v6617_v21 = vld [vmem:[%s6334_s29 + $0x228] sm:$0xff]  ;;  %v6620_v17 = vld [vmem:[%s6334_s29 + $0x220] sm:$0xff] }
  0xd0   : > { %13247 = vst [vmem:[#allocation25_spill] sm:$0xff] %v6617_v21  ;;  %13248 = vst [vmem:[#allocation26_spill] sm:$0xff] %v6620_v17 }
  0xd2   : > { %v6610_v23 = vpop.permute.xlu1 %663  ;;  %v6612_v24 = vpop.permute.xlu0 %653 }
  0xd3   : > { %13245 = vst [vmem:[#allocation23_spill] sm:$0xff] %v6610_v23  ;;  %13246 = vst [vmem:[#allocation24_spill] sm:$0xff] %v6612_v24  ;;  %983 = vperm.xlu1 %5772, %v6605_v22   ;;  %978 = vperm.xlu0 %5771, %v6608_v18   ;;  %v6629_v24 = vld [vmem:[%s6334_s29 + $0x238] sm:$0xff]  ;;  %v6632_v23 = vld [vmem:[%s6334_s29 + $0x230] sm:$0xff] }
  0xd4   : > { %13251 = vst [vmem:[#allocation29_spill] sm:$0xff] %v6629_v24  ;;  %13252 = vst [vmem:[#allocation30_spill] sm:$0xff] %v6632_v23 }
  0xd6   : > { %v6622_v19 = vpop.permute.xlu1 %673  ;;  %v6624_v20 = vpop.permute.xlu0 %668 }
  0xd7   : > { %13249 = vst [vmem:[#allocation27_spill] sm:$0xff] %v6622_v19  ;;  %13250 = vst [vmem:[#allocation28_spill] sm:$0xff] %v6624_v20  ;;  %993 = vperm.xlu1 %5772, %v6617_v21   ;;  %988 = vperm.xlu0 %5771, %v6620_v17   ;;  %v6641_v20 = vld [vmem:[%s6334_s29 + $0x248] sm:$0xff]  ;;  %v6644_v19 = vld [vmem:[%s6334_s29 + $0x240] sm:$0xff] }
  0xd8   : > { %13255 = vst [vmem:[#allocation33_spill] sm:$0xff] %v6641_v20  ;;  %13256 = vst [vmem:[#allocation34_spill] sm:$0xff] %v6644_v19 }
  0xda   : > { %v6634_v22 = vpop.permute.xlu1 %683  ;;  %v6636_v18 = vpop.permute.xlu0 %678 }
  0xdb   : > { %13253 = vst [vmem:[#allocation31_spill] sm:$0xff] %v6634_v22  ;;  %13254 = vst [vmem:[#allocation32_spill] sm:$0xff] %v6636_v18  ;;  %1003 = vperm.xlu1 %5772, %v6629_v24   ;;  %998 = vperm.xlu0 %5771, %v6632_v23   ;;  %v6653_v18 = vld [vmem:[%s6334_s29 + $0x258] sm:$0xff]  ;;  %v6656_v22 = vld [vmem:[%s6334_s29 + $0x250] sm:$0xff] }
  0xdc   : > { %13259 = vst [vmem:[#allocation37_spill] sm:$0xff] %v6653_v18  ;;  %13260 = vst [vmem:[#allocation38_spill] sm:$0xff] %v6656_v22 }
  0xde   : > { %v6646_v21 = vpop.permute.xlu1 %693  ;;  %v6648_v17 = vpop.permute.xlu0 %688 }
  0xdf   : > { %13257 = vst [vmem:[#allocation35_spill] sm:$0xff] %v6646_v21  ;;  %13258 = vst [vmem:[#allocation36_spill] sm:$0xff] %v6648_v17  ;;  %1013 = vperm.xlu1 %5772, %v6641_v20   ;;  %1008 = vperm.xlu0 %5771, %v6644_v19   ;;  %v6665_v17 = vld [vmem:[%s6334_s29 + $0x268] sm:$0xff]  ;;  %v6668_v21 = vld [vmem:[%s6334_s29 + $0x260] sm:$0xff] }
  0xe0   : > { %13263 = vst [vmem:[#allocation41_spill] sm:$0xff] %v6665_v17  ;;  %13264 = vst [vmem:[#allocation42_spill] sm:$0xff] %v6668_v21 }
  0xe2   : > { %v6658_v24 = vpop.permute.xlu1 %703  ;;  %v6660_v23 = vpop.permute.xlu0 %698 }
  0xe3   : > { %13261 = vst [vmem:[#allocation39_spill] sm:$0xff] %v6658_v24  ;;  %13262 = vst [vmem:[#allocation40_spill] sm:$0xff] %v6660_v23  ;;  %1023 = vperm.xlu1 %5772, %v6653_v18   ;;  %1018 = vperm.xlu0 %5771, %v6656_v22   ;;  %v6677_v23 = vld [vmem:[%s6334_s29 + $0x278] sm:$0xff]  ;;  %v6680_v24 = vld [vmem:[%s6334_s29 + $0x270] sm:$0xff] }
  0xe4   : > { %13267 = vst [vmem:[#allocation45_spill] sm:$0xff] %v6677_v23  ;;  %13268 = vst [vmem:[#allocation46_spill] sm:$0xff] %v6680_v24 }
  0xe6   : > { %v6670_v20 = vpop.permute.xlu1 %713  ;;  %v6672_v19 = vpop.permute.xlu0 %708 }
  0xe7   : > { %13265 = vst [vmem:[#allocation43_spill] sm:$0xff] %v6670_v20  ;;  %13266 = vst [vmem:[#allocation44_spill] sm:$0xff] %v6672_v19  ;;  %1033 = vperm.xlu1 %5772, %v6665_v17   ;;  %1028 = vperm.xlu0 %5771, %v6668_v21   ;;  %v6689_v19 = vld [vmem:[%s6334_s29 + $0x288] sm:$0xff]  ;;  %v6692_v20 = vld [vmem:[%s6334_s29 + $0x280] sm:$0xff] }
  0xe8   : > { %13271 = vst [vmem:[#allocation49_spill] sm:$0xff] %v6689_v19  ;;  %13272 = vst [vmem:[#allocation50_spill] sm:$0xff] %v6692_v20 }
  0xea   : > { %v6682_v18 = vpop.permute.xlu1 %723  ;;  %v6684_v22 = vpop.permute.xlu0 %718 }
  0xeb   : > { %13269 = vst [vmem:[#allocation47_spill] sm:$0xff] %v6682_v18  ;;  %13270 = vst [vmem:[#allocation48_spill] sm:$0xff] %v6684_v22  ;;  %1043 = vperm.xlu1 %5772, %v6677_v23   ;;  %1038 = vperm.xlu0 %5771, %v6680_v24   ;;  %v6701_v22 = vld [vmem:[%s6334_s29 + $0x298] sm:$0xff]  ;;  %v6704_v18 = vld [vmem:[%s6334_s29 + $0x290] sm:$0xff] }
  0xec   : > { %13275 = vst [vmem:[#allocation53_spill] sm:$0xff] %v6701_v22  ;;  %13276 = vst [vmem:[#allocation54_spill] sm:$0xff] %v6704_v18 }
  0xee   : > { %v6694_v17 = vpop.permute.xlu1 %733  ;;  %v6696_v21 = vpop.permute.xlu0 %728 }
  0xef   : > { %13273 = vst [vmem:[#allocation51_spill] sm:$0xff] %v6694_v17  ;;  %13274 = vst [vmem:[#allocation52_spill] sm:$0xff] %v6696_v21  ;;  %1053 = vperm.xlu1 %5772, %v6689_v19   ;;  %1048 = vperm.xlu0 %5771, %v6692_v20   ;;  %v6713_v17 = vld [vmem:[%s6334_s29 + $0x2a8] sm:$0xff]  ;;  %v6716_v21 = vld [vmem:[%s6334_s29 + $0x2a0] sm:$0xff] }
  0xf0   : > { %13279 = vst [vmem:[#allocation57_spill] sm:$0xff] %v6713_v17  ;;  %v6725_v20 = vld [vmem:[%s6334_s29 + $0x2b8] sm:$0xff] }
  0xf2   : > { %v6706_v23 = vpop.permute.xlu1 %743  ;;  %v6708_v24 = vpop.permute.xlu0 %738 }
  0xf3   : > { %13277 = vst [vmem:[#allocation55_spill] sm:$0xff] %v6706_v23  ;;  %13278 = vst [vmem:[#allocation56_spill] sm:$0xff] %v6708_v24  ;;  %1063 = vperm.xlu1 %5772, %v6701_v22   ;;  %1058 = vperm.xlu0 %5771, %v6704_v18   ;;  %v6728_v23 = vld [vmem:[%s6334_s29 + $0x2b0] sm:$0xff] }
  0xf6   : > { %v6718_v15 = vpop.permute.xlu1 %753  ;;  %v6720_v19 = vpop.permute.xlu0 %748 }
  0xf7   : > { %13280 = vst [vmem:[#allocation58_spill] sm:$0xff] %v6718_v15  ;;  %13281 = vst [vmem:[#allocation59_spill] sm:$0xff] %v6720_v19  ;;  %1073 = vperm.xlu1 %5772, %v6713_v17   ;;  %1068 = vperm.xlu0 %5771, %v6716_v21   ;;  %v6089_v19 = vmov 1  }
  0xfa   : > { %v6730_v24 = vpop.permute.xlu1 %763  ;;  %v6732_v22 = vpop.permute.xlu0 %758 }
  0xfb   : > { %13282 = vst [vmem:[#allocation60_spill] sm:$0xff] %v6730_v24  ;;  %13283 = vst [vmem:[#allocation61_spill] sm:$0xff] %v6732_v22  ;;  %1083 = vperm.xlu1 %5772, %v6725_v20   ;;  %1078 = vperm.xlu0 %5771, %v6728_v23  }
  0xfe   : > { %v6736_v18 = vpop.permute.xlu1 %773  ;;  %v6738_v15 = vpop.permute.xlu0 %768 }
  0xff   : > { %13284 = vst [vmem:[#allocation62_spill] sm:$0xff] %v6736_v18  ;;  %13285 = vst [vmem:[#allocation63_spill] sm:$0xff] %v6738_v15  ;;  %5774 = vset.pattern.permute.xlu1 %v6089_v19  ;;  %5773 = vset.pattern.permute.xlu0 %v6089_v19 }
 0x100   : > { %1271 = vperm.xlu1 %5774, %v6348_v28   ;;  %1267 = vperm.xlu0 %5773, %v6340_v26  }
 0x102   : > { %v6742_v17 = vpop.permute.xlu1 %783  ;;  %v6744_v24 = vpop.permute.xlu0 %778 }
 0x103   : > { %13286 = vst [vmem:[#allocation64_spill] sm:$0xff] %v6742_v17  ;;  %13287 = vst [vmem:[#allocation65_spill] sm:$0xff] %v6744_v24 }
 0x104   : > { %1275 = vperm.xlu1 %5774, %v6337_v25   ;;  %1279 = vperm.xlu0 %5773, %v6345_v27  }
 0x106   : > { %v6748_v22 = vpop.permute.xlu1 %793  ;;  %v6750_v18 = vpop.permute.xlu0 %788 }
 0x107   : > { %13288 = vst [vmem:[#allocation66_spill] sm:$0xff] %v6748_v22  ;;  %13289 = vst [vmem:[#allocation67_spill] sm:$0xff] %v6750_v18 }
 0x108   : > { %1283 = vperm.xlu1 %5774, %v6356_v30   ;;  %1287 = vperm.xlu0 %5773, %v6353_v29  }
 0x10a   : > { %v6754_v19 = vpop.permute.xlu1 %803  ;;  %v6756_v15 = vpop.permute.xlu0 %798 }
 0x10b   : > { %13290 = vst [vmem:[#allocation68_spill] sm:$0xff] %v6754_v19  ;;  %13291 = vst [vmem:[#allocation69_spill] sm:$0xff] %v6756_v15 }
 0x10c   : > { %1291 = vperm.xlu1 %5774, %v6364_v32   ;;  %1295 = vperm.xlu0 %5773, %v6361_v31  }
 0x10e   : > { %v6760_v24 = vpop.permute.xlu1 %813  ;;  %v6762_v17 = vpop.permute.xlu0 %808 }
 0x10f   : > { %13292 = vst [vmem:[#allocation70_spill] sm:$0xff] %v6760_v24  ;;  %13293 = vst [vmem:[#allocation71_spill] sm:$0xff] %v6762_v17 }
 0x110   : > { %1299 = vperm.xlu1 %5774, %v6372_v34   ;;  %1303 = vperm.xlu0 %5773, %v6369_v33  }
 0x112   : > { %v6766_v18 = vpop.permute.xlu1 %823  ;;  %v6768_v22 = vpop.permute.xlu0 %818 }
 0x113   : > { %13294 = vst [vmem:[#allocation72_spill] sm:$0xff] %v6766_v18  ;;  %13295 = vst [vmem:[#allocation73_spill] sm:$0xff] %v6768_v22 }
 0x114   : > { %1307 = vperm.xlu1 %5774, %v6380_v36   ;;  %1311 = vperm.xlu0 %5773, %v6377_v35  }
 0x116   : > { %v6772_v15 = vpop.permute.xlu1 %833  ;;  %v6774_v19 = vpop.permute.xlu0 %828 }
 0x117   : > { %13296 = vst [vmem:[#allocation74_spill] sm:$0xff] %v6772_v15  ;;  %13297 = vst [vmem:[#allocation75_spill] sm:$0xff] %v6774_v19 }
 0x118   : > { %1315 = vperm.xlu1 %5774, %v6388_v38   ;;  %1319 = vperm.xlu0 %5773, %v6385_v37  }
 0x11a   : > { %v6778_v17 = vpop.permute.xlu1 %843  ;;  %v6780_v24 = vpop.permute.xlu0 %838 }
 0x11b   : > { %13298 = vst [vmem:[#allocation76_spill] sm:$0xff] %v6778_v17  ;;  %13299 = vst [vmem:[#allocation77_spill] sm:$0xff] %v6780_v24 }
 0x11c   : > { %1323 = vperm.xlu1 %5774, %v6396_v40   ;;  %1327 = vperm.xlu0 %5773, %v6393_v39  }
 0x11e   : > { %v6784_v22 = vpop.permute.xlu1 %853  ;;  %v6786_v18 = vpop.permute.xlu0 %848 }
 0x11f   : > { %13300 = vst [vmem:[#allocation78_spill] sm:$0xff] %v6784_v22  ;;  %13301 = vst [vmem:[#allocation79_spill] sm:$0xff] %v6786_v18 }
 0x120   : > { %1331 = vperm.xlu1 %5774, %v6404_v42   ;;  %1335 = vperm.xlu0 %5773, %v6401_v41  }
 0x122   : > { %v6790_v19 = vpop.permute.xlu1 %863  ;;  %v6792_v15 = vpop.permute.xlu0 %858 }
 0x123   : > { %13302 = vst [vmem:[#allocation80_spill] sm:$0xff] %v6790_v19  ;;  %13303 = vst [vmem:[#allocation81_spill] sm:$0xff] %v6792_v15 }
 0x124   : > { %1339 = vperm.xlu1 %5774, %v6412_v44   ;;  %1343 = vperm.xlu0 %5773, %v6409_v43  }
 0x126   : > { %v6796_v24 = vpop.permute.xlu1 %873  ;;  %v6798_v17 = vpop.permute.xlu0 %868 }
 0x127   : > { %13304 = vst [vmem:[#allocation82_spill] sm:$0xff] %v6796_v24  ;;  %13305 = vst [vmem:[#allocation83_spill] sm:$0xff] %v6798_v17 }
 0x128   : > { %1347 = vperm.xlu1 %5774, %v6420_v46   ;;  %1351 = vperm.xlu0 %5773, %v6417_v45  }
 0x12a   : > { %v6802_v18 = vpop.permute.xlu1 %883  ;;  %v6804_v22 = vpop.permute.xlu0 %878 }
 0x12b   : > { %13306 = vst [vmem:[#allocation84_spill] sm:$0xff] %v6802_v18  ;;  %13307 = vst [vmem:[#allocation85_spill] sm:$0xff] %v6804_v22 }
 0x12c   : > { %1355 = vperm.xlu1 %5774, %v6428_v48   ;;  %1359 = vperm.xlu0 %5773, %v6425_v47  }
 0x12e   : > { %v6808_v15 = vpop.permute.xlu1 %893  ;;  %v6810_v19 = vpop.permute.xlu0 %888 }
 0x12f   : > { %13308 = vst [vmem:[#allocation86_spill] sm:$0xff] %v6808_v15  ;;  %13309 = vst [vmem:[#allocation87_spill] sm:$0xff] %v6810_v19 }
 0x130   : > { %1363 = vperm.xlu1 %5774, %v6436_v50   ;;  %1367 = vperm.xlu0 %5773, %v6433_v49  }
 0x132   : > { %v6814_v17 = vpop.permute.xlu1 %903  ;;  %v6816_v24 = vpop.permute.xlu0 %898 }
 0x133   : > { %13310 = vst [vmem:[#allocation88_spill] sm:$0xff] %v6814_v17  ;;  %13311 = vst [vmem:[#allocation89_spill] sm:$0xff] %v6816_v24 }
 0x134   : > { %1371 = vperm.xlu1 %5774, %v6444_v52   ;;  %1375 = vperm.xlu0 %5773, %v6441_v51  }
 0x136   : > { %v6820_v22 = vpop.permute.xlu1 %913  ;;  %v6822_v18 = vpop.permute.xlu0 %908 }
 0x137   : > { %13312 = vst [vmem:[#allocation90_spill] sm:$0xff] %v6820_v22  ;;  %13313 = vst [vmem:[#allocation91_spill] sm:$0xff] %v6822_v18 }
 0x138   : > { %1379 = vperm.xlu1 %5774, %v6452_v54   ;;  %1383 = vperm.xlu0 %5773, %v6449_v53  }
 0x13a   : > { %v6826_v19 = vpop.permute.xlu1 %923  ;;  %v6828_v15 = vpop.permute.xlu0 %918 }
 0x13b   : > { %13314 = vst [vmem:[#allocation92_spill] sm:$0xff] %v6826_v19  ;;  %13315 = vst [vmem:[#allocation93_spill] sm:$0xff] %v6828_v15 }
 0x13c   : > { %1387 = vperm.xlu1 %5774, %v6460_v56   ;;  %1391 = vperm.xlu0 %5773, %v6457_v55  }
 0x13e   : > { %v6832_v24 = vpop.permute.xlu1 %933  ;;  %v6834_v17 = vpop.permute.xlu0 %928 }
 0x13f   : > { %13316 = vst [vmem:[#allocation94_spill] sm:$0xff] %v6832_v24  ;;  %13317 = vst [vmem:[#allocation95_spill] sm:$0xff] %v6834_v17 }
 0x140   : > { %1395 = vperm.xlu1 %5774, %v6468_v58   ;;  %1399 = vperm.xlu0 %5773, %v6465_v57  }
 0x142   : > { %v6838_v18 = vpop.permute.xlu1 %943  ;;  %v6840_v22 = vpop.permute.xlu0 %938 }
 0x143   : > { %13318 = vst [vmem:[#allocation96_spill] sm:$0xff] %v6838_v18  ;;  %13319 = vst [vmem:[#allocation97_spill] sm:$0xff] %v6840_v22 }
 0x144   : > { %1403 = vperm.xlu1 %5774, %v6476_v60   ;;  %1407 = vperm.xlu0 %5773, %v6473_v59  }
 0x146   : > { %v6844_v15 = vpop.permute.xlu1 %953  ;;  %v6846_v19 = vpop.permute.xlu0 %948 }
 0x147   : > { %13320 = vst [vmem:[#allocation98_spill] sm:$0xff] %v6844_v15  ;;  %13321 = vst [vmem:[#allocation99_spill] sm:$0xff] %v6846_v19 }
 0x148   : > { %1411 = vperm.xlu1 %5774, %v6484_v62   ;;  %1415 = vperm.xlu0 %5773, %v6481_v61  }
 0x14a   : > { %v6850_v17 = vpop.permute.xlu1 %963  ;;  %v6852_v24 = vpop.permute.xlu0 %958 }
 0x14b   : > { %13322 = vst [vmem:[#allocation100_spill] sm:$0xff] %v6850_v17  ;;  %13323 = vst [vmem:[#allocation101_spill] sm:$0xff] %v6852_v24 }
 0x14c   : > { %1419 = vperm.xlu1 %5774, %v6492_v0   ;;  %1423 = vperm.xlu0 %5773, %v6489_v63  }
 0x14e   : > { %v6856_v22 = vpop.permute.xlu1 %973  ;;  %v6858_v18 = vpop.permute.xlu0 %968 }
 0x14f   : > { %13324 = vst [vmem:[#allocation102_spill] sm:$0xff] %v6856_v22  ;;  %13325 = vst [vmem:[#allocation103_spill] sm:$0xff] %v6858_v18 }
 0x150   : > { %1427 = vperm.xlu1 %5774, %v6500_v2   ;;  %1431 = vperm.xlu0 %5773, %v6497_v1  }
 0x152   : > { %v6862_v19 = vpop.permute.xlu1 %983  ;;  %v6864_v15 = vpop.permute.xlu0 %978 }
 0x153   : > { %13326 = vst [vmem:[#allocation104_spill] sm:$0xff] %v6862_v19  ;;  %13327 = vst [vmem:[#allocation105_spill] sm:$0xff] %v6864_v15 }
 0x154   : > { %1435 = vperm.xlu1 %5774, %v6508_v4   ;;  %1439 = vperm.xlu0 %5773, %v6505_v3  }
 0x156   : > { %v6868_v24 = vpop.permute.xlu1 %993  ;;  %v6870_v17 = vpop.permute.xlu0 %988 }
 0x157   : > { %13328 = vst [vmem:[#allocation106_spill] sm:$0xff] %v6868_v24  ;;  %13329 = vst [vmem:[#allocation107_spill] sm:$0xff] %v6870_v17 }
 0x158   : > { %1443 = vperm.xlu1 %5774, %v6516_v6   ;;  %1447 = vperm.xlu0 %5773, %v6513_v5  }
 0x15a   : > { %v6874_v18 = vpop.permute.xlu1 %1003  ;;  %v6876_v22 = vpop.permute.xlu0 %998 }
 0x15b   : > { %13330 = vst [vmem:[#allocation108_spill] sm:$0xff] %v6874_v18  ;;  %13331 = vst [vmem:[#allocation109_spill] sm:$0xff] %v6876_v22 }
 0x15c   : > { %1451 = vperm.xlu1 %5774, %v6524_v8   ;;  %1455 = vperm.xlu0 %5773, %v6521_v7  }
 0x15e   : > { %v6880_v15 = vpop.permute.xlu1 %1013  ;;  %v6882_v19 = vpop.permute.xlu0 %1008 }
 0x15f   : > { %13332 = vst [vmem:[#allocation110_spill] sm:$0xff] %v6880_v15  ;;  %13333 = vst [vmem:[#allocation111_spill] sm:$0xff] %v6882_v19 }
 0x160   : > { %1459 = vperm.xlu1 %5774, %v6532_v10   ;;  %1463 = vperm.xlu0 %5773, %v6529_v9  }
 0x162   : > { %v6886_v17 = vpop.permute.xlu1 %1023  ;;  %v6888_v24 = vpop.permute.xlu0 %1018 }
 0x163   : > { %13334 = vst [vmem:[#allocation112_spill] sm:$0xff] %v6886_v17  ;;  %13335 = vst [vmem:[#allocation113_spill] sm:$0xff] %v6888_v24  ;;  %v13340_v17 = vld [vmem:[#allocation7_spill] sm:$0xff] }
 0x164   : > { %1467 = vperm.xlu1 %5774, %v6540_v12   ;;  %1471 = vperm.xlu0 %5773, %v6537_v11   ;;  %v13343_v11 = vld [vmem:[#allocation10_spill] sm:$0xff] }
 0x166   : > { %v6892_v22 = vpop.permute.xlu1 %1033  ;;  %v6894_v18 = vpop.permute.xlu0 %1028 }
 0x167   : > { %13336 = vst [vmem:[#allocation114_spill] sm:$0xff] %v6892_v22  ;;  %13337 = vst [vmem:[#allocation115_spill] sm:$0xff] %v6894_v18  ;;  %v13344_v22 = vld [vmem:[#allocation9_spill] sm:$0xff] }
 0x168   : > { %1475 = vperm.xlu1 %5774, %v6548_v14   ;;  %1479 = vperm.xlu0 %5773, %v6545_v13   ;;  %v13347_v13 = vld [vmem:[#allocation12_spill] sm:$0xff] }
 0x16a   : > { %v6898_v19 = vpop.permute.xlu1 %1043  ;;  %v6900_v15 = vpop.permute.xlu0 %1038 }
 0x16b   : > { %13338 = vst [vmem:[#allocation116_spill] sm:$0xff] %v6898_v19  ;;  %13339 = vst [vmem:[#allocation117_spill] sm:$0xff] %v6900_v15  ;;  %v13348_v19 = vld [vmem:[#allocation11_spill] sm:$0xff] }
 0x16c   : > { %1483 = vperm.xlu1 %5774, %v6556_v16   ;;  %1487 = vperm.xlu0 %5773, %v13340_v17   ;;  %v13351_v17 = vld [vmem:[#allocation14_spill] sm:$0xff] }
 0x16e   : > { %v6904_v24 = vpop.permute.xlu1 %1053  ;;  %v6906_v9 = vpop.permute.xlu0 %1048 }
 0x16f   : > { %13341 = vst [vmem:[#allocation118_spill] sm:$0xff] %v6904_v24  ;;  %13342 = vst [vmem:[#allocation119_spill] sm:$0xff] %v6906_v9  ;;  %v13352_v24 = vld [vmem:[#allocation13_spill] sm:$0xff] }
 0x170   : > { %1491 = vperm.xlu1 %5774, %v13343_v11   ;;  %1495 = vperm.xlu0 %5773, %v13344_v22   ;;  %v13355_v22 = vld [vmem:[#allocation16_spill] sm:$0xff] }
 0x172   : > { %v6910_v18 = vpop.permute.xlu1 %1063  ;;  %v6912_v14 = vpop.permute.xlu0 %1058 }
 0x173   : > { %13345 = vst [vmem:[#allocation120_spill] sm:$0xff] %v6910_v18  ;;  %13346 = vst [vmem:[#allocation121_spill] sm:$0xff] %v6912_v14  ;;  %v13356_v18 = vld [vmem:[#allocation15_spill] sm:$0xff] }
 0x174   : > { %1499 = vperm.xlu1 %5774, %v13347_v13   ;;  %1503 = vperm.xlu0 %5773, %v13348_v19   ;;  %v13359_v19 = vld [vmem:[#allocation18_spill] sm:$0xff] }
 0x176   : > { %v6916_v15 = vpop.permute.xlu1 %1073  ;;  %v6918_v16 = vpop.permute.xlu0 %1068 }
 0x177   : > { %13349 = vst [vmem:[#allocation122_spill] sm:$0xff] %v6916_v15  ;;  %13350 = vst [vmem:[#allocation123_spill] sm:$0xff] %v6918_v16  ;;  %v13360_v15 = vld [vmem:[#allocation17_spill] sm:$0xff] }
 0x178   : > { %1507 = vperm.xlu1 %5774, %v13351_v17   ;;  %1511 = vperm.xlu0 %5773, %v13352_v24   ;;  %v13363_v24 = vld [vmem:[#allocation22_spill] sm:$0xff] }
 0x17a   : > { %v6922_v9 = vpop.permute.xlu1 %1083  ;;  %v6924_v11 = vpop.permute.xlu0 %1078 }
 0x17b   : > { %13353 = vst [vmem:[#allocation124_spill] sm:$0xff] %v6922_v9  ;;  %13354 = vst [vmem:[#allocation125_spill] sm:$0xff] %v6924_v11  ;;  %v13364_v9 = vld [vmem:[#allocation21_spill] sm:$0xff] }
 0x17c   : > { %1515 = vperm.xlu1 %5774, %v13355_v22   ;;  %1519 = vperm.xlu0 %5773, %v13356_v18   ;;  %v13367_v18 = vld [vmem:[#allocation26_spill] sm:$0xff] }
 0x17f   : > { %v6928_v14 = vpop.permute.xlu1 %1271  ;;  %v6930_v13 = vpop.permute.xlu0 %1267 }
 0x180   : > { %13357 = vst [vmem:[#allocation126_spill] sm:$0xff] %v6928_v14  ;;  %13358 = vst [vmem:[#allocation127_spill] sm:$0xff] %v6930_v13  ;;  %1523 = vperm.xlu1 %5774, %v13359_v19   ;;  %1527 = vperm.xlu0 %5773, %v13360_v15   ;;  %v13368_v14 = vld [vmem:[#allocation25_spill] sm:$0xff]  ;;  %v13371_v15 = vld [vmem:[#allocation30_spill] sm:$0xff] }
 0x183   : > { %v6934_v16 = vpop.permute.xlu1 %1275  ;;  %v6936_v17 = vpop.permute.xlu0 %1279 }
 0x184   : > { %13361 = vst [vmem:[#allocation128_spill] sm:$0xff] %v6934_v16  ;;  %13362 = vst [vmem:[#allocation129_spill] sm:$0xff] %v6936_v17  ;;  %1531 = vperm.xlu1 %5774, %v13363_v24   ;;  %1535 = vperm.xlu0 %5773, %v13364_v9   ;;  %v13372_v16 = vld [vmem:[#allocation29_spill] sm:$0xff]  ;;  %v13375_v9 = vld [vmem:[#allocation34_spill] sm:$0xff] }
 0x187   : > { %v6940_v11 = vpop.permute.xlu1 %1283  ;;  %v6942_v22 = vpop.permute.xlu0 %1287 }
 0x188   : > { %13365 = vst [vmem:[#allocation130_spill] sm:$0xff] %v6940_v11  ;;  %13366 = vst [vmem:[#allocation131_spill] sm:$0xff] %v6942_v22  ;;  %1539 = vperm.xlu1 %5774, %v13367_v18   ;;  %1543 = vperm.xlu0 %5773, %v13368_v14   ;;  %v13376_v11 = vld [vmem:[#allocation33_spill] sm:$0xff]  ;;  %v13379_v14 = vld [vmem:[#allocation38_spill] sm:$0xff] }
 0x18b   : > { %v6946_v13 = vpop.permute.xlu1 %1291  ;;  %v6948_v19 = vpop.permute.xlu0 %1295 }
 0x18c   : > { %13369 = vst [vmem:[#allocation132_spill] sm:$0xff] %v6946_v13  ;;  %13370 = vst [vmem:[#allocation133_spill] sm:$0xff] %v6948_v19  ;;  %1547 = vperm.xlu1 %5774, %v13371_v15   ;;  %1551 = vperm.xlu0 %5773, %v13372_v16   ;;  %v13380_v13 = vld [vmem:[#allocation37_spill] sm:$0xff]  ;;  %v13383_v16 = vld [vmem:[#allocation42_spill] sm:$0xff] }
 0x18f   : > { %v6952_v17 = vpop.permute.xlu1 %1299  ;;  %v6954_v24 = vpop.permute.xlu0 %1303 }
 0x190   : > { %13373 = vst [vmem:[#allocation134_spill] sm:$0xff] %v6952_v17  ;;  %13374 = vst [vmem:[#allocation135_spill] sm:$0xff] %v6954_v24  ;;  %1555 = vperm.xlu1 %5774, %v13375_v9   ;;  %1559 = vperm.xlu0 %5773, %v13376_v11   ;;  %v13384_v17 = vld [vmem:[#allocation41_spill] sm:$0xff]  ;;  %v13387_v11 = vld [vmem:[#allocation46_spill] sm:$0xff] }
 0x193   : > { %v6958_v22 = vpop.permute.xlu1 %1307  ;;  %v6960_v18 = vpop.permute.xlu0 %1311 }
 0x194   : > { %13377 = vst [vmem:[#allocation136_spill] sm:$0xff] %v6958_v22  ;;  %13378 = vst [vmem:[#allocation137_spill] sm:$0xff] %v6960_v18  ;;  %1563 = vperm.xlu1 %5774, %v13379_v14   ;;  %1567 = vperm.xlu0 %5773, %v13380_v13   ;;  %v13388_v22 = vld [vmem:[#allocation45_spill] sm:$0xff]  ;;  %v13391_v13 = vld [vmem:[#allocation50_spill] sm:$0xff] }
 0x197   : > { %v6964_v19 = vpop.permute.xlu1 %1315  ;;  %v6966_v15 = vpop.permute.xlu0 %1319 }
 0x198   : > { %13381 = vst [vmem:[#allocation138_spill] sm:$0xff] %v6964_v19  ;;  %13382 = vst [vmem:[#allocation139_spill] sm:$0xff] %v6966_v15  ;;  %1571 = vperm.xlu1 %5774, %v13383_v16   ;;  %1575 = vperm.xlu0 %5773, %v13384_v17   ;;  %v13392_v19 = vld [vmem:[#allocation49_spill] sm:$0xff]  ;;  %v13395_v17 = vld [vmem:[#allocation54_spill] sm:$0xff] }
 0x19b   : > { %v6970_v24 = vpop.permute.xlu1 %1323  ;;  %v6972_v9 = vpop.permute.xlu0 %1327 }
 0x19c   : > { %13385 = vst [vmem:[#allocation140_spill] sm:$0xff] %v6970_v24  ;;  %13386 = vst [vmem:[#allocation141_spill] sm:$0xff] %v6972_v9  ;;  %1579 = vperm.xlu1 %5774, %v13387_v11   ;;  %1583 = vperm.xlu0 %5773, %v13388_v22   ;;  %v13396_v24 = vld [vmem:[#allocation53_spill] sm:$0xff] }
 0x19f   : > { %v6976_v18 = vpop.permute.xlu1 %1331  ;;  %v6978_v14 = vpop.permute.xlu0 %1335 }
 0x1a0   : > { %13389 = vst [vmem:[#allocation142_spill] sm:$0xff] %v6976_v18  ;;  %13390 = vst [vmem:[#allocation143_spill] sm:$0xff] %v6978_v14  ;;  %1587 = vperm.xlu1 %5774, %v13391_v13   ;;  %1591 = vperm.xlu0 %5773, %v13392_v19   ;;  %v13399_v18 = vld [vmem:[#allocation57_spill] sm:$0xff] }
 0x1a3   : > { %v6982_v15 = vpop.permute.xlu1 %1339  ;;  %v6984_v16 = vpop.permute.xlu0 %1343 }
 0x1a4   : > { %13393 = vst [vmem:[#allocation50_spill] sm:$0xff] %v6982_v15  ;;  %13394 = vst [vmem:[#allocation49_spill] sm:$0xff] %v6984_v16  ;;  %1595 = vperm.xlu1 %5774, %v13395_v17   ;;  %1599 = vperm.xlu0 %5773, %v13396_v24   ;;  %v6090_v24 = vmov 2  }
 0x1a7   : > { %v6988_v9 = vpop.permute.xlu1 %1347  ;;  %v6990_v11 = vpop.permute.xlu0 %1351 }
 0x1a8   : > { %13397 = vst [vmem:[#allocation54_spill] sm:$0xff] %v6988_v9  ;;  %13398 = vst [vmem:[#allocation144_spill] sm:$0xff] %v6990_v11  ;;  %1603 = vperm.xlu1 %5774, %v6716_v21   ;;  %1607 = vperm.xlu0 %5773, %v13399_v18  }
 0x1ab   : > { %v6994_v14 = vpop.permute.xlu1 %1355  ;;  %v6996_v22 = vpop.permute.xlu0 %1359 }
 0x1ac   : > { %13400 = vst [vmem:[#allocation57_spill] sm:$0xff] %v6994_v14  ;;  %13401 = vst [vmem:[#allocation145_spill] sm:$0xff] %v6996_v22  ;;  %1611 = vperm.xlu1 %5774, %v6728_v23   ;;  %1615 = vperm.xlu0 %5773, %v6725_v20  }
 0x1af   : > { %v7000_v16 = vpop.permute.xlu1 %1363  ;;  %v7002_v15 = vpop.permute.xlu0 %1367 }
 0x1b0   : > { %13402 = vst [vmem:[#allocation146_spill] sm:$0xff] %v7000_v16  ;;  %13403 = vst [vmem:[#allocation147_spill] sm:$0xff] %v7002_v15  ;;  %5775 = vset.pattern.permute.xlu1 %v6090_v24  ;;  %5776 = vset.pattern.permute.xlu0 %v6090_v24  ;;  %v7617_v15 = vld [vmem:[%s6334_s29 + $0x1c0] sm:$0xff] }
 0x1b1   : > { %1799 = vperm.xlu1 %5775, %v6340_v26   ;;  %1803 = vperm.xlu0 %5776, %v6348_v28   ;;  %13591 = vst [vmem:[#allocation273_spill] sm:$0xff] %v7617_v15 }
 0x1b3   : > { %v7006_v11 = vpop.permute.xlu1 %1371  ;;  %v7008_v14 = vpop.permute.xlu0 %1375 }
 0x1b4   : > { %13404 = vst [vmem:[#allocation148_spill] sm:$0xff] %v7006_v11  ;;  %13405 = vst [vmem:[#allocation149_spill] sm:$0xff] %v7008_v14  ;;  %v7605_v14 = vld [vmem:[%s6334_s29 + $0x1b0] sm:$0xff] }
 0x1b5   : > { %1807 = vperm.xlu1 %5775, %v6337_v25   ;;  %1815 = vperm.xlu0 %5776, %v6356_v30   ;;  %13587 = vst [vmem:[#allocation269_spill] sm:$0xff] %v7605_v14 }
 0x1b7   : > { %v7012_v22 = vpop.permute.xlu1 %1379  ;;  %v7014_v16 = vpop.permute.xlu0 %1383 }
 0x1b8   : > { %13406 = vst [vmem:[#allocation150_spill] sm:$0xff] %v7012_v22  ;;  %13407 = vst [vmem:[#allocation151_spill] sm:$0xff] %v7014_v16  ;;  %v7593_v16 = vld [vmem:[%s6334_s29 + $0x1a0] sm:$0xff] }
 0x1b9   : > { %1811 = vperm.xlu1 %5775, %v6345_v27   ;;  %1823 = vperm.xlu0 %5776, %v6364_v32   ;;  %13583 = vst [vmem:[#allocation265_spill] sm:$0xff] %v7593_v16 }
 0x1bb   : > { %v7018_v24 = vpop.permute.xlu1 %1387  ;;  %v7020_v26 = vpop.permute.xlu0 %1391 }
 0x1bc   : > { %13408 = vst [vmem:[#allocation152_spill] sm:$0xff] %v7018_v24  ;;  %13409 = vst [vmem:[#allocation153_spill] sm:$0xff] %v7020_v26  ;;  %v7581_v26 = vld [vmem:[%s6334_s29 + $0x190] sm:$0xff] }
 0x1bd   : > { %1819 = vperm.xlu1 %5775, %v6353_v29   ;;  %1831 = vperm.xlu0 %5776, %v6372_v34   ;;  %13579 = vst [vmem:[#allocation261_spill] sm:$0xff] %v7581_v26 }
 0x1bf   : > { %v7024_v28 = vpop.permute.xlu1 %1395  ;;  %v7026_v25 = vpop.permute.xlu0 %1399 }
 0x1c0   : > { %13410 = vst [vmem:[#allocation154_spill] sm:$0xff] %v7024_v28  ;;  %13411 = vst [vmem:[#allocation155_spill] sm:$0xff] %v7026_v25  ;;  %v7569_v25 = vld [vmem:[%s6334_s29 + $0x180] sm:$0xff] }
 0x1c1   : > { %1827 = vperm.xlu1 %5775, %v6361_v31   ;;  %1839 = vperm.xlu0 %5776, %v6380_v36   ;;  %13575 = vst [vmem:[#allocation257_spill] sm:$0xff] %v7569_v25 }
 0x1c3   : > { %v7030_v30 = vpop.permute.xlu1 %1403  ;;  %v7032_v27 = vpop.permute.xlu0 %1407 }
 0x1c4   : > { %13412 = vst [vmem:[#allocation156_spill] sm:$0xff] %v7030_v30  ;;  %13413 = vst [vmem:[#allocation157_spill] sm:$0xff] %v7032_v27  ;;  %v7557_v27 = vld [vmem:[%s6334_s29 + $0x170] sm:$0xff] }
 0x1c5   : > { %1835 = vperm.xlu1 %5775, %v6369_v33   ;;  %1847 = vperm.xlu0 %5776, %v6388_v38  }
 0x1c7   : > { %v7036_v32 = vpop.permute.xlu1 %1411  ;;  %v7038_v29 = vpop.permute.xlu0 %1415 }
 0x1c8   : > { %13414 = vst [vmem:[#allocation158_spill] sm:$0xff] %v7036_v32  ;;  %13415 = vst [vmem:[#allocation159_spill] sm:$0xff] %v7038_v29  ;;  %v7545_v29 = vld [vmem:[%s6334_s29 + $0x160] sm:$0xff] }
 0x1c9   : > { %1843 = vperm.xlu1 %5775, %v6377_v35   ;;  %1855 = vperm.xlu0 %5776, %v6396_v40  }
 0x1cb   : > { %v7042_v34 = vpop.permute.xlu1 %1419  ;;  %v7044_v31 = vpop.permute.xlu0 %1423 }
 0x1cc   : > { %13416 = vst [vmem:[#allocation160_spill] sm:$0xff] %v7042_v34  ;;  %13417 = vst [vmem:[#allocation161_spill] sm:$0xff] %v7044_v31  ;;  %v7533_v31 = vld [vmem:[%s6334_s29 + $0x150] sm:$0xff] }
 0x1cd   : > { %1851 = vperm.xlu1 %5775, %v6385_v37   ;;  %1863 = vperm.xlu0 %5776, %v6404_v42  }
 0x1cf   : > { %v7048_v36 = vpop.permute.xlu1 %1427  ;;  %v7050_v33 = vpop.permute.xlu0 %1431 }
 0x1d0   : > { %13418 = vst [vmem:[#allocation162_spill] sm:$0xff] %v7048_v36  ;;  %13419 = vst [vmem:[#allocation163_spill] sm:$0xff] %v7050_v33  ;;  %v7521_v33 = vld [vmem:[%s6334_s29 + $0x140] sm:$0xff] }
 0x1d1   : > { %1859 = vperm.xlu1 %5775, %v6393_v39   ;;  %1871 = vperm.xlu0 %5776, %v6412_v44  }
 0x1d3   : > { %v7054_v38 = vpop.permute.xlu1 %1435  ;;  %v7056_v35 = vpop.permute.xlu0 %1439 }
 0x1d4   : > { %13420 = vst [vmem:[#allocation164_spill] sm:$0xff] %v7054_v38  ;;  %13421 = vst [vmem:[#allocation165_spill] sm:$0xff] %v7056_v35  ;;  %v7509_v35 = vld [vmem:[%s6334_s29 + $0x130] sm:$0xff] }
 0x1d5   : > { %1867 = vperm.xlu1 %5775, %v6401_v41   ;;  %1879 = vperm.xlu0 %5776, %v6420_v46  }
 0x1d7   : > { %v7060_v40 = vpop.permute.xlu1 %1443  ;;  %v7062_v37 = vpop.permute.xlu0 %1447 }
 0x1d8   : > { %13422 = vst [vmem:[#allocation166_spill] sm:$0xff] %v7060_v40  ;;  %13423 = vst [vmem:[#allocation167_spill] sm:$0xff] %v7062_v37  ;;  %v7497_v37 = vld [vmem:[%s6334_s29 + $0x120] sm:$0xff] }
 0x1d9   : > { %1875 = vperm.xlu1 %5775, %v6409_v43   ;;  %1887 = vperm.xlu0 %5776, %v6428_v48  }
 0x1db   : > { %v7066_v42 = vpop.permute.xlu1 %1451  ;;  %v7068_v39 = vpop.permute.xlu0 %1455 }
 0x1dc   : > { %13424 = vst [vmem:[#allocation168_spill] sm:$0xff] %v7066_v42  ;;  %13425 = vst [vmem:[#allocation169_spill] sm:$0xff] %v7068_v39  ;;  %v7485_v39 = vld [vmem:[%s6334_s29 + $0x110] sm:$0xff] }
 0x1dd   : > { %1883 = vperm.xlu1 %5775, %v6417_v45   ;;  %1895 = vperm.xlu0 %5776, %v6436_v50  }
 0x1df   : > { %v7072_v44 = vpop.permute.xlu1 %1459  ;;  %v7074_v41 = vpop.permute.xlu0 %1463 }
 0x1e0   : > { %13426 = vst [vmem:[#allocation170_spill] sm:$0xff] %v7072_v44  ;;  %13427 = vst [vmem:[#allocation171_spill] sm:$0xff] %v7074_v41  ;;  %v7473_v41 = vld [vmem:[%s6334_s29 + $0x100] sm:$0xff] }
 0x1e1   : > { %1891 = vperm.xlu1 %5775, %v6425_v47   ;;  %1903 = vperm.xlu0 %5776, %v6444_v52  }
 0x1e3   : > { %v7078_v46 = vpop.permute.xlu1 %1467  ;;  %v7080_v43 = vpop.permute.xlu0 %1471 }
 0x1e4   : > { %13428 = vst [vmem:[#allocation172_spill] sm:$0xff] %v7078_v46  ;;  %13429 = vst [vmem:[#allocation173_spill] sm:$0xff] %v7080_v43  ;;  %v7461_v43 = vld [vmem:[%s6334_s29 + $0xf0] sm:$0xff] }
 0x1e5   : > { %1899 = vperm.xlu1 %5775, %v6433_v49   ;;  %1911 = vperm.xlu0 %5776, %v6452_v54  }
 0x1e7   : > { %v7084_v48 = vpop.permute.xlu1 %1475  ;;  %v7086_v45 = vpop.permute.xlu0 %1479 }
 0x1e8   : > { %13430 = vst [vmem:[#allocation174_spill] sm:$0xff] %v7084_v48  ;;  %13431 = vst [vmem:[#allocation175_spill] sm:$0xff] %v7086_v45  ;;  %v7449_v45 = vld [vmem:[%s6334_s29 + $0xe0] sm:$0xff] }
 0x1e9   : > { %1907 = vperm.xlu1 %5775, %v6441_v51   ;;  %1919 = vperm.xlu0 %5776, %v6460_v56  }
 0x1eb   : > { %v7090_v50 = vpop.permute.xlu1 %1483  ;;  %v7092_v47 = vpop.permute.xlu0 %1487 }
 0x1ec   : > { %13432 = vst [vmem:[#allocation176_spill] sm:$0xff] %v7090_v50  ;;  %13433 = vst [vmem:[#allocation177_spill] sm:$0xff] %v7092_v47  ;;  %v7437_v47 = vld [vmem:[%s6334_s29 + $0xd0] sm:$0xff] }
 0x1ed   : > { %1915 = vperm.xlu1 %5775, %v6449_v53   ;;  %1927 = vperm.xlu0 %5776, %v6468_v58  }
 0x1ef   : > { %v7096_v52 = vpop.permute.xlu1 %1491  ;;  %v7098_v49 = vpop.permute.xlu0 %1495 }
 0x1f0   : > { %13434 = vst [vmem:[#allocation178_spill] sm:$0xff] %v7096_v52  ;;  %13435 = vst [vmem:[#allocation179_spill] sm:$0xff] %v7098_v49  ;;  %v7425_v49 = vld [vmem:[%s6334_s29 + $0xc0] sm:$0xff] }
 0x1f1   : > { %1923 = vperm.xlu1 %5775, %v6457_v55   ;;  %1935 = vperm.xlu0 %5776, %v6476_v60  }
 0x1f3   : > { %v7102_v54 = vpop.permute.xlu1 %1499  ;;  %v7104_v51 = vpop.permute.xlu0 %1503 }
 0x1f4   : > { %13436 = vst [vmem:[#allocation180_spill] sm:$0xff] %v7102_v54  ;;  %13437 = vst [vmem:[#allocation181_spill] sm:$0xff] %v7104_v51  ;;  %v7413_v51 = vld [vmem:[%s6334_s29 + $0xb0] sm:$0xff] }
 0x1f5   : > { %1931 = vperm.xlu1 %5775, %v6465_v57   ;;  %1943 = vperm.xlu0 %5776, %v6484_v62  }
 0x1f7   : > { %v7108_v56 = vpop.permute.xlu1 %1507  ;;  %v7110_v53 = vpop.permute.xlu0 %1511 }
 0x1f8   : > { %13438 = vst [vmem:[#allocation182_spill] sm:$0xff] %v7108_v56  ;;  %13439 = vst [vmem:[#allocation183_spill] sm:$0xff] %v7110_v53  ;;  %v7401_v53 = vld [vmem:[%s6334_s29 + $0xa0] sm:$0xff] }
 0x1f9   : > { %1939 = vperm.xlu1 %5775, %v6473_v59   ;;  %1951 = vperm.xlu0 %5776, %v6492_v0  }
 0x1fb   : > { %v7114_v58 = vpop.permute.xlu1 %1515  ;;  %v7116_v55 = vpop.permute.xlu0 %1519 }
 0x1fc   : > { %13440 = vst [vmem:[#allocation184_spill] sm:$0xff] %v7114_v58  ;;  %13441 = vst [vmem:[#allocation185_spill] sm:$0xff] %v7116_v55  ;;  %v7389_v55 = vld [vmem:[%s6334_s29 + $0x90] sm:$0xff] }
 0x1fd   : > { %1947 = vperm.xlu1 %5775, %v6481_v61   ;;  %1959 = vperm.xlu0 %5776, %v6500_v2  }
 0x1ff   : > { %v7120_v60 = vpop.permute.xlu1 %1523  ;;  %v7122_v57 = vpop.permute.xlu0 %1527 }
 0x200   : > { %13442 = vst [vmem:[#allocation186_spill] sm:$0xff] %v7120_v60  ;;  %13443 = vst [vmem:[#allocation187_spill] sm:$0xff] %v7122_v57  ;;  %v7377_v57 = vld [vmem:[%s6334_s29 + $0x80] sm:$0xff] }
 0x201   : > { %1955 = vperm.xlu1 %5775, %v6489_v63   ;;  %1967 = vperm.xlu0 %5776, %v6508_v4  }
 0x203   : > { %v7126_v62 = vpop.permute.xlu1 %1531  ;;  %v7128_v59 = vpop.permute.xlu0 %1535 }
 0x204   : > { %13444 = vst [vmem:[#allocation188_spill] sm:$0xff] %v7126_v62  ;;  %13445 = vst [vmem:[#allocation189_spill] sm:$0xff] %v7128_v59  ;;  %v7365_v59 = vld [vmem:[%s6334_s29 + $0x70] sm:$0xff] }
 0x205   : > { %1963 = vperm.xlu1 %5775, %v6497_v1   ;;  %1975 = vperm.xlu0 %5776, %v6516_v6  }
 0x207   : > { %v7132_v0 = vpop.permute.xlu1 %1539  ;;  %v7134_v61 = vpop.permute.xlu0 %1543 }
 0x208   : > { %13446 = vst [vmem:[#allocation190_spill] sm:$0xff] %v7132_v0  ;;  %13447 = vst [vmem:[#allocation191_spill] sm:$0xff] %v7134_v61  ;;  %v7353_v61 = vld [vmem:[%s6334_s29 + $0x60] sm:$0xff] }
 0x209   : > { %1971 = vperm.xlu1 %5775, %v6505_v3   ;;  %1983 = vperm.xlu0 %5776, %v6524_v8   ;;  %v13454_v8 = vld [vmem:[#allocation3_spill] sm:$0xff] }
 0x20b   : > { %v7138_v2 = vpop.permute.xlu1 %1547  ;;  %v7140_v63 = vpop.permute.xlu0 %1551 }
 0x20c   : > { %13448 = vst [vmem:[#allocation192_spill] sm:$0xff] %v7138_v2  ;;  %13449 = vst [vmem:[#allocation193_spill] sm:$0xff] %v7140_v63  ;;  %v13455_v2 = vld [vmem:[#allocation6_spill] sm:$0xff] }
 0x20d   : > { %1979 = vperm.xlu1 %5775, %v6513_v5   ;;  %1991 = vperm.xlu0 %5776, %v6532_v10   ;;  %v13458_v10 = vld [vmem:[#allocation4_spill] sm:$0xff] }
 0x20f   : > { %v7144_v4 = vpop.permute.xlu1 %1555  ;;  %v7146_v1 = vpop.permute.xlu0 %1559 }
 0x210   : > { %13450 = vst [vmem:[#allocation194_spill] sm:$0xff] %v7144_v4  ;;  %13451 = vst [vmem:[#allocation195_spill] sm:$0xff] %v7146_v1  ;;  %v13459_v4 = vld [vmem:[#allocation8_spill] sm:$0xff] }
 0x211   : > { %1987 = vperm.xlu1 %5775, %v6521_v7   ;;  %1999 = vperm.xlu0 %5776, %v6540_v12   ;;  %v13462_v12 = vld [vmem:[#allocation5_spill] sm:$0xff] }
 0x213   : > { %v7150_v6 = vpop.permute.xlu1 %1563  ;;  %v7152_v3 = vpop.permute.xlu0 %1567 }
 0x214   : > { %13452 = vst [vmem:[#allocation196_spill] sm:$0xff] %v7150_v6  ;;  %13453 = vst [vmem:[#allocation197_spill] sm:$0xff] %v7152_v3  ;;  %v13463_v6 = vld [vmem:[#allocation10_spill] sm:$0xff] }
 0x215   : > { %1995 = vperm.xlu1 %5775, %v13454_v8   ;;  %2007 = vperm.xlu0 %5776, %v13455_v2   ;;  %v13466_v2 = vld [vmem:[#allocation7_spill] sm:$0xff] }
 0x217   : > { %v7156_v63 = vpop.permute.xlu1 %1571  ;;  %v7158_v5 = vpop.permute.xlu0 %1575 }
 0x218   : > { %13456 = vst [vmem:[#allocation3_spill] sm:$0xff] %v7156_v63  ;;  %13457 = vst [vmem:[#allocation6_spill] sm:$0xff] %v7158_v5  ;;  %v13467_v63 = vld [vmem:[#allocation12_spill] sm:$0xff] }
 0x219   : > { %2003 = vperm.xlu1 %5775, %v13458_v10   ;;  %2015 = vperm.xlu0 %5776, %v13459_v4   ;;  %v13470_v4 = vld [vmem:[#allocation9_spill] sm:$0xff] }
 0x21b   : > { %v7162_v1 = vpop.permute.xlu1 %1579  ;;  %v7164_v7 = vpop.permute.xlu0 %1583 }
 0x21c   : > { %13460 = vst [vmem:[#allocation4_spill] sm:$0xff] %v7162_v1  ;;  %13461 = vst [vmem:[#allocation8_spill] sm:$0xff] %v7164_v7  ;;  %v13471_v1 = vld [vmem:[#allocation14_spill] sm:$0xff] }
 0x21d   : > { %2011 = vperm.xlu1 %5775, %v13462_v12   ;;  %2023 = vperm.xlu0 %5776, %v13463_v6   ;;  %v13474_v6 = vld [vmem:[#allocation11_spill] sm:$0xff] }
 0x21f   : > { %v7168_v3 = vpop.permute.xlu1 %1587  ;;  %v7170_v8 = vpop.permute.xlu0 %1591 }
 0x220   : > { %13464 = vst [vmem:[#allocation5_spill] sm:$0xff] %v7168_v3  ;;  %13465 = vst [vmem:[#allocation10_spill] sm:$0xff] %v7170_v8  ;;  %v13475_v3 = vld [vmem:[#allocation16_spill] sm:$0xff] }
 0x221   : > { %2019 = vperm.xlu1 %5775, %v13466_v2   ;;  %2031 = vperm.xlu0 %5776, %v13467_v63   ;;  %v13478_v63 = vld [vmem:[#allocation13_spill] sm:$0xff] }
 0x223   : > { %v7174_v5 = vpop.permute.xlu1 %1595  ;;  %v7176_v10 = vpop.permute.xlu0 %1599 }
 0x224   : > { %13468 = vst [vmem:[#allocation7_spill] sm:$0xff] %v7174_v5  ;;  %13469 = vst [vmem:[#allocation12_spill] sm:$0xff] %v7176_v10  ;;  %v13479_v5 = vld [vmem:[#allocation18_spill] sm:$0xff] }
 0x225   : > { %2027 = vperm.xlu1 %5775, %v13470_v4   ;;  %2039 = vperm.xlu0 %5776, %v13471_v1   ;;  %v13482_v1 = vld [vmem:[#allocation15_spill] sm:$0xff] }
 0x227   : > { %v7180_v7 = vpop.permute.xlu1 %1603  ;;  %v7182_v12 = vpop.permute.xlu0 %1607 }
 0x228   : > { %13472 = vst [vmem:[#allocation9_spill] sm:$0xff] %v7180_v7  ;;  %13473 = vst [vmem:[#allocation14_spill] sm:$0xff] %v7182_v12  ;;  %v13483_v7 = vld [vmem:[#allocation22_spill] sm:$0xff] }
 0x229   : > { %2035 = vperm.xlu1 %5775, %v13474_v6   ;;  %2047 = vperm.xlu0 %5776, %v13475_v3   ;;  %v13486_v3 = vld [vmem:[#allocation17_spill] sm:$0xff] }
 0x22b   : > { %v7186_v8 = vpop.permute.xlu1 %1611  ;;  %v7188_v2 = vpop.permute.xlu0 %1615 }
 0x22c   : > { %13476 = vst [vmem:[#allocation11_spill] sm:$0xff] %v7186_v8  ;;  %13477 = vst [vmem:[#allocation16_spill] sm:$0xff] %v7188_v2  ;;  %v13487_v8 = vld [vmem:[#allocation26_spill] sm:$0xff] }
 0x22d   : > { %2043 = vperm.xlu1 %5775, %v13478_v63   ;;  %2055 = vperm.xlu0 %5776, %v13479_v5   ;;  %v13490_v5 = vld [vmem:[#allocation21_spill] sm:$0xff] }
 0x230   : > { %v7192_v10 = vpop.permute.xlu1 %1799  ;;  %v7194_v4 = vpop.permute.xlu0 %1803 }
 0x231   : > { %13480 = vst [vmem:[#allocation13_spill] sm:$0xff] %v7192_v10  ;;  %13481 = vst [vmem:[#allocation18_spill] sm:$0xff] %v7194_v4  ;;  %2051 = vperm.xlu1 %5775, %v13482_v1   ;;  %2063 = vperm.xlu0 %5776, %v13483_v7   ;;  %v13491_v10 = vld [vmem:[#allocation30_spill] sm:$0xff]  ;;  %v13494_v7 = vld [vmem:[#allocation25_spill] sm:$0xff] }
 0x234   : > { %v7198_v12 = vpop.permute.xlu1 %1807  ;;  %v7200_v6 = vpop.permute.xlu0 %1815 }
 0x235   : > { %13484 = vst [vmem:[#allocation15_spill] sm:$0xff] %v7198_v12  ;;  %13485 = vst [vmem:[#allocation22_spill] sm:$0xff] %v7200_v6  ;;  %2059 = vperm.xlu1 %5775, %v13486_v3   ;;  %2071 = vperm.xlu0 %5776, %v13487_v8   ;;  %v13495_v12 = vld [vmem:[#allocation34_spill] sm:$0xff]  ;;  %v13498_v8 = vld [vmem:[#allocation29_spill] sm:$0xff] }
 0x238   : > { %v7204_v2 = vpop.permute.xlu1 %1811  ;;  %v7206_v63 = vpop.permute.xlu0 %1823 }
 0x239   : > { %13488 = vst [vmem:[#allocation17_spill] sm:$0xff] %v7204_v2  ;;  %13489 = vst [vmem:[#allocation26_spill] sm:$0xff] %v7206_v63  ;;  %2067 = vperm.xlu1 %5775, %v13490_v5   ;;  %2079 = vperm.xlu0 %5776, %v13491_v10   ;;  %v13499_v2 = vld [vmem:[#allocation38_spill] sm:$0xff]  ;;  %v13502_v10 = vld [vmem:[#allocation33_spill] sm:$0xff] }
 0x23c   : > { %v7210_v4 = vpop.permute.xlu1 %1819  ;;  %v7212_v1 = vpop.permute.xlu0 %1831 }
 0x23d   : > { %13492 = vst [vmem:[#allocation21_spill] sm:$0xff] %v7210_v4  ;;  %13493 = vst [vmem:[#allocation30_spill] sm:$0xff] %v7212_v1  ;;  %2075 = vperm.xlu1 %5775, %v13494_v7   ;;  %2087 = vperm.xlu0 %5776, %v13495_v12   ;;  %v13503_v4 = vld [vmem:[#allocation42_spill] sm:$0xff]  ;;  %v13506_v12 = vld [vmem:[#allocation37_spill] sm:$0xff] }
 0x240   : > { %v7216_v6 = vpop.permute.xlu1 %1827  ;;  %v7218_v3 = vpop.permute.xlu0 %1839 }
 0x241   : > { %13496 = vst [vmem:[#allocation25_spill] sm:$0xff] %v7216_v6  ;;  %13497 = vst [vmem:[#allocation34_spill] sm:$0xff] %v7218_v3  ;;  %2083 = vperm.xlu1 %5775, %v13498_v8   ;;  %2095 = vperm.xlu0 %5776, %v13499_v2   ;;  %v13507_v6 = vld [vmem:[#allocation46_spill] sm:$0xff]  ;;  %v13510_v2 = vld [vmem:[#allocation41_spill] sm:$0xff] }
 0x244   : > { %v7222_v63 = vpop.permute.xlu1 %1835  ;;  %v7224_v5 = vpop.permute.xlu0 %1847 }
 0x245   : > { %13500 = vst [vmem:[#allocation29_spill] sm:$0xff] %v7222_v63  ;;  %13501 = vst [vmem:[#allocation38_spill] sm:$0xff] %v7224_v5  ;;  %2091 = vperm.xlu1 %5775, %v13502_v10   ;;  %2103 = vperm.xlu0 %5776, %v13503_v4   ;;  %v13513_v4 = vld [vmem:[#allocation45_spill] sm:$0xff] }
 0x248   : > { %v7228_v1 = vpop.permute.xlu1 %1843  ;;  %v7230_v7 = vpop.permute.xlu0 %1855 }
 0x249   : > { %13504 = vst [vmem:[#allocation33_spill] sm:$0xff] %v7228_v1  ;;  %13505 = vst [vmem:[#allocation42_spill] sm:$0xff] %v7230_v7  ;;  %2099 = vperm.xlu1 %5775, %v13506_v12   ;;  %2111 = vperm.xlu0 %5776, %v13507_v6   ;;  %v7341_v1 = vld [vmem:[%s6334_s29 + $0x50] sm:$0xff] }
 0x24c   : > { %v7234_v3 = vpop.permute.xlu1 %1851  ;;  %v7236_v8 = vpop.permute.xlu0 %1863 }
 0x24d   : > { %13508 = vst [vmem:[#allocation37_spill] sm:$0xff] %v7234_v3  ;;  %13509 = vst [vmem:[#allocation46_spill] sm:$0xff] %v7236_v8  ;;  %2107 = vperm.xlu1 %5775, %v13510_v2   ;;  %2119 = vperm.xlu0 %5776, %v13391_v13   ;;  %v7329_v3 = vld [vmem:[%s6334_s29 + $0x40] sm:$0xff] }
 0x250   : > { %v7240_v5 = vpop.permute.xlu1 %1859  ;;  %v7242_v10 = vpop.permute.xlu0 %1871 }
 0x251   : > { %13511 = vst [vmem:[#allocation41_spill] sm:$0xff] %v7240_v5  ;;  %13512 = vst [vmem:[#allocation198_spill] sm:$0xff] %v7242_v10  ;;  %2115 = vperm.xlu1 %5775, %v13513_v4   ;;  %2127 = vperm.xlu0 %5776, %v13395_v17   ;;  %v13518_v5 = vld [vmem:[#allocation53_spill] sm:$0xff] }
 0x252   : > { %v7317_v10 = vld [vmem:[%s6334_s29 + $0x30] sm:$0xff] }
 0x254   : > { %v7246_v12 = vpop.permute.xlu1 %1867  ;;  %v7248_v6 = vpop.permute.xlu0 %1879 }
 0x255   : > { %13514 = vst [vmem:[#allocation45_spill] sm:$0xff] %v7246_v12  ;;  %13515 = vst [vmem:[#allocation199_spill] sm:$0xff] %v7248_v6  ;;  %2123 = vperm.xlu1 %5775, %v13392_v19   ;;  %2135 = vperm.xlu0 %5776, %v6716_v21   ;;  %v6091_v19 = vmov 3   ;;  %v7264_v6 = vld [vmem:[%s6334_s29] sm:$0xff] }
 0x258   : > { %v7252_v2 = vpop.permute.xlu1 %1875  ;;  %v7254_v13 = vpop.permute.xlu0 %1887 }
 0x259   : > { %13516 = vst [vmem:[#allocation200_spill] sm:$0xff] %v7252_v2  ;;  %13517 = vst [vmem:[#allocation201_spill] sm:$0xff] %v7254_v13  ;;  %2131 = vperm.xlu1 %5775, %v13518_v5   ;;  %2143 = vperm.xlu0 %5776, %v6728_v23   ;;  %v7273_v23 = vld [vmem:[%s6334_s29 + $0x18] sm:$0xff]  ;;  %v7293_v13 = vld [vmem:[%s6334_s29 + $0x10] sm:$0xff] }
 0x25a   : > { %v7305_v2 = vld [vmem:[%s6334_s29 + $0x20] sm:$0xff] }
 0x25b   : > { %13530 = vst [vmem:[#allocation212_spill] sm:$0xff] %v7305_v2 }
 0x25c   : > { %v7258_v4 = vpop.permute.xlu1 %1883  ;;  %v7260_v17 = vpop.permute.xlu0 %1895 }
 0x25d   : > { %13519 = vst [vmem:[#allocation53_spill] sm:$0xff] %v7258_v4  ;;  %13520 = vst [vmem:[#allocation202_spill] sm:$0xff] %v7260_v17  ;;  %2139 = vperm.xlu1 %5775, %v13399_v18   ;;  %5777 = vset.pattern.permute.xlu0 %v6091_v19  ;;  %v7281_v4 = vld [vmem:[%s6334_s29 + $0x8] sm:$0xff] }
 0x25e   : > { %2331 = vperm.xlu0 %5777, %v7264_v6   ;;  %13525 = vst [vmem:[#allocation207_spill] sm:$0xff] %v7281_v4 }
 0x260   : > { %v7267_v21 = vpop.permute.xlu1 %1891  ;;  %v7269_v5 = vpop.permute.xlu0 %1903 }
 0x261   : > { %13521 = vst [vmem:[#allocation203_spill] sm:$0xff] %v7267_v21  ;;  %13522 = vst [vmem:[#allocation204_spill] sm:$0xff] %v7269_v5  ;;  %2147 = vperm.xlu1 %5775, %v6725_v20   ;;  %v7285_v21 = vld [vmem:[%s6334_s29 + $0x28] sm:$0xff] }
 0x262   : > { %2343 = vperm.xlu0 %5777, %v7273_v23  }
 0x264   : > { %v7276_v18 = vpop.permute.xlu1 %1899  ;;  %v7278_v17 = vpop.permute.xlu0 %1911 }
 0x265   : > { %13523 = vst [vmem:[#allocation205_spill] sm:$0xff] %v7276_v18  ;;  %13524 = vst [vmem:[#allocation206_spill] sm:$0xff] %v7278_v17  ;;  %5778 = vset.pattern.permute.xlu1 %v6091_v19  ;;  %v7297_v17 = vld [vmem:[%s6334_s29 + $0x38] sm:$0xff] }
 0x266   : > { %2335 = vperm.xlu1 %5778, %v7281_v4   ;;  %2351 = vperm.xlu0 %5777, %v7285_v21  }
 0x268   : > { %v7288_v20 = vpop.permute.xlu1 %1907  ;;  %v7290_v5 = vpop.permute.xlu0 %1919 }
 0x269   : > { %13526 = vst [vmem:[#allocation208_spill] sm:$0xff] %v7288_v20  ;;  %13527 = vst [vmem:[#allocation209_spill] sm:$0xff] %v7290_v5  ;;  %v7309_v20 = vld [vmem:[%s6334_s29 + $0x48] sm:$0xff] }
 0x26a   : > { %2339 = vperm.xlu1 %5778, %v7293_v13   ;;  %2359 = vperm.xlu0 %5777, %v7297_v17  }
 0x26c   : > { %v7300_v19 = vpop.permute.xlu1 %1915  ;;  %v7302_v18 = vpop.permute.xlu0 %1927 }
 0x26d   : > { %13528 = vst [vmem:[#allocation210_spill] sm:$0xff] %v7300_v19  ;;  %13529 = vst [vmem:[#allocation211_spill] sm:$0xff] %v7302_v18  ;;  %v7321_v19 = vld [vmem:[%s6334_s29 + $0x58] sm:$0xff] }
 0x26e   : > { %2347 = vperm.xlu1 %5778, %v7305_v2   ;;  %2367 = vperm.xlu0 %5777, %v7309_v20  }
 0x270   : > { %v7312_v5 = vpop.permute.xlu1 %1923  ;;  %v7314_v12 = vpop.permute.xlu0 %1935 }
 0x271   : > { %13531 = vst [vmem:[#allocation213_spill] sm:$0xff] %v7312_v5  ;;  %13532 = vst [vmem:[#allocation214_spill] sm:$0xff] %v7314_v12  ;;  %v7333_v5 = vld [vmem:[%s6334_s29 + $0x68] sm:$0xff] }
 0x272   : > { %2355 = vperm.xlu1 %5778, %v7317_v10   ;;  %2375 = vperm.xlu0 %5777, %v7321_v19  }
 0x274   : > { %v7324_v18 = vpop.permute.xlu1 %1931  ;;  %v7326_v8 = vpop.permute.xlu0 %1943 }
 0x275   : > { %13533 = vst [vmem:[#allocation215_spill] sm:$0xff] %v7324_v18  ;;  %13534 = vst [vmem:[#allocation216_spill] sm:$0xff] %v7326_v8  ;;  %v7345_v18 = vld [vmem:[%s6334_s29 + $0x78] sm:$0xff] }
 0x276   : > { %2363 = vperm.xlu1 %5778, %v7329_v3   ;;  %2383 = vperm.xlu0 %5777, %v7333_v5  }
 0x278   : > { %v7336_v12 = vpop.permute.xlu1 %1939  ;;  %v7338_v7 = vpop.permute.xlu0 %1951 }
 0x279   : > { %13535 = vst [vmem:[#allocation217_spill] sm:$0xff] %v7336_v12  ;;  %13536 = vst [vmem:[#allocation218_spill] sm:$0xff] %v7338_v7  ;;  %v7357_v12 = vld [vmem:[%s6334_s29 + $0x88] sm:$0xff] }
 0x27a   : > { %2371 = vperm.xlu1 %5778, %v7341_v1   ;;  %2391 = vperm.xlu0 %5777, %v7345_v18  }
 0x27c   : > { %v7348_v8 = vpop.permute.xlu1 %1947  ;;  %v7350_v63 = vpop.permute.xlu0 %1959 }
 0x27d   : > { %13537 = vst [vmem:[#allocation219_spill] sm:$0xff] %v7348_v8  ;;  %13538 = vst [vmem:[#allocation220_spill] sm:$0xff] %v7350_v63  ;;  %v7369_v8 = vld [vmem:[%s6334_s29 + $0x98] sm:$0xff] }
 0x27e   : > { %2379 = vperm.xlu1 %5778, %v7353_v61   ;;  %2399 = vperm.xlu0 %5777, %v7357_v12  }
 0x280   : > { %v7360_v7 = vpop.permute.xlu1 %1955  ;;  %v7362_v0 = vpop.permute.xlu0 %1967 }
 0x281   : > { %13539 = vst [vmem:[#allocation221_spill] sm:$0xff] %v7360_v7  ;;  %13540 = vst [vmem:[#allocation222_spill] sm:$0xff] %v7362_v0  ;;  %v7381_v7 = vld [vmem:[%s6334_s29 + $0xa8] sm:$0xff] }
 0x282   : > { %2387 = vperm.xlu1 %5778, %v7365_v59   ;;  %2407 = vperm.xlu0 %5777, %v7369_v8  }
 0x284   : > { %v7372_v63 = vpop.permute.xlu1 %1963  ;;  %v7374_v62 = vpop.permute.xlu0 %1975 }
 0x285   : > { %13541 = vst [vmem:[#allocation223_spill] sm:$0xff] %v7372_v63  ;;  %13542 = vst [vmem:[#allocation224_spill] sm:$0xff] %v7374_v62  ;;  %v7393_v63 = vld [vmem:[%s6334_s29 + $0xb8] sm:$0xff] }
 0x286   : > { %2395 = vperm.xlu1 %5778, %v7377_v57   ;;  %2415 = vperm.xlu0 %5777, %v7381_v7  }
 0x288   : > { %v7384_v0 = vpop.permute.xlu1 %1971  ;;  %v7386_v60 = vpop.permute.xlu0 %1983 }
 0x289   : > { %13543 = vst [vmem:[#allocation225_spill] sm:$0xff] %v7384_v0  ;;  %13544 = vst [vmem:[#allocation226_spill] sm:$0xff] %v7386_v60  ;;  %v7405_v0 = vld [vmem:[%s6334_s29 + $0xc8] sm:$0xff] }
 0x28a   : > { %2403 = vperm.xlu1 %5778, %v7389_v55   ;;  %2423 = vperm.xlu0 %5777, %v7393_v63  }
 0x28c   : > { %v7396_v62 = vpop.permute.xlu1 %1979  ;;  %v7398_v58 = vpop.permute.xlu0 %1991 }
 0x28d   : > { %13545 = vst [vmem:[#allocation227_spill] sm:$0xff] %v7396_v62  ;;  %13546 = vst [vmem:[#allocation228_spill] sm:$0xff] %v7398_v58  ;;  %v7417_v62 = vld [vmem:[%s6334_s29 + $0xd8] sm:$0xff] }
 0x28e   : > { %2411 = vperm.xlu1 %5778, %v7401_v53   ;;  %2431 = vperm.xlu0 %5777, %v7405_v0  }
 0x290   : > { %v7408_v60 = vpop.permute.xlu1 %1987  ;;  %v7410_v56 = vpop.permute.xlu0 %1999 }
 0x291   : > { %13547 = vst [vmem:[#allocation229_spill] sm:$0xff] %v7408_v60  ;;  %13548 = vst [vmem:[#allocation230_spill] sm:$0xff] %v7410_v56  ;;  %v7429_v60 = vld [vmem:[%s6334_s29 + $0xe8] sm:$0xff] }
 0x292   : > { %2419 = vperm.xlu1 %5778, %v7413_v51   ;;  %2439 = vperm.xlu0 %5777, %v7417_v62  }
 0x294   : > { %v7420_v58 = vpop.permute.xlu1 %1995  ;;  %v7422_v54 = vpop.permute.xlu0 %2007 }
 0x295   : > { %13549 = vst [vmem:[#allocation231_spill] sm:$0xff] %v7420_v58  ;;  %13550 = vst [vmem:[#allocation232_spill] sm:$0xff] %v7422_v54  ;;  %v7441_v58 = vld [vmem:[%s6334_s29 + $0xf8] sm:$0xff] }
 0x296   : > { %2427 = vperm.xlu1 %5778, %v7425_v49   ;;  %2447 = vperm.xlu0 %5777, %v7429_v60  }
 0x298   : > { %v7432_v56 = vpop.permute.xlu1 %2003  ;;  %v7434_v52 = vpop.permute.xlu0 %2015 }
 0x299   : > { %13551 = vst [vmem:[#allocation233_spill] sm:$0xff] %v7432_v56  ;;  %13552 = vst [vmem:[#allocation234_spill] sm:$0xff] %v7434_v52  ;;  %v7453_v56 = vld [vmem:[%s6334_s29 + $0x108] sm:$0xff] }
 0x29a   : > { %2435 = vperm.xlu1 %5778, %v7437_v47   ;;  %2455 = vperm.xlu0 %5777, %v7441_v58  }
 0x29c   : > { %v7444_v54 = vpop.permute.xlu1 %2011  ;;  %v7446_v50 = vpop.permute.xlu0 %2023 }
 0x29d   : > { %13553 = vst [vmem:[#allocation235_spill] sm:$0xff] %v7444_v54  ;;  %13554 = vst [vmem:[#allocation236_spill] sm:$0xff] %v7446_v50  ;;  %v7465_v54 = vld [vmem:[%s6334_s29 + $0x118] sm:$0xff] }
 0x29e   : > { %2443 = vperm.xlu1 %5778, %v7449_v45   ;;  %2463 = vperm.xlu0 %5777, %v7453_v56  }
 0x2a0   : > { %v7456_v52 = vpop.permute.xlu1 %2019  ;;  %v7458_v48 = vpop.permute.xlu0 %2031 }
 0x2a1   : > { %13555 = vst [vmem:[#allocation237_spill] sm:$0xff] %v7456_v52  ;;  %13556 = vst [vmem:[#allocation238_spill] sm:$0xff] %v7458_v48  ;;  %v7477_v52 = vld [vmem:[%s6334_s29 + $0x128] sm:$0xff] }
 0x2a2   : > { %2451 = vperm.xlu1 %5778, %v7461_v43   ;;  %2471 = vperm.xlu0 %5777, %v7465_v54  }
 0x2a4   : > { %v7468_v50 = vpop.permute.xlu1 %2027  ;;  %v7470_v46 = vpop.permute.xlu0 %2039 }
 0x2a5   : > { %13557 = vst [vmem:[#allocation239_spill] sm:$0xff] %v7468_v50  ;;  %13558 = vst [vmem:[#allocation240_spill] sm:$0xff] %v7470_v46  ;;  %v7489_v50 = vld [vmem:[%s6334_s29 + $0x138] sm:$0xff] }
 0x2a6   : > { %2459 = vperm.xlu1 %5778, %v7473_v41   ;;  %2479 = vperm.xlu0 %5777, %v7477_v52  }
 0x2a8   : > { %v7480_v48 = vpop.permute.xlu1 %2035  ;;  %v7482_v44 = vpop.permute.xlu0 %2047 }
 0x2a9   : > { %13559 = vst [vmem:[#allocation241_spill] sm:$0xff] %v7480_v48  ;;  %13560 = vst [vmem:[#allocation242_spill] sm:$0xff] %v7482_v44  ;;  %v7501_v48 = vld [vmem:[%s6334_s29 + $0x148] sm:$0xff] }
 0x2aa   : > { %2467 = vperm.xlu1 %5778, %v7485_v39   ;;  %2487 = vperm.xlu0 %5777, %v7489_v50  }
 0x2ac   : > { %v7492_v46 = vpop.permute.xlu1 %2043  ;;  %v7494_v42 = vpop.permute.xlu0 %2055 }
 0x2ad   : > { %13561 = vst [vmem:[#allocation243_spill] sm:$0xff] %v7492_v46  ;;  %13562 = vst [vmem:[#allocation244_spill] sm:$0xff] %v7494_v42  ;;  %v7513_v46 = vld [vmem:[%s6334_s29 + $0x158] sm:$0xff] }
 0x2ae   : > { %2475 = vperm.xlu1 %5778, %v7497_v37   ;;  %2495 = vperm.xlu0 %5777, %v7501_v48  }
 0x2b0   : > { %v7504_v44 = vpop.permute.xlu1 %2051  ;;  %v7506_v40 = vpop.permute.xlu0 %2063 }
 0x2b1   : > { %13563 = vst [vmem:[#allocation245_spill] sm:$0xff] %v7504_v44  ;;  %13564 = vst [vmem:[#allocation246_spill] sm:$0xff] %v7506_v40  ;;  %v7525_v44 = vld [vmem:[%s6334_s29 + $0x168] sm:$0xff] }
 0x2b2   : > { %2483 = vperm.xlu1 %5778, %v7509_v35   ;;  %2503 = vperm.xlu0 %5777, %v7513_v46  }
 0x2b4   : > { %v7516_v42 = vpop.permute.xlu1 %2059  ;;  %v7518_v38 = vpop.permute.xlu0 %2071 }
 0x2b5   : > { %13565 = vst [vmem:[#allocation247_spill] sm:$0xff] %v7516_v42  ;;  %13566 = vst [vmem:[#allocation248_spill] sm:$0xff] %v7518_v38  ;;  %v7537_v42 = vld [vmem:[%s6334_s29 + $0x178] sm:$0xff] }
 0x2b6   : > { %2491 = vperm.xlu1 %5778, %v7521_v33   ;;  %2511 = vperm.xlu0 %5777, %v7525_v44  }
 0x2b8   : > { %v7528_v40 = vpop.permute.xlu1 %2067  ;;  %v7530_v36 = vpop.permute.xlu0 %2079 }
 0x2b9   : > { %13567 = vst [vmem:[#allocation249_spill] sm:$0xff] %v7528_v40  ;;  %13568 = vst [vmem:[#allocation250_spill] sm:$0xff] %v7530_v36  ;;  %v7549_v40 = vld [vmem:[%s6334_s29 + $0x188] sm:$0xff] }
 0x2ba   : > { %2499 = vperm.xlu1 %5778, %v7533_v31   ;;  %2519 = vperm.xlu0 %5777, %v7537_v42  }
 0x2bc   : > { %v7540_v38 = vpop.permute.xlu1 %2075  ;;  %v7542_v34 = vpop.permute.xlu0 %2087 }
 0x2bd   : > { %13569 = vst [vmem:[#allocation251_spill] sm:$0xff] %v7540_v38  ;;  %13570 = vst [vmem:[#allocation252_spill] sm:$0xff] %v7542_v34  ;;  %v7561_v38 = vld [vmem:[%s6334_s29 + $0x198] sm:$0xff] }
 0x2be   : > { %2507 = vperm.xlu1 %5778, %v7545_v29   ;;  %2527 = vperm.xlu0 %5777, %v7549_v40  }
 0x2c0   : > { %v7552_v36 = vpop.permute.xlu1 %2083  ;;  %v7554_v32 = vpop.permute.xlu0 %2095 }
 0x2c1   : > { %13571 = vst [vmem:[#allocation253_spill] sm:$0xff] %v7552_v36  ;;  %13572 = vst [vmem:[#allocation254_spill] sm:$0xff] %v7554_v32  ;;  %v7573_v36 = vld [vmem:[%s6334_s29 + $0x1a8] sm:$0xff] }
 0x2c2   : > { %2515 = vperm.xlu1 %5778, %v7557_v27   ;;  %2535 = vperm.xlu0 %5777, %v7561_v38   ;;  %13576 = vst [vmem:[#allocation258_spill] sm:$0xff] %v7573_v36 }
 0x2c4   : > { %v7564_v34 = vpop.permute.xlu1 %2091  ;;  %v7566_v30 = vpop.permute.xlu0 %2103 }
 0x2c5   : > { %13573 = vst [vmem:[#allocation255_spill] sm:$0xff] %v7564_v34  ;;  %13574 = vst [vmem:[#allocation256_spill] sm:$0xff] %v7566_v30  ;;  %v7585_v34 = vld [vmem:[%s6334_s29 + $0x1b8] sm:$0xff] }
 0x2c6   : > { %2523 = vperm.xlu1 %5778, %v7569_v25   ;;  %2543 = vperm.xlu0 %5777, %v7573_v36   ;;  %13580 = vst [vmem:[#allocation262_spill] sm:$0xff] %v7585_v34  ;;  %v7761_v36 = vld [vmem:[%s6334_s29 + $0x280] sm:$0xff] }
 0x2c7   : > { %13639 = vst [vmem:[#allocation321_spill] sm:$0xff] %v7761_v36 }
 0x2c8   : > { %v7576_v32 = vpop.permute.xlu1 %2099  ;;  %v7578_v28 = vpop.permute.xlu0 %2111 }
 0x2c9   : > { %13577 = vst [vmem:[#allocation259_spill] sm:$0xff] %v7576_v32  ;;  %13578 = vst [vmem:[#allocation260_spill] sm:$0xff] %v7578_v28  ;;  %v7597_v32 = vld [vmem:[%s6334_s29 + $0x1c8] sm:$0xff] }
 0x2ca   : > { %2531 = vperm.xlu1 %5778, %v7581_v26   ;;  %2551 = vperm.xlu0 %5777, %v7585_v34   ;;  %13584 = vst [vmem:[#allocation266_spill] sm:$0xff] %v7597_v32 }
 0x2cc   : > { %v7588_v30 = vpop.permute.xlu1 %2107  ;;  %v7590_v24 = vpop.permute.xlu0 %2119 }
 0x2cd   : > { %13581 = vst [vmem:[#allocation263_spill] sm:$0xff] %v7588_v30  ;;  %13582 = vst [vmem:[#allocation264_spill] sm:$0xff] %v7590_v24  ;;  %v7609_v30 = vld [vmem:[%s6334_s29 + $0x1d8] sm:$0xff] }
 0x2ce   : > { %2539 = vperm.xlu1 %5778, %v7593_v16   ;;  %2559 = vperm.xlu0 %5777, %v7597_v32   ;;  %13588 = vst [vmem:[#allocation270_spill] sm:$0xff] %v7609_v30 }
 0x2d0   : > { %v7600_v28 = vpop.permute.xlu1 %2115  ;;  %v7602_v22 = vpop.permute.xlu0 %2127 }
 0x2d1   : > { %13585 = vst [vmem:[#allocation267_spill] sm:$0xff] %v7600_v28  ;;  %13586 = vst [vmem:[#allocation268_spill] sm:$0xff] %v7602_v22  ;;  %v7621_v28 = vld [vmem:[%s6334_s29 + $0x1e8] sm:$0xff] }
 0x2d2   : > { %2547 = vperm.xlu1 %5778, %v7605_v14   ;;  %2567 = vperm.xlu0 %5777, %v7609_v30   ;;  %13592 = vst [vmem:[#allocation274_spill] sm:$0xff] %v7621_v28  ;;  %v7629_v30 = vld [vmem:[%s6334_s29 + $0x1d0] sm:$0xff] }
 0x2d3   : > { %13595 = vst [vmem:[#allocation277_spill] sm:$0xff] %v7629_v30 }
 0x2d4   : > { %v7612_v24 = vpop.permute.xlu1 %2123  ;;  %v7614_v11 = vpop.permute.xlu0 %2135 }
 0x2d5   : > { %13589 = vst [vmem:[#allocation271_spill] sm:$0xff] %v7612_v24  ;;  %13590 = vst [vmem:[#allocation272_spill] sm:$0xff] %v7614_v11  ;;  %v7633_v24 = vld [vmem:[%s6334_s29 + $0x1f8] sm:$0xff] }
 0x2d6   : > { %2555 = vperm.xlu1 %5778, %v7617_v15   ;;  %2575 = vperm.xlu0 %5777, %v7621_v28   ;;  %13596 = vst [vmem:[#allocation278_spill] sm:$0xff] %v7633_v24  ;;  %v7641_v28 = vld [vmem:[%s6334_s29 + $0x1e0] sm:$0xff] }
 0x2d7   : > { %13599 = vst [vmem:[#allocation281_spill] sm:$0xff] %v7641_v28 }
 0x2d8   : > { %v7624_v22 = vpop.permute.xlu1 %2131  ;;  %v7626_v9 = vpop.permute.xlu0 %2143 }
 0x2d9   : > { %13593 = vst [vmem:[#allocation275_spill] sm:$0xff] %v7624_v22  ;;  %13594 = vst [vmem:[#allocation276_spill] sm:$0xff] %v7626_v9  ;;  %v7645_v22 = vld [vmem:[%s6334_s29 + $0x208] sm:$0xff] }
 0x2da   : > { %2563 = vperm.xlu1 %5778, %v7629_v30   ;;  %2583 = vperm.xlu0 %5777, %v7633_v24   ;;  %13600 = vst [vmem:[#allocation282_spill] sm:$0xff] %v7645_v22  ;;  %v7653_v24 = vld [vmem:[%s6334_s29 + $0x1f0] sm:$0xff] }
 0x2db   : > { %13603 = vst [vmem:[#allocation285_spill] sm:$0xff] %v7653_v24 }
 0x2dc   : > { %v7636_v11 = vpop.permute.xlu1 %2139 }
 0x2dd   : > { %13597 = vst [vmem:[#allocation279_spill] sm:$0xff] %v7636_v11  ;;  %v7638_v32 = vpop.permute.xlu0 %2331  ;;  %v7657_v11 = vld [vmem:[%s6334_s29 + $0x218] sm:$0xff] }
 0x2de   : > { %13598 = vst [vmem:[#allocation280_spill] sm:$0xff] %v7638_v32  ;;  %2571 = vperm.xlu1 %5778, %v7641_v28   ;;  %2591 = vperm.xlu0 %5777, %v7645_v22   ;;  %13604 = vst [vmem:[#allocation286_spill] sm:$0xff] %v7657_v11  ;;  %v7665_v22 = vld [vmem:[%s6334_s29 + $0x200] sm:$0xff] }
 0x2df   : > { %13607 = vst [vmem:[#allocation289_spill] sm:$0xff] %v7665_v22 }
 0x2e0   : > { %v7648_v9 = vpop.permute.xlu1 %2147 }
 0x2e1   : > { %13601 = vst [vmem:[#allocation283_spill] sm:$0xff] %v7648_v9  ;;  %v7650_v34 = vpop.permute.xlu0 %2343  ;;  %v7669_v9 = vld [vmem:[%s6334_s29 + $0x228] sm:$0xff] }
 0x2e2   : > { %13602 = vst [vmem:[#allocation284_spill] sm:$0xff] %v7650_v34  ;;  %2579 = vperm.xlu1 %5778, %v7653_v24   ;;  %2599 = vperm.xlu0 %5777, %v7657_v11   ;;  %13608 = vst [vmem:[#allocation290_spill] sm:$0xff] %v7669_v9  ;;  %v7677_v11 = vld [vmem:[%s6334_s29 + $0x210] sm:$0xff] }
 0x2e3   : > { %13611 = vst [vmem:[#allocation293_spill] sm:$0xff] %v7677_v11 }
 0x2e5   : > { %v7660_v32 = vpop.permute.xlu1 %2335  ;;  %v7662_v28 = vpop.permute.xlu0 %2351 }
 0x2e6   : > { %13605 = vst [vmem:[#allocation287_spill] sm:$0xff] %v7660_v32  ;;  %13606 = vst [vmem:[#allocation288_spill] sm:$0xff] %v7662_v28  ;;  %2587 = vperm.xlu1 %5778, %v7665_v22   ;;  %2607 = vperm.xlu0 %5777, %v7669_v9   ;;  %v7681_v32 = vld [vmem:[%s6334_s29 + $0x238] sm:$0xff]  ;;  %v7689_v9 = vld [vmem:[%s6334_s29 + $0x220] sm:$0xff] }
 0x2e7   : > { %13612 = vst [vmem:[#allocation294_spill] sm:$0xff] %v7681_v32  ;;  %13615 = vst [vmem:[#allocation297_spill] sm:$0xff] %v7689_v9 }
 0x2e9   : > { %v7672_v34 = vpop.permute.xlu1 %2339  ;;  %v7674_v24 = vpop.permute.xlu0 %2359 }
 0x2ea   : > { %13609 = vst [vmem:[#allocation291_spill] sm:$0xff] %v7672_v34  ;;  %13610 = vst [vmem:[#allocation292_spill] sm:$0xff] %v7674_v24  ;;  %2595 = vperm.xlu1 %5778, %v7677_v11   ;;  %2615 = vperm.xlu0 %5777, %v7681_v32   ;;  %v7693_v34 = vld [vmem:[%s6334_s29 + $0x248] sm:$0xff]  ;;  %v7701_v32 = vld [vmem:[%s6334_s29 + $0x230] sm:$0xff] }
 0x2eb   : > { %13616 = vst [vmem:[#allocation298_spill] sm:$0xff] %v7693_v34  ;;  %13619 = vst [vmem:[#allocation301_spill] sm:$0xff] %v7701_v32 }
 0x2ed   : > { %v7684_v28 = vpop.permute.xlu1 %2347  ;;  %v7686_v22 = vpop.permute.xlu0 %2367 }
 0x2ee   : > { %13613 = vst [vmem:[#allocation295_spill] sm:$0xff] %v7684_v28  ;;  %13614 = vst [vmem:[#allocation296_spill] sm:$0xff] %v7686_v22  ;;  %2603 = vperm.xlu1 %5778, %v7689_v9   ;;  %2623 = vperm.xlu0 %5777, %v7693_v34   ;;  %v7705_v28 = vld [vmem:[%s6334_s29 + $0x258] sm:$0xff]  ;;  %v7713_v34 = vld [vmem:[%s6334_s29 + $0x240] sm:$0xff] }
 0x2ef   : > { %13620 = vst [vmem:[#allocation302_spill] sm:$0xff] %v7705_v28  ;;  %13623 = vst [vmem:[#allocation305_spill] sm:$0xff] %v7713_v34 }
 0x2f1   : > { %v7696_v24 = vpop.permute.xlu1 %2355  ;;  %v7698_v11 = vpop.permute.xlu0 %2375 }
 0x2f2   : > { %13617 = vst [vmem:[#allocation299_spill] sm:$0xff] %v7696_v24  ;;  %13618 = vst [vmem:[#allocation300_spill] sm:$0xff] %v7698_v11  ;;  %2611 = vperm.xlu1 %5778, %v7701_v32   ;;  %2631 = vperm.xlu0 %5777, %v7705_v28   ;;  %v7717_v24 = vld [vmem:[%s6334_s29 + $0x268] sm:$0xff]  ;;  %v7725_v28 = vld [vmem:[%s6334_s29 + $0x250] sm:$0xff] }
 0x2f3   : > { %13624 = vst [vmem:[#allocation306_spill] sm:$0xff] %v7717_v24  ;;  %13627 = vst [vmem:[#allocation309_spill] sm:$0xff] %v7725_v28 }
 0x2f5   : > { %v7708_v22 = vpop.permute.xlu1 %2363  ;;  %v7710_v9 = vpop.permute.xlu0 %2383 }
 0x2f6   : > { %13621 = vst [vmem:[#allocation303_spill] sm:$0xff] %v7708_v22  ;;  %13622 = vst [vmem:[#allocation304_spill] sm:$0xff] %v7710_v9  ;;  %2619 = vperm.xlu1 %5778, %v7713_v34   ;;  %2639 = vperm.xlu0 %5777, %v7717_v24   ;;  %v7729_v22 = vld [vmem:[%s6334_s29 + $0x278] sm:$0xff]  ;;  %v7737_v24 = vld [vmem:[%s6334_s29 + $0x260] sm:$0xff] }
 0x2f7   : > { %13628 = vst [vmem:[#allocation310_spill] sm:$0xff] %v7729_v22  ;;  %13631 = vst [vmem:[#allocation313_spill] sm:$0xff] %v7737_v24 }
 0x2f9   : > { %v7720_v11 = vpop.permute.xlu1 %2371  ;;  %v7722_v32 = vpop.permute.xlu0 %2391 }
 0x2fa   : > { %13625 = vst [vmem:[#allocation307_spill] sm:$0xff] %v7720_v11  ;;  %13626 = vst [vmem:[#allocation308_spill] sm:$0xff] %v7722_v32  ;;  %2627 = vperm.xlu1 %5778, %v7725_v28   ;;  %2647 = vperm.xlu0 %5777, %v7729_v22   ;;  %v7741_v11 = vld [vmem:[%s6334_s29 + $0x288] sm:$0xff]  ;;  %v7749_v22 = vld [vmem:[%s6334_s29 + $0x270] sm:$0xff] }
 0x2fb   : > { %13632 = vst [vmem:[#allocation314_spill] sm:$0xff] %v7741_v11  ;;  %13635 = vst [vmem:[#allocation317_spill] sm:$0xff] %v7749_v22 }
 0x2fd   : > { %v7732_v9 = vpop.permute.xlu1 %2379  ;;  %v7734_v34 = vpop.permute.xlu0 %2399 }
 0x2fe   : > { %13629 = vst [vmem:[#allocation311_spill] sm:$0xff] %v7732_v9  ;;  %13630 = vst [vmem:[#allocation312_spill] sm:$0xff] %v7734_v34  ;;  %2635 = vperm.xlu1 %5778, %v7737_v24   ;;  %2655 = vperm.xlu0 %5777, %v7741_v11   ;;  %v7753_v9 = vld [vmem:[%s6334_s29 + $0x298] sm:$0xff] }
 0x2ff   : > { %13636 = vst [vmem:[#allocation318_spill] sm:$0xff] %v7753_v9 }
 0x301   : > { %v7744_v32 = vpop.permute.xlu1 %2387  ;;  %v7746_v28 = vpop.permute.xlu0 %2407 }
 0x302   : > { %13633 = vst [vmem:[#allocation315_spill] sm:$0xff] %v7744_v32  ;;  %13634 = vst [vmem:[#allocation316_spill] sm:$0xff] %v7746_v28  ;;  %2643 = vperm.xlu1 %5778, %v7749_v22   ;;  %2663 = vperm.xlu0 %5777, %v7753_v9   ;;  %v7765_v32 = vld [vmem:[%s6334_s29 + $0x2a8] sm:$0xff]  ;;  %v7773_v22 = vld [vmem:[%s6334_s29 + $0x290] sm:$0xff] }
 0x303   : > { %13640 = vst [vmem:[#allocation322_spill] sm:$0xff] %v7765_v32  ;;  %13643 = vst [vmem:[#allocation325_spill] sm:$0xff] %v7773_v22 }
 0x305   : > { %v7756_v34 = vpop.permute.xlu1 %2395  ;;  %v7758_v24 = vpop.permute.xlu0 %2415 }
 0x306   : > { %13637 = vst [vmem:[#allocation319_spill] sm:$0xff] %v7756_v34  ;;  %13638 = vst [vmem:[#allocation320_spill] sm:$0xff] %v7758_v24  ;;  %2651 = vperm.xlu1 %5778, %v7761_v36   ;;  %2671 = vperm.xlu0 %5777, %v7765_v32   ;;  %v7777_v34 = vld [vmem:[%s6334_s29 + $0x2b8] sm:$0xff]  ;;  %v7785_v36 = vld [vmem:[%s6334_s29 + $0x2a0] sm:$0xff]  ;;  %v6092_v32 = vmov 4  }
 0x307   : > { %13646 = vst [vmem:[#allocation328_spill] sm:$0xff] %v7785_v36 }
 0x309   : > { %v7768_v28 = vpop.permute.xlu1 %2403  ;;  %v7770_v11 = vpop.permute.xlu0 %2423 }
 0x30a   : > { %13641 = vst [vmem:[#allocation323_spill] sm:$0xff] %v7768_v28  ;;  %13642 = vst [vmem:[#allocation324_spill] sm:$0xff] %v7770_v11  ;;  %2659 = vperm.xlu1 %5778, %v7773_v22   ;;  %2679 = vperm.xlu0 %5777, %v7777_v34   ;;  %v7794_v22 = vld [vmem:[%s6334_s29 + $0x2b0] sm:$0xff] }
 0x30b   : > { %13649 = vst [vmem:[#allocation331_spill] sm:$0xff] %v7794_v22 }
 0x30d   : > { %v7780_v24 = vpop.permute.xlu1 %2411  ;;  %v7782_v9 = vpop.permute.xlu0 %2431 }
 0x30e   : > { %13644 = vst [vmem:[#allocation326_spill] sm:$0xff] %v7780_v24  ;;  %13645 = vst [vmem:[#allocation327_spill] sm:$0xff] %v7782_v9  ;;  %2667 = vperm.xlu1 %5778, %v7785_v36   ;;  %5780 = vset.pattern.permute.xlu0 %v6092_v32 }
 0x30f   : > { %2867 = vperm.xlu0 %5780, %v7281_v4  }
 0x311   : > { %v7789_v11 = vpop.permute.xlu1 %2419  ;;  %v7791_v28 = vpop.permute.xlu0 %2439 }
 0x312   : > { %13647 = vst [vmem:[#allocation329_spill] sm:$0xff] %v7789_v11  ;;  %13648 = vst [vmem:[#allocation330_spill] sm:$0xff] %v7791_v28  ;;  %2675 = vperm.xlu1 %5778, %v7794_v22  }
 0x313   : > { %2879 = vperm.xlu0 %5780, %v7305_v2  }
 0x315   : > { %v7798_v24 = vpop.permute.xlu1 %2427  ;;  %v7800_v9 = vpop.permute.xlu0 %2447 }
 0x316   : > { %13650 = vst [vmem:[#allocation332_spill] sm:$0xff] %v7798_v24  ;;  %13651 = vst [vmem:[#allocation333_spill] sm:$0xff] %v7800_v9  ;;  %5779 = vset.pattern.permute.xlu1 %v6092_v32  ;;  %v13706_v24 = vld [vmem:[#allocation258_spill] sm:$0xff] }
 0x317   : > { %2863 = vperm.xlu1 %5779, %v7264_v6   ;;  %2887 = vperm.xlu0 %5780, %v7317_v10  }
 0x319   : > { %v7804_v4 = vpop.permute.xlu1 %2435  ;;  %v7806_v11 = vpop.permute.xlu0 %2455 }
 0x31a   : > { %13652 = vst [vmem:[#allocation334_spill] sm:$0xff] %v7804_v4  ;;  %13653 = vst [vmem:[#allocation335_spill] sm:$0xff] %v7806_v11 }
 0x31b   : > { %2871 = vperm.xlu1 %5779, %v7293_v13   ;;  %2895 = vperm.xlu0 %5780, %v7329_v3  }
 0x31d   : > { %v7810_v28 = vpop.permute.xlu1 %2443  ;;  %v7812_v2 = vpop.permute.xlu0 %2463 }
 0x31e   : > { %13654 = vst [vmem:[#allocation336_spill] sm:$0xff] %v7810_v28  ;;  %13655 = vst [vmem:[#allocation337_spill] sm:$0xff] %v7812_v2 }
 0x31f   : > { %2875 = vperm.xlu1 %5779, %v7273_v23   ;;  %2903 = vperm.xlu0 %5780, %v7341_v1  }
 0x321   : > { %v7816_v32 = vpop.permute.xlu1 %2451  ;;  %v7818_v9 = vpop.permute.xlu0 %2471 }
 0x322   : > { %13656 = vst [vmem:[#allocation338_spill] sm:$0xff] %v7816_v32  ;;  %13657 = vst [vmem:[#allocation339_spill] sm:$0xff] %v7818_v9 }
 0x323   : > { %2883 = vperm.xlu1 %5779, %v7285_v21   ;;  %2911 = vperm.xlu0 %5780, %v7353_v61  }
 0x325   : > { %v7822_v11 = vpop.permute.xlu1 %2459  ;;  %v7824_v4 = vpop.permute.xlu0 %2479 }
 0x326   : > { %13658 = vst [vmem:[#allocation340_spill] sm:$0xff] %v7822_v11  ;;  %13659 = vst [vmem:[#allocation341_spill] sm:$0xff] %v7824_v4 }
 0x327   : > { %2891 = vperm.xlu1 %5779, %v7297_v17   ;;  %2919 = vperm.xlu0 %5780, %v7365_v59  }
 0x329   : > { %v7828_v2 = vpop.permute.xlu1 %2467  ;;  %v7830_v28 = vpop.permute.xlu0 %2487 }
 0x32a   : > { %13660 = vst [vmem:[#allocation342_spill] sm:$0xff] %v7828_v2  ;;  %13661 = vst [vmem:[#allocation343_spill] sm:$0xff] %v7830_v28 }
 0x32b   : > { %2899 = vperm.xlu1 %5779, %v7309_v20   ;;  %2927 = vperm.xlu0 %5780, %v7377_v57  }
 0x32d   : > { %v7834_v9 = vpop.permute.xlu1 %2475  ;;  %v7836_v32 = vpop.permute.xlu0 %2495 }
 0x32e   : > { %13662 = vst [vmem:[#allocation344_spill] sm:$0xff] %v7834_v9  ;;  %13663 = vst [vmem:[#allocation345_spill] sm:$0xff] %v7836_v32 }
 0x32f   : > { %2907 = vperm.xlu1 %5779, %v7321_v19   ;;  %2935 = vperm.xlu0 %5780, %v7389_v55  }
 0x331   : > { %v7840_v4 = vpop.permute.xlu1 %2483  ;;  %v7842_v11 = vpop.permute.xlu0 %2503 }
 0x332   : > { %13664 = vst [vmem:[#allocation346_spill] sm:$0xff] %v7840_v4  ;;  %13665 = vst [vmem:[#allocation347_spill] sm:$0xff] %v7842_v11 }
 0x333   : > { %2915 = vperm.xlu1 %5779, %v7333_v5   ;;  %2943 = vperm.xlu0 %5780, %v7401_v53  }
 0x335   : > { %v7846_v28 = vpop.permute.xlu1 %2491  ;;  %v7848_v2 = vpop.permute.xlu0 %2511 }
 0x336   : > { %13666 = vst [vmem:[#allocation348_spill] sm:$0xff] %v7846_v28  ;;  %13667 = vst [vmem:[#allocation349_spill] sm:$0xff] %v7848_v2 }
 0x337   : > { %2923 = vperm.xlu1 %5779, %v7345_v18   ;;  %2951 = vperm.xlu0 %5780, %v7413_v51  }
 0x339   : > { %v7852_v32 = vpop.permute.xlu1 %2499  ;;  %v7854_v9 = vpop.permute.xlu0 %2519 }
 0x33a   : > { %13668 = vst [vmem:[#allocation350_spill] sm:$0xff] %v7852_v32  ;;  %13669 = vst [vmem:[#allocation351_spill] sm:$0xff] %v7854_v9 }
 0x33b   : > { %2931 = vperm.xlu1 %5779, %v7357_v12   ;;  %2959 = vperm.xlu0 %5780, %v7425_v49  }
 0x33d   : > { %v7858_v11 = vpop.permute.xlu1 %2507  ;;  %v7860_v4 = vpop.permute.xlu0 %2527 }
 0x33e   : > { %13670 = vst [vmem:[#allocation352_spill] sm:$0xff] %v7858_v11  ;;  %13671 = vst [vmem:[#allocation353_spill] sm:$0xff] %v7860_v4 }
 0x33f   : > { %2939 = vperm.xlu1 %5779, %v7369_v8   ;;  %2967 = vperm.xlu0 %5780, %v7437_v47  }
 0x341   : > { %v7864_v2 = vpop.permute.xlu1 %2515  ;;  %v7866_v28 = vpop.permute.xlu0 %2535 }
 0x342   : > { %13672 = vst [vmem:[#allocation354_spill] sm:$0xff] %v7864_v2  ;;  %13673 = vst [vmem:[#allocation355_spill] sm:$0xff] %v7866_v28 }
 0x343   : > { %2947 = vperm.xlu1 %5779, %v7381_v7   ;;  %2975 = vperm.xlu0 %5780, %v7449_v45  }
 0x345   : > { %v7870_v9 = vpop.permute.xlu1 %2523  ;;  %v7872_v32 = vpop.permute.xlu0 %2543 }
 0x346   : > { %13674 = vst [vmem:[#allocation356_spill] sm:$0xff] %v7870_v9  ;;  %13675 = vst [vmem:[#allocation357_spill] sm:$0xff] %v7872_v32 }
 0x347   : > { %2955 = vperm.xlu1 %5779, %v7393_v63   ;;  %2983 = vperm.xlu0 %5780, %v7461_v43  }
 0x349   : > { %v7876_v4 = vpop.permute.xlu1 %2531  ;;  %v7878_v11 = vpop.permute.xlu0 %2551 }
 0x34a   : > { %13676 = vst [vmem:[#allocation358_spill] sm:$0xff] %v7876_v4  ;;  %13677 = vst [vmem:[#allocation359_spill] sm:$0xff] %v7878_v11 }
 0x34b   : > { %2963 = vperm.xlu1 %5779, %v7405_v0   ;;  %2991 = vperm.xlu0 %5780, %v7473_v41  }
 0x34d   : > { %v7882_v28 = vpop.permute.xlu1 %2539  ;;  %v7884_v2 = vpop.permute.xlu0 %2559 }
 0x34e   : > { %13678 = vst [vmem:[#allocation360_spill] sm:$0xff] %v7882_v28  ;;  %13679 = vst [vmem:[#allocation361_spill] sm:$0xff] %v7884_v2 }
 0x34f   : > { %2971 = vperm.xlu1 %5779, %v7417_v62   ;;  %2999 = vperm.xlu0 %5780, %v7485_v39  }
 0x351   : > { %v7888_v32 = vpop.permute.xlu1 %2547  ;;  %v7890_v9 = vpop.permute.xlu0 %2567 }
 0x352   : > { %13680 = vst [vmem:[#allocation362_spill] sm:$0xff] %v7888_v32  ;;  %13681 = vst [vmem:[#allocation363_spill] sm:$0xff] %v7890_v9 }
 0x353   : > { %2979 = vperm.xlu1 %5779, %v7429_v60   ;;  %3007 = vperm.xlu0 %5780, %v7497_v37  }
 0x355   : > { %v7894_v11 = vpop.permute.xlu1 %2555  ;;  %v7896_v4 = vpop.permute.xlu0 %2575 }
 0x356   : > { %13682 = vst [vmem:[#allocation364_spill] sm:$0xff] %v7894_v11  ;;  %13683 = vst [vmem:[#allocation365_spill] sm:$0xff] %v7896_v4 }
 0x357   : > { %2987 = vperm.xlu1 %5779, %v7441_v58   ;;  %3015 = vperm.xlu0 %5780, %v7509_v35  }
 0x359   : > { %v7900_v2 = vpop.permute.xlu1 %2563  ;;  %v7902_v28 = vpop.permute.xlu0 %2583 }
 0x35a   : > { %13684 = vst [vmem:[#allocation366_spill] sm:$0xff] %v7900_v2  ;;  %13685 = vst [vmem:[#allocation367_spill] sm:$0xff] %v7902_v28 }
 0x35b   : > { %2995 = vperm.xlu1 %5779, %v7453_v56   ;;  %3023 = vperm.xlu0 %5780, %v7521_v33  }
 0x35d   : > { %v7906_v9 = vpop.permute.xlu1 %2571  ;;  %v7908_v32 = vpop.permute.xlu0 %2591 }
 0x35e   : > { %13686 = vst [vmem:[#allocation368_spill] sm:$0xff] %v7906_v9  ;;  %13687 = vst [vmem:[#allocation369_spill] sm:$0xff] %v7908_v32 }
 0x35f   : > { %3003 = vperm.xlu1 %5779, %v7465_v54   ;;  %3031 = vperm.xlu0 %5780, %v7533_v31  }
 0x361   : > { %v7912_v4 = vpop.permute.xlu1 %2579  ;;  %v7914_v11 = vpop.permute.xlu0 %2599 }
 0x362   : > { %13688 = vst [vmem:[#allocation370_spill] sm:$0xff] %v7912_v4  ;;  %13689 = vst [vmem:[#allocation371_spill] sm:$0xff] %v7914_v11 }
 0x363   : > { %3011 = vperm.xlu1 %5779, %v7477_v52   ;;  %3039 = vperm.xlu0 %5780, %v7545_v29  }
 0x365   : > { %v7918_v28 = vpop.permute.xlu1 %2587  ;;  %v7920_v2 = vpop.permute.xlu0 %2607 }
 0x366   : > { %13690 = vst [vmem:[#allocation372_spill] sm:$0xff] %v7918_v28  ;;  %13691 = vst [vmem:[#allocation373_spill] sm:$0xff] %v7920_v2 }
 0x367   : > { %3019 = vperm.xlu1 %5779, %v7489_v50   ;;  %3047 = vperm.xlu0 %5780, %v7557_v27  }
 0x369   : > { %v7924_v32 = vpop.permute.xlu1 %2595  ;;  %v7926_v9 = vpop.permute.xlu0 %2615 }
 0x36a   : > { %13692 = vst [vmem:[#allocation374_spill] sm:$0xff] %v7924_v32  ;;  %13693 = vst [vmem:[#allocation375_spill] sm:$0xff] %v7926_v9 }
 0x36b   : > { %3027 = vperm.xlu1 %5779, %v7501_v48   ;;  %3055 = vperm.xlu0 %5780, %v7569_v25  }
 0x36d   : > { %v7930_v11 = vpop.permute.xlu1 %2603  ;;  %v7932_v4 = vpop.permute.xlu0 %2623 }
 0x36e   : > { %13694 = vst [vmem:[#allocation376_spill] sm:$0xff] %v7930_v11  ;;  %13695 = vst [vmem:[#allocation377_spill] sm:$0xff] %v7932_v4 }
 0x36f   : > { %3035 = vperm.xlu1 %5779, %v7513_v46   ;;  %3063 = vperm.xlu0 %5780, %v7581_v26  }
 0x371   : > { %v7936_v2 = vpop.permute.xlu1 %2611  ;;  %v7938_v28 = vpop.permute.xlu0 %2631 }
 0x372   : > { %13696 = vst [vmem:[#allocation378_spill] sm:$0xff] %v7936_v2  ;;  %13697 = vst [vmem:[#allocation379_spill] sm:$0xff] %v7938_v28 }
 0x373   : > { %3043 = vperm.xlu1 %5779, %v7525_v44   ;;  %3071 = vperm.xlu0 %5780, %v7593_v16  }
 0x375   : > { %v7942_v9 = vpop.permute.xlu1 %2619  ;;  %v7944_v32 = vpop.permute.xlu0 %2639 }
 0x376   : > { %13698 = vst [vmem:[#allocation380_spill] sm:$0xff] %v7942_v9  ;;  %13699 = vst [vmem:[#allocation381_spill] sm:$0xff] %v7944_v32 }
 0x377   : > { %3051 = vperm.xlu1 %5779, %v7537_v42   ;;  %3079 = vperm.xlu0 %5780, %v7605_v14  }
 0x379   : > { %v7948_v4 = vpop.permute.xlu1 %2627  ;;  %v7950_v11 = vpop.permute.xlu0 %2647 }
 0x37a   : > { %13700 = vst [vmem:[#allocation382_spill] sm:$0xff] %v7948_v4  ;;  %13701 = vst [vmem:[#allocation383_spill] sm:$0xff] %v7950_v11  ;;  %v13707_v4 = vld [vmem:[#allocation281_spill] sm:$0xff] }
 0x37b   : > { %3059 = vperm.xlu1 %5779, %v7549_v40   ;;  %3087 = vperm.xlu0 %5780, %v7617_v15   ;;  %v13710_v15 = vld [vmem:[#allocation262_spill] sm:$0xff] }
 0x37d   : > { %v7954_v28 = vpop.permute.xlu1 %2635  ;;  %v7956_v2 = vpop.permute.xlu0 %2655 }
 0x37e   : > { %13702 = vst [vmem:[#allocation384_spill] sm:$0xff] %v7954_v28  ;;  %13703 = vst [vmem:[#allocation385_spill] sm:$0xff] %v7956_v2  ;;  %v13711_v28 = vld [vmem:[#allocation285_spill] sm:$0xff] }
 0x37f   : > { %3067 = vperm.xlu1 %5779, %v7561_v38   ;;  %3095 = vperm.xlu0 %5780, %v7629_v30   ;;  %v13714_v30 = vld [vmem:[#allocation266_spill] sm:$0xff] }
 0x381   : > { %v7960_v32 = vpop.permute.xlu1 %2643  ;;  %v7962_v9 = vpop.permute.xlu0 %2663 }
 0x382   : > { %13704 = vst [vmem:[#allocation386_spill] sm:$0xff] %v7960_v32  ;;  %13705 = vst [vmem:[#allocation387_spill] sm:$0xff] %v7962_v9  ;;  %v13715_v32 = vld [vmem:[#allocation289_spill] sm:$0xff] }
 0x383   : > { %3075 = vperm.xlu1 %5779, %v13706_v24   ;;  %3103 = vperm.xlu0 %5780, %v13707_v4   ;;  %v13718_v4 = vld [vmem:[#allocation270_spill] sm:$0xff] }
 0x385   : > { %v7966_v11 = vpop.permute.xlu1 %2651  ;;  %v7968_v14 = vpop.permute.xlu0 %2671 }
 0x386   : > { %13708 = vst [vmem:[#allocation258_spill] sm:$0xff] %v7966_v11  ;;  %13709 = vst [vmem:[#allocation388_spill] sm:$0xff] %v7968_v14  ;;  %v13719_v11 = vld [vmem:[#allocation293_spill] sm:$0xff] }
 0x387   : > { %3083 = vperm.xlu1 %5779, %v13710_v15   ;;  %3111 = vperm.xlu0 %5780, %v13711_v28   ;;  %v13722_v28 = vld [vmem:[#allocation274_spill] sm:$0xff] }
 0x389   : > { %v7972_v2 = vpop.permute.xlu1 %2659  ;;  %v7974_v16 = vpop.permute.xlu0 %2679 }
 0x38a   : > { %13712 = vst [vmem:[#allocation262_spill] sm:$0xff] %v7972_v2  ;;  %13713 = vst [vmem:[#allocation389_spill] sm:$0xff] %v7974_v16  ;;  %v13723_v2 = vld [vmem:[#allocation297_spill] sm:$0xff] }
 0x38b   : > { %3091 = vperm.xlu1 %5779, %v13714_v30   ;;  %3119 = vperm.xlu0 %5780, %v13715_v32   ;;  %v13726_v32 = vld [vmem:[#allocation278_spill] sm:$0xff] }
 0x38d   : > { %v7978_v9 = vpop.permute.xlu1 %2667 }
 0x38e   : > { %13716 = vst [vmem:[#allocation390_spill] sm:$0xff] %v7978_v9  ;;  %v7980_v26 = vpop.permute.xlu0 %2867  ;;  %v13727_v9 = vld [vmem:[#allocation301_spill] sm:$0xff] }
 0x38f   : > { %13717 = vst [vmem:[#allocation391_spill] sm:$0xff] %v7980_v26  ;;  %3099 = vperm.xlu1 %5779, %v13718_v4   ;;  %3127 = vperm.xlu0 %5780, %v13719_v11   ;;  %v13730_v11 = vld [vmem:[#allocation282_spill] sm:$0xff] }
 0x391   : > { %v7984_v14 = vpop.permute.xlu1 %2675 }
 0x392   : > { %13720 = vst [vmem:[#allocation392_spill] sm:$0xff] %v7984_v14  ;;  %v7986_v25 = vpop.permute.xlu0 %2879  ;;  %v13731_v14 = vld [vmem:[#allocation305_spill] sm:$0xff] }
 0x393   : > { %13721 = vst [vmem:[#allocation393_spill] sm:$0xff] %v7986_v25  ;;  %3107 = vperm.xlu1 %5779, %v13722_v28   ;;  %3135 = vperm.xlu0 %5780, %v13723_v2   ;;  %v13734_v2 = vld [vmem:[#allocation286_spill] sm:$0xff] }
 0x396   : > { %v7990_v16 = vpop.permute.xlu1 %2863  ;;  %v7992_v30 = vpop.permute.xlu0 %2887 }
 0x397   : > { %13724 = vst [vmem:[#allocation394_spill] sm:$0xff] %v7990_v16  ;;  %13725 = vst [vmem:[#allocation395_spill] sm:$0xff] %v7992_v30  ;;  %3115 = vperm.xlu1 %5779, %v13726_v32   ;;  %3143 = vperm.xlu0 %5780, %v13727_v9   ;;  %v13735_v16 = vld [vmem:[#allocation309_spill] sm:$0xff]  ;;  %v13738_v9 = vld [vmem:[#allocation290_spill] sm:$0xff] }
 0x39a   : > { %v7996_v26 = vpop.permute.xlu1 %2871  ;;  %v7998_v4 = vpop.permute.xlu0 %2895 }
 0x39b   : > { %13728 = vst [vmem:[#allocation396_spill] sm:$0xff] %v7996_v26  ;;  %13729 = vst [vmem:[#allocation397_spill] sm:$0xff] %v7998_v4  ;;  %3123 = vperm.xlu1 %5779, %v13730_v11   ;;  %3151 = vperm.xlu0 %5780, %v13731_v14   ;;  %v13739_v26 = vld [vmem:[#allocation313_spill] sm:$0xff]  ;;  %v13742_v14 = vld [vmem:[#allocation294_spill] sm:$0xff] }
 0x39e   : > { %v8002_v25 = vpop.permute.xlu1 %2875  ;;  %v8004_v28 = vpop.permute.xlu0 %2903 }
 0x39f   : > { %13732 = vst [vmem:[#allocation398_spill] sm:$0xff] %v8002_v25  ;;  %13733 = vst [vmem:[#allocation399_spill] sm:$0xff] %v8004_v28  ;;  %3131 = vperm.xlu1 %5779, %v13734_v2   ;;  %3159 = vperm.xlu0 %5780, %v13735_v16   ;;  %v13743_v25 = vld [vmem:[#allocation317_spill] sm:$0xff]  ;;  %v13746_v16 = vld [vmem:[#allocation298_spill] sm:$0xff] }
 0x3a2   : > { %v8008_v30 = vpop.permute.xlu1 %2883  ;;  %v8010_v32 = vpop.permute.xlu0 %2911 }
 0x3a3   : > { %13736 = vst [vmem:[#allocation400_spill] sm:$0xff] %v8008_v30  ;;  %13737 = vst [vmem:[#allocation401_spill] sm:$0xff] %v8010_v32  ;;  %3139 = vperm.xlu1 %5779, %v13738_v9   ;;  %3167 = vperm.xlu0 %5780, %v13739_v26   ;;  %v13747_v30 = vld [vmem:[#allocation321_spill] sm:$0xff]  ;;  %v13750_v26 = vld [vmem:[#allocation302_spill] sm:$0xff] }
 0x3a6   : > { %v8014_v4 = vpop.permute.xlu1 %2891  ;;  %v8016_v11 = vpop.permute.xlu0 %2919 }
 0x3a7   : > { %13740 = vst [vmem:[#allocation402_spill] sm:$0xff] %v8014_v4  ;;  %13741 = vst [vmem:[#allocation403_spill] sm:$0xff] %v8016_v11  ;;  %3147 = vperm.xlu1 %5779, %v13742_v14   ;;  %3175 = vperm.xlu0 %5780, %v13743_v25   ;;  %v13751_v4 = vld [vmem:[#allocation325_spill] sm:$0xff]  ;;  %v13754_v25 = vld [vmem:[#allocation306_spill] sm:$0xff] }
 0x3aa   : > { %v8020_v28 = vpop.permute.xlu1 %2899  ;;  %v8022_v2 = vpop.permute.xlu0 %2927 }
 0x3ab   : > { %13744 = vst [vmem:[#allocation404_spill] sm:$0xff] %v8020_v28  ;;  %13745 = vst [vmem:[#allocation405_spill] sm:$0xff] %v8022_v2  ;;  %3155 = vperm.xlu1 %5779, %v13746_v16   ;;  %3183 = vperm.xlu0 %5780, %v13747_v30   ;;  %v13757_v30 = vld [vmem:[#allocation310_spill] sm:$0xff] }
 0x3ae   : > { %v8026_v32 = vpop.permute.xlu1 %2907  ;;  %v8028_v9 = vpop.permute.xlu0 %2935 }
 0x3af   : > { %13748 = vst [vmem:[#allocation298_spill] sm:$0xff] %v8026_v32  ;;  %13749 = vst [vmem:[#allocation406_spill] sm:$0xff] %v8028_v9  ;;  %3163 = vperm.xlu1 %5779, %v13750_v26   ;;  %3191 = vperm.xlu0 %5780, %v13751_v4   ;;  %v13760_v4 = vld [vmem:[#allocation314_spill] sm:$0xff] }
 0x3b2   : > { %v8032_v11 = vpop.permute.xlu1 %2915  ;;  %v8034_v14 = vpop.permute.xlu0 %2943 }
 0x3b3   : > { %13752 = vst [vmem:[#allocation302_spill] sm:$0xff] %v8032_v11  ;;  %13753 = vst [vmem:[#allocation407_spill] sm:$0xff] %v8034_v14  ;;  %3171 = vperm.xlu1 %5779, %v13754_v25   ;;  %3199 = vperm.xlu0 %5780, %v7785_v36   ;;  %v6093_v11 = vmov 5  }
 0x3b6   : > { %v8038_v2 = vpop.permute.xlu1 %2923  ;;  %v8040_v28 = vpop.permute.xlu0 %2951 }
 0x3b7   : > { %13755 = vst [vmem:[#allocation306_spill] sm:$0xff] %v8038_v2  ;;  %13756 = vst [vmem:[#allocation408_spill] sm:$0xff] %v8040_v28  ;;  %3179 = vperm.xlu1 %5779, %v13757_v30   ;;  %3207 = vperm.xlu0 %5780, %v7794_v22   ;;  %v13763_v2 = vld [vmem:[#allocation318_spill] sm:$0xff] }
 0x3ba   : > { %v8044_v9 = vpop.permute.xlu1 %2931  ;;  %v8046_v32 = vpop.permute.xlu0 %2959 }
 0x3bb   : > { %13758 = vst [vmem:[#allocation310_spill] sm:$0xff] %v8044_v9  ;;  %13759 = vst [vmem:[#allocation409_spill] sm:$0xff] %v8046_v32  ;;  %3187 = vperm.xlu1 %5779, %v13760_v4   ;;  %5781 = vset.pattern.permute.xlu0 %v6093_v11  ;;  %v13766_v9 = vld [vmem:[#allocation322_spill] sm:$0xff] }
 0x3bc   : > { %3395 = vperm.xlu0 %5781, %v7264_v6  }
 0x3be   : > { %v8050_v14 = vpop.permute.xlu1 %2939  ;;  %v8052_v36 = vpop.permute.xlu0 %2967 }
 0x3bf   : > { %13761 = vst [vmem:[#allocation410_spill] sm:$0xff] %v8050_v14  ;;  %13762 = vst [vmem:[#allocation411_spill] sm:$0xff] %v8052_v36  ;;  %3195 = vperm.xlu1 %5779, %v13763_v2  }
 0x3c0   : > { %3407 = vperm.xlu0 %5781, %v7273_v23   ;;  %v13771_v23 = vld [vmem:[#allocation207_spill] sm:$0xff] }
 0x3c2   : > { %v8056_v28 = vpop.permute.xlu1 %2947  ;;  %v8058_v22 = vpop.permute.xlu0 %2975 }
 0x3c3   : > { %13764 = vst [vmem:[#allocation318_spill] sm:$0xff] %v8056_v28  ;;  %13765 = vst [vmem:[#allocation412_spill] sm:$0xff] %v8058_v22  ;;  %3203 = vperm.xlu1 %5779, %v13766_v9   ;;  %v8673_v28 = vld [vmem:[%s6334_s29 + $0x1a8] sm:$0xff] }
 0x3c4   : > { %3415 = vperm.xlu0 %5781, %v7285_v21  }
 0x3c6   : > { %v8062_v32 = vpop.permute.xlu1 %2955  ;;  %v8064_v4 = vpop.permute.xlu0 %2983 }
 0x3c7   : > { %13767 = vst [vmem:[#allocation322_spill] sm:$0xff] %v8062_v32  ;;  %13768 = vst [vmem:[#allocation413_spill] sm:$0xff] %v8064_v4  ;;  %3211 = vperm.xlu1 %5779, %v7777_v34  }
 0x3c8   : > { %3423 = vperm.xlu0 %5781, %v7297_v17  }
 0x3ca   : > { %v8068_v6 = vpop.permute.xlu1 %2963  ;;  %v8070_v36 = vpop.permute.xlu0 %2991 }
 0x3cb   : > { %13769 = vst [vmem:[#allocation414_spill] sm:$0xff] %v8068_v6  ;;  %13770 = vst [vmem:[#allocation415_spill] sm:$0xff] %v8070_v36  ;;  %5782 = vset.pattern.permute.xlu1 %v6093_v11  ;;  %v13776_v6 = vld [vmem:[#allocation212_spill] sm:$0xff]  ;;  %v8661_v36 = vld [vmem:[%s6334_s29 + $0x198] sm:$0xff] }
 0x3cc   : > { %3399 = vperm.xlu1 %5782, %v13771_v23   ;;  %3431 = vperm.xlu0 %5781, %v7309_v20  }
 0x3ce   : > { %v8074_v22 = vpop.permute.xlu1 %2971  ;;  %v8076_v21 = vpop.permute.xlu0 %2999 }
 0x3cf   : > { %13772 = vst [vmem:[#allocation207_spill] sm:$0xff] %v8074_v22  ;;  %13773 = vst [vmem:[#allocation416_spill] sm:$0xff] %v8076_v21  ;;  %v8649_v21 = vld [vmem:[%s6334_s29 + $0x188] sm:$0xff] }
 0x3d0   : > { %3403 = vperm.xlu1 %5782, %v7293_v13   ;;  %3439 = vperm.xlu0 %5781, %v7321_v19  }
 0x3d2   : > { %v8080_v4 = vpop.permute.xlu1 %2979  ;;  %v8082_v17 = vpop.permute.xlu0 %3007 }
 0x3d3   : > { %13774 = vst [vmem:[#allocation417_spill] sm:$0xff] %v8080_v4  ;;  %13775 = vst [vmem:[#allocation418_spill] sm:$0xff] %v8082_v17  ;;  %v8637_v17 = vld [vmem:[%s6334_s29 + $0x178] sm:$0xff] }
 0x3d4   : > { %3411 = vperm.xlu1 %5782, %v13776_v6   ;;  %3447 = vperm.xlu0 %5781, %v7333_v5  }
 0x3d6   : > { %v8086_v11 = vpop.permute.xlu1 %2987  ;;  %v8088_v23 = vpop.permute.xlu0 %3015 }
 0x3d7   : > { %13777 = vst [vmem:[#allocation212_spill] sm:$0xff] %v8086_v11  ;;  %13778 = vst [vmem:[#allocation419_spill] sm:$0xff] %v8088_v23  ;;  %v8625_v23 = vld [vmem:[%s6334_s29 + $0x168] sm:$0xff] }
 0x3d8   : > { %3419 = vperm.xlu1 %5782, %v7317_v10   ;;  %3455 = vperm.xlu0 %5781, %v7345_v18  }
 0x3da   : > { %v8092_v20 = vpop.permute.xlu1 %2995  ;;  %v8094_v13 = vpop.permute.xlu0 %3023 }
 0x3db   : > { %13779 = vst [vmem:[#allocation420_spill] sm:$0xff] %v8092_v20  ;;  %13780 = vst [vmem:[#allocation421_spill] sm:$0xff] %v8094_v13  ;;  %v8613_v13 = vld [vmem:[%s6334_s29 + $0x158] sm:$0xff] }
 0x3dc   : > { %3427 = vperm.xlu1 %5782, %v7329_v3   ;;  %3463 = vperm.xlu0 %5781, %v7357_v12  }
 0x3de   : > { %v8098_v19 = vpop.permute.xlu1 %3003  ;;  %v8100_v6 = vpop.permute.xlu0 %3031 }
 0x3df   : > { %13781 = vst [vmem:[#allocation422_spill] sm:$0xff] %v8098_v19  ;;  %13782 = vst [vmem:[#allocation423_spill] sm:$0xff] %v8100_v6  ;;  %v8601_v6 = vld [vmem:[%s6334_s29 + $0x148] sm:$0xff] }
 0x3e0   : > { %3435 = vperm.xlu1 %5782, %v7341_v1   ;;  %3471 = vperm.xlu0 %5781, %v7369_v8  }
 0x3e2   : > { %v8104_v5 = vpop.permute.xlu1 %3011  ;;  %v8106_v10 = vpop.permute.xlu0 %3039 }
 0x3e3   : > { %13783 = vst [vmem:[#allocation424_spill] sm:$0xff] %v8104_v5  ;;  %13784 = vst [vmem:[#allocation425_spill] sm:$0xff] %v8106_v10  ;;  %v8589_v10 = vld [vmem:[%s6334_s29 + $0x138] sm:$0xff] }
 0x3e4   : > { %3443 = vperm.xlu1 %5782, %v7353_v61   ;;  %3479 = vperm.xlu0 %5781, %v7381_v7  }
 0x3e6   : > { %v8110_v18 = vpop.permute.xlu1 %3019  ;;  %v8112_v3 = vpop.permute.xlu0 %3047 }
 0x3e7   : > { %13785 = vst [vmem:[#allocation426_spill] sm:$0xff] %v8110_v18  ;;  %13786 = vst [vmem:[#allocation427_spill] sm:$0xff] %v8112_v3  ;;  %v8577_v3 = vld [vmem:[%s6334_s29 + $0x128] sm:$0xff] }
 0x3e8   : > { %3451 = vperm.xlu1 %5782, %v7365_v59   ;;  %3487 = vperm.xlu0 %5781, %v7393_v63  }
 0x3ea   : > { %v8116_v12 = vpop.permute.xlu1 %3027  ;;  %v8118_v1 = vpop.permute.xlu0 %3055 }
 0x3eb   : > { %13787 = vst [vmem:[#allocation428_spill] sm:$0xff] %v8116_v12  ;;  %13788 = vst [vmem:[#allocation429_spill] sm:$0xff] %v8118_v1  ;;  %v8565_v1 = vld [vmem:[%s6334_s29 + $0x118] sm:$0xff] }
 0x3ec   : > { %3459 = vperm.xlu1 %5782, %v7377_v57   ;;  %3495 = vperm.xlu0 %5781, %v7405_v0  }
 0x3ee   : > { %v8122_v8 = vpop.permute.xlu1 %3035  ;;  %v8124_v61 = vpop.permute.xlu0 %3063 }
 0x3ef   : > { %13789 = vst [vmem:[#allocation430_spill] sm:$0xff] %v8122_v8  ;;  %13790 = vst [vmem:[#allocation431_spill] sm:$0xff] %v8124_v61  ;;  %v8553_v61 = vld [vmem:[%s6334_s29 + $0x108] sm:$0xff] }
 0x3f0   : > { %3467 = vperm.xlu1 %5782, %v7389_v55   ;;  %3503 = vperm.xlu0 %5781, %v7417_v62  }
 0x3f2   : > { %v8128_v7 = vpop.permute.xlu1 %3043  ;;  %v8130_v59 = vpop.permute.xlu0 %3071 }
 0x3f3   : > { %13791 = vst [vmem:[#allocation432_spill] sm:$0xff] %v8128_v7  ;;  %13792 = vst [vmem:[#allocation433_spill] sm:$0xff] %v8130_v59  ;;  %v8541_v59 = vld [vmem:[%s6334_s29 + $0xf8] sm:$0xff] }
 0x3f4   : > { %3475 = vperm.xlu1 %5782, %v7401_v53   ;;  %3511 = vperm.xlu0 %5781, %v7429_v60  }
 0x3f6   : > { %v8134_v63 = vpop.permute.xlu1 %3051  ;;  %v8136_v57 = vpop.permute.xlu0 %3079 }
 0x3f7   : > { %13793 = vst [vmem:[#allocation434_spill] sm:$0xff] %v8134_v63  ;;  %13794 = vst [vmem:[#allocation435_spill] sm:$0xff] %v8136_v57  ;;  %v8529_v57 = vld [vmem:[%s6334_s29 + $0xe8] sm:$0xff] }
 0x3f8   : > { %3483 = vperm.xlu1 %5782, %v7413_v51   ;;  %3519 = vperm.xlu0 %5781, %v7441_v58  }
 0x3fa   : > { %v8140_v0 = vpop.permute.xlu1 %3059  ;;  %v8142_v55 = vpop.permute.xlu0 %3087 }
 0x3fb   : > { %13795 = vst [vmem:[#allocation436_spill] sm:$0xff] %v8140_v0  ;;  %13796 = vst [vmem:[#allocation437_spill] sm:$0xff] %v8142_v55  ;;  %v8517_v55 = vld [vmem:[%s6334_s29 + $0xd8] sm:$0xff] }
 0x3fc   : > { %3491 = vperm.xlu1 %5782, %v7425_v49   ;;  %3527 = vperm.xlu0 %5781, %v7453_v56  }
 0x3fe   : > { %v8146_v62 = vpop.permute.xlu1 %3067  ;;  %v8148_v53 = vpop.permute.xlu0 %3095 }
 0x3ff   : > { %13797 = vst [vmem:[#allocation438_spill] sm:$0xff] %v8146_v62  ;;  %13798 = vst [vmem:[#allocation439_spill] sm:$0xff] %v8148_v53  ;;  %v8505_v53 = vld [vmem:[%s6334_s29 + $0xc8] sm:$0xff] }
 0x400   : > { %3499 = vperm.xlu1 %5782, %v7437_v47   ;;  %3535 = vperm.xlu0 %5781, %v7465_v54  }
 0x402   : > { %v8152_v60 = vpop.permute.xlu1 %3075  ;;  %v8154_v51 = vpop.permute.xlu0 %3103 }
 0x403   : > { %13799 = vst [vmem:[#allocation440_spill] sm:$0xff] %v8152_v60  ;;  %13800 = vst [vmem:[#allocation441_spill] sm:$0xff] %v8154_v51  ;;  %v8493_v51 = vld [vmem:[%s6334_s29 + $0xb8] sm:$0xff] }
 0x404   : > { %3507 = vperm.xlu1 %5782, %v7449_v45   ;;  %3543 = vperm.xlu0 %5781, %v7477_v52  }
 0x406   : > { %v8158_v58 = vpop.permute.xlu1 %3083  ;;  %v8160_v49 = vpop.permute.xlu0 %3111 }
 0x407   : > { %13801 = vst [vmem:[#allocation442_spill] sm:$0xff] %v8158_v58  ;;  %13802 = vst [vmem:[#allocation443_spill] sm:$0xff] %v8160_v49  ;;  %v8481_v49 = vld [vmem:[%s6334_s29 + $0xa8] sm:$0xff] }
 0x408   : > { %3515 = vperm.xlu1 %5782, %v7461_v43   ;;  %3551 = vperm.xlu0 %5781, %v7489_v50  }
 0x40a   : > { %v8164_v56 = vpop.permute.xlu1 %3091  ;;  %v8166_v47 = vpop.permute.xlu0 %3119 }
 0x40b   : > { %13803 = vst [vmem:[#allocation444_spill] sm:$0xff] %v8164_v56  ;;  %13804 = vst [vmem:[#allocation445_spill] sm:$0xff] %v8166_v47  ;;  %v8469_v47 = vld [vmem:[%s6334_s29 + $0x98] sm:$0xff] }
 0x40c   : > { %3523 = vperm.xlu1 %5782, %v7473_v41   ;;  %3559 = vperm.xlu0 %5781, %v7501_v48  }
 0x40e   : > { %v8170_v54 = vpop.permute.xlu1 %3099  ;;  %v8172_v45 = vpop.permute.xlu0 %3127 }
 0x40f   : > { %13805 = vst [vmem:[#allocation446_spill] sm:$0xff] %v8170_v54  ;;  %13806 = vst [vmem:[#allocation447_spill] sm:$0xff] %v8172_v45  ;;  %v8457_v45 = vld [vmem:[%s6334_s29 + $0x88] sm:$0xff] }
 0x410   : > { %3531 = vperm.xlu1 %5782, %v7485_v39   ;;  %3567 = vperm.xlu0 %5781, %v7513_v46  }
 0x412   : > { %v8176_v52 = vpop.permute.xlu1 %3107  ;;  %v8178_v43 = vpop.permute.xlu0 %3135 }
 0x413   : > { %13807 = vst [vmem:[#allocation448_spill] sm:$0xff] %v8176_v52  ;;  %13808 = vst [vmem:[#allocation449_spill] sm:$0xff] %v8178_v43  ;;  %v8445_v43 = vld [vmem:[%s6334_s29 + $0x78] sm:$0xff] }
 0x414   : > { %3539 = vperm.xlu1 %5782, %v7497_v37   ;;  %3575 = vperm.xlu0 %5781, %v7525_v44  }
 0x416   : > { %v8182_v50 = vpop.permute.xlu1 %3115  ;;  %v8184_v41 = vpop.permute.xlu0 %3143 }
 0x417   : > { %13809 = vst [vmem:[#allocation450_spill] sm:$0xff] %v8182_v50  ;;  %13810 = vst [vmem:[#allocation451_spill] sm:$0xff] %v8184_v41  ;;  %v8433_v41 = vld [vmem:[%s6334_s29 + $0x68] sm:$0xff] }
 0x418   : > { %3547 = vperm.xlu1 %5782, %v7509_v35   ;;  %3583 = vperm.xlu0 %5781, %v7537_v42  }
 0x41a   : > { %v8188_v48 = vpop.permute.xlu1 %3123  ;;  %v8190_v39 = vpop.permute.xlu0 %3151 }
 0x41b   : > { %13811 = vst [vmem:[#allocation452_spill] sm:$0xff] %v8188_v48  ;;  %13812 = vst [vmem:[#allocation453_spill] sm:$0xff] %v8190_v39  ;;  %v8421_v39 = vld [vmem:[%s6334_s29 + $0x58] sm:$0xff] }
 0x41c   : > { %3555 = vperm.xlu1 %5782, %v7521_v33   ;;  %3591 = vperm.xlu0 %5781, %v7549_v40  }
 0x41e   : > { %v8194_v46 = vpop.permute.xlu1 %3131  ;;  %v8196_v37 = vpop.permute.xlu0 %3159 }
 0x41f   : > { %13813 = vst [vmem:[#allocation454_spill] sm:$0xff] %v8194_v46  ;;  %13814 = vst [vmem:[#allocation455_spill] sm:$0xff] %v8196_v37  ;;  %v8409_v37 = vld [vmem:[%s6334_s29 + $0x48] sm:$0xff] }
 0x420   : > { %3563 = vperm.xlu1 %5782, %v7533_v31   ;;  %3599 = vperm.xlu0 %5781, %v7561_v38   ;;  %v13821_v38 = vld [vmem:[#allocation257_spill] sm:$0xff] }
 0x422   : > { %v8200_v44 = vpop.permute.xlu1 %3139  ;;  %v8202_v35 = vpop.permute.xlu0 %3167 }
 0x423   : > { %13815 = vst [vmem:[#allocation456_spill] sm:$0xff] %v8200_v44  ;;  %13816 = vst [vmem:[#allocation457_spill] sm:$0xff] %v8202_v35  ;;  %v13822_v44 = vld [vmem:[#allocation266_spill] sm:$0xff] }
 0x424   : > { %3571 = vperm.xlu1 %5782, %v7545_v29   ;;  %3607 = vperm.xlu0 %5781, %v13706_v24   ;;  %v13825_v24 = vld [vmem:[#allocation261_spill] sm:$0xff] }
 0x426   : > { %v8206_v42 = vpop.permute.xlu1 %3147  ;;  %v8208_v33 = vpop.permute.xlu0 %3175 }
 0x427   : > { %13817 = vst [vmem:[#allocation458_spill] sm:$0xff] %v8206_v42  ;;  %13818 = vst [vmem:[#allocation459_spill] sm:$0xff] %v8208_v33  ;;  %v13826_v42 = vld [vmem:[#allocation270_spill] sm:$0xff] }
 0x428   : > { %3579 = vperm.xlu1 %5782, %v7557_v27   ;;  %3615 = vperm.xlu0 %5781, %v13710_v15   ;;  %v13829_v15 = vld [vmem:[#allocation265_spill] sm:$0xff] }
 0x42a   : > { %v8212_v40 = vpop.permute.xlu1 %3155  ;;  %v8214_v31 = vpop.permute.xlu0 %3183 }
 0x42b   : > { %13819 = vst [vmem:[#allocation460_spill] sm:$0xff] %v8212_v40  ;;  %13820 = vst [vmem:[#allocation461_spill] sm:$0xff] %v8214_v31  ;;  %v13830_v40 = vld [vmem:[#allocation274_spill] sm:$0xff] }
 0x42c   : > { %3587 = vperm.xlu1 %5782, %v13821_v38   ;;  %3623 = vperm.xlu0 %5781, %v13822_v44   ;;  %v13833_v44 = vld [vmem:[#allocation269_spill] sm:$0xff] }
 0x42e   : > { %v8218_v35 = vpop.permute.xlu1 %3163  ;;  %v8220_v29 = vpop.permute.xlu0 %3191 }
 0x42f   : > { %13823 = vst [vmem:[#allocation257_spill] sm:$0xff] %v8218_v35  ;;  %13824 = vst [vmem:[#allocation266_spill] sm:$0xff] %v8220_v29  ;;  %v13834_v35 = vld [vmem:[#allocation278_spill] sm:$0xff] }
 0x430   : > { %3595 = vperm.xlu1 %5782, %v13825_v24   ;;  %3631 = vperm.xlu0 %5781, %v13826_v42   ;;  %v13837_v42 = vld [vmem:[#allocation273_spill] sm:$0xff] }
 0x432   : > { %v8224_v33 = vpop.permute.xlu1 %3171  ;;  %v8226_v27 = vpop.permute.xlu0 %3199 }
 0x433   : > { %13827 = vst [vmem:[#allocation261_spill] sm:$0xff] %v8224_v33  ;;  %13828 = vst [vmem:[#allocation270_spill] sm:$0xff] %v8226_v27  ;;  %v13838_v33 = vld [vmem:[#allocation282_spill] sm:$0xff] }
 0x434   : > { %3603 = vperm.xlu1 %5782, %v13829_v15   ;;  %3639 = vperm.xlu0 %5781, %v13830_v40   ;;  %v13841_v40 = vld [vmem:[#allocation277_spill] sm:$0xff] }
 0x436   : > { %v8230_v31 = vpop.permute.xlu1 %3179  ;;  %v8232_v38 = vpop.permute.xlu0 %3207 }
 0x437   : > { %13831 = vst [vmem:[#allocation265_spill] sm:$0xff] %v8230_v31  ;;  %13832 = vst [vmem:[#allocation274_spill] sm:$0xff] %v8232_v38  ;;  %v13842_v31 = vld [vmem:[#allocation286_spill] sm:$0xff] }
 0x438   : > { %3611 = vperm.xlu1 %5782, %v13833_v44   ;;  %3647 = vperm.xlu0 %5781, %v13834_v35   ;;  %v13845_v35 = vld [vmem:[#allocation281_spill] sm:$0xff] }
 0x43a   : > { %v8236_v29 = vpop.permute.xlu1 %3187 }
 0x43b   : > { %13835 = vst [vmem:[#allocation269_spill] sm:$0xff] %v8236_v29  ;;  %v8238_v24 = vpop.permute.xlu0 %3395  ;;  %v13846_v29 = vld [vmem:[#allocation290_spill] sm:$0xff] }
 0x43c   : > { %13836 = vst [vmem:[#allocation278_spill] sm:$0xff] %v8238_v24  ;;  %3619 = vperm.xlu1 %5782, %v13837_v42   ;;  %3655 = vperm.xlu0 %5781, %v13838_v33   ;;  %v13849_v33 = vld [vmem:[#allocation285_spill] sm:$0xff] }
 0x43e   : > { %v8242_v27 = vpop.permute.xlu1 %3195 }
 0x43f   : > { %13839 = vst [vmem:[#allocation273_spill] sm:$0xff] %v8242_v27  ;;  %v8244_v15 = vpop.permute.xlu0 %3407  ;;  %v13850_v27 = vld [vmem:[#allocation294_spill] sm:$0xff] }
 0x440   : > { %13840 = vst [vmem:[#allocation282_spill] sm:$0xff] %v8244_v15  ;;  %3627 = vperm.xlu1 %5782, %v13841_v40   ;;  %3663 = vperm.xlu0 %5781, %v13842_v31   ;;  %v13853_v31 = vld [vmem:[#allocation289_spill] sm:$0xff] }
 0x442   : > { %v8248_v38 = vpop.permute.xlu1 %3203 }
 0x443   : > { %13843 = vst [vmem:[#allocation277_spill] sm:$0xff] %v8248_v38  ;;  %v8250_v44 = vpop.permute.xlu0 %3415 }
 0x444   : > { %13844 = vst [vmem:[#allocation286_spill] sm:$0xff] %v8250_v44  ;;  %3635 = vperm.xlu1 %5782, %v13845_v35   ;;  %3671 = vperm.xlu0 %5781, %v13846_v29   ;;  %v13856_v29 = vld [vmem:[#allocation293_spill] sm:$0xff] }
 0x446   : > { %v8254_v24 = vpop.permute.xlu1 %3211 }
 0x447   : > { %13847 = vst [vmem:[#allocation281_spill] sm:$0xff] %v8254_v24  ;;  %v8256_v42 = vpop.permute.xlu0 %3423  ;;  %v8397_v24 = vld [vmem:[%s6334_s29 + $0x38] sm:$0xff] }
 0x448   : > { %13848 = vst [vmem:[#allocation290_spill] sm:$0xff] %v8256_v42  ;;  %3643 = vperm.xlu1 %5782, %v13849_v33   ;;  %3679 = vperm.xlu0 %5781, %v13850_v27   ;;  %v13859_v27 = vld [vmem:[#allocation297_spill] sm:$0xff] }
 0x44b   : > { %v8260_v15 = vpop.permute.xlu1 %3399  ;;  %v8262_v40 = vpop.permute.xlu0 %3431 }
 0x44c   : > { %13851 = vst [vmem:[#allocation285_spill] sm:$0xff] %v8260_v15  ;;  %13852 = vst [vmem:[#allocation294_spill] sm:$0xff] %v8262_v40  ;;  %3651 = vperm.xlu1 %5782, %v13853_v31   ;;  %3687 = vperm.xlu0 %5781, %v13746_v16   ;;  %v13862_v16 = vld [vmem:[#allocation301_spill] sm:$0xff] }
 0x44f   : > { %v8266_v44 = vpop.permute.xlu1 %3403  ;;  %v8268_v35 = vpop.permute.xlu0 %3439 }
 0x450   : > { %13854 = vst [vmem:[#allocation289_spill] sm:$0xff] %v8266_v44  ;;  %13855 = vst [vmem:[#allocation462_spill] sm:$0xff] %v8268_v35  ;;  %3659 = vperm.xlu1 %5782, %v13856_v29   ;;  %3695 = vperm.xlu0 %5781, %v13750_v26   ;;  %v13865_v26 = vld [vmem:[#allocation305_spill] sm:$0xff]  ;;  %v8385_v44 = vld [vmem:[%s6334_s29 + $0x28] sm:$0xff] }
 0x453   : > { %v8272_v42 = vpop.permute.xlu1 %3411  ;;  %v8274_v33 = vpop.permute.xlu0 %3447 }
 0x454   : > { %13857 = vst [vmem:[#allocation293_spill] sm:$0xff] %v8272_v42  ;;  %13858 = vst [vmem:[#allocation463_spill] sm:$0xff] %v8274_v33  ;;  %3667 = vperm.xlu1 %5782, %v13859_v27   ;;  %3703 = vperm.xlu0 %5781, %v13754_v25   ;;  %v13866_v42 = vld [vmem:[#allocation314_spill] sm:$0xff]  ;;  %v13869_v25 = vld [vmem:[#allocation309_spill] sm:$0xff] }
 0x457   : > { %v8278_v40 = vpop.permute.xlu1 %3419  ;;  %v8280_v31 = vpop.permute.xlu0 %3455 }
 0x458   : > { %13860 = vst [vmem:[#allocation297_spill] sm:$0xff] %v8278_v40  ;;  %13861 = vst [vmem:[#allocation464_spill] sm:$0xff] %v8280_v31  ;;  %3675 = vperm.xlu1 %5782, %v13862_v16   ;;  %3711 = vperm.xlu0 %5781, %v13757_v30   ;;  %v8373_v31 = vld [vmem:[%s6334_s29 + $0x18] sm:$0xff] }
 0x45b   : > { %v8284_v35 = vpop.permute.xlu1 %3427  ;;  %v8286_v29 = vpop.permute.xlu0 %3463 }
 0x45c   : > { %13863 = vst [vmem:[#allocation301_spill] sm:$0xff] %v8284_v35  ;;  %13864 = vst [vmem:[#allocation465_spill] sm:$0xff] %v8286_v29  ;;  %3683 = vperm.xlu1 %5782, %v13865_v26   ;;  %3719 = vperm.xlu0 %5781, %v13866_v42   ;;  %v13872_v35 = vld [vmem:[#allocation313_spill] sm:$0xff] }
 0x45d   : > { %v8361_v29 = vld [vmem:[%s6334_s29 + $0x10] sm:$0xff] }
 0x45f   : > { %v8290_v33 = vpop.permute.xlu1 %3435  ;;  %v8292_v27 = vpop.permute.xlu0 %3471 }
 0x460   : > { %13867 = vst [vmem:[#allocation305_spill] sm:$0xff] %v8290_v33  ;;  %13868 = vst [vmem:[#allocation314_spill] sm:$0xff] %v8292_v27  ;;  %3691 = vperm.xlu1 %5782, %v13869_v25   ;;  %3727 = vperm.xlu0 %5781, %v13763_v2   ;;  %v13875_v33 = vld [vmem:[#allocation317_spill] sm:$0xff]  ;;  %v8341_v27 = vld [vmem:[%s6334_s29 + $0x40] sm:$0xff] }
 0x463   : > { %v8296_v16 = vpop.permute.xlu1 %3443  ;;  %v8298_v30 = vpop.permute.xlu0 %3479 }
 0x464   : > { %13870 = vst [vmem:[#allocation309_spill] sm:$0xff] %v8296_v16  ;;  %13871 = vst [vmem:[#allocation466_spill] sm:$0xff] %v8298_v30  ;;  %3699 = vperm.xlu1 %5782, %v13872_v35   ;;  %3735 = vperm.xlu0 %5781, %v13766_v9   ;;  %v13878_v16 = vld [vmem:[#allocation321_spill] sm:$0xff]  ;;  %v6094_v30 = vmov 6   ;;  %v8314_v35 = vld [vmem:[%s6334_s29 + $0x8] sm:$0xff] }
 0x467   : > { %v8302_v26 = vpop.permute.xlu1 %3451  ;;  %v8304_v42 = vpop.permute.xlu0 %3487 }
 0x468   : > { %13873 = vst [vmem:[#allocation313_spill] sm:$0xff] %v8302_v26  ;;  %13874 = vst [vmem:[#allocation467_spill] sm:$0xff] %v8304_v42  ;;  %3707 = vperm.xlu1 %5782, %v13875_v33   ;;  %3743 = vperm.xlu0 %5781, %v7777_v34   ;;  %v13881_v33 = vld [vmem:[#allocation325_spill] sm:$0xff]  ;;  %v8323_v34 = vld [vmem:[%s6334_s29 + $0x20] sm:$0xff] }
 0x469   : > { %v8332_v26 = vld [vmem:[%s6334_s29 + $0x30] sm:$0xff] }
 0x46b   : > { %v8308_v25 = vpop.permute.xlu1 %3459  ;;  %v8310_v2 = vpop.permute.xlu0 %3495 }
 0x46c   : > { %13876 = vst [vmem:[#allocation317_spill] sm:$0xff] %v8308_v25  ;;  %13877 = vst [vmem:[#allocation468_spill] sm:$0xff] %v8310_v2  ;;  %3715 = vperm.xlu1 %5782, %v13878_v16   ;;  %5784 = vset.pattern.permute.xlu0 %v6094_v30  ;;  %v13884_v25 = vld [vmem:[#allocation328_spill] sm:$0xff] }
 0x46d   : > { %3931 = vperm.xlu0 %5784, %v8314_v35  }
 0x46f   : > { %v8317_v9 = vpop.permute.xlu1 %3467  ;;  %v8319_v42 = vpop.permute.xlu0 %3503 }
 0x470   : > { %13879 = vst [vmem:[#allocation321_spill] sm:$0xff] %v8317_v9  ;;  %13880 = vst [vmem:[#allocation469_spill] sm:$0xff] %v8319_v42  ;;  %3723 = vperm.xlu1 %5782, %v13881_v33   ;;  %v13887_v9 = vld [vmem:[#allocation331_spill] sm:$0xff] }
 0x471   : > { %3943 = vperm.xlu0 %5784, %v8323_v34  }
 0x473   : > { %v8326_v16 = vpop.permute.xlu1 %3475  ;;  %v8328_v2 = vpop.permute.xlu0 %3511 }
 0x474   : > { %13882 = vst [vmem:[#allocation325_spill] sm:$0xff] %v8326_v16  ;;  %13883 = vst [vmem:[#allocation470_spill] sm:$0xff] %v8328_v2  ;;  %3731 = vperm.xlu1 %5782, %v13884_v25   ;;  %v8349_v16 = vld [vmem:[%s6334_s29] sm:$0xff] }
 0x475   : > { %3951 = vperm.xlu0 %5784, %v8332_v26  }
 0x477   : > { %v8335_v42 = vpop.permute.xlu1 %3483  ;;  %v8337_v33 = vpop.permute.xlu0 %3519 }
 0x478   : > { %13885 = vst [vmem:[#allocation328_spill] sm:$0xff] %v8335_v42  ;;  %13886 = vst [vmem:[#allocation471_spill] sm:$0xff] %v8337_v33  ;;  %3739 = vperm.xlu1 %5782, %v13887_v9   ;;  %v8353_v42 = vld [vmem:[%s6334_s29 + $0x50] sm:$0xff] }
 0x479   : > { %3959 = vperm.xlu0 %5784, %v8341_v27  }
 0x47b   : > { %v8344_v2 = vpop.permute.xlu1 %3491  ;;  %v8346_v25 = vpop.permute.xlu0 %3527 }
 0x47c   : > { %13888 = vst [vmem:[#allocation331_spill] sm:$0xff] %v8344_v2  ;;  %13889 = vst [vmem:[#allocation472_spill] sm:$0xff] %v8346_v25  ;;  %5783 = vset.pattern.permute.xlu1 %v6094_v30  ;;  %v8365_v25 = vld [vmem:[%s6334_s29 + $0x60] sm:$0xff] }
 0x47d   : > { %3927 = vperm.xlu1 %5783, %v8349_v16   ;;  %3967 = vperm.xlu0 %5784, %v8353_v42  }
 0x47f   : > { %v8356_v9 = vpop.permute.xlu1 %3499  ;;  %v8358_v33 = vpop.permute.xlu0 %3535 }
 0x480   : > { %13890 = vst [vmem:[#allocation473_spill] sm:$0xff] %v8356_v9  ;;  %13891 = vst [vmem:[#allocation474_spill] sm:$0xff] %v8358_v33  ;;  %v8377_v9 = vld [vmem:[%s6334_s29 + $0x70] sm:$0xff] }
 0x481   : > { %3935 = vperm.xlu1 %5783, %v8361_v29   ;;  %3975 = vperm.xlu0 %5784, %v8365_v25  }
 0x483   : > { %v8368_v30 = vpop.permute.xlu1 %3507  ;;  %v8370_v2 = vpop.permute.xlu0 %3543 }
 0x484   : > { %13892 = vst [vmem:[#allocation475_spill] sm:$0xff] %v8368_v30  ;;  %13893 = vst [vmem:[#allocation476_spill] sm:$0xff] %v8370_v2  ;;  %v8389_v30 = vld [vmem:[%s6334_s29 + $0x80] sm:$0xff] }
 0x485   : > { %3939 = vperm.xlu1 %5783, %v8373_v31   ;;  %3983 = vperm.xlu0 %5784, %v8377_v9  }
 0x487   : > { %v8380_v33 = vpop.permute.xlu1 %3515  ;;  %v8382_v40 = vpop.permute.xlu0 %3551 }
 0x488   : > { %13894 = vst [vmem:[#allocation477_spill] sm:$0xff] %v8380_v33  ;;  %13895 = vst [vmem:[#allocation478_spill] sm:$0xff] %v8382_v40  ;;  %v8401_v33 = vld [vmem:[%s6334_s29 + $0x90] sm:$0xff] }
 0x489   : > { %3947 = vperm.xlu1 %5783, %v8385_v44   ;;  %3991 = vperm.xlu0 %5784, %v8389_v30  }
 0x48b   : > { %v8392_v2 = vpop.permute.xlu1 %3523  ;;  %v8394_v15 = vpop.permute.xlu0 %3559 }
 0x48c   : > { %13896 = vst [vmem:[#allocation479_spill] sm:$0xff] %v8392_v2  ;;  %13897 = vst [vmem:[#allocation480_spill] sm:$0xff] %v8394_v15  ;;  %v8413_v2 = vld [vmem:[%s6334_s29 + $0xa0] sm:$0xff] }
 0x48d   : > { %3955 = vperm.xlu1 %5783, %v8397_v24   ;;  %3999 = vperm.xlu0 %5784, %v8401_v33  }
 0x48f   : > { %v8404_v40 = vpop.permute.xlu1 %3531  ;;  %v8406_v38 = vpop.permute.xlu0 %3567 }
 0x490   : > { %13898 = vst [vmem:[#allocation481_spill] sm:$0xff] %v8404_v40  ;;  %13899 = vst [vmem:[#allocation482_spill] sm:$0xff] %v8406_v38  ;;  %v8425_v40 = vld [vmem:[%s6334_s29 + $0xb0] sm:$0xff] }
 0x491   : > { %3963 = vperm.xlu1 %5783, %v8409_v37   ;;  %4007 = vperm.xlu0 %5784, %v8413_v2  }
 0x493   : > { %v8416_v15 = vpop.permute.xlu1 %3539  ;;  %v8418_v46 = vpop.permute.xlu0 %3575 }
 0x494   : > { %13900 = vst [vmem:[#allocation483_spill] sm:$0xff] %v8416_v15  ;;  %13901 = vst [vmem:[#allocation484_spill] sm:$0xff] %v8418_v46  ;;  %v8437_v15 = vld [vmem:[%s6334_s29 + $0xc0] sm:$0xff] }
 0x495   : > { %3971 = vperm.xlu1 %5783, %v8421_v39   ;;  %4015 = vperm.xlu0 %5784, %v8425_v40  }
 0x497   : > { %v8428_v38 = vpop.permute.xlu1 %3547  ;;  %v8430_v48 = vpop.permute.xlu0 %3583 }
 0x498   : > { %13902 = vst [vmem:[#allocation485_spill] sm:$0xff] %v8428_v38  ;;  %13903 = vst [vmem:[#allocation486_spill] sm:$0xff] %v8430_v48  ;;  %v8449_v38 = vld [vmem:[%s6334_s29 + $0xd0] sm:$0xff] }
 0x499   : > { %3979 = vperm.xlu1 %5783, %v8433_v41   ;;  %4023 = vperm.xlu0 %5784, %v8437_v15  }
 0x49b   : > { %v8440_v46 = vpop.permute.xlu1 %3555  ;;  %v8442_v50 = vpop.permute.xlu0 %3591 }
 0x49c   : > { %13904 = vst [vmem:[#allocation487_spill] sm:$0xff] %v8440_v46  ;;  %13905 = vst [vmem:[#allocation488_spill] sm:$0xff] %v8442_v50  ;;  %v8461_v46 = vld [vmem:[%s6334_s29 + $0xe0] sm:$0xff] }
 0x49d   : > { %3987 = vperm.xlu1 %5783, %v8445_v43   ;;  %4031 = vperm.xlu0 %5784, %v8449_v38  }
 0x49f   : > { %v8452_v48 = vpop.permute.xlu1 %3563  ;;  %v8454_v52 = vpop.permute.xlu0 %3599 }
 0x4a0   : > { %13906 = vst [vmem:[#allocation489_spill] sm:$0xff] %v8452_v48  ;;  %13907 = vst [vmem:[#allocation490_spill] sm:$0xff] %v8454_v52  ;;  %v8473_v48 = vld [vmem:[%s6334_s29 + $0xf0] sm:$0xff] }
 0x4a1   : > { %3995 = vperm.xlu1 %5783, %v8457_v45   ;;  %4039 = vperm.xlu0 %5784, %v8461_v46  }
 0x4a3   : > { %v8464_v50 = vpop.permute.xlu1 %3571  ;;  %v8466_v54 = vpop.permute.xlu0 %3607 }
 0x4a4   : > { %13908 = vst [vmem:[#allocation491_spill] sm:$0xff] %v8464_v50  ;;  %13909 = vst [vmem:[#allocation492_spill] sm:$0xff] %v8466_v54  ;;  %v8485_v50 = vld [vmem:[%s6334_s29 + $0x100] sm:$0xff] }
 0x4a5   : > { %4003 = vperm.xlu1 %5783, %v8469_v47   ;;  %4047 = vperm.xlu0 %5784, %v8473_v48  }
 0x4a7   : > { %v8476_v52 = vpop.permute.xlu1 %3579  ;;  %v8478_v56 = vpop.permute.xlu0 %3615 }
 0x4a8   : > { %13910 = vst [vmem:[#allocation493_spill] sm:$0xff] %v8476_v52  ;;  %13911 = vst [vmem:[#allocation494_spill] sm:$0xff] %v8478_v56  ;;  %v8497_v52 = vld [vmem:[%s6334_s29 + $0x110] sm:$0xff] }
 0x4a9   : > { %4011 = vperm.xlu1 %5783, %v8481_v49   ;;  %4055 = vperm.xlu0 %5784, %v8485_v50  }
 0x4ab   : > { %v8488_v54 = vpop.permute.xlu1 %3587  ;;  %v8490_v58 = vpop.permute.xlu0 %3623 }
 0x4ac   : > { %13912 = vst [vmem:[#allocation495_spill] sm:$0xff] %v8488_v54  ;;  %13913 = vst [vmem:[#allocation496_spill] sm:$0xff] %v8490_v58  ;;  %v8509_v54 = vld [vmem:[%s6334_s29 + $0x120] sm:$0xff] }
 0x4ad   : > { %4019 = vperm.xlu1 %5783, %v8493_v51   ;;  %4063 = vperm.xlu0 %5784, %v8497_v52  }
 0x4af   : > { %v8500_v56 = vpop.permute.xlu1 %3595  ;;  %v8502_v60 = vpop.permute.xlu0 %3631 }
 0x4b0   : > { %13914 = vst [vmem:[#allocation497_spill] sm:$0xff] %v8500_v56  ;;  %13915 = vst [vmem:[#allocation498_spill] sm:$0xff] %v8502_v60  ;;  %v8521_v56 = vld [vmem:[%s6334_s29 + $0x130] sm:$0xff] }
 0x4b1   : > { %4027 = vperm.xlu1 %5783, %v8505_v53   ;;  %4071 = vperm.xlu0 %5784, %v8509_v54  }
 0x4b3   : > { %v8512_v58 = vpop.permute.xlu1 %3603  ;;  %v8514_v62 = vpop.permute.xlu0 %3639 }
 0x4b4   : > { %13916 = vst [vmem:[#allocation499_spill] sm:$0xff] %v8512_v58  ;;  %13917 = vst [vmem:[#allocation500_spill] sm:$0xff] %v8514_v62  ;;  %v8533_v58 = vld [vmem:[%s6334_s29 + $0x140] sm:$0xff] }
 0x4b5   : > { %4035 = vperm.xlu1 %5783, %v8517_v55   ;;  %4079 = vperm.xlu0 %5784, %v8521_v56  }
 0x4b7   : > { %v8524_v60 = vpop.permute.xlu1 %3611  ;;  %v8526_v0 = vpop.permute.xlu0 %3647 }
 0x4b8   : > { %13918 = vst [vmem:[#allocation501_spill] sm:$0xff] %v8524_v60  ;;  %13919 = vst [vmem:[#allocation502_spill] sm:$0xff] %v8526_v0  ;;  %v8545_v60 = vld [vmem:[%s6334_s29 + $0x150] sm:$0xff] }
 0x4b9   : > { %4043 = vperm.xlu1 %5783, %v8529_v57   ;;  %4087 = vperm.xlu0 %5784, %v8533_v58  }
 0x4bb   : > { %v8536_v62 = vpop.permute.xlu1 %3619  ;;  %v8538_v63 = vpop.permute.xlu0 %3655 }
 0x4bc   : > { %13920 = vst [vmem:[#allocation503_spill] sm:$0xff] %v8536_v62  ;;  %13921 = vst [vmem:[#allocation504_spill] sm:$0xff] %v8538_v63  ;;  %v8557_v62 = vld [vmem:[%s6334_s29 + $0x160] sm:$0xff] }
 0x4bd   : > { %4051 = vperm.xlu1 %5783, %v8541_v59   ;;  %4095 = vperm.xlu0 %5784, %v8545_v60  }
 0x4bf   : > { %v8548_v0 = vpop.permute.xlu1 %3627  ;;  %v8550_v7 = vpop.permute.xlu0 %3663 }
 0x4c0   : > { %13922 = vst [vmem:[#allocation505_spill] sm:$0xff] %v8548_v0  ;;  %13923 = vst [vmem:[#allocation506_spill] sm:$0xff] %v8550_v7  ;;  %v8569_v0 = vld [vmem:[%s6334_s29 + $0x170] sm:$0xff] }
 0x4c1   : > { %4059 = vperm.xlu1 %5783, %v8553_v61   ;;  %4103 = vperm.xlu0 %5784, %v8557_v62  }
 0x4c3   : > { %v8560_v63 = vpop.permute.xlu1 %3635  ;;  %v8562_v8 = vpop.permute.xlu0 %3671 }
 0x4c4   : > { %13924 = vst [vmem:[#allocation507_spill] sm:$0xff] %v8560_v63  ;;  %13925 = vst [vmem:[#allocation508_spill] sm:$0xff] %v8562_v8  ;;  %v8581_v63 = vld [vmem:[%s6334_s29 + $0x180] sm:$0xff] }
 0x4c5   : > { %4067 = vperm.xlu1 %5783, %v8565_v1   ;;  %4111 = vperm.xlu0 %5784, %v8569_v0  }
 0x4c7   : > { %v8572_v7 = vpop.permute.xlu1 %3643  ;;  %v8574_v12 = vpop.permute.xlu0 %3679 }
 0x4c8   : > { %13926 = vst [vmem:[#allocation509_spill] sm:$0xff] %v8572_v7  ;;  %13927 = vst [vmem:[#allocation510_spill] sm:$0xff] %v8574_v12  ;;  %v8593_v7 = vld [vmem:[%s6334_s29 + $0x190] sm:$0xff] }
 0x4c9   : > { %4075 = vperm.xlu1 %5783, %v8577_v3   ;;  %4119 = vperm.xlu0 %5784, %v8581_v63   ;;  %13930 = vst [vmem:[#allocation513_spill] sm:$0xff] %v8593_v7 }
 0x4cb   : > { %v8584_v8 = vpop.permute.xlu1 %3651  ;;  %v8586_v18 = vpop.permute.xlu0 %3687 }
 0x4cc   : > { %13928 = vst [vmem:[#allocation511_spill] sm:$0xff] %v8584_v8  ;;  %13929 = vst [vmem:[#allocation512_spill] sm:$0xff] %v8586_v18  ;;  %v8605_v8 = vld [vmem:[%s6334_s29 + $0x1a0] sm:$0xff] }
 0x4cd   : > { %4083 = vperm.xlu1 %5783, %v8589_v10   ;;  %4127 = vperm.xlu0 %5784, %v8593_v7   ;;  %13933 = vst [vmem:[#allocation516_spill] sm:$0xff] %v8605_v8  ;;  %v8739_v7 = vld [vmem:[%s6334_s29 + $0x208] sm:$0xff] }
 0x4ce   : > { %13969 = vst [vmem:[#allocation552_spill] sm:$0xff] %v8739_v7 }
 0x4cf   : > { %v8596_v12 = vpop.permute.xlu1 %3659  ;;  %v8598_v5 = vpop.permute.xlu0 %3695 }
 0x4d0   : > { %13931 = vst [vmem:[#allocation514_spill] sm:$0xff] %v8596_v12  ;;  %13932 = vst [vmem:[#allocation515_spill] sm:$0xff] %v8598_v5  ;;  %v8617_v12 = vld [vmem:[%s6334_s29 + $0x1b0] sm:$0xff] }
 0x4d1   : > { %4091 = vperm.xlu1 %5783, %v8601_v6   ;;  %4135 = vperm.xlu0 %5784, %v8605_v8   ;;  %13936 = vst [vmem:[#allocation519_spill] sm:$0xff] %v8617_v12  ;;  %v8730_v8 = vld [vmem:[%s6334_s29 + $0x1f8] sm:$0xff] }
 0x4d2   : > { %13966 = vst [vmem:[#allocation549_spill] sm:$0xff] %v8730_v8 }
 0x4d3   : > { %v8608_v18 = vpop.permute.xlu1 %3667  ;;  %v8610_v19 = vpop.permute.xlu0 %3703 }
 0x4d4   : > { %13934 = vst [vmem:[#allocation517_spill] sm:$0xff] %v8608_v18  ;;  %13935 = vst [vmem:[#allocation518_spill] sm:$0xff] %v8610_v19  ;;  %v8629_v18 = vld [vmem:[%s6334_s29 + $0x1c0] sm:$0xff] }
 0x4d5   : > { %4099 = vperm.xlu1 %5783, %v8613_v13   ;;  %4143 = vperm.xlu0 %5784, %v8617_v12   ;;  %13939 = vst [vmem:[#allocation522_spill] sm:$0xff] %v8629_v18 }
 0x4d7   : > { %v8620_v5 = vpop.permute.xlu1 %3675  ;;  %v8622_v20 = vpop.permute.xlu0 %3711 }
 0x4d8   : > { %13937 = vst [vmem:[#allocation520_spill] sm:$0xff] %v8620_v5  ;;  %13938 = vst [vmem:[#allocation521_spill] sm:$0xff] %v8622_v20  ;;  %v8641_v5 = vld [vmem:[%s6334_s29 + $0x1d0] sm:$0xff] }
 0x4d9   : > { %4107 = vperm.xlu1 %5783, %v8625_v23   ;;  %4151 = vperm.xlu0 %5784, %v8629_v18   ;;  %13942 = vst [vmem:[#allocation525_spill] sm:$0xff] %v8641_v5 }
 0x4db   : > { %v8632_v19 = vpop.permute.xlu1 %3683  ;;  %v8634_v11 = vpop.permute.xlu0 %3719 }
 0x4dc   : > { %13940 = vst [vmem:[#allocation523_spill] sm:$0xff] %v8632_v19  ;;  %13941 = vst [vmem:[#allocation524_spill] sm:$0xff] %v8634_v11  ;;  %v8653_v19 = vld [vmem:[%s6334_s29 + $0x1e0] sm:$0xff] }
 0x4dd   : > { %4115 = vperm.xlu1 %5783, %v8637_v17   ;;  %4159 = vperm.xlu0 %5784, %v8641_v5   ;;  %13945 = vst [vmem:[#allocation528_spill] sm:$0xff] %v8653_v19 }
 0x4df   : > { %v8644_v20 = vpop.permute.xlu1 %3691  ;;  %v8646_v4 = vpop.permute.xlu0 %3727 }
 0x4e0   : > { %13943 = vst [vmem:[#allocation526_spill] sm:$0xff] %v8644_v20  ;;  %13944 = vst [vmem:[#allocation527_spill] sm:$0xff] %v8646_v4  ;;  %v8665_v20 = vld [vmem:[%s6334_s29 + $0x1f0] sm:$0xff] }
 0x4e1   : > { %4123 = vperm.xlu1 %5783, %v8649_v21   ;;  %4167 = vperm.xlu0 %5784, %v8653_v19   ;;  %13948 = vst [vmem:[#allocation531_spill] sm:$0xff] %v8665_v20 }
 0x4e3   : > { %v8656_v11 = vpop.permute.xlu1 %3699  ;;  %v8658_v22 = vpop.permute.xlu0 %3735 }
 0x4e4   : > { %13946 = vst [vmem:[#allocation529_spill] sm:$0xff] %v8656_v11  ;;  %13947 = vst [vmem:[#allocation530_spill] sm:$0xff] %v8658_v22  ;;  %v8677_v11 = vld [vmem:[%s6334_s29 + $0x200] sm:$0xff] }
 0x4e5   : > { %4131 = vperm.xlu1 %5783, %v8661_v36   ;;  %4175 = vperm.xlu0 %5784, %v8665_v20   ;;  %13951 = vst [vmem:[#allocation534_spill] sm:$0xff] %v8677_v11  ;;  %v8685_v20 = vld [vmem:[%s6334_s29 + $0x1b8] sm:$0xff] }
 0x4e7   : > { %v8668_v4 = vpop.permute.xlu1 %3707  ;;  %v8670_v32 = vpop.permute.xlu0 %3743 }
 0x4e8   : > { %13949 = vst [vmem:[#allocation532_spill] sm:$0xff] %v8668_v4  ;;  %13950 = vst [vmem:[#allocation533_spill] sm:$0xff] %v8670_v32  ;;  %v8689_v4 = vld [vmem:[%s6334_s29 + $0x210] sm:$0xff] }
 0x4e9   : > { %4139 = vperm.xlu1 %5783, %v8673_v28   ;;  %4183 = vperm.xlu0 %5784, %v8677_v11   ;;  %13954 = vst [vmem:[#allocation537_spill] sm:$0xff] %v8689_v4  ;;  %v8697_v11 = vld [vmem:[%s6334_s29 + $0x1c8] sm:$0xff] }
 0x4eb   : > { %v8680_v22 = vpop.permute.xlu1 %3715 }
 0x4ec   : > { %13952 = vst [vmem:[#allocation535_spill] sm:$0xff] %v8680_v22  ;;  %v8682_v14 = vpop.permute.xlu0 %3931  ;;  %v8701_v22 = vld [vmem:[%s6334_s29 + $0x220] sm:$0xff] }
 0x4ed   : > { %13953 = vst [vmem:[#allocation536_spill] sm:$0xff] %v8682_v14  ;;  %4147 = vperm.xlu1 %5783, %v8685_v20   ;;  %4191 = vperm.xlu0 %5784, %v8689_v4   ;;  %13957 = vst [vmem:[#allocation540_spill] sm:$0xff] %v8701_v22  ;;  %v8709_v4 = vld [vmem:[%s6334_s29 + $0x1d8] sm:$0xff] }
 0x4ef   : > { %v8692_v32 = vpop.permute.xlu1 %3723 }
 0x4f0   : > { %13955 = vst [vmem:[#allocation538_spill] sm:$0xff] %v8692_v32  ;;  %v8694_v19 = vpop.permute.xlu0 %3943  ;;  %v8713_v32 = vld [vmem:[%s6334_s29 + $0x230] sm:$0xff] }
 0x4f1   : > { %13956 = vst [vmem:[#allocation539_spill] sm:$0xff] %v8694_v19  ;;  %4155 = vperm.xlu1 %5783, %v8697_v11   ;;  %4199 = vperm.xlu0 %5784, %v8701_v22   ;;  %13960 = vst [vmem:[#allocation543_spill] sm:$0xff] %v8713_v32  ;;  %v8721_v22 = vld [vmem:[%s6334_s29 + $0x1e8] sm:$0xff] }
 0x4f2   : > { %13963 = vst [vmem:[#allocation546_spill] sm:$0xff] %v8721_v22 }
 0x4f3   : > { %v8704_v14 = vpop.permute.xlu1 %3731 }
 0x4f4   : > { %13958 = vst [vmem:[#allocation541_spill] sm:$0xff] %v8704_v14  ;;  %v8706_v5 = vpop.permute.xlu0 %3951  ;;  %v5944_v14 = vld [vmem:[%s6334_s29 + $0x240] sm:$0xff] }
 0x4f5   : > { %13959 = vst [vmem:[#allocation542_spill] sm:$0xff] %v8706_v5  ;;  %4163 = vperm.xlu1 %5783, %v8709_v4   ;;  %4207 = vperm.xlu0 %5784, %v8713_v32  }
 0x4f7   : > { %v8716_v19 = vpop.permute.xlu1 %3739 }
 0x4f8   : > { %13961 = vst [vmem:[#allocation544_spill] sm:$0xff] %v8716_v19  ;;  %v8718_v18 = vpop.permute.xlu0 %3959  ;;  %v5946_v19 = vld [vmem:[%s6334_s29 + $0x250] sm:$0xff] }
 0x4f9   : > { %13962 = vst [vmem:[#allocation545_spill] sm:$0xff] %v8718_v18  ;;  %4171 = vperm.xlu1 %5783, %v8721_v22   ;;  %4215 = vperm.xlu0 %5784, %v5944_v14   ;;  %v5948_v14 = vld [vmem:[%s6334_s29 + $0x260] sm:$0xff]  ;;  %v8784_v22 = vld [vmem:[%s6334_s29 + $0x258] sm:$0xff] }
 0x4fa   : > { %13984 = vst [vmem:[#allocation567_spill] sm:$0xff] %v8784_v22 }
 0x4fc   : > { %v8725_v5 = vpop.permute.xlu1 %3927  ;;  %v8727_v12 = vpop.permute.xlu0 %3967 }
 0x4fd   : > { %13964 = vst [vmem:[#allocation547_spill] sm:$0xff] %v8725_v5  ;;  %13965 = vst [vmem:[#allocation548_spill] sm:$0xff] %v8727_v12  ;;  %4179 = vperm.xlu1 %5783, %v8730_v8   ;;  %4223 = vperm.xlu0 %5784, %v5946_v19   ;;  %v8748_v8 = vld [vmem:[%s6334_s29 + $0x218] sm:$0xff]  ;;  %v5950_v19 = vld [vmem:[%s6334_s29 + $0x270] sm:$0xff] }
 0x4fe   : > { %13972 = vst [vmem:[#allocation555_spill] sm:$0xff] %v8748_v8 }
 0x500   : > { %v8734_v18 = vpop.permute.xlu1 %3935  ;;  %v8736_v32 = vpop.permute.xlu0 %3975 }
 0x501   : > { %13967 = vst [vmem:[#allocation550_spill] sm:$0xff] %v8734_v18  ;;  %13968 = vst [vmem:[#allocation551_spill] sm:$0xff] %v8736_v32  ;;  %4187 = vperm.xlu1 %5783, %v8739_v7   ;;  %4231 = vperm.xlu0 %5784, %v5948_v14   ;;  %v8757_v7 = vld [vmem:[%s6334_s29 + $0x228] sm:$0xff]  ;;  %v5952_v14 = vld [vmem:[%s6334_s29 + $0x280] sm:$0xff] }
 0x502   : > { %13975 = vst [vmem:[#allocation558_spill] sm:$0xff] %v8757_v7 }
 0x504   : > { %v8743_v12 = vpop.permute.xlu1 %3939  ;;  %v8745_v5 = vpop.permute.xlu0 %3983 }
 0x505   : > { %13970 = vst [vmem:[#allocation553_spill] sm:$0xff] %v8743_v12  ;;  %13971 = vst [vmem:[#allocation554_spill] sm:$0xff] %v8745_v5  ;;  %4195 = vperm.xlu1 %5783, %v8748_v8   ;;  %4239 = vperm.xlu0 %5784, %v5950_v19   ;;  %v8766_v8 = vld [vmem:[%s6334_s29 + $0x238] sm:$0xff]  ;;  %v5954_v19 = vld [vmem:[%s6334_s29 + $0x290] sm:$0xff] }
 0x506   : > { %13978 = vst [vmem:[#allocation561_spill] sm:$0xff] %v8766_v8 }
 0x508   : > { %v8752_v32 = vpop.permute.xlu1 %3947  ;;  %v8754_v18 = vpop.permute.xlu0 %3991 }
 0x509   : > { %13973 = vst [vmem:[#allocation556_spill] sm:$0xff] %v8752_v32  ;;  %13974 = vst [vmem:[#allocation557_spill] sm:$0xff] %v8754_v18  ;;  %4203 = vperm.xlu1 %5783, %v8757_v7   ;;  %4247 = vperm.xlu0 %5784, %v5952_v14   ;;  %v8775_v7 = vld [vmem:[%s6334_s29 + $0x248] sm:$0xff]  ;;  %v5956_v14 = vld [vmem:[%s6334_s29 + $0x2a0] sm:$0xff] }
 0x50a   : > { %13981 = vst [vmem:[#allocation564_spill] sm:$0xff] %v8775_v7 }
 0x50c   : > { %v8761_v5 = vpop.permute.xlu1 %3955  ;;  %v8763_v12 = vpop.permute.xlu0 %3999 }
 0x50d   : > { %13976 = vst [vmem:[#allocation559_spill] sm:$0xff] %v8761_v5  ;;  %13977 = vst [vmem:[#allocation560_spill] sm:$0xff] %v8763_v12  ;;  %4211 = vperm.xlu1 %5783, %v8766_v8   ;;  %4255 = vperm.xlu0 %5784, %v5954_v19   ;;  %v5958_v19 = vld [vmem:[%s6334_s29 + $0x2b0] sm:$0xff]  ;;  %v8793_v8 = vld [vmem:[%s6334_s29 + $0x268] sm:$0xff] }
 0x50e   : > { %13987 = vst [vmem:[#allocation570_spill] sm:$0xff] %v8793_v8 }
 0x510   : > { %v8770_v18 = vpop.permute.xlu1 %3963  ;;  %v8772_v32 = vpop.permute.xlu0 %4007 }
 0x511   : > { %13979 = vst [vmem:[#allocation562_spill] sm:$0xff] %v8770_v18  ;;  %13980 = vst [vmem:[#allocation563_spill] sm:$0xff] %v8772_v32  ;;  %4219 = vperm.xlu1 %5783, %v8775_v7   ;;  %4263 = vperm.xlu0 %5784, %v5956_v14   ;;  %v6095_v14 = vmov 7   ;;  %v14089_v7 = vld [vmem:[#allocation80_spill] sm:$0xff] }
 0x514   : > { %v8779_v5 = vpop.permute.xlu1 %3971  ;;  %v8781_v12 = vpop.permute.xlu0 %4015 }
 0x515   : > { %13982 = vst [vmem:[#allocation565_spill] sm:$0xff] %v8779_v5  ;;  %13983 = vst [vmem:[#allocation566_spill] sm:$0xff] %v8781_v12  ;;  %4227 = vperm.xlu1 %5783, %v8784_v22   ;;  %4271 = vperm.xlu0 %5784, %v5958_v19   ;;  %v8802_v22 = vld [vmem:[%s6334_s29 + $0x278] sm:$0xff] }
 0x516   : > { %13990 = vst [vmem:[#allocation573_spill] sm:$0xff] %v8802_v22 }
 0x518   : > { %v8788_v18 = vpop.permute.xlu1 %3979  ;;  %v8790_v32 = vpop.permute.xlu0 %4023 }
 0x519   : > { %13985 = vst [vmem:[#allocation568_spill] sm:$0xff] %v8788_v18  ;;  %13986 = vst [vmem:[#allocation569_spill] sm:$0xff] %v8790_v32  ;;  %4235 = vperm.xlu1 %5783, %v8793_v8   ;;  %5785 = vset.pattern.permute.xlu0 %v6095_v14  ;;  %v8811_v32 = vld [vmem:[%s6334_s29 + $0x288] sm:$0xff] }
 0x51a   : > { %4459 = vperm.xlu0 %5785, %v8349_v16   ;;  %13993 = vst [vmem:[#allocation576_spill] sm:$0xff] %v8811_v32 }
 0x51c   : > { %v8797_v5 = vpop.permute.xlu1 %3987  ;;  %v8799_v12 = vpop.permute.xlu0 %4031 }
 0x51d   : > { %13988 = vst [vmem:[#allocation571_spill] sm:$0xff] %v8797_v5  ;;  %13989 = vst [vmem:[#allocation572_spill] sm:$0xff] %v8799_v12  ;;  %4243 = vperm.xlu1 %5783, %v8802_v22   ;;  %v8820_v12 = vld [vmem:[%s6334_s29 + $0x298] sm:$0xff]  ;;  %v14085_v22 = vld [vmem:[#allocation79_spill] sm:$0xff] }
 0x51e   : > { %4471 = vperm.xlu0 %5785, %v8373_v31   ;;  %13996 = vst [vmem:[#allocation579_spill] sm:$0xff] %v8820_v12 }
 0x520   : > { %v8806_v19 = vpop.permute.xlu1 %3995  ;;  %v8808_v18 = vpop.permute.xlu0 %4039 }
 0x521   : > { %13991 = vst [vmem:[#allocation574_spill] sm:$0xff] %v8806_v19  ;;  %13992 = vst [vmem:[#allocation575_spill] sm:$0xff] %v8808_v18  ;;  %4251 = vperm.xlu1 %5783, %v8811_v32   ;;  %v8829_v18 = vld [vmem:[%s6334_s29 + $0x2a8] sm:$0xff]  ;;  %v14083_v32 = vld [vmem:[#allocation78_spill] sm:$0xff] }
 0x522   : > { %4479 = vperm.xlu0 %5785, %v8385_v44   ;;  %13999 = vst [vmem:[#allocation582_spill] sm:$0xff] %v8829_v18 }
 0x524   : > { %v8815_v16 = vpop.permute.xlu1 %4003  ;;  %v8817_v5 = vpop.permute.xlu0 %4047 }
 0x525   : > { %13994 = vst [vmem:[#allocation577_spill] sm:$0xff] %v8815_v16  ;;  %13995 = vst [vmem:[#allocation578_spill] sm:$0xff] %v8817_v5  ;;  %4259 = vperm.xlu1 %5783, %v8820_v12   ;;  %v8838_v5 = vld [vmem:[%s6334_s29 + $0x2b8] sm:$0xff]  ;;  %v14079_v12 = vld [vmem:[#allocation76_spill] sm:$0xff] }
 0x526   : > { %4487 = vperm.xlu0 %5785, %v8397_v24   ;;  %14002 = vst [vmem:[#allocation585_spill] sm:$0xff] %v8838_v5 }
 0x528   : > { %v8824_v31 = vpop.permute.xlu1 %4011  ;;  %v8826_v19 = vpop.permute.xlu0 %4055 }
 0x529   : > { %13997 = vst [vmem:[#allocation580_spill] sm:$0xff] %v8824_v31  ;;  %13998 = vst [vmem:[#allocation581_spill] sm:$0xff] %v8826_v19  ;;  %4267 = vperm.xlu1 %5783, %v8829_v18   ;;  %v14076_v19 = vld [vmem:[#allocation73_spill] sm:$0xff]  ;;  %v14078_v18 = vld [vmem:[#allocation75_spill] sm:$0xff] }
 0x52a   : > { %4495 = vperm.xlu0 %5785, %v8409_v37  }
 0x52c   : > { %v8833_v44 = vpop.permute.xlu1 %4019  ;;  %v8835_v16 = vpop.permute.xlu0 %4063 }
 0x52d   : > { %14000 = vst [vmem:[#allocation583_spill] sm:$0xff] %v8833_v44  ;;  %14001 = vst [vmem:[#allocation584_spill] sm:$0xff] %v8835_v16  ;;  %4275 = vperm.xlu1 %5783, %v8838_v5   ;;  %v14077_v5 = vld [vmem:[#allocation74_spill] sm:$0xff] }
 0x52e   : > { %4503 = vperm.xlu0 %5785, %v8421_v39  }
 0x530   : > { %v8842_v24 = vpop.permute.xlu1 %4027  ;;  %v8844_v31 = vpop.permute.xlu0 %4071 }
 0x531   : > { %14003 = vst [vmem:[#allocation586_spill] sm:$0xff] %v8842_v24  ;;  %14004 = vst [vmem:[#allocation587_spill] sm:$0xff] %v8844_v31  ;;  %5786 = vset.pattern.permute.xlu1 %v6095_v14  ;;  %v14072_v31 = vld [vmem:[#allocation69_spill] sm:$0xff]  ;;  %v14074_v24 = vld [vmem:[#allocation71_spill] sm:$0xff] }
 0x532   : > { %4463 = vperm.xlu1 %5786, %v8314_v35   ;;  %4511 = vperm.xlu0 %5785, %v8433_v41  }
 0x534   : > { %v8848_v37 = vpop.permute.xlu1 %4035  ;;  %v8850_v44 = vpop.permute.xlu0 %4079 }
 0x535   : > { %14005 = vst [vmem:[#allocation588_spill] sm:$0xff] %v8848_v37  ;;  %14006 = vst [vmem:[#allocation589_spill] sm:$0xff] %v8850_v44 }
 0x536   : > { %4467 = vperm.xlu1 %5786, %v8361_v29   ;;  %4519 = vperm.xlu0 %5785, %v8445_v43  }
 0x538   : > { %v8854_v16 = vpop.permute.xlu1 %4043  ;;  %v8856_v39 = vpop.permute.xlu0 %4087 }
 0x539   : > { %14007 = vst [vmem:[#allocation590_spill] sm:$0xff] %v8854_v16  ;;  %14008 = vst [vmem:[#allocation591_spill] sm:$0xff] %v8856_v39 }
 0x53a   : > { %4475 = vperm.xlu1 %5786, %v8323_v34   ;;  %4527 = vperm.xlu0 %5785, %v8457_v45  }
 0x53c   : > { %v8860_v14 = vpop.permute.xlu1 %4051  ;;  %v8862_v35 = vpop.permute.xlu0 %4095 }
 0x53d   : > { %14009 = vst [vmem:[#allocation592_spill] sm:$0xff] %v8860_v14  ;;  %14010 = vst [vmem:[#allocation593_spill] sm:$0xff] %v8862_v35  ;;  %v14065_v14 = vld [vmem:[#allocation64_spill] sm:$0xff] }
 0x53e   : > { %4483 = vperm.xlu1 %5786, %v8332_v26   ;;  %4535 = vperm.xlu0 %5785, %v8469_v47  }
 0x540   : > { %v8866_v41 = vpop.permute.xlu1 %4059  ;;  %v8868_v29 = vpop.permute.xlu0 %4103 }
 0x541   : > { %14011 = vst [vmem:[#allocation594_spill] sm:$0xff] %v8866_v41  ;;  %14012 = vst [vmem:[#allocation595_spill] sm:$0xff] %v8868_v29  ;;  %v14063_v41 = vld [vmem:[#allocation62_spill] sm:$0xff] }
 0x542   : > { %4491 = vperm.xlu1 %5786, %v8341_v27   ;;  %4543 = vperm.xlu0 %5785, %v8481_v49  }
 0x544   : > { %v8872_v43 = vpop.permute.xlu1 %4067  ;;  %v8874_v34 = vpop.permute.xlu0 %4111 }
 0x545   : > { %14013 = vst [vmem:[#allocation596_spill] sm:$0xff] %v8872_v43  ;;  %14014 = vst [vmem:[#allocation597_spill] sm:$0xff] %v8874_v34  ;;  %v14062_v43 = vld [vmem:[#allocation61_spill] sm:$0xff] }
 0x546   : > { %4499 = vperm.xlu1 %5786, %v8353_v42   ;;  %4551 = vperm.xlu0 %5785, %v8493_v51  }
 0x548   : > { %v8878_v45 = vpop.permute.xlu1 %4075  ;;  %v8880_v26 = vpop.permute.xlu0 %4119 }
 0x549   : > { %14015 = vst [vmem:[#allocation598_spill] sm:$0xff] %v8878_v45  ;;  %14016 = vst [vmem:[#allocation599_spill] sm:$0xff] %v8880_v26  ;;  %v14061_v45 = vld [vmem:[#allocation60_spill] sm:$0xff] }
 0x54a   : > { %4507 = vperm.xlu1 %5786, %v8365_v25   ;;  %4559 = vperm.xlu0 %5785, %v8505_v53  }
 0x54c   : > { %v8884_v47 = vpop.permute.xlu1 %4083  ;;  %v8886_v27 = vpop.permute.xlu0 %4127 }
 0x54d   : > { %14017 = vst [vmem:[#allocation600_spill] sm:$0xff] %v8884_v47  ;;  %14018 = vst [vmem:[#allocation601_spill] sm:$0xff] %v8886_v27  ;;  %v14060_v47 = vld [vmem:[#allocation59_spill] sm:$0xff] }
 0x54e   : > { %4515 = vperm.xlu1 %5786, %v8377_v9   ;;  %4567 = vperm.xlu0 %5785, %v8517_v55  }
 0x550   : > { %v8890_v49 = vpop.permute.xlu1 %4091  ;;  %v8892_v42 = vpop.permute.xlu0 %4135 }
 0x551   : > { %14019 = vst [vmem:[#allocation602_spill] sm:$0xff] %v8890_v49  ;;  %14020 = vst [vmem:[#allocation603_spill] sm:$0xff] %v8892_v42  ;;  %v14058_v49 = vld [vmem:[#allocation56_spill] sm:$0xff] }
 0x552   : > { %4523 = vperm.xlu1 %5786, %v8389_v30   ;;  %4575 = vperm.xlu0 %5785, %v8529_v57  }
 0x554   : > { %v8896_v51 = vpop.permute.xlu1 %4099  ;;  %v8898_v25 = vpop.permute.xlu0 %4143 }
 0x555   : > { %14021 = vst [vmem:[#allocation604_spill] sm:$0xff] %v8896_v51  ;;  %14022 = vst [vmem:[#allocation605_spill] sm:$0xff] %v8898_v25  ;;  %v14056_v51 = vld [vmem:[#allocation52_spill] sm:$0xff] }
 0x556   : > { %4531 = vperm.xlu1 %5786, %v8401_v33   ;;  %4583 = vperm.xlu0 %5785, %v8541_v59   ;;  %v1086_v59 = vlaneseq }
 0x558   : > { %v8902_v53 = vpop.permute.xlu1 %4107  ;;  %v8904_v9 = vpop.permute.xlu0 %4151 }
 0x559   : > { %14023 = vst [vmem:[#allocation606_spill] sm:$0xff] %v8902_v53  ;;  %14024 = vst [vmem:[#allocation607_spill] sm:$0xff] %v8904_v9  ;;  %v14047_v9 = vld [vmem:[#allocation39_spill] sm:$0xff] }
 0x55a   : > { %4539 = vperm.xlu1 %5786, %v8413_v2   ;;  %4591 = vperm.xlu0 %5785, %v8553_v61   ;;  %v14049_v53 = vld [vmem:[#allocation43_spill] sm:$0xff] }
 0x55c   : > { %v8908_v55 = vpop.permute.xlu1 %4115  ;;  %v8910_v30 = vpop.permute.xlu0 %4159 }
 0x55d   : > { %14025 = vst [vmem:[#allocation608_spill] sm:$0xff] %v8908_v55  ;;  %14026 = vst [vmem:[#allocation609_spill] sm:$0xff] %v8910_v30  ;;  %v8924_v55 = vshrl.u32 %v1086_v59, 7  ;;  %v14046_v30 = vld [vmem:[#allocation36_spill] sm:$0xff] }
 0x55e   : > { %4547 = vperm.xlu1 %5786, %v8425_v40   ;;  %4599 = vperm.xlu0 %5785, %v8565_v1  }
 0x55f   : > { %v1620_v25 = vsub.s32 1, %v8924_v55 }
 0x560   : > { %v8914_v57 = vpop.permute.xlu1 %4123  ;;  %v8916_v33 = vpop.permute.xlu0 %4167 }
 0x561   : > { %14027 = vst [vmem:[#allocation610_spill] sm:$0xff] %v8914_v57  ;;  %14028 = vst [vmem:[#allocation611_spill] sm:$0xff] %v8916_v33  ;;  %v1088_v33 = vsub.s32 0, %v8924_v55  ;;  %v14045_v57 = vld [vmem:[#allocation35_spill] sm:$0xff] }
 0x562   : > { %4555 = vperm.xlu1 %5786, %v8437_v15   ;;  %4607 = vperm.xlu0 %5785, %v8577_v3   ;;  %v8936_v3 = vld [vmem:[%s13026_s1] sm:$0xff] }
 0x563   : > { %v9071_v16 = vrot.slane %v8936_v3, %v1620_v25 }
 0x564   : > { %v8920_v2 = vpop.permute.xlu1 %4131  ;;  %v8922_v61 = vpop.permute.xlu0 %4175 }
 0x565   : > { %14029 = vst [vmem:[#allocation612_spill] sm:$0xff] %v8920_v2  ;;  %14030 = vst [vmem:[#allocation613_spill] sm:$0xff] %v8922_v61  ;;  %v14040_v61 = vld [vmem:[#allocation24_spill] sm:$0xff] }
 0x566   : > { %4563 = vperm.xlu1 %5786, %v8449_v38   ;;  %4615 = vperm.xlu0 %5785, %v8589_v10   ;;  %v8945_v10 = vrot.slane %v8936_v3, %v1088_v33  ;;  %v14044_v2 = vld [vmem:[#allocation32_spill] sm:$0xff] }
 0x568   : > { %v8928_v1 = vpop.permute.xlu1 %4139  ;;  %v8930_v40 = vpop.permute.xlu0 %4183 }
 0x569   : > { %14031 = vst [vmem:[#allocation614_spill] sm:$0xff] %v8928_v1  ;;  %14032 = vst [vmem:[#allocation615_spill] sm:$0xff] %v8930_v40  ;;  %v14037_v1 = vld [vmem:[#allocation19_spill] sm:$0xff] }
 0x56a   : > { %4571 = vperm.xlu1 %5786, %v8461_v46   ;;  %4623 = vperm.xlu0 %5785, %v8601_v6   ;;  %v8955_v46 = vmul.f32 %v8945_v10, %v14037_v1  ;;  %v14038_v6 = vld [vmem:[#allocation20_spill] sm:$0xff] }
 0x56c   : > { %v8940_v15 = vpop.permute.xlu1 %4147  ;;  %v8942_v38 = vpop.permute.xlu0 %4191 }
 0x56d   : > { %14033 = vst [vmem:[#allocation616_spill] sm:$0xff] %v8940_v15  ;;  %14034 = vst [vmem:[#allocation617_spill] sm:$0xff] %v8942_v38  ;;  %v8959_v15 = vmul.f32 %v8945_v10, %v14038_v6  ;;  %v14039_v38 = vld [vmem:[#allocation23_spill] sm:$0xff] }
 0x56e   : > { %4579 = vperm.xlu1 %5786, %v8473_v48   ;;  %4631 = vperm.xlu0 %5785, %v8613_v13   ;;  %v8963_v33 = vmul.f32 %v8945_v10, %v14039_v38  ;;  %v8967_v48 = vmul.f32 %v8945_v10, %v14040_v61  ;;  %v14041_v13 = vld [vmem:[#allocation27_spill] sm:$0xff]  ;;  %v8985_v61 = vmul.f32 %v8945_v10, %v14044_v2 }
 0x56f   : > { %v14043_v6 = vld [vmem:[#allocation31_spill] sm:$0xff]  ;;  %v9005_v2 = vmul.f32 %v8945_v10, %v14049_v53 }
 0x570   : > { %v8949_v59 = vpop.permute.xlu1 %4155  ;;  %v8951_v40 = vpop.permute.xlu0 %4199  ;;  %v8981_v38 = vmul.f32 %v8945_v10, %v14043_v6  ;;  %v14055_v53 = vld [vmem:[#allocation51_spill] sm:$0xff] }
 0x571   : > { %14035 = vst [vmem:[#allocation618_spill] sm:$0xff] %v8949_v59  ;;  %14036 = vst [vmem:[#allocation619_spill] sm:$0xff] %v8951_v40  ;;  %v8971_v59 = vmul.f32 %v8945_v10, %v14041_v13  ;;  %v14042_v40 = vld [vmem:[#allocation28_spill] sm:$0xff]  ;;  %v8989_v13 = vmul.f32 %v8945_v10, %v14045_v57  ;;  %v9026_v29 = vmul.f32 %v8945_v10, %v14055_v53 }
 0x572   : > { %v8975_v1 = vmul.f32 %v8945_v10, %v14042_v40  ;;  %4587 = vperm.xlu1 %5786, %v8485_v50   ;;  %4639 = vperm.xlu0 %5785, %v8625_v23   ;;  %v8993_v40 = vmul.f32 %v8945_v10, %v14046_v30  ;;  %v8997_v50 = vmul.f32 %v8945_v10, %v14047_v9  ;;  %v14048_v23 = vld [vmem:[#allocation40_spill] sm:$0xff]  ;;  %v14053_v9 = vld [vmem:[#allocation47_spill] sm:$0xff] }
 0x573   : > { %v9001_v6 = vmul.f32 %v8945_v10, %v14048_v23  ;;  %v14052_v30 = vld [vmem:[#allocation44_spill] sm:$0xff]  ;;  %v9018_v26 = vmul.f32 %v8945_v10, %v14053_v9  ;;  %v9038_v9 = vmul.f32 %v8945_v10, %v14058_v49  ;;  %v9056_v49 = vmul.f32 %v8945_v10, %v14062_v43  ;;  %v14068_v43 = vld [vmem:[#allocation65_spill] sm:$0xff] }
 0x574   : > { %v9008_v57 = vpop.permute.xlu1 %4163  ;;  %v9010_v42 = vpop.permute.xlu0 %4207  ;;  %v9014_v27 = vmul.f32 %v8945_v10, %v14052_v30  ;;  %v14054_v23 = vld [vmem:[#allocation48_spill] sm:$0xff]  ;;  %v9079_v39 = vmul.f32 %v8945_v10, %v14068_v43 }
 0x575   : > { %14050 = vst [vmem:[#allocation19_spill] sm:$0xff] %v9008_v57  ;;  %14051 = vst [vmem:[#allocation20_spill] sm:$0xff] %v9010_v42  ;;  %v9022_v34 = vmul.f32 %v8945_v10, %v14054_v23  ;;  %v9030_v57 = vmul.f32 %v8945_v10, %v14056_v51  ;;  %v14057_v42 = vld [vmem:[#allocation55_spill] sm:$0xff]  ;;  %v14059_v23 = vld [vmem:[#allocation58_spill] sm:$0xff]  ;;  %v9048_v51 = vmul.f32 %v8945_v10, %v14060_v47 }
 0x576   : > { %v9034_v30 = vmul.f32 %v8945_v10, %v14057_v42  ;;  %4595 = vperm.xlu1 %5786, %v8497_v52   ;;  %4647 = vperm.xlu0 %5785, %v8637_v17   ;;  %v9044_v53 = vmul.f32 %v8945_v10, %v14059_v23  ;;  %v9052_v42 = vmul.f32 %v8945_v10, %v14061_v45  ;;  %v14064_v17 = vld [vmem:[#allocation63_spill] sm:$0xff] }
 0x577   : > { %v9060_v52 = vmul.f32 %v8945_v10, %v14063_v41  ;;  %v9064_v23 = vmul.f32 %v8945_v10, %v14064_v17  ;;  %v9068_v47 = vmul.f32 %v8945_v10, %v14065_v14  ;;  %v14069_v41 = vld [vmem:[#allocation66_spill] sm:$0xff]  ;;  %v14070_v17 = vld [vmem:[#allocation67_spill] sm:$0xff]  ;;  %v14071_v14 = vld [vmem:[#allocation68_spill] sm:$0xff] }
 0x578   : > { %v9073_v45 = vpop.permute.xlu1 %4171  ;;  %v9075_v35 = vpop.permute.xlu0 %4215  ;;  %v9083_v44 = vmul.f32 %v8945_v10, %v14069_v41  ;;  %v9087_v37 = vmul.f32 %v8945_v10, %v14070_v17  ;;  %v9091_v25 = vmul.f32 %v8945_v10, %v14071_v14  ;;  %v9103_v41 = vmul.f32 %v8945_v10, %v14074_v24  ;;  %v14075_v17 = vld [vmem:[#allocation72_spill] sm:$0xff] }
 0x579   : > { %14066 = vst [vmem:[#allocation23_spill] sm:$0xff] %v9073_v45  ;;  %14067 = vst [vmem:[#allocation24_spill] sm:$0xff] %v9075_v35  ;;  %v9095_v45 = vmul.f32 %v8945_v10, %v14072_v31  ;;  %v14073_v35 = vld [vmem:[#allocation70_spill] sm:$0xff]  ;;  %v9109_v14 = vmul.f32 %v8945_v10, %v14075_v17  ;;  %v9113_v31 = vmul.f32 %v8945_v10, %v14076_v19 }
 0x57a   : > { %v9099_v43 = vmul.f32 %v8945_v10, %v14073_v35  ;;  %4603 = vperm.xlu1 %5786, %v8509_v54   ;;  %4655 = vperm.xlu0 %5785, %v8649_v21   ;;  %v9117_v35 = vmul.f32 %v8945_v10, %v14077_v5  ;;  %v9121_v24 = vmul.f32 %v8945_v10, %v14078_v18  ;;  %v14081_v21 = vld [vmem:[#allocation77_spill] sm:$0xff] }
 0x57b   : > { %v9125_v54 = vmul.f32 %v8945_v10, %v14079_v12  ;;  %v9129_v17 = vmul.f32 %v8945_v10, %v14081_v21  ;;  %v9133_v19 = vmul.f32 %v8945_v10, %v14083_v32  ;;  %v9137_v5 = vmul.f32 %v8945_v10, %v14085_v22 }
 0x57c   : > { %v9139_v8 = vpop.permute.xlu1 %4179  ;;  %v9141_v18 = vpop.permute.xlu0 %4223  ;;  %v9145_v12 = vmul.f32 %v8945_v10, %v14089_v7 }
 0x57d   : > { %14080 = vst [vmem:[#allocation27_spill] sm:$0xff] %v9125_v54  ;;  %14082 = vst [vmem:[#allocation28_spill] sm:$0xff] %v9129_v17  ;;  %v14091_v54 = vld [vmem:[#allocation81_spill] sm:$0xff]  ;;  %v14092_v17 = vld [vmem:[#allocation82_spill] sm:$0xff] }
 0x57e   : > { %14084 = vst [vmem:[#allocation31_spill] sm:$0xff] %v9133_v19  ;;  %14086 = vst [vmem:[#allocation32_spill] sm:$0xff] %v9137_v5  ;;  %v9149_v21 = vmul.f32 %v8945_v10, %v14091_v54  ;;  %v9153_v32 = vmul.f32 %v8945_v10, %v14092_v17  ;;  %v14094_v19 = vld [vmem:[#allocation83_spill] sm:$0xff]  ;;  %v14096_v5 = vld [vmem:[#allocation84_spill] sm:$0xff]  ;;  %4611 = vperm.xlu1 %5786, %v8521_v56   ;;  %4663 = vperm.xlu0 %5785, %v8661_v36  }
 0x57f   : > { %14087 = vst [vmem:[#allocation35_spill] sm:$0xff] %v9139_v8  ;;  %14088 = vst [vmem:[#allocation36_spill] sm:$0xff] %v9141_v18  ;;  %v9157_v22 = vmul.f32 %v8945_v10, %v14094_v19  ;;  %v9161_v8 = vmul.f32 %v8945_v10, %v14096_v5  ;;  %v14098_v18 = vld [vmem:[#allocation85_spill] sm:$0xff]  ;;  %v14102_v17 = vld [vmem:[#allocation87_spill] sm:$0xff] }
 0x580   : > { %14090 = vst [vmem:[#allocation39_spill] sm:$0xff] %v9145_v12  ;;  %14093 = vst [vmem:[#allocation40_spill] sm:$0xff] %v9153_v32  ;;  %v9165_v7 = vmul.f32 %v8945_v10, %v14098_v18  ;;  %v14100_v12 = vld [vmem:[#allocation86_spill] sm:$0xff]  ;;  %v9175_v19 = vmul.f32 %v8945_v10, %v14102_v17  ;;  %v14104_v32 = vld [vmem:[#allocation88_spill] sm:$0xff] }
 0x581   : > { %14095 = vst [vmem:[#allocation43_spill] sm:$0xff] %v9157_v22  ;;  %14097 = vst [vmem:[#allocation44_spill] sm:$0xff] %v9161_v8  ;;  %v9169_v54 = vmul.f32 %v8945_v10, %v14100_v12  ;;  %v9179_v5 = vmul.f32 %v8945_v10, %v14104_v32  ;;  %v14106_v8 = vld [vmem:[#allocation89_spill] sm:$0xff]  ;;  %v14112_v36 = vld [vmem:[#allocation92_spill] sm:$0xff] }
 0x582   : > { %14099 = vst [vmem:[#allocation47_spill] sm:$0xff] %v9165_v7  ;;  %14103 = vst [vmem:[#allocation51_spill] sm:$0xff] %v9175_v19  ;;  %v9183_v18 = vmul.f32 %v8945_v10, %v14106_v8  ;;  %v14108_v7 = vld [vmem:[#allocation90_spill] sm:$0xff]  ;;  %v9195_v17 = vmul.f32 %v8945_v10, %v14112_v36  ;;  %v14114_v19 = vld [vmem:[#allocation93_spill] sm:$0xff]  ;;  %4619 = vperm.xlu1 %5786, %v8533_v58   ;;  %4671 = vperm.xlu0 %5785, %v8673_v28  }
 0x583   : > { %14101 = vst [vmem:[#allocation48_spill] sm:$0xff] %v9169_v54  ;;  %14105 = vst [vmem:[#allocation52_spill] sm:$0xff] %v9179_v5  ;;  %v9187_v12 = vmul.f32 %v8945_v10, %v14108_v7  ;;  %v14110_v54 = vld [vmem:[#allocation91_spill] sm:$0xff]  ;;  %v9199_v32 = vmul.f32 %v8945_v10, %v14114_v19  ;;  %v14116_v5 = vld [vmem:[#allocation94_spill] sm:$0xff]  ;;  %v9207_v7 = vpop.permute.xlu0 %4231 }
 0x584   : > { %14107 = vst [vmem:[#allocation55_spill] sm:$0xff] %v9183_v18  ;;  %v9191_v56 = vmul.f32 %v8945_v10, %v14110_v54  ;;  %14113 = vst [vmem:[#allocation59_spill] sm:$0xff] %v9195_v17  ;;  %v9203_v8 = vmul.f32 %v8945_v10, %v14116_v5  ;;  %v9205_v18 = vpop.permute.xlu1 %4187  ;;  %v14124_v17 = vld [vmem:[#allocation97_spill] sm:$0xff]  ;;  %v14144_v28 = vld [vmem:[#allocation107_spill] sm:$0xff] }
 0x585   : > { %14109 = vst [vmem:[#allocation56_spill] sm:$0xff] %v9187_v12  ;;  %14115 = vst [vmem:[#allocation60_spill] sm:$0xff] %v9199_v32  ;;  %v14120_v12 = vld [vmem:[#allocation95_spill] sm:$0xff]  ;;  %v9219_v19 = vmul.f32 %v8945_v10, %v14124_v17  ;;  %v14126_v32 = vld [vmem:[#allocation98_spill] sm:$0xff] }
 0x586   : > { %14111 = vst [vmem:[#allocation58_spill] sm:$0xff] %v9191_v56  ;;  %14117 = vst [vmem:[#allocation61_spill] sm:$0xff] %v9203_v8  ;;  %v9211_v54 = vmul.f32 %v8945_v10, %v14120_v12  ;;  %v14122_v56 = vld [vmem:[#allocation96_spill] sm:$0xff]  ;;  %v9223_v5 = vmul.f32 %v8945_v10, %v14126_v32  ;;  %v14128_v8 = vld [vmem:[#allocation99_spill] sm:$0xff]  ;;  %4627 = vperm.xlu1 %5786, %v8545_v60   ;;  %4679 = vperm.xlu0 %5785, %v8685_v20  }
 0x587   : > { %14118 = vst [vmem:[#allocation62_spill] sm:$0xff] %v9205_v18  ;;  %14119 = vst [vmem:[#allocation63_spill] sm:$0xff] %v9207_v7  ;;  %v9215_v36 = vmul.f32 %v8945_v10, %v14122_v56  ;;  %v9227_v18 = vmul.f32 %v8945_v10, %v14128_v8  ;;  %v14130_v7 = vld [vmem:[#allocation100_spill] sm:$0xff]  ;;  %v14134_v17 = vld [vmem:[#allocation102_spill] sm:$0xff] }
 0x588   : > { %14121 = vst [vmem:[#allocation64_spill] sm:$0xff] %v9211_v54  ;;  %14125 = vst [vmem:[#allocation66_spill] sm:$0xff] %v9219_v19  ;;  %v9231_v12 = vmul.f32 %v8945_v10, %v14130_v7  ;;  %v14132_v54 = vld [vmem:[#allocation101_spill] sm:$0xff]  ;;  %v9241_v32 = vmul.f32 %v8945_v10, %v14134_v17  ;;  %v9261_v17 = vmul.f32 %v8945_v10, %v14144_v28  ;;  %v14174_v60 = vld [vmem:[#allocation120_spill] sm:$0xff] }
 0x589   : > { %14123 = vst [vmem:[#allocation65_spill] sm:$0xff] %v9215_v36  ;;  %14127 = vst [vmem:[#allocation67_spill] sm:$0xff] %v9223_v5  ;;  %v9235_v56 = vmul.f32 %v8945_v10, %v14132_v54  ;;  %v14136_v5 = vld [vmem:[#allocation103_spill] sm:$0xff]  ;;  %v9323_v20 = vmul.f32 %v8945_v10, %v14174_v60  ;;  %v14180_v36 = vld [vmem:[#allocation121_spill] sm:$0xff] }
 0x58a   : > { %14129 = vst [vmem:[#allocation68_spill] sm:$0xff] %v9227_v18  ;;  %14131 = vst [vmem:[#allocation69_spill] sm:$0xff] %v9231_v12  ;;  %v9245_v8 = vmul.f32 %v8945_v10, %v14136_v5  ;;  %v14138_v18 = vld [vmem:[#allocation104_spill] sm:$0xff]  ;;  %v14140_v12 = vld [vmem:[#allocation105_spill] sm:$0xff]  ;;  %4635 = vperm.xlu1 %5786, %v8557_v62   ;;  %4687 = vperm.xlu0 %5785, %v8697_v11  }
 0x58b   : > { %14133 = vst [vmem:[#allocation70_spill] sm:$0xff] %v9235_v56  ;;  %14135 = vst [vmem:[#allocation71_spill] sm:$0xff] %v9241_v32  ;;  %v9249_v7 = vmul.f32 %v8945_v10, %v14138_v18  ;;  %v9253_v54 = vmul.f32 %v8945_v10, %v14140_v12  ;;  %v14142_v56 = vld [vmem:[#allocation106_spill] sm:$0xff]  ;;  %v14146_v32 = vld [vmem:[#allocation108_spill] sm:$0xff]  ;;  %v9273_v12 = vpop.permute.xlu0 %4239 }
 0x58c   : > { %14137 = vst [vmem:[#allocation72_spill] sm:$0xff] %v9245_v8  ;;  %v9257_v58 = vmul.f32 %v8945_v10, %v14142_v56  ;;  %14145 = vst [vmem:[#allocation76_spill] sm:$0xff] %v9261_v17  ;;  %v9265_v5 = vmul.f32 %v8945_v10, %v14146_v32  ;;  %v14148_v8 = vld [vmem:[#allocation109_spill] sm:$0xff]  ;;  %v14156_v17 = vld [vmem:[#allocation112_spill] sm:$0xff] }
 0x58d   : > { %14139 = vst [vmem:[#allocation73_spill] sm:$0xff] %v9249_v7  ;;  %14141 = vst [vmem:[#allocation74_spill] sm:$0xff] %v9253_v54  ;;  %v9269_v18 = vmul.f32 %v8945_v10, %v14148_v8  ;;  %v9271_v7 = vpop.permute.xlu1 %4195  ;;  %v14152_v54 = vld [vmem:[#allocation110_spill] sm:$0xff]  ;;  %v9285_v32 = vmul.f32 %v8945_v10, %v14156_v17  ;;  %v14166_v17 = vld [vmem:[#allocation117_spill] sm:$0xff] }
 0x58e   : > { %14143 = vst [vmem:[#allocation75_spill] sm:$0xff] %v9257_v58  ;;  %14147 = vst [vmem:[#allocation77_spill] sm:$0xff] %v9265_v5  ;;  %v9277_v56 = vmul.f32 %v8945_v10, %v14152_v54  ;;  %v14154_v58 = vld [vmem:[#allocation111_spill] sm:$0xff]  ;;  %v14158_v5 = vld [vmem:[#allocation113_spill] sm:$0xff]  ;;  %4643 = vperm.xlu1 %5786, %v8569_v0   ;;  %4695 = vperm.xlu0 %5785, %v8709_v4  }
 0x58f   : > { %14149 = vst [vmem:[#allocation78_spill] sm:$0xff] %v9269_v18  ;;  %14150 = vst [vmem:[#allocation79_spill] sm:$0xff] %v9271_v7  ;;  %v9281_v28 = vmul.f32 %v8945_v10, %v14154_v58  ;;  %v9289_v8 = vmul.f32 %v8945_v10, %v14158_v5  ;;  %v14160_v18 = vld [vmem:[#allocation114_spill] sm:$0xff]  ;;  %v9307_v5 = vmul.f32 %v8945_v10, %v14166_v17  ;;  %v14176_v17 = vld [vmem:[#allocation128_spill] sm:$0xff] }
 0x590   : > { %14151 = vst [vmem:[#allocation80_spill] sm:$0xff] %v9273_v12  ;;  %14153 = vst [vmem:[#allocation81_spill] sm:$0xff] %v9277_v56  ;;  %v9293_v7 = vmul.f32 %v8945_v10, %v14160_v18  ;;  %v14162_v12 = vld [vmem:[#allocation115_spill] sm:$0xff]  ;;  %v14164_v56 = vld [vmem:[#allocation116_spill] sm:$0xff] }
 0x591   : > { %14155 = vst [vmem:[#allocation82_spill] sm:$0xff] %v9281_v28  ;;  %14157 = vst [vmem:[#allocation83_spill] sm:$0xff] %v9285_v32  ;;  %v9297_v54 = vmul.f32 %v8945_v10, %v14162_v12  ;;  %v9301_v58 = vmul.f32 %v8945_v10, %v14164_v56  ;;  %v14168_v32 = vld [vmem:[#allocation118_spill] sm:$0xff]  ;;  %v14172_v56 = vld [vmem:[#allocation119_spill] sm:$0xff] }
 0x592   : > { %14159 = vst [vmem:[#allocation84_spill] sm:$0xff] %v9289_v8  ;;  %14161 = vst [vmem:[#allocation85_spill] sm:$0xff] %v9293_v7  ;;  %v9311_v18 = vmul.f32 %v8945_v10, %v14168_v32  ;;  %v14170_v7 = vld [vmem:[#allocation126_spill] sm:$0xff]  ;;  %v14177_v28 = vld [vmem:[#allocation129_spill] sm:$0xff]  ;;  %4651 = vperm.xlu1 %5786, %v8581_v63  }
 0x593   : > { %14163 = vst [vmem:[#allocation86_spill] sm:$0xff] %v9297_v54  ;;  %14165 = vst [vmem:[#allocation87_spill] sm:$0xff] %v9301_v58  ;;  %v1623_v12 = vmul.f32 %v9071_v16, %v14170_v7  ;;  %v14171_v54 = vld [vmem:[#allocation127_spill] sm:$0xff]  ;;  %v9319_v58 = vmul.f32 %v8945_v10, %v14172_v56  ;;  %v1625_v32 = vmul.f32 %v9071_v16, %v14177_v28  ;;  %v9331_v7 = vpop.permute.xlu0 %4247  ;;  %v14182_v56 = vld [vmem:[#allocation122_spill] sm:$0xff] }
 0x594   : > { %14167 = vst [vmem:[#allocation88_spill] sm:$0xff] %v9307_v5  ;;  %14169 = vst [vmem:[#allocation89_spill] sm:$0xff] %v9311_v18  ;;  %v1622_v8 = vmul.f32 %v9071_v16, %v14171_v54  ;;  %v1624_v5 = vmul.f32 %v9071_v16, %v14176_v17  ;;  %v9329_v18 = vpop.permute.xlu1 %4203  ;;  %v9335_v54 = vmul.f32 %v8945_v10, %v14180_v36  ;;  %v14183_v60 = vld [vmem:[#allocation123_spill] sm:$0xff]  ;;  %v14184_v17 = vld [vmem:[#allocation130_spill] sm:$0xff] }
 0x595   : > { %14173 = vst [vmem:[#allocation90_spill] sm:$0xff] %v9319_v58  ;;  %14175 = vst [vmem:[#allocation91_spill] sm:$0xff] %v9323_v20  ;;  %v9339_v58 = vmul.f32 %v8945_v10, %v14182_v56  ;;  %v9343_v20 = vmul.f32 %v8945_v10, %v14183_v60  ;;  %v1626_v19 = vmul.f32 %v9071_v16, %v14184_v17  ;;  %v14185_v28 = vld [vmem:[#allocation124_spill] sm:$0xff]  ;;  %v14188_v36 = vld [vmem:[#allocation131_spill] sm:$0xff] }
 0x596   : > { %14178 = vst [vmem:[#allocation92_spill] sm:$0xff] %v9329_v18  ;;  %14179 = vst [vmem:[#allocation93_spill] sm:$0xff] %v9331_v7  ;;  %v9349_v18 = vmul.f32 %v8945_v10, %v14185_v28  ;;  %v14187_v7 = vld [vmem:[#allocation125_spill] sm:$0xff]  ;;  %v9360_v56 = vadd.f32 %v1623_v12, %v8967_v48  ;;  %v9363_v60 = vadd.f32 %v1622_v8, %v8959_v15  ;;  %v14189_v17 = vld [vmem:[#allocation132_spill] sm:$0xff] }
 0x597   : > { %14181 = vst [vmem:[#allocation94_spill] sm:$0xff] %v9335_v54  ;;  %v9353_v22 = vmul.f32 %v8945_v10, %v14187_v7  ;;  %v1627_v54 = vmul.f32 %v9071_v16, %v14188_v36  ;;  %v1628_v28 = vmul.f32 %v9071_v16, %v14189_v17  ;;  %v9370_v7 = vadd.f32 %v1624_v5, %v8955_v46  ;;  %v14193_v62 = vld [vmem:[#allocation134_spill] sm:$0xff]  ;;  %v14194_v48 = vld [vmem:[#allocation135_spill] sm:$0xff]  ;;  %v9381_v8 = vpop.permute.xlu0 %4255  ;;  %v14198_v5 = vld [vmem:[#allocation137_spill] sm:$0xff] }
 0x598   : > { %14186 = vst [vmem:[#allocation95_spill] sm:$0xff] %v9349_v18  ;;  %v14190_v18 = vld [vmem:[#allocation133_spill] sm:$0xff]  ;;  %v9373_v36 = vadd.f32 %v1625_v32, %v8963_v33  ;;  %v1630_v11 = vmul.f32 %v9071_v16, %v14193_v62  ;;  %v1631_v12 = vmul.f32 %v9071_v16, %v14194_v48  ;;  %v9379_v15 = vpop.permute.xlu1 %4211  ;;  %14196 = vst [vmem:[#allocation99_spill] sm:$0xff] %v9381_v8  ;;  %v14199_v32 = vld [vmem:[#allocation138_spill] sm:$0xff] }
 0x599   : > { %v1629_v10 = vmul.f32 %v9071_v16, %v14190_v18  ;;  %14191 = vst [vmem:[#allocation96_spill] sm:$0xff] %v9370_v7  ;;  %14195 = vst [vmem:[#allocation98_spill] sm:$0xff] %v9379_v15  ;;  %v9384_v17 = vadd.f32 %v1626_v19, %v8975_v1  ;;  %v14197_v18 = vld [vmem:[#allocation136_spill] sm:$0xff]  ;;  %v1633_v33 = vmul.f32 %v9071_v16, %v14198_v5  ;;  %v14200_v48 = vld [vmem:[#allocation139_spill] sm:$0xff] }
 0x59a   : > { %14192 = vst [vmem:[#allocation97_spill] sm:$0xff] %v9373_v36  ;;  %v1632_v46 = vmul.f32 %v9071_v16, %v14197_v18  ;;  %v1634_v36 = vmul.f32 %v9071_v16, %v14199_v32  ;;  %v9393_v62 = vadd.f32 %v1627_v54, %v8971_v59  ;;  %v1635_v15 = vmul.f32 %v9071_v16, %v14200_v48  ;;  %v14201_v7 = vld [vmem:[#allocation140_spill] sm:$0xff]  ;;  %v14202_v18 = vld [vmem:[#allocation141_spill] sm:$0xff]  ;;  %v14203_v54 = vld [vmem:[#allocation142_spill] sm:$0xff] }
 0x59b   : > { %v1636_v8 = vmul.f32 %v9071_v16, %v14201_v7  ;;  %v9402_v1 = vadd.f32 %v1628_v28, %v8985_v61  ;;  %v9405_v19 = vadd.f32 %v1629_v10, %v8981_v38  ;;  %v1637_v59 = vmul.f32 %v9071_v16, %v14202_v18  ;;  %v14204_v0 = vld [vmem:[#allocation143_spill] sm:$0xff]  ;;  %v14205_v61 = vld [vmem:[#allocation50_spill] sm:$0xff]  ;;  %v9423_v10 = vpop.permute.xlu0 %4263  ;;  %v14213_v63 = vld [vmem:[#allocation145_spill] sm:$0xff] }
 0x59c   : > { %v1638_v5 = vmul.f32 %v9071_v16, %v14203_v54  ;;  %v9412_v32 = vadd.f32 %v1630_v11, %v8993_v40  ;;  %v9415_v7 = vadd.f32 %v1631_v12, %v8989_v13  ;;  %v1639_v4 = vmul.f32 %v9071_v16, %v14204_v0  ;;  %v9421_v38 = vpop.permute.xlu1 %4219  ;;  %14207 = vst [vmem:[#allocation101_spill] sm:$0xff] %v9423_v10  ;;  %v14208_v13 = vld [vmem:[#allocation49_spill] sm:$0xff]  ;;  %v14209_v0 = vld [vmem:[#allocation54_spill] sm:$0xff] }
 0x59d   : > { %v1640_v28 = vmul.f32 %v9071_v16, %v14205_v61  ;;  %14206 = vst [vmem:[#allocation100_spill] sm:$0xff] %v9421_v38  ;;  %v9426_v48 = vadd.f32 %v1632_v46, %v9001_v6  ;;  %v9429_v18 = vadd.f32 %v1633_v33, %v8997_v50  ;;  %v9432_v40 = vadd.f32 %v1634_v36, %v9014_v27  ;;  %v14210_v6 = vld [vmem:[#allocation546_spill] sm:$0xff]  ;;  %v14211_v36 = vld [vmem:[#allocation144_spill] sm:$0xff] }
 0x59e   : > { %v1641_v11 = vmul.f32 %v9071_v16, %v14208_v13  ;;  %v9437_v12 = vadd.f32 %v1635_v15, %v9005_v2  ;;  %v9440_v54 = vadd.f32 %v1636_v8, %v9022_v34  ;;  %v1642_v61 = vmul.f32 %v9071_v16, %v14209_v0  ;;  %4703 = vperm.xlu0 %5785, %v14210_v6   ;;  %v14212_v15 = vld [vmem:[#allocation57_spill] sm:$0xff]  ;;  %v14216_v13 = vld [vmem:[#allocation146_spill] sm:$0xff] }
 0x59f   : > { %v9447_v50 = vadd.f32 %v1637_v59, %v9018_v26  ;;  %v9450_v27 = vadd.f32 %v1638_v5, %v9030_v57  ;;  %v1643_v2 = vmul.f32 %v9071_v16, %v14211_v36  ;;  %v1644_v34 = vmul.f32 %v9071_v16, %v14212_v15  ;;  %v9467_v57 = vpop.permute.xlu0 %4271  ;;  %v14219_v36 = vld [vmem:[#allocation149_spill] sm:$0xff]  ;;  %v14226_v10 = vld [vmem:[#allocation154_spill] sm:$0xff] }
 0x5a0   : > { %v9457_v8 = vadd.f32 %v1639_v4, %v9026_v29  ;;  %v9460_v46 = vadd.f32 %v1640_v28, %v9038_v9  ;;  %v1645_v33 = vmul.f32 %v9071_v16, %v14213_v63  ;;  %v2152_v26 = vsub.s32 2, %v8924_v55  ;;  %v9465_v59 = vpop.permute.xlu1 %4227  ;;  %14215 = vst [vmem:[#allocation103_spill] sm:$0xff] %v9467_v57  ;;  %v14217_v29 = vld [vmem:[#allocation147_spill] sm:$0xff]  ;;  %v14218_v9 = vld [vmem:[#allocation148_spill] sm:$0xff]  ;;  %v14220_v63 = vld [vmem:[#allocation150_spill] sm:$0xff] }
 0x5a1   : > { %14214 = vst [vmem:[#allocation102_spill] sm:$0xff] %v9465_v59  ;;  %v9470_v5 = vadd.f32 %v1641_v11, %v9034_v30  ;;  %v1646_v0 = vmul.f32 %v9071_v16, %v14216_v13  ;;  %v1647_v4 = vmul.f32 %v9071_v16, %v14217_v29  ;;  %v1648_v28 = vmul.f32 %v9071_v16, %v14218_v9  ;;  %v14221_v30 = vld [vmem:[#allocation513_spill] sm:$0xff]  ;;  %v14223_v9 = vld [vmem:[#allocation151_spill] sm:$0xff]  ;;  %v14248_v38 = vld [vmem:[#allocation166_spill] sm:$0xff] }
 0x5a2   : > { %v9479_v6 = vadd.f32 %v1642_v61, %v9048_v51  ;;  %v1649_v15 = vmul.f32 %v9071_v16, %v14219_v36  ;;  %v1650_v57 = vmul.f32 %v9071_v16, %v14220_v63  ;;  %4659 = vperm.xlu1 %5786, %v14221_v30   ;;  %v14222_v11 = vld [vmem:[#allocation549_spill] sm:$0xff]  ;;  %v9488_v13 = vadd.f32 %v1643_v2, %v9044_v53  ;;  %v14224_v61 = vld [vmem:[#allocation152_spill] sm:$0xff] }
 0x5a3   : > { %4711 = vperm.xlu0 %5785, %v14222_v11   ;;  %v9491_v29 = vadd.f32 %v1644_v34, %v9056_v49  ;;  %v1651_v51 = vmul.f32 %v9071_v16, %v14223_v9  ;;  %v1652_v59 = vmul.f32 %v9071_v16, %v14224_v61  ;;  %v9498_v36 = vadd.f32 %v1645_v33, %v9052_v42  ;;  %v14225_v63 = vld [vmem:[#allocation153_spill] sm:$0xff]  ;;  %v14228_v33 = vld [vmem:[#allocation155_spill] sm:$0xff]  ;;  %v9520_v61 = vpop.permute.xlu0 %4459 }
 0x5a4   : > { %v1653_v30 = vmul.f32 %v9071_v16, %v14225_v63  ;;  %v1654_v11 = vmul.f32 %v9071_v16, %v14226_v10  ;;  %v9505_v53 = vrot.slane %v8936_v3, %v2152_v26  ;;  %v9507_v49 = vpop.permute.xlu1 %4235  ;;  %v9510_v2 = vadd.f32 %v1646_v0, %v9064_v23  ;;  %14229 = vst [vmem:[#allocation105_spill] sm:$0xff] %v9520_v61  ;;  %v14230_v63 = vld [vmem:[#allocation156_spill] sm:$0xff] }
 0x5a5   : > { %14227 = vst [vmem:[#allocation104_spill] sm:$0xff] %v9507_v49  ;;  %v9513_v34 = vadd.f32 %v1647_v4, %v9060_v52  ;;  %v9516_v42 = vadd.f32 %v1648_v28, %v9079_v39  ;;  %v1655_v9 = vmul.f32 %v9071_v16, %v14228_v33  ;;  %v9523_v10 = vadd.f32 %v1649_v15, %v9068_v47  ;;  %v14231_v0 = vld [vmem:[#allocation516_spill] sm:$0xff]  ;;  %v14233_v28 = vld [vmem:[#allocation157_spill] sm:$0xff]  ;;  %v14234_v15 = vld [vmem:[#allocation158_spill] sm:$0xff] }
 0x5a6   : > { %v9526_v26 = vadd.f32 %v1650_v57, %v9087_v37  ;;  %v1656_v23 = vmul.f32 %v9071_v16, %v14230_v63  ;;  %4667 = vperm.xlu1 %5786, %v14231_v0   ;;  %v14232_v52 = vld [vmem:[#allocation552_spill] sm:$0xff]  ;;  %v9533_v39 = vadd.f32 %v1651_v51, %v9083_v44  ;;  %v9536_v4 = vadd.f32 %v1652_v59, %v9095_v45  ;;  %v14235_v63 = vld [vmem:[#allocation159_spill] sm:$0xff]  ;;  %v14243_v49 = vld [vmem:[#allocation165_spill] sm:$0xff] }
 0x5a7   : > { %4719 = vperm.xlu0 %5785, %v14232_v52   ;;  %v1657_v47 = vmul.f32 %v9071_v16, %v14233_v28  ;;  %v1658_v37 = vmul.f32 %v9071_v16, %v14234_v15  ;;  %v9543_v57 = vadd.f32 %v1653_v30, %v9091_v25  ;;  %v9546_v33 = vadd.f32 %v1654_v11, %v9103_v41  ;;  %v14236_v44 = vld [vmem:[#allocation160_spill] sm:$0xff]  ;;  %v14238_v52 = vld [vmem:[#allocation161_spill] sm:$0xff]  ;;  %v14239_v15 = vld [vmem:[#allocation162_spill] sm:$0xff]  ;;  %v9563_v11 = vpop.permute.xlu0 %4471 }
 0x5a8   : > { %v1659_v0 = vmul.f32 %v9071_v16, %v14235_v63  ;;  %v1660_v51 = vmul.f32 %v9071_v16, %v14236_v44  ;;  %v9552_v45 = vpop.permute.xlu1 %4243  ;;  %v9555_v59 = vadd.f32 %v1655_v9, %v9099_v43  ;;  %v1661_v28 = vmul.f32 %v9071_v16, %v14238_v52  ;;  %v14240_v30 = vld [vmem:[#allocation163_spill] sm:$0xff]  ;;  %14241 = vst [vmem:[#allocation107_spill] sm:$0xff] %v9563_v11  ;;  %v14242_v44 = vld [vmem:[#allocation164_spill] sm:$0xff] }
 0x5a9   : > { %14237 = vst [vmem:[#allocation106_spill] sm:$0xff] %v9552_v45  ;;  %v1662_v25 = vmul.f32 %v9071_v16, %v14239_v15  ;;  %v1663_v41 = vmul.f32 %v9071_v16, %v14240_v30  ;;  %v9566_v63 = vadd.f32 %v1656_v23, %v9113_v31  ;;  %v1664_v45 = vmul.f32 %v9071_v16, %v14242_v44  ;;  %v14244_v9 = vld [vmem:[#allocation519_spill] sm:$0xff] }
 0x5aa   : > { %v1665_v43 = vmul.f32 %v9071_v16, %v14243_v49  ;;  %4675 = vperm.xlu1 %5786, %v14244_v9   ;;  %v14245_v52 = vld [vmem:[#allocation555_spill] sm:$0xff]  ;;  %v9575_v15 = vadd.f32 %v1657_v47, %v9109_v14  ;;  %v9578_v30 = vadd.f32 %v1658_v37, %v9121_v24  ;;  %v1666_v31 = vmul.f32 %v9071_v16, %v14248_v38  ;;  %v14251_v49 = vld [vmem:[#allocation28_spill] sm:$0xff]  ;;  %v14253_v14 = vld [vmem:[#allocation169_spill] sm:$0xff] }
 0x5ab   : > { %4727 = vperm.xlu0 %5785, %v14245_v52   ;;  %v14249_v23 = vld [vmem:[#allocation167_spill] sm:$0xff]  ;;  %v9585_v44 = vadd.f32 %v1659_v0, %v9117_v35  ;;  %v9588_v61 = vadd.f32 %v1660_v51, %v14251_v49  ;;  %v14252_v9 = vld [vmem:[#allocation168_spill] sm:$0xff]  ;;  %v1669_v47 = vmul.f32 %v9071_v16, %v14253_v14  ;;  %v14261_v0 = vld [vmem:[#allocation170_spill] sm:$0xff]  ;;  %v9607_v49 = vpop.permute.xlu0 %4479 }
 0x5ac   : > { %14246 = vst [vmem:[#allocation108_spill] sm:$0xff] %v9575_v15  ;;  %14247 = vst [vmem:[#allocation109_spill] sm:$0xff] %v9578_v30  ;;  %v1667_v11 = vmul.f32 %v9071_v16, %v14249_v23  ;;  %v1668_v52 = vmul.f32 %v9071_v16, %v14252_v9  ;;  %v9594_v24 = vpop.permute.xlu1 %4251  ;;  %v14255_v37 = vld [vmem:[#allocation27_spill] sm:$0xff]  ;;  %v14257_v38 = vld [vmem:[#allocation32_spill] sm:$0xff]  ;;  %v1670_v51 = vmul.f32 %v9071_v16, %v14261_v0 }
 0x5ad   : > { %14250 = vst [vmem:[#allocation110_spill] sm:$0xff] %v9585_v44  ;;  %14254 = vst [vmem:[#allocation111_spill] sm:$0xff] %v9594_v24  ;;  %v9597_v15 = vadd.f32 %v1661_v28, %v14255_v37  ;;  %v9600_v30 = vadd.f32 %v1662_v25, %v14257_v38  ;;  %v14259_v23 = vld [vmem:[#allocation31_spill] sm:$0xff]  ;;  %v9610_v9 = vadd.f32 %v1664_v45, %v9149_v21  ;;  %v14267_v37 = vld [vmem:[#allocation522_spill] sm:$0xff] }
 0x5ae   : > { %v9603_v35 = vadd.f32 %v1663_v41, %v14259_v23  ;;  %14262 = vst [vmem:[#allocation115_spill] sm:$0xff] %v9607_v49  ;;  %v14264_v14 = vld [vmem:[#allocation39_spill] sm:$0xff]  ;;  %4683 = vperm.xlu1 %5786, %v14267_v37   ;;  %v14268_v25 = vld [vmem:[#allocation558_spill] sm:$0xff]  ;;  %v14271_v23 = vld [vmem:[#allocation40_spill] sm:$0xff] }
 0x5af   : > { %14256 = vst [vmem:[#allocation112_spill] sm:$0xff] %v9597_v15  ;;  %14258 = vst [vmem:[#allocation113_spill] sm:$0xff] %v9600_v30  ;;  %v9613_v44 = vadd.f32 %v1665_v43, %v14264_v14  ;;  %v14266_v24 = vld [vmem:[#allocation171_spill] sm:$0xff]  ;;  %4735 = vperm.xlu0 %5785, %v14268_v25   ;;  %v9623_v0 = vadd.f32 %v1667_v11, %v14271_v23  ;;  %v14273_v49 = vld [vmem:[#allocation172_spill] sm:$0xff] }
 0x5b0   : > { %14260 = vst [vmem:[#allocation114_spill] sm:$0xff] %v9603_v35  ;;  %14263 = vst [vmem:[#allocation116_spill] sm:$0xff] %v9610_v9  ;;  %v1671_v28 = vmul.f32 %v9071_v16, %v14266_v24  ;;  %v14269_v41 = vld [vmem:[#allocation43_spill] sm:$0xff]  ;;  %v1672_v21 = vmul.f32 %v9071_v16, %v14273_v49  ;;  %v14274_v45 = vld [vmem:[#allocation173_spill] sm:$0xff]  ;;  %v9639_v11 = vpop.permute.xlu1 %4259 }
 0x5b1   : > { %14265 = vst [vmem:[#allocation117_spill] sm:$0xff] %v9613_v44  ;;  %v9620_v38 = vadd.f32 %v1666_v31, %v14269_v41  ;;  %14272 = vst [vmem:[#allocation126_spill] sm:$0xff] %v9623_v0  ;;  %v1673_v43 = vmul.f32 %v9071_v16, %v14274_v45  ;;  %v14275_v14 = vld [vmem:[#allocation47_spill] sm:$0xff]  ;;  %v14277_v24 = vld [vmem:[#allocation44_spill] sm:$0xff] }
 0x5b2   : > { %v9630_v44 = vadd.f32 %v1668_v52, %v14275_v14  ;;  %v9633_v35 = vadd.f32 %v1669_v47, %v14277_v24  ;;  %v14279_v37 = vld [vmem:[#allocation174_spill] sm:$0xff]  ;;  %v14280_v31 = vld [vmem:[#allocation175_spill] sm:$0xff]  ;;  %14281 = vst [vmem:[#allocation120_spill] sm:$0xff] %v9639_v11  ;;  %v14284_v49 = vld [vmem:[#allocation176_spill] sm:$0xff]  ;;  %v9650_v24 = vpop.permute.xlu0 %4487 }
 0x5b3   : > { %14270 = vst [vmem:[#allocation118_spill] sm:$0xff] %v9620_v38  ;;  %v1674_v25 = vmul.f32 %v9071_v16, %v14279_v37  ;;  %v1675_v41 = vmul.f32 %v9071_v16, %v14280_v31  ;;  %v14282_v23 = vld [vmem:[#allocation51_spill] sm:$0xff]  ;;  %v1676_v45 = vmul.f32 %v9071_v16, %v14284_v49  ;;  %v14285_v38 = vld [vmem:[#allocation177_spill] sm:$0xff]  ;;  %v14286_v14 = vld [vmem:[#allocation178_spill] sm:$0xff] }
 0x5b4   : > { %14276 = vst [vmem:[#allocation127_spill] sm:$0xff] %v9630_v44  ;;  %14278 = vst [vmem:[#allocation119_spill] sm:$0xff] %v9633_v35  ;;  %v9642_v0 = vadd.f32 %v1670_v51, %v14282_v23  ;;  %v1677_v52 = vmul.f32 %v9071_v16, %v14285_v38  ;;  %v1678_v47 = vmul.f32 %v9071_v16, %v14286_v14  ;;  %v14288_v37 = vld [vmem:[#allocation48_spill] sm:$0xff]  ;;  %v14290_v31 = vld [vmem:[#allocation179_spill] sm:$0xff] }
 0x5b5   : > { %14287 = vst [vmem:[#allocation129_spill] sm:$0xff] %v9650_v24  ;;  %v9653_v35 = vadd.f32 %v1671_v28, %v14288_v37  ;;  %v1679_v11 = vmul.f32 %v9071_v16, %v14290_v31  ;;  %v14291_v44 = vld [vmem:[#allocation180_spill] sm:$0xff]  ;;  %v14292_v23 = vld [vmem:[#allocation525_spill] sm:$0xff]  ;;  %v14299_v37 = vld [vmem:[#allocation182_spill] sm:$0xff] }
 0x5b6   : > { %14283 = vst [vmem:[#allocation128_spill] sm:$0xff] %v9642_v0  ;;  %v1680_v51 = vmul.f32 %v9071_v16, %v14291_v44  ;;  %4691 = vperm.xlu1 %5786, %v14292_v23   ;;  %v14293_v49 = vld [vmem:[#allocation561_spill] sm:$0xff]  ;;  %v14294_v0 = vld [vmem:[#allocation55_spill] sm:$0xff]  ;;  %v14296_v9 = vld [vmem:[#allocation52_spill] sm:$0xff] }
 0x5b7   : > { %14289 = vst [vmem:[#allocation121_spill] sm:$0xff] %v9653_v35  ;;  %4743 = vperm.xlu0 %5785, %v14293_v49   ;;  %v9662_v38 = vadd.f32 %v1672_v21, %v14294_v0  ;;  %v9665_v14 = vadd.f32 %v1673_v43, %v14296_v9  ;;  %v14298_v24 = vld [vmem:[#allocation181_spill] sm:$0xff]  ;;  %v1682_v35 = vmul.f32 %v9071_v16, %v14299_v37  ;;  %v14300_v31 = vld [vmem:[#allocation58_spill] sm:$0xff]  ;;  %v14302_v44 = vld [vmem:[#allocation56_spill] sm:$0xff]  ;;  %v9681_v9 = vpop.permute.xlu1 %4267 }
 0x5b8   : > { %v1681_v28 = vmul.f32 %v9071_v16, %v14298_v24  ;;  %v9672_v15 = vadd.f32 %v1674_v25, %v14300_v31  ;;  %v9675_v30 = vadd.f32 %v1675_v41, %v14302_v44  ;;  %v14304_v23 = vld [vmem:[#allocation183_spill] sm:$0xff]  ;;  %v14305_v0 = vld [vmem:[#allocation184_spill] sm:$0xff]  ;;  %14306 = vst [vmem:[#allocation125_spill] sm:$0xff] %v9681_v9  ;;  %v14313_v31 = vld [vmem:[#allocation185_spill] sm:$0xff]  ;;  %v9694_v44 = vpop.permute.xlu0 %4495 }
 0x5b9   : > { %14295 = vst [vmem:[#allocation122_spill] sm:$0xff] %v9662_v38  ;;  %14297 = vst [vmem:[#allocation123_spill] sm:$0xff] %v9665_v14  ;;  %v1683_v49 = vmul.f32 %v9071_v16, %v14304_v23  ;;  %v1684_v21 = vmul.f32 %v9071_v16, %v14305_v0  ;;  %v14307_v43 = vld [vmem:[#allocation60_spill] sm:$0xff]  ;;  %v14309_v24 = vld [vmem:[#allocation59_spill] sm:$0xff]  ;;  %v1685_v41 = vmul.f32 %v9071_v16, %v14313_v31 }
 0x5ba   : > { %14301 = vst [vmem:[#allocation130_spill] sm:$0xff] %v9672_v15  ;;  %14303 = vst [vmem:[#allocation124_spill] sm:$0xff] %v9675_v30  ;;  %v9684_v14 = vadd.f32 %v1676_v45, %v14307_v43  ;;  %v9687_v38 = vadd.f32 %v1677_v52, %v14309_v24  ;;  %v14311_v37 = vld [vmem:[#allocation64_spill] sm:$0xff]  ;;  %v14315_v23 = vld [vmem:[#allocation61_spill] sm:$0xff] }
 0x5bb   : > { %v9690_v25 = vadd.f32 %v1678_v47, %v14311_v37  ;;  %14314 = vst [vmem:[#allocation134_spill] sm:$0xff] %v9694_v44  ;;  %v9697_v30 = vadd.f32 %v1679_v11, %v14315_v23  ;;  %v14317_v0 = vld [vmem:[#allocation66_spill] sm:$0xff]  ;;  %v14320_v43 = vld [vmem:[#allocation528_spill] sm:$0xff]  ;;  %v14322_v47 = vld [vmem:[#allocation65_spill] sm:$0xff] }
 0x5bc   : > { %14308 = vst [vmem:[#allocation131_spill] sm:$0xff] %v9684_v14  ;;  %14310 = vst [vmem:[#allocation132_spill] sm:$0xff] %v9687_v38  ;;  %v9700_v15 = vadd.f32 %v1680_v51, %v14317_v0  ;;  %v14319_v9 = vld [vmem:[#allocation186_spill] sm:$0xff]  ;;  %4699 = vperm.xlu1 %5786, %v14320_v43   ;;  %v14321_v52 = vld [vmem:[#allocation564_spill] sm:$0xff]  ;;  %v9707_v24 = vadd.f32 %v1681_v28, %v14322_v47 }
 0x5bd   : > { %14312 = vst [vmem:[#allocation133_spill] sm:$0xff] %v9690_v25  ;;  %14316 = vst [vmem:[#allocation135_spill] sm:$0xff] %v9697_v30  ;;  %v1686_v45 = vmul.f32 %v9071_v16, %v14319_v9  ;;  %4751 = vperm.xlu0 %5785, %v14321_v52   ;;  %v14324_v37 = vld [vmem:[#allocation68_spill] sm:$0xff]  ;;  %v14326_v44 = vld [vmem:[#allocation187_spill] sm:$0xff] }
 0x5be   : > { %14318 = vst [vmem:[#allocation136_spill] sm:$0xff] %v9700_v15  ;;  %14323 = vst [vmem:[#allocation137_spill] sm:$0xff] %v9707_v24  ;;  %v9710_v31 = vadd.f32 %v1682_v35, %v14324_v37  ;;  %v1687_v11 = vmul.f32 %v9071_v16, %v14326_v44  ;;  %v14327_v23 = vld [vmem:[#allocation188_spill] sm:$0xff]  ;;  %v14328_v0 = vld [vmem:[#allocation67_spill] sm:$0xff]  ;;  %v9726_v35 = vpop.permute.xlu1 %4275 }
 0x5bf   : > { %v1688_v51 = vmul.f32 %v9071_v16, %v14327_v23  ;;  %v9717_v30 = vadd.f32 %v1683_v49, %v14328_v0  ;;  %v14330_v9 = vld [vmem:[#allocation70_spill] sm:$0xff]  ;;  %v14332_v43 = vld [vmem:[#allocation189_spill] sm:$0xff]  ;;  %14334 = vst [vmem:[#allocation141_spill] sm:$0xff] %v9726_v35  ;;  %v14337_v44 = vld [vmem:[#allocation191_spill] sm:$0xff] }
 0x5c0   : > { %14325 = vst [vmem:[#allocation138_spill] sm:$0xff] %v9710_v31  ;;  %v9720_v15 = vadd.f32 %v1684_v21, %v14330_v9  ;;  %v1689_v52 = vmul.f32 %v9071_v16, %v14332_v43  ;;  %v14333_v28 = vld [vmem:[#allocation190_spill] sm:$0xff]  ;;  %v14335_v37 = vld [vmem:[#allocation69_spill] sm:$0xff]  ;;  %v1691_v23 = vmul.f32 %v9071_v16, %v14337_v44  ;;  %v14338_v31 = vld [vmem:[#allocation192_spill] sm:$0xff]  ;;  %v9737_v9 = vpop.permute.xlu0 %4503 }
 0x5c1   : > { %14329 = vst [vmem:[#allocation139_spill] sm:$0xff] %v9717_v30  ;;  %v1690_v47 = vmul.f32 %v9071_v16, %v14333_v28  ;;  %v9729_v24 = vadd.f32 %v1685_v41, %v14335_v37  ;;  %v1692_v49 = vmul.f32 %v9071_v16, %v14338_v31  ;;  %v14339_v0 = vld [vmem:[#allocation193_spill] sm:$0xff]  ;;  %14340 = vst [vmem:[#allocation143_spill] sm:$0xff] %v9737_v9  ;;  %v14341_v43 = vld [vmem:[#allocation72_spill] sm:$0xff] }
 0x5c2   : > { %14331 = vst [vmem:[#allocation140_spill] sm:$0xff] %v9720_v15  ;;  %v1693_v21 = vmul.f32 %v9071_v16, %v14339_v0  ;;  %v9740_v30 = vadd.f32 %v1686_v45, %v14341_v43  ;;  %v14343_v28 = vld [vmem:[#allocation194_spill] sm:$0xff]  ;;  %v14344_v15 = vld [vmem:[#allocation195_spill] sm:$0xff]  ;;  %v14351_v9 = vld [vmem:[#allocation196_spill] sm:$0xff] }
 0x5c3   : > { %14336 = vst [vmem:[#allocation142_spill] sm:$0xff] %v9729_v24  ;;  %v1694_v35 = vmul.f32 %v9071_v16, %v14343_v28  ;;  %v1695_v41 = vmul.f32 %v9071_v16, %v14344_v15  ;;  %v14345_v37 = vld [vmem:[#allocation531_spill] sm:$0xff]  ;;  %v14349_v38 = vld [vmem:[#allocation74_spill] sm:$0xff]  ;;  %v1696_v45 = vmul.f32 %v9071_v16, %v14351_v9  ;;  %v14352_v43 = vld [vmem:[#allocation197_spill] sm:$0xff] }
 0x5c4   : > { %14342 = vst [vmem:[#allocation50_spill] sm:$0xff] %v9740_v30  ;;  %4707 = vperm.xlu1 %5786, %v14345_v37   ;;  %v14346_v44 = vld [vmem:[#allocation567_spill] sm:$0xff]  ;;  %v9752_v0 = vadd.f32 %v1688_v51, %v14349_v38  ;;  %v1697_v30 = vmul.f32 %v9071_v16, %v14352_v43  ;;  %v14353_v28 = vld [vmem:[#allocation73_spill] sm:$0xff]  ;;  %v14355_v15 = vld [vmem:[#allocation76_spill] sm:$0xff] }
 0x5c5   : > { %4759 = vperm.xlu0 %5785, %v14346_v44   ;;  %v14347_v24 = vld [vmem:[#allocation71_spill] sm:$0xff]  ;;  %v9759_v25 = vadd.f32 %v1689_v52, %v14353_v28  ;;  %v9762_v14 = vadd.f32 %v1690_v47, %v14355_v15  ;;  %v14364_v52 = vld [vmem:[#allocation4_spill] sm:$0xff]  ;;  %v9779_v47 = vpop.permute.xlu1 %4463  ;;  %v9781_v15 = vpop.permute.xlu0 %4511 }
 0x5c6   : > { %v9749_v31 = vadd.f32 %v1687_v11, %v14347_v24  ;;  %14350 = vst [vmem:[#allocation54_spill] sm:$0xff] %v9752_v0  ;;  %v14357_v37 = vld [vmem:[#allocation3_spill] sm:$0xff]  ;;  %v14358_v24 = vld [vmem:[#allocation6_spill] sm:$0xff]  ;;  %v14362_v0 = vld [vmem:[#allocation77_spill] sm:$0xff]  ;;  %v1700_v28 = vmul.f32 %v9071_v16, %v14364_v52 }
 0x5c7   : > { %14354 = vst [vmem:[#allocation546_spill] sm:$0xff] %v9759_v25  ;;  %14356 = vst [vmem:[#allocation144_spill] sm:$0xff] %v9762_v14  ;;  %v1698_v44 = vmul.f32 %v9071_v16, %v14357_v37  ;;  %v1699_v11 = vmul.f32 %v9071_v16, %v14358_v24  ;;  %v14359_v38 = vld [vmem:[#allocation75_spill] sm:$0xff]  ;;  %v9775_v43 = vadd.f32 %v1693_v21, %v14362_v0  ;;  %v14367_v37 = vld [vmem:[#allocation82_spill] sm:$0xff] }
 0x5c8   : > { %14348 = vst [vmem:[#allocation49_spill] sm:$0xff] %v9749_v31  ;;  %v9769_v51 = vadd.f32 %v1691_v23, %v14359_v38  ;;  %v14361_v31 = vld [vmem:[#allocation78_spill] sm:$0xff]  ;;  %14365 = vst [vmem:[#allocation146_spill] sm:$0xff] %v9779_v47  ;;  %v9784_v25 = vadd.f32 %v1694_v35, %v14367_v37  ;;  %v14369_v24 = vld [vmem:[#allocation81_spill] sm:$0xff] }
 0x5c9   : > { %v9772_v9 = vadd.f32 %v1692_v49, %v14361_v31  ;;  %14363 = vst [vmem:[#allocation145_spill] sm:$0xff] %v9775_v43  ;;  %14366 = vst [vmem:[#allocation147_spill] sm:$0xff] %v9781_v15  ;;  %v9787_v14 = vadd.f32 %v1695_v41, %v14369_v24  ;;  %v14371_v23 = vld [vmem:[#allocation8_spill] sm:$0xff]  ;;  %v14372_v31 = vld [vmem:[#allocation534_spill] sm:$0xff] }
 0x5ca   : > { %14360 = vst [vmem:[#allocation57_spill] sm:$0xff] %v9769_v51  ;;  %14368 = vst [vmem:[#allocation148_spill] sm:$0xff] %v9784_v25  ;;  %v1701_v49 = vmul.f32 %v9071_v16, %v14371_v23  ;;  %4715 = vperm.xlu1 %5786, %v14372_v31   ;;  %v14373_v21 = vld [vmem:[#allocation570_spill] sm:$0xff]  ;;  %v14374_v0 = vld [vmem:[#allocation84_spill] sm:$0xff] }
 0x5cb   : > { %14370 = vst [vmem:[#allocation149_spill] sm:$0xff] %v9787_v14  ;;  %4767 = vperm.xlu0 %5785, %v14373_v21   ;;  %v9794_v38 = vadd.f32 %v1696_v45, %v14374_v0  ;;  %v14376_v52 = vld [vmem:[#allocation83_spill] sm:$0xff]  ;;  %v14378_v15 = vld [vmem:[#allocation5_spill] sm:$0xff]  ;;  %v14379_v37 = vld [vmem:[#allocation10_spill] sm:$0xff] }
 0x5cc   : > { %v9797_v47 = vadd.f32 %v1697_v30, %v14376_v52  ;;  %v1702_v35 = vmul.f32 %v9071_v16, %v14378_v15  ;;  %v1703_v41 = vmul.f32 %v9071_v16, %v14379_v37  ;;  %v14380_v24 = vld [vmem:[#allocation86_spill] sm:$0xff]  ;;  %v14382_v23 = vld [vmem:[#allocation85_spill] sm:$0xff]  ;;  %v14384_v31 = vld [vmem:[#allocation7_spill] sm:$0xff] }
 0x5cd   : > { %14375 = vst [vmem:[#allocation150_spill] sm:$0xff] %v9794_v38  ;;  %v9804_v14 = vadd.f32 %v1698_v44, %v14380_v24  ;;  %v9807_v43 = vadd.f32 %v1699_v11, %v14382_v23  ;;  %v1704_v21 = vmul.f32 %v9071_v16, %v14384_v31  ;;  %v14385_v45 = vld [vmem:[#allocation12_spill] sm:$0xff]  ;;  %v14389_v38 = vld [vmem:[#allocation14_spill] sm:$0xff]  ;;  %v14390_v44 = vld [vmem:[#allocation11_spill] sm:$0xff]  ;;  %v9822_v11 = vpop.permute.xlu1 %4467  ;;  %v9824_v23 = vpop.permute.xlu0 %4519 }
 0x5ce   : > { %14377 = vst [vmem:[#allocation513_spill] sm:$0xff] %v9797_v47  ;;  %v1705_v0 = vmul.f32 %v9071_v16, %v14385_v45  ;;  %v14386_v30 = vld [vmem:[#allocation88_spill] sm:$0xff]  ;;  %v14388_v47 = vld [vmem:[#allocation9_spill] sm:$0xff]  ;;  %v1707_v37 = vmul.f32 %v9071_v16, %v14389_v38  ;;  %v1708_v24 = vmul.f32 %v9071_v16, %v14390_v44  ;;  %14391 = vst [vmem:[#allocation153_spill] sm:$0xff] %v9822_v11 }
 0x5cf   : > { %14381 = vst [vmem:[#allocation549_spill] sm:$0xff] %v9804_v14  ;;  %14383 = vst [vmem:[#allocation151_spill] sm:$0xff] %v9807_v43  ;;  %v9814_v52 = vadd.f32 %v1700_v28, %v14386_v30  ;;  %v1706_v15 = vmul.f32 %v9071_v16, %v14388_v47  ;;  %v14393_v31 = vld [vmem:[#allocation87_spill] sm:$0xff]  ;;  %v14395_v45 = vld [vmem:[#allocation16_spill] sm:$0xff] }
 0x5d0   : > { %14392 = vst [vmem:[#allocation154_spill] sm:$0xff] %v9824_v23  ;;  %v9827_v43 = vadd.f32 %v1701_v49, %v14393_v31  ;;  %v1709_v28 = vmul.f32 %v9071_v16, %v14395_v45  ;;  %v14396_v30 = vld [vmem:[#allocation13_spill] sm:$0xff]  ;;  %v14399_v38 = vld [vmem:[#allocation90_spill] sm:$0xff]  ;;  %v14402_v31 = vld [vmem:[#allocation15_spill] sm:$0xff] }
 0x5d1   : > { %14387 = vst [vmem:[#allocation152_spill] sm:$0xff] %v9814_v52  ;;  %v2154_v52 = vmul.f32 %v9505_v53, %v14396_v30  ;;  %v14397_v47 = vld [vmem:[#allocation537_spill] sm:$0xff]  ;;  %v9836_v25 = vadd.f32 %v1702_v35, %v14399_v38  ;;  %v14401_v23 = vld [vmem:[#allocation18_spill] sm:$0xff]  ;;  %v14404_v30 = vld [vmem:[#allocation91_spill] sm:$0xff] }
 0x5d2   : > { %14394 = vst [vmem:[#allocation155_spill] sm:$0xff] %v9827_v43  ;;  %4723 = vperm.xlu1 %5786, %v14397_v47   ;;  %v14398_v14 = vld [vmem:[#allocation573_spill] sm:$0xff]  ;;  %v2155_v49 = vmul.f32 %v9505_v53, %v14401_v23  ;;  %v2156_v43 = vmul.f32 %v9505_v53, %v14402_v31  ;;  %v14403_v16 = vld [vmem:[#allocation94_spill] sm:$0xff]  ;;  %v9849_v51 = vadd.f32 %v1705_v0, %v14404_v30  ;;  %v9866_v0 = vpop.permute.xlu1 %4475  ;;  %v14410_v30 = vld [vmem:[#allocation95_spill] sm:$0xff] }
 0x5d3   : > { %4775 = vperm.xlu0 %5785, %v14398_v14   ;;  %v14400_v44 = vld [vmem:[#allocation89_spill] sm:$0xff]  ;;  %v9846_v45 = vadd.f32 %v1704_v21, %v14403_v16  ;;  %v14405_v47 = vld [vmem:[#allocation22_spill] sm:$0xff]  ;;  %v9859_v23 = vadd.f32 %v1707_v37, %v9339_v58  ;;  %14408 = vst [vmem:[#allocation156_spill] sm:$0xff] %v9866_v0  ;;  %v9868_v16 = vpop.permute.xlu0 %4527 }
 0x5d4   : > { %v9839_v11 = vadd.f32 %v1703_v41, %v14400_v44  ;;  %v2158_v14 = vmul.f32 %v9505_v53, %v14405_v47  ;;  %v14406_v35 = vld [vmem:[#allocation17_spill] sm:$0xff]  ;;  %v9856_v41 = vadd.f32 %v1706_v15, %v9343_v20  ;;  %v9862_v44 = vadd.f32 %v1708_v24, %v9353_v22  ;;  %v14407_v21 = vld [vmem:[#allocation26_spill] sm:$0xff]  ;;  %14409 = vst [vmem:[#allocation516_spill] sm:$0xff] %v9868_v16  ;;  %v14412_v15 = vld [vmem:[#allocation540_spill] sm:$0xff] }
 0x5d5   : > { %v2157_v38 = vmul.f32 %v9505_v53, %v14406_v35  ;;  %v2160_v31 = vmul.f32 %v9505_v53, %v14407_v21  ;;  %v9871_v47 = vadd.f32 %v1709_v28, %v14410_v30  ;;  %v9874_v35 = vadd.f32 %v2154_v52, %v9363_v60  ;;  %v14411_v20 = vld [vmem:[#allocation21_spill] sm:$0xff]  ;;  %v14413_v22 = vld [vmem:[#allocation576_spill] sm:$0xff]  ;;  %v14416_v16 = vld [vmem:[#allocation30_spill] sm:$0xff] }
 0x5d6   : > { %v2159_v58 = vmul.f32 %v9505_v53, %v14411_v20  ;;  %4731 = vperm.xlu1 %5786, %v14412_v15   ;;  %v9881_v37 = vadd.f32 %v2155_v49, %v9360_v56  ;;  %v14414_v24 = vld [vmem:[#allocation96_spill] sm:$0xff]  ;;  %v2162_v28 = vmul.f32 %v9505_v53, %v14416_v16  ;;  %v14417_v30 = vld [vmem:[#allocation25_spill] sm:$0xff]  ;;  %v9891_v52 = vadd.f32 %v2158_v14, %v9384_v17  ;;  %v14420_v15 = vld [vmem:[#allocation34_spill] sm:$0xff] }
 0x5d7   : > { %4783 = vperm.xlu0 %5785, %v14413_v22   ;;  %v9884_v21 = vadd.f32 %v2156_v43, %v14414_v24  ;;  %v2161_v60 = vmul.f32 %v9505_v53, %v14417_v30  ;;  %v14419_v20 = vld [vmem:[#allocation97_spill] sm:$0xff]  ;;  %v2164_v22 = vmul.f32 %v9505_v53, %v14420_v15  ;;  %v9901_v43 = vadd.f32 %v2160_v31, %v9402_v1  ;;  %v14423_v24 = vld [vmem:[#allocation38_spill] sm:$0xff] }
 0x5d8   : > { %14418 = vst [vmem:[#allocation157_spill] sm:$0xff] %v9891_v52  ;;  %v9894_v0 = vadd.f32 %v2157_v38, %v14419_v20  ;;  %v14421_v56 = vld [vmem:[#allocation29_spill] sm:$0xff]  ;;  %v2166_v16 = vmul.f32 %v9505_v53, %v14423_v24  ;;  %v14425_v17 = vld [vmem:[#allocation42_spill] sm:$0xff]  ;;  %v9909_v38 = vpop.permute.xlu1 %4483  ;;  %v9911_v20 = vpop.permute.xlu0 %4535  ;;  %v9914_v15 = vadd.f32 %v2159_v58, %v9393_v62  ;;  %v14430_v24 = vld [vmem:[#allocation543_spill] sm:$0xff] }
 0x5d9   : > { %14415 = vst [vmem:[#allocation552_spill] sm:$0xff] %v9884_v21  ;;  %v2163_v49 = vmul.f32 %v9505_v53, %v14421_v56  ;;  %14422 = vst [vmem:[#allocation158_spill] sm:$0xff] %v9901_v43  ;;  %v14424_v21 = vld [vmem:[#allocation33_spill] sm:$0xff]  ;;  %v2168_v14 = vmul.f32 %v9505_v53, %v14425_v17  ;;  %v14429_v31 = vld [vmem:[#allocation46_spill] sm:$0xff]  ;;  %v9926_v17 = vadd.f32 %v2161_v60, %v9405_v19 }
 0x5da   : > { %v2165_v30 = vmul.f32 %v9505_v53, %v14424_v21  ;;  %14426 = vst [vmem:[#allocation159_spill] sm:$0xff] %v9909_v38  ;;  %14427 = vst [vmem:[#allocation160_spill] sm:$0xff] %v9911_v20  ;;  %v14428_v56 = vld [vmem:[#allocation37_spill] sm:$0xff]  ;;  %v2170_v43 = vmul.f32 %v9505_v53, %v14429_v31  ;;  %4739 = vperm.xlu1 %5786, %v14430_v24   ;;  %v14431_v52 = vld [vmem:[#allocation579_spill] sm:$0xff]  ;;  %v9923_v21 = vadd.f32 %v2162_v28, %v9412_v32 }
 0x5db   : > { %v2167_v1 = vmul.f32 %v9505_v53, %v14428_v56  ;;  %4791 = vperm.xlu0 %5785, %v14431_v52   ;;  %v14432_v20 = vld [vmem:[#allocation41_spill] sm:$0xff]  ;;  %v14433_v58 = vld [vmem:[#allocation198_spill] sm:$0xff]  ;;  %v9933_v38 = vadd.f32 %v2164_v22, %v9426_v48  ;;  %v9936_v31 = vadd.f32 %v2163_v49, %v9415_v7  ;;  %v14435_v28 = vld [vmem:[#allocation199_spill] sm:$0xff]  ;;  %v9943_v60 = vadd.f32 %v2166_v16, %v9432_v40 }
 0x5dc   : > { %v2169_v62 = vmul.f32 %v9505_v53, %v14432_v20  ;;  %v2172_v56 = vmul.f32 %v9505_v53, %v14433_v58  ;;  %v14434_v52 = vld [vmem:[#allocation45_spill] sm:$0xff]  ;;  %v2174_v19 = vmul.f32 %v9505_v53, %v14435_v28  ;;  %v9946_v20 = vadd.f32 %v2165_v30, %v9429_v18  ;;  %v14436_v48 = vld [vmem:[#allocation200_spill] sm:$0xff]  ;;  %v9953_v7 = vpop.permute.xlu1 %4491  ;;  %v9955_v49 = vpop.permute.xlu0 %4543  ;;  %v14440_v30 = vld [vmem:[#allocation582_spill] sm:$0xff] }
 0x5dd   : > { %v2171_v32 = vmul.f32 %v9505_v53, %v14434_v52  ;;  %v9949_v24 = vadd.f32 %v2168_v14, %v9440_v54  ;;  %v2173_v22 = vmul.f32 %v9505_v53, %v14436_v48  ;;  %14437 = vst [vmem:[#allocation161_spill] sm:$0xff] %v9953_v7  ;;  %14438 = vst [vmem:[#allocation162_spill] sm:$0xff] %v9955_v49  ;;  %v14439_v40 = vld [vmem:[#allocation201_spill] sm:$0xff]  ;;  %v2684_v16 = vsub.s32 3, %v8924_v55  ;;  %v5965_v54 = vld [vmem:[%s6334_s29 + $0x240] sm:$0xff] }
 0x5de   : > { %v9958_v58 = vadd.f32 %v2167_v1, %v9437_v12  ;;  %v9961_v52 = vadd.f32 %v2170_v43, %v9450_v27  ;;  %v2176_v18 = vmul.f32 %v9505_v53, %v14439_v40  ;;  %4747 = vperm.xlu1 %5786, %v5965_v54   ;;  %v9969_v14 = vadd.f32 %v2169_v62, %v9447_v50  ;;  %v14441_v12 = vld [vmem:[#allocation53_spill] sm:$0xff]  ;;  %v14442_v43 = vld [vmem:[#allocation202_spill] sm:$0xff]  ;;  %v14443_v54 = vld [vmem:[#allocation203_spill] sm:$0xff] }
 0x5df   : > { %4799 = vperm.xlu0 %5785, %v14440_v30   ;;  %v9972_v28 = vadd.f32 %v2172_v56, %v9460_v46  ;;  %v2175_v27 = vmul.f32 %v9505_v53, %v14441_v12  ;;  %v2178_v1 = vmul.f32 %v9505_v53, %v14442_v43  ;;  %v9979_v48 = vadd.f32 %v2171_v32, %v9457_v8  ;;  %v14444_v62 = vld [vmem:[#allocation204_spill] sm:$0xff]  ;;  %v14445_v30 = vld [vmem:[#allocation205_spill] sm:$0xff]  ;;  %v14446_v49 = vld [vmem:[#allocation206_spill] sm:$0xff] }
 0x5e0   : > { %v9982_v40 = vadd.f32 %v2174_v19, %v9479_v6  ;;  %v2177_v50 = vmul.f32 %v9505_v53, %v14443_v54  ;;  %v2180_v46 = vmul.f32 %v9505_v53, %v14444_v62  ;;  %v9989_v56 = vadd.f32 %v2173_v22, %v9470_v5  ;;  %v14447_v8 = vld [vmem:[#allocation208_spill] sm:$0xff]  ;;  %v9997_v6 = vpop.permute.xlu1 %4499  ;;  %v9999_v19 = vpop.permute.xlu0 %4551  ;;  %v14450_v62 = vld [vmem:[#allocation209_spill] sm:$0xff] }
 0x5e1   : > { %v2179_v12 = vmul.f32 %v9505_v53, %v14445_v30  ;;  %v2182_v43 = vmul.f32 %v9505_v53, %v14446_v49  ;;  %v2181_v32 = vmul.f32 %v9505_v53, %v14447_v8  ;;  %14448 = vst [vmem:[#allocation163_spill] sm:$0xff] %v9997_v6  ;;  %14449 = vst [vmem:[#allocation164_spill] sm:$0xff] %v9999_v19  ;;  %v5966_v30 = vld [vmem:[%s6334_s29 + $0x250] sm:$0xff]  ;;  %v14452_v19 = vld [vmem:[#allocation210_spill] sm:$0xff] }
 0x5e2   : > { %v10002_v54 = vadd.f32 %v2176_v18, %v9491_v29  ;;  %v2184_v5 = vmul.f32 %v9505_v53, %v14450_v62  ;;  %v10007_v22 = vrot.slane %v8936_v3, %v2684_v16  ;;  %4755 = vperm.xlu1 %5786, %v5966_v30   ;;  %v14451_v7 = vld [vmem:[#allocation585_spill] sm:$0xff]  ;;  %v10012_v49 = vadd.f32 %v2175_v27, %v9488_v13  ;;  %v14453_v16 = vld [vmem:[#allocation211_spill] sm:$0xff] }
 0x5e3   : > { %4807 = vperm.xlu0 %5785, %v14451_v7   ;;  %v10015_v8 = vadd.f32 %v2178_v1, %v9510_v2  ;;  %v2183_v29 = vmul.f32 %v9505_v53, %v14452_v19  ;;  %v10020_v18 = vadd.f32 %v2177_v50, %v9498_v36  ;;  %v10023_v3 = vadd.f32 %v2180_v46, %v9516_v42  ;;  %v14454_v7 = vld [vmem:[#allocation213_spill] sm:$0xff]  ;;  %v14455_v36 = vld [vmem:[#allocation214_spill] sm:$0xff]  ;;  %v14459_v30 = vld [vmem:[#allocation215_spill] sm:$0xff] }
 0x5e4   : > { %v2186_v62 = vmul.f32 %v9505_v53, %v14453_v16  ;;  %v2185_v13 = vmul.f32 %v9505_v53, %v14454_v7  ;;  %v10030_v27 = vadd.f32 %v2179_v12, %v9513_v34  ;;  %v10033_v2 = vadd.f32 %v2182_v43, %v9526_v26  ;;  %v10040_v50 = vpop.permute.xlu1 %4507  ;;  %v10042_v46 = vpop.permute.xlu0 %4559  ;;  %v14460_v12 = vld [vmem:[#allocation216_spill] sm:$0xff]  ;;  %v5967_v43 = vld [vmem:[%s6334_s29 + $0x260] sm:$0xff]  ;;  %v14461_v16 = vld [vmem:[#allocation217_spill] sm:$0xff] }
 0x5e5   : > { %v10036_v1 = vadd.f32 %v2181_v32, %v9523_v10  ;;  %v2188_v42 = vmul.f32 %v9505_v53, %v14455_v36  ;;  %14456 = vst [vmem:[#allocation165_spill] sm:$0xff] %v10040_v50  ;;  %14457 = vst [vmem:[#allocation519_spill] sm:$0xff] %v10042_v46  ;;  %v10045_v19 = vadd.f32 %v2184_v5, %v9536_v4  ;;  %v13187_v10 = vmov 8   ;;  %v14462_v36 = vld [vmem:[#allocation218_spill] sm:$0xff]  ;;  %v14463_v5 = vld [vmem:[#allocation219_spill] sm:$0xff] }
 0x5e6   : > { %v2187_v34 = vmul.f32 %v9505_v53, %v14459_v30  ;;  %v2190_v26 = vmul.f32 %v9505_v53, %v14460_v12  ;;  %4763 = vperm.xlu1 %5786, %v5967_v43   ;;  %v10054_v32 = vadd.f32 %v2183_v29, %v9533_v39  ;;  %v2189_v7 = vmul.f32 %v9505_v53, %v14461_v16  ;;  %v5968_v46 = vld [vmem:[%s6334_s29 + $0x8] sm:$0xff]  ;;  %v14468_v50 = vld [vmem:[#allocation222_spill] sm:$0xff] }
 0x5e7   : > { %14458 = vst [vmem:[#allocation555_spill] sm:$0xff] %v10045_v19  ;;  %5788 = vset.pattern.permute.xlu0 %v13187_v10  ;;  %v2192_v4 = vmul.f32 %v9505_v53, %v14462_v36  ;;  %v2191_v30 = vmul.f32 %v9505_v53, %v14463_v5  ;;  %v10064_v12 = vadd.f32 %v2186_v62, %v9546_v33  ;;  %v14465_v39 = vld [vmem:[#allocation220_spill] sm:$0xff]  ;;  %v14466_v10 = vld [vmem:[#allocation221_spill] sm:$0xff] }
 0x5e8   : > { %4995 = vperm.xlu0 %5788, %v5968_v46   ;;  %v10067_v43 = vadd.f32 %v2185_v13, %v9543_v57  ;;  %v2194_v29 = vmul.f32 %v9505_v53, %v14465_v39  ;;  %v2193_v16 = vmul.f32 %v9505_v53, %v14466_v10  ;;  %v10074_v36 = vadd.f32 %v2188_v42, %v9566_v63  ;;  %v14469_v46 = vld [vmem:[#allocation223_spill] sm:$0xff]  ;;  %v14470_v62 = vld [vmem:[#allocation224_spill] sm:$0xff]  ;;  %v10082_v13 = vpop.permute.xlu1 %4515  ;;  %v10084_v6 = vpop.permute.xlu0 %4567  ;;  %v14474_v10 = vld [vmem:[#allocation109_spill] sm:$0xff] }
 0x5e9   : > { %14464 = vst [vmem:[#allocation166_spill] sm:$0xff] %v10064_v12  ;;  %v2196_v5 = vmul.f32 %v9505_v53, %v14468_v50  ;;  %v2195_v33 = vmul.f32 %v9505_v53, %v14469_v46  ;;  %v2198_v57 = vmul.f32 %v9505_v53, %v14470_v62  ;;  %14471 = vst [vmem:[#allocation28_spill] sm:$0xff] %v10082_v13  ;;  %v14476_v42 = vld [vmem:[#allocation225_spill] sm:$0xff]  ;;  %v14477_v50 = vld [vmem:[#allocation226_spill] sm:$0xff] }
 0x5ea   : > { %14467 = vst [vmem:[#allocation167_spill] sm:$0xff] %v10074_v36  ;;  %14472 = vst [vmem:[#allocation168_spill] sm:$0xff] %v10084_v6  ;;  %v10087_v39 = vadd.f32 %v2187_v34, %v9555_v59  ;;  %v10090_v63 = vadd.f32 %v2190_v26, %v14474_v10  ;;  %v2197_v36 = vmul.f32 %v9505_v53, %v14476_v42  ;;  %v5969_v46 = vld [vmem:[%s6334_s29 + $0x270] sm:$0xff]  ;;  %v14478_v19 = vld [vmem:[#allocation108_spill] sm:$0xff] }
 0x5eb   : > { %v2200_v12 = vmul.f32 %v9505_v53, %v14477_v50  ;;  %4771 = vperm.xlu1 %5786, %v5969_v46   ;;  %v10098_v62 = vadd.f32 %v2189_v7, %v14478_v19  ;;  %v10101_v13 = vadd.f32 %v2192_v4, %v9588_v61  ;;  %v14481_v6 = vld [vmem:[#allocation110_spill] sm:$0xff]  ;;  %v14483_v34 = vld [vmem:[#allocation227_spill] sm:$0xff]  ;;  %v14484_v42 = vld [vmem:[#allocation113_spill] sm:$0xff] }
 0x5ec   : > { %14473 = vst [vmem:[#allocation169_spill] sm:$0xff] %v10087_v39  ;;  %14475 = vst [vmem:[#allocation27_spill] sm:$0xff] %v10090_v63  ;;  %v10104_v59 = vadd.f32 %v2191_v30, %v14481_v6  ;;  %v2199_v26 = vmul.f32 %v9505_v53, %v14483_v34  ;;  %v5970_v10 = vld [vmem:[%s6334_s29 + $0x20] sm:$0xff]  ;;  %v10110_v63 = vadd.f32 %v2194_v29, %v14484_v42  ;;  %v14486_v50 = vld [vmem:[#allocation112_spill] sm:$0xff]  ;;  %v10130_v42 = vpop.permute.xlu1 %4523 }
 0x5ed   : > { %14479 = vst [vmem:[#allocation32_spill] sm:$0xff] %v10098_v62  ;;  %14480 = vst [vmem:[#allocation31_spill] sm:$0xff] %v10101_v13  ;;  %5007 = vperm.xlu0 %5788, %v5970_v10   ;;  %v10113_v46 = vadd.f32 %v2193_v16, %v14486_v50  ;;  %v14488_v19 = vld [vmem:[#allocation228_spill] sm:$0xff]  ;;  %v14489_v61 = vld [vmem:[#allocation229_spill] sm:$0xff]  ;;  %v10132_v50 = vpop.permute.xlu0 %4575 }
 0x5ee   : > { %14482 = vst [vmem:[#allocation170_spill] sm:$0xff] %v10104_v59  ;;  %14485 = vst [vmem:[#allocation39_spill] sm:$0xff] %v10110_v63  ;;  %v2202_v7 = vmul.f32 %v9505_v53, %v14488_v19  ;;  %v2201_v4 = vmul.f32 %v9505_v53, %v14489_v61  ;;  %v14490_v6 = vld [vmem:[#allocation116_spill] sm:$0xff]  ;;  %v14492_v13 = vld [vmem:[#allocation114_spill] sm:$0xff] }
 0x5ef   : > { %14487 = vst [vmem:[#allocation171_spill] sm:$0xff] %v10113_v46  ;;  %v10120_v30 = vadd.f32 %v2196_v5, %v14490_v6  ;;  %v10123_v34 = vadd.f32 %v2195_v33, %v14492_v13  ;;  %v14494_v10 = vld [vmem:[#allocation118_spill] sm:$0xff]  ;;  %14497 = vst [vmem:[#allocation40_spill] sm:$0xff] %v10130_v42  ;;  %v14499_v19 = vld [vmem:[#allocation117_spill] sm:$0xff] }
 0x5f0   : > { %v10126_v59 = vadd.f32 %v2198_v57, %v14494_v10  ;;  %v14496_v29 = vld [vmem:[#allocation230_spill] sm:$0xff]  ;;  %14498 = vst [vmem:[#allocation172_spill] sm:$0xff] %v10132_v50  ;;  %v10135_v63 = vadd.f32 %v2197_v36, %v14499_v19  ;;  %v14501_v61 = vld [vmem:[#allocation127_spill] sm:$0xff]  ;;  %v14504_v13 = vld [vmem:[#allocation232_spill] sm:$0xff] }
 0x5f1   : > { %14491 = vst [vmem:[#allocation522_spill] sm:$0xff] %v10120_v30  ;;  %14493 = vst [vmem:[#allocation558_spill] sm:$0xff] %v10123_v34  ;;  %v2204_v16 = vmul.f32 %v9505_v53, %v14496_v29  ;;  %v10138_v5 = vadd.f32 %v2200_v12, %v14501_v61  ;;  %v14503_v6 = vld [vmem:[#allocation231_spill] sm:$0xff]  ;;  %v2206_v57 = vmul.f32 %v9505_v53, %v14504_v13  ;;  %v14507_v42 = vld [vmem:[#allocation233_spill] sm:$0xff] }
 0x5f2   : > { %14495 = vst [vmem:[#allocation43_spill] sm:$0xff] %v10126_v59  ;;  %14500 = vst [vmem:[#allocation173_spill] sm:$0xff] %v10135_v63  ;;  %v2203_v33 = vmul.f32 %v9505_v53, %v14503_v6  ;;  %v5971_v10 = vld [vmem:[%s6334_s29 + $0x280] sm:$0xff]  ;;  %v14505_v59 = vld [vmem:[#allocation126_spill] sm:$0xff]  ;;  %v2205_v50 = vmul.f32 %v9505_v53, %v14507_v42 }
 0x5f3   : > { %14502 = vst [vmem:[#allocation47_spill] sm:$0xff] %v10138_v5  ;;  %4779 = vperm.xlu1 %5786, %v5971_v10   ;;  %v10146_v29 = vadd.f32 %v2199_v26, %v14505_v59  ;;  %v14508_v30 = vld [vmem:[#allocation234_spill] sm:$0xff]  ;;  %v14509_v19 = vld [vmem:[#allocation235_spill] sm:$0xff]  ;;  %v5972_v61 = vld [vmem:[%s6334_s29 + $0x30] sm:$0xff] }
 0x5f4   : > { %v2208_v36 = vmul.f32 %v9505_v53, %v14508_v30  ;;  %v2207_v12 = vmul.f32 %v9505_v53, %v14509_v19  ;;  %5015 = vperm.xlu0 %5788, %v5972_v61   ;;  %v14510_v6 = vld [vmem:[#allocation128_spill] sm:$0xff]  ;;  %v14512_v13 = vld [vmem:[#allocation119_spill] sm:$0xff]  ;;  %v14516_v63 = vld [vmem:[#allocation122_spill] sm:$0xff] }
 0x5f5   : > { %14506 = vst [vmem:[#allocation44_spill] sm:$0xff] %v10146_v29  ;;  %v10156_v5 = vadd.f32 %v2202_v7, %v14510_v6  ;;  %v10159_v10 = vadd.f32 %v2201_v4, %v14512_v13  ;;  %v14514_v59 = vld [vmem:[#allocation236_spill] sm:$0xff]  ;;  %v14515_v29 = vld [vmem:[#allocation237_spill] sm:$0xff]  ;;  %v10166_v30 = vadd.f32 %v2204_v16, %v14516_v63  ;;  %v14518_v34 = vld [vmem:[#allocation238_spill] sm:$0xff]  ;;  %v10174_v13 = vpop.permute.xlu1 %4531 }
 0x5f6   : > { %v2210_v26 = vmul.f32 %v9505_v53, %v14514_v59  ;;  %v2209_v42 = vmul.f32 %v9505_v53, %v14515_v29  ;;  %v2212_v19 = vmul.f32 %v9505_v53, %v14518_v34  ;;  %v14519_v61 = vld [vmem:[#allocation239_spill] sm:$0xff]  ;;  %v14520_v6 = vld [vmem:[#allocation240_spill] sm:$0xff]  ;;  %14521 = vst [vmem:[#allocation176_spill] sm:$0xff] %v10174_v13  ;;  %v14523_v59 = vld [vmem:[#allocation121_spill] sm:$0xff] }
 0x5f7   : > { %14511 = vst [vmem:[#allocation174_spill] sm:$0xff] %v10156_v5  ;;  %14513 = vst [vmem:[#allocation175_spill] sm:$0xff] %v10159_v10  ;;  %v2211_v7 = vmul.f32 %v9505_v53, %v14519_v61  ;;  %v2214_v4 = vmul.f32 %v9505_v53, %v14520_v6  ;;  %v10176_v5 = vpop.permute.xlu0 %4583  ;;  %v10179_v10 = vadd.f32 %v2203_v33, %v14523_v59  ;;  %v14524_v29 = vld [vmem:[#allocation130_spill] sm:$0xff]  ;;  %v14526_v16 = vld [vmem:[#allocation241_spill] sm:$0xff] }
 0x5f8   : > { %14517 = vst [vmem:[#allocation51_spill] sm:$0xff] %v10166_v30  ;;  %14522 = vst [vmem:[#allocation177_spill] sm:$0xff] %v10176_v5  ;;  %v10182_v63 = vadd.f32 %v2206_v57, %v14524_v29  ;;  %v2213_v30 = vmul.f32 %v9505_v53, %v14526_v16  ;;  %v14527_v34 = vld [vmem:[#allocation242_spill] sm:$0xff]  ;;  %v5973_v61 = vld [vmem:[%s6334_s29 + $0x290] sm:$0xff] }
 0x5f9   : > { %v2216_v46 = vmul.f32 %v9505_v53, %v14527_v34  ;;  %4787 = vperm.xlu1 %5786, %v5973_v61   ;;  %v14528_v62 = vld [vmem:[#allocation123_spill] sm:$0xff]  ;;  %v14532_v5 = vld [vmem:[#allocation124_spill] sm:$0xff]  ;;  %v14535_v16 = vld [vmem:[#allocation133_spill] sm:$0xff] }
 0x5fa   : > { %14525 = vst [vmem:[#allocation178_spill] sm:$0xff] %v10182_v63  ;;  %v10190_v6 = vadd.f32 %v2205_v50, %v14528_v62  ;;  %v14530_v13 = vld [vmem:[#allocation131_spill] sm:$0xff]  ;;  %v10196_v33 = vadd.f32 %v2207_v12, %v14532_v5  ;;  %v10202_v63 = vadd.f32 %v2210_v26, %v14535_v16  ;;  %v14537_v34 = vld [vmem:[#allocation132_spill] sm:$0xff]  ;;  %v14547_v26 = vld [vmem:[#allocation246_spill] sm:$0xff]  ;;  %v10222_v16 = vpop.permute.xlu1 %4539 }
 0x5fb   : > { %v10193_v39 = vadd.f32 %v2208_v36, %v14530_v13  ;;  %v14534_v59 = vld [vmem:[#allocation243_spill] sm:$0xff]  ;;  %v10205_v61 = vadd.f32 %v2209_v42, %v14537_v34  ;;  %v14539_v62 = vld [vmem:[#allocation244_spill] sm:$0xff]  ;;  %v14540_v36 = vld [vmem:[#allocation245_spill] sm:$0xff]  ;;  %v2220_v42 = vmul.f32 %v9505_v53, %v14547_v26  ;;  %14548 = vst [vmem:[#allocation182_spill] sm:$0xff] %v10222_v16  ;;  %v10224_v34 = vpop.permute.xlu0 %4591 }
 0x5fc   : > { %14529 = vst [vmem:[#allocation48_spill] sm:$0xff] %v10190_v6  ;;  %14533 = vst [vmem:[#allocation180_spill] sm:$0xff] %v10196_v33  ;;  %v2215_v57 = vmul.f32 %v9505_v53, %v14534_v59  ;;  %v5974_v29 = vld [vmem:[%s6334_s29 + $0x40] sm:$0xff]  ;;  %v2218_v50 = vmul.f32 %v9505_v53, %v14539_v62  ;;  %v2217_v13 = vmul.f32 %v9505_v53, %v14540_v36  ;;  %v14541_v5 = vld [vmem:[#allocation136_spill] sm:$0xff] }
 0x5fd   : > { %14531 = vst [vmem:[#allocation179_spill] sm:$0xff] %v10193_v39  ;;  %5023 = vperm.xlu0 %5788, %v5974_v29   ;;  %14536 = vst [vmem:[#allocation525_spill] sm:$0xff] %v10202_v63  ;;  %v10212_v12 = vadd.f32 %v2212_v19, %v14541_v5  ;;  %v14543_v39 = vld [vmem:[#allocation135_spill] sm:$0xff]  ;;  %v14545_v29 = vld [vmem:[#allocation138_spill] sm:$0xff] }
 0x5fe   : > { %14538 = vst [vmem:[#allocation561_spill] sm:$0xff] %v10205_v61  ;;  %v10215_v59 = vadd.f32 %v2211_v7, %v14543_v39  ;;  %v10218_v33 = vadd.f32 %v2214_v4, %v14545_v29  ;;  %14549 = vst [vmem:[#allocation58_spill] sm:$0xff] %v10224_v34  ;;  %v14550_v62 = vld [vmem:[#allocation137_spill] sm:$0xff]  ;;  %v14552_v36 = vld [vmem:[#allocation140_spill] sm:$0xff] }
 0x5ff   : > { %14542 = vst [vmem:[#allocation55_spill] sm:$0xff] %v10212_v12  ;;  %v10227_v63 = vadd.f32 %v2213_v30, %v14550_v62  ;;  %v10230_v19 = vadd.f32 %v2216_v46, %v14552_v36  ;;  %v14554_v5 = vld [vmem:[#allocation247_spill] sm:$0xff]  ;;  %v14555_v7 = vld [vmem:[#allocation248_spill] sm:$0xff]  ;;  %v14558_v16 = vld [vmem:[#allocation249_spill] sm:$0xff] }
 0x600   : > { %14544 = vst [vmem:[#allocation52_spill] sm:$0xff] %v10215_v59  ;;  %14546 = vst [vmem:[#allocation181_spill] sm:$0xff] %v10218_v33  ;;  %v2219_v39 = vmul.f32 %v9505_v53, %v14554_v5  ;;  %v2222_v4 = vmul.f32 %v9505_v53, %v14555_v7  ;;  %v5975_v29 = vld [vmem:[%s6334_s29 + $0x2a0] sm:$0xff]  ;;  %v2221_v34 = vmul.f32 %v9505_v53, %v14558_v16  ;;  %v14559_v12 = vld [vmem:[#allocation250_spill] sm:$0xff] }
 0x601   : > { %14551 = vst [vmem:[#allocation56_spill] sm:$0xff] %v10227_v63  ;;  %14553 = vst [vmem:[#allocation183_spill] sm:$0xff] %v10230_v19  ;;  %4795 = vperm.xlu1 %5786, %v5975_v29   ;;  %v14556_v33 = vld [vmem:[#allocation139_spill] sm:$0xff]  ;;  %v2224_v30 = vmul.f32 %v9505_v53, %v14559_v12  ;;  %v5976_v36 = vld [vmem:[%s6334_s29 + $0x50] sm:$0xff] }
 0x602   : > { %v10238_v26 = vadd.f32 %v2215_v57, %v14556_v33  ;;  %v14560_v62 = vld [vmem:[#allocation251_spill] sm:$0xff]  ;;  %5031 = vperm.xlu0 %5788, %v5976_v36   ;;  %v14561_v5 = vld [vmem:[#allocation50_spill] sm:$0xff]  ;;  %v14565_v33 = vld [vmem:[#allocation252_spill] sm:$0xff] }
 0x603   : > { %v2223_v46 = vmul.f32 %v9505_v53, %v14560_v62  ;;  %v10248_v19 = vadd.f32 %v2218_v50, %v14561_v5  ;;  %v14563_v7 = vld [vmem:[#allocation142_spill] sm:$0xff]  ;;  %v2226_v57 = vmul.f32 %v9505_v53, %v14565_v33  ;;  %v14570_v36 = vld [vmem:[#allocation255_spill] sm:$0xff]  ;;  %v14571_v5 = vld [vmem:[#allocation256_spill] sm:$0xff] }
 0x604   : > { %14557 = vst [vmem:[#allocation184_spill] sm:$0xff] %v10238_v26  ;;  %v10251_v29 = vadd.f32 %v2217_v13, %v14563_v7  ;;  %v14566_v26 = vld [vmem:[#allocation253_spill] sm:$0xff]  ;;  %v14567_v63 = vld [vmem:[#allocation54_spill] sm:$0xff]  ;;  %v2227_v50 = vmul.f32 %v9505_v53, %v14570_v36  ;;  %v2230_v13 = vmul.f32 %v9505_v53, %v14571_v5  ;;  %v10266_v7 = vpop.permute.xlu1 %4547 }
 0x605   : > { %14562 = vst [vmem:[#allocation60_spill] sm:$0xff] %v10248_v19  ;;  %v2225_v16 = vmul.f32 %v9505_v53, %v14566_v26  ;;  %v10258_v12 = vadd.f32 %v2220_v42, %v14567_v63  ;;  %v14569_v59 = vld [vmem:[#allocation254_spill] sm:$0xff]  ;;  %14572 = vst [vmem:[#allocation185_spill] sm:$0xff] %v10266_v7  ;;  %v10268_v19 = vpop.permute.xlu0 %4599  ;;  %v14574_v33 = vld [vmem:[#allocation49_spill] sm:$0xff]  ;;  %v10285_v7 = vadd.f32 %v2224_v30, %v9772_v9 }
 0x606   : > { %14564 = vst [vmem:[#allocation59_spill] sm:$0xff] %v10251_v29  ;;  %v2228_v62 = vmul.f32 %v9505_v53, %v14569_v59  ;;  %14573 = vst [vmem:[#allocation61_spill] sm:$0xff] %v10268_v19  ;;  %v10271_v29 = vadd.f32 %v2219_v39, %v14574_v33  ;;  %v14576_v26 = vld [vmem:[#allocation144_spill] sm:$0xff]  ;;  %v14578_v42 = vld [vmem:[#allocation259_spill] sm:$0xff] }
 0x607   : > { %14568 = vst [vmem:[#allocation64_spill] sm:$0xff] %v10258_v12  ;;  %v10274_v63 = vadd.f32 %v2222_v4, %v14576_v26  ;;  %v2229_v12 = vmul.f32 %v9505_v53, %v14578_v42  ;;  %v14579_v59 = vld [vmem:[#allocation260_spill] sm:$0xff]  ;;  %v5977_v36 = vld [vmem:[%s6334_s29 + $0x2b0] sm:$0xff]  ;;  %v14580_v6 = vld [vmem:[#allocation546_spill] sm:$0xff] }
 0x608   : > { %14575 = vst [vmem:[#allocation66_spill] sm:$0xff] %v10271_v29  ;;  %v2232_v61 = vmul.f32 %v9505_v53, %v14579_v59  ;;  %4803 = vperm.xlu1 %5786, %v5977_v36   ;;  %v10282_v5 = vadd.f32 %v2221_v34, %v14580_v6  ;;  %14581 = vst [vmem:[#allocation528_spill] sm:$0xff] %v10285_v7  ;;  %v14582_v19 = vld [vmem:[#allocation57_spill] sm:$0xff]  ;;  %v14583_v33 = vld [vmem:[#allocation263_spill] sm:$0xff] }
 0x609   : > { %14577 = vst [vmem:[#allocation186_spill] sm:$0xff] %v10274_v63  ;;  %v10288_v39 = vadd.f32 %v2223_v46, %v14582_v19  ;;  %v2231_v4 = vmul.f32 %v9505_v53, %v14583_v33  ;;  %v5978_v26 = vld [vmem:[%s6334_s29 + $0x60] sm:$0xff]  ;;  %v14584_v42 = vld [vmem:[#allocation148_spill] sm:$0xff]  ;;  %v14586_v59 = vld [vmem:[#allocation145_spill] sm:$0xff] }
 0x60a   : > { %5039 = vperm.xlu0 %5788, %v5978_v26   ;;  %v10294_v63 = vadd.f32 %v2226_v57, %v14584_v42  ;;  %v10297_v29 = vadd.f32 %v2225_v16, %v14586_v59  ;;  %v14587_v36 = vld [vmem:[#allocation264_spill] sm:$0xff]  ;;  %v14588_v34 = vld [vmem:[#allocation267_spill] sm:$0xff]  ;;  %v14589_v19 = vld [vmem:[#allocation150_spill] sm:$0xff]  ;;  %v10314_v59 = vpop.permute.xlu1 %4555 }
 0x60b   : > { %v2234_v6 = vmul.f32 %v9505_v53, %v14587_v36  ;;  %v2233_v9 = vmul.f32 %v9505_v53, %v14588_v34  ;;  %v10304_v30 = vadd.f32 %v2228_v62, %v14589_v19  ;;  %v14591_v46 = vld [vmem:[#allocation149_spill] sm:$0xff]  ;;  %v14594_v42 = vld [vmem:[#allocation268_spill] sm:$0xff]  ;;  %14595 = vst [vmem:[#allocation187_spill] sm:$0xff] %v10314_v59  ;;  %v10316_v36 = vpop.permute.xlu0 %4607  ;;  %v14600_v19 = vld [vmem:[#allocation271_spill] sm:$0xff] }
 0x60c   : > { %14585 = vst [vmem:[#allocation564_spill] sm:$0xff] %v10294_v63  ;;  %v10307_v33 = vadd.f32 %v2227_v50, %v14591_v46  ;;  %v14592_v26 = vld [vmem:[#allocation549_spill] sm:$0xff]  ;;  %v2236_v16 = vmul.f32 %v9505_v53, %v14594_v42  ;;  %14596 = vst [vmem:[#allocation188_spill] sm:$0xff] %v10316_v36  ;;  %v14598_v34 = vld [vmem:[#allocation152_spill] sm:$0xff]  ;;  %v2235_v50 = vmul.f32 %v9505_v53, %v14600_v19 }
 0x60d   : > { %14590 = vst [vmem:[#allocation65_spill] sm:$0xff] %v10304_v30  ;;  %v10310_v57 = vadd.f32 %v2230_v13, %v14592_v26  ;;  %v14597_v63 = vld [vmem:[#allocation513_spill] sm:$0xff]  ;;  %v10322_v62 = vadd.f32 %v2232_v61, %v14598_v34  ;;  %v14601_v46 = vld [vmem:[#allocation272_spill] sm:$0xff]  ;;  %v14602_v26 = vmov 8   ;;  %v14604_v59 = vld [vmem:[#allocation275_spill] sm:$0xff]  ;;  %v10339_v34 = vadd.f32 %v2234_v6, %v9836_v25 }
 0x60e   : > { %v10319_v7 = vadd.f32 %v2229_v12, %v14597_v63  ;;  %v2238_v13 = vmul.f32 %v9505_v53, %v14601_v46  ;;  %5787 = vset.pattern.permute.xlu1 %v14602_v26  ;;  %v2237_v36 = vmul.f32 %v9505_v53, %v14604_v59  ;;  %v14605_v30 = vld [vmem:[#allocation276_spill] sm:$0xff]  ;;  %v5979_v63 = vld [vmem:[%s6334_s29] sm:$0xff]  ;;  %v5980_v61 = vld [vmem:[%s6334_s29 + $0x70] sm:$0xff] }
 0x60f   : > { %14593 = vst [vmem:[#allocation68_spill] sm:$0xff] %v10310_v57  ;;  %14599 = vst [vmem:[#allocation67_spill] sm:$0xff] %v10322_v62  ;;  %v14603_v57 = vld [vmem:[#allocation151_spill] sm:$0xff]  ;;  %v2240_v12 = vmul.f32 %v9505_v53, %v14605_v30  ;;  %4991 = vperm.xlu1 %5787, %v5979_v63   ;;  %5047 = vperm.xlu0 %5788, %v5980_v61   ;;  %v10349_v30 = vadd.f32 %v2236_v16, %v9846_v45  ;;  %v14611_v62 = vld [vmem:[#allocation284_spill] sm:$0xff] }
 0x610   : > { %v10330_v42 = vadd.f32 %v2231_v4, %v14603_v57  ;;  %14606 = vst [vmem:[#allocation70_spill] sm:$0xff] %v10339_v34  ;;  %v14607_v19 = vld [vmem:[#allocation155_spill] sm:$0xff]  ;;  %v14609_v57 = vld [vmem:[#allocation280_spill] sm:$0xff]  ;;  %v2689_v25 = vmul.f32 %v10007_v22, %v14611_v62  ;;  %v10359_v34 = vpop.permute.xlu0 %4615  ;;  %v10372_v62 = vadd.f32 %v2237_v36, %v9849_v51 }
 0x611   : > { %v10342_v46 = vadd.f32 %v2233_v9, %v14607_v19  ;;  %v14608_v26 = vld [vmem:[#allocation279_spill] sm:$0xff]  ;;  %v2686_v59 = vmul.f32 %v10007_v22, %v14609_v57  ;;  %v10357_v19 = vpop.permute.xlu1 %4563  ;;  %14614 = vst [vmem:[#allocation190_spill] sm:$0xff] %v10359_v34  ;;  %v10365_v57 = vadd.f32 %v2238_v13, %v9856_v41  ;;  %v14615_v45 = vld [vmem:[#allocation288_spill] sm:$0xff] }
 0x612   : > { %v2239_v4 = vmul.f32 %v9505_v53, %v14608_v26  ;;  %v14610_v63 = vld [vmem:[#allocation283_spill] sm:$0xff]  ;;  %14613 = vst [vmem:[#allocation189_spill] sm:$0xff] %v10357_v19  ;;  %v10362_v26 = vadd.f32 %v2235_v50, %v9839_v11  ;;  %v2691_v16 = vmul.f32 %v10007_v22, %v14615_v45  ;;  %v14617_v19 = vld [vmem:[#allocation292_spill] sm:$0xff]  ;;  %v5981_v11 = vld [vmem:[%s6334_s29 + $0x10] sm:$0xff] }
 0x613   : > { %v2241_v61 = vmul.f32 %v9505_v53, %v14610_v63  ;;  %v14612_v6 = vld [vmem:[#allocation287_spill] sm:$0xff]  ;;  %v2693_v34 = vmul.f32 %v10007_v22, %v14617_v19  ;;  %4999 = vperm.xlu1 %5787, %v5981_v11   ;;  %v10385_v13 = vadd.f32 %v2686_v59, %v9874_v35  ;;  %v14619_v36 = vld [vmem:[#allocation296_spill] sm:$0xff]  ;;  %v10395_v19 = vadd.f32 %v2689_v25, %v9894_v0 }
 0x614   : > { %v2687_v9 = vmul.f32 %v10007_v22, %v14612_v6  ;;  %v14616_v53 = vld [vmem:[#allocation291_spill] sm:$0xff]  ;;  %v10375_v6 = vadd.f32 %v2240_v12, %v9862_v44  ;;  %v10382_v41 = vadd.f32 %v2239_v4, %v9859_v23  ;;  %v2695_v44 = vmul.f32 %v10007_v22, %v14619_v36 }
 0x615   : > { %v2688_v63 = vmul.f32 %v10007_v22, %v14616_v53  ;;  %v5982_v50 = vld [vmem:[%s6334_s29 + $0x80] sm:$0xff]  ;;  %v10392_v12 = vadd.f32 %v2241_v61, %v9871_v47  ;;  %v10402_v59 = vpop.permute.xlu1 %4571  ;;  %v10404_v53 = vpop.permute.xlu0 %4623  ;;  %v10407_v11 = vadd.f32 %v2691_v16, %v9914_v15  ;;  %v14625_v47 = vld [vmem:[#allocation300_spill] sm:$0xff]  ;;  %v10417_v25 = vadd.f32 %v2693_v34, %v9926_v17  ;;  %v5983_v15 = vld [vmem:[%s6334_s29 + $0x18] sm:$0xff] }
 0x616   : > { %5055 = vperm.xlu0 %5788, %v5982_v50   ;;  %v14618_v45 = vld [vmem:[#allocation295_spill] sm:$0xff]  ;;  %v10398_v23 = vadd.f32 %v2687_v9, %v9881_v37  ;;  %14621 = vst [vmem:[#allocation69_spill] sm:$0xff] %v10402_v59  ;;  %14622 = vst [vmem:[#allocation191_spill] sm:$0xff] %v10404_v53  ;;  %v14624_v50 = vld [vmem:[#allocation552_spill] sm:$0xff]  ;;  %v2697_v0 = vmul.f32 %v10007_v22, %v14625_v47  ;;  %v10429_v47 = vadd.f32 %v2695_v44, %v9936_v31 }
 0x617   : > { %v2690_v51 = vmul.f32 %v10007_v22, %v14618_v45  ;;  %v14620_v4 = vld [vmem:[#allocation299_spill] sm:$0xff]  ;;  %14623 = vst [vmem:[#allocation192_spill] sm:$0xff] %v10407_v11  ;;  %v10410_v45 = vadd.f32 %v2688_v63, %v14624_v50  ;;  %14627 = vst [vmem:[#allocation193_spill] sm:$0xff] %v10417_v25  ;;  %v14628_v9 = vld [vmem:[#allocation304_spill] sm:$0xff]  ;;  %5003 = vperm.xlu1 %5787, %v5983_v15  }
 0x618   : > { %v2692_v35 = vmul.f32 %v10007_v22, %v14620_v4  ;;  %v14626_v61 = vld [vmem:[#allocation303_spill] sm:$0xff]  ;;  %v2699_v36 = vmul.f32 %v10007_v22, %v14628_v9  ;;  %v5984_v16 = vld [vmem:[%s6334_s29 + $0x90] sm:$0xff]  ;;  %14631 = vst [vmem:[#allocation72_spill] sm:$0xff] %v10429_v47  ;;  %v14634_v59 = vld [vmem:[#allocation158_spill] sm:$0xff] }
 0x619   : > { %v2694_v37 = vmul.f32 %v10007_v22, %v14626_v61  ;;  %v14629_v4 = vld [vmem:[#allocation307_spill] sm:$0xff]  ;;  %v14630_v63 = vld [vmem:[#allocation157_spill] sm:$0xff]  ;;  %v14632_v61 = vld [vmem:[#allocation308_spill] sm:$0xff]  ;;  %v10444_v44 = vpop.permute.xlu1 %4579  ;;  %v10446_v47 = vpop.permute.xlu0 %4631 }
 0x61a   : > { %v2696_v53 = vmul.f32 %v10007_v22, %v14629_v4  ;;  %5063 = vperm.xlu0 %5788, %v5984_v16   ;;  %v10426_v50 = vadd.f32 %v2690_v51, %v14630_v63  ;;  %v2701_v17 = vmul.f32 %v10007_v22, %v14632_v61  ;;  %v14633_v34 = vld [vmem:[#allocation311_spill] sm:$0xff]  ;;  %v10436_v4 = vadd.f32 %v2692_v35, %v14634_v59  ;;  %v14635_v15 = vld [vmem:[#allocation312_spill] sm:$0xff] }
 0x61b   : > { %v2698_v9 = vmul.f32 %v10007_v22, %v14633_v34  ;;  %v2703_v16 = vmul.f32 %v10007_v22, %v14635_v15  ;;  %v14636_v25 = vld [vmem:[#allocation315_spill] sm:$0xff]  ;;  %v14637_v63 = vld [vmem:[#allocation316_spill] sm:$0xff]  ;;  %14638 = vst [vmem:[#allocation194_spill] sm:$0xff] %v10444_v44  ;;  %14639 = vst [vmem:[#allocation195_spill] sm:$0xff] %v10446_v47  ;;  %v10449_v61 = vadd.f32 %v2697_v0, %v9946_v20 }
 0x61c   : > { %v2700_v51 = vmul.f32 %v10007_v22, %v14636_v25  ;;  %v2705_v31 = vmul.f32 %v10007_v22, %v14637_v63  ;;  %v10452_v34 = vadd.f32 %v2694_v37, %v9923_v21  ;;  %v14640_v35 = vld [vmem:[#allocation319_spill] sm:$0xff]  ;;  %v14641_v15 = vld [vmem:[#allocation320_spill] sm:$0xff]  ;;  %v10459_v25 = vadd.f32 %v2699_v36, %v9958_v58 }
 0x61d   : > { %v2702_v59 = vmul.f32 %v10007_v22, %v14640_v35  ;;  %v2707_v11 = vmul.f32 %v10007_v22, %v14641_v15  ;;  %v10462_v63 = vadd.f32 %v2696_v53, %v9933_v38  ;;  %v14642_v44 = vld [vmem:[#allocation323_spill] sm:$0xff]  ;;  %v5985_v20 = vld [vmem:[%s6334_s29 + $0x28] sm:$0xff]  ;;  %v10469_v21 = vadd.f32 %v2701_v17, %v9969_v14  ;;  %v14644_v14 = vld [vmem:[#allocation326_spill] sm:$0xff]  ;;  %v10488_v17 = vpop.permute.xlu1 %4587 }
 0x61e   : > { %v2704_v47 = vmul.f32 %v10007_v22, %v14642_v44  ;;  %5011 = vperm.xlu1 %5787, %v5985_v20   ;;  %v5986_v0 = vld [vmem:[%s6334_s29 + $0xa0] sm:$0xff]  ;;  %v10472_v37 = vadd.f32 %v2698_v9, %v9943_v60  ;;  %v14643_v35 = vld [vmem:[#allocation324_spill] sm:$0xff]  ;;  %v3216_v38 = vsub.s32 4, %v8924_v55  ;;  %v10478_v53 = vadd.f32 %v2703_v16, %v9979_v48  ;;  %14645 = vst [vmem:[#allocation531_spill] sm:$0xff] %v10488_v17  ;;  %v10490_v9 = vpop.permute.xlu0 %4639  ;;  %v14649_v16 = vld [vmem:[#allocation329_spill] sm:$0xff] }
 0x61f   : > { %5071 = vperm.xlu0 %5788, %v5986_v0   ;;  %v2709_v58 = vmul.f32 %v10007_v22, %v14643_v35  ;;  %v10481_v36 = vadd.f32 %v2700_v51, %v9949_v24  ;;  %v10484_v44 = vadd.f32 %v2705_v31, %v9989_v56  ;;  %v2706_v60 = vmul.f32 %v10007_v22, %v14644_v14  ;;  %v14648_v48 = vld [vmem:[#allocation327_spill] sm:$0xff]  ;;  %v14650_v31 = vld [vmem:[#allocation330_spill] sm:$0xff]  ;;  %v14651_v35 = vld [vmem:[#allocation332_spill] sm:$0xff] }
 0x620   : > { %14646 = vst [vmem:[#allocation567_spill] sm:$0xff] %v10490_v9  ;;  %v10493_v15 = vadd.f32 %v2702_v59, %v9961_v52  ;;  %v10496_v20 = vadd.f32 %v2707_v11, %v10012_v49  ;;  %v2711_v24 = vmul.f32 %v10007_v22, %v14648_v48  ;;  %v2708_v56 = vmul.f32 %v10007_v22, %v14649_v16  ;;  %v5987_v52 = vld [vmem:[%s6334_s29 + $0x38] sm:$0xff]  ;;  %v5988_v59 = vld [vmem:[%s6334_s29 + $0xb0] sm:$0xff] }
 0x621   : > { %v10503_v51 = vadd.f32 %v2704_v47, %v9972_v28  ;;  %v2713_v0 = vmul.f32 %v10007_v22, %v14650_v31  ;;  %v2710_v14 = vmul.f32 %v10007_v22, %v14651_v35  ;;  %v10512_v49 = vadd.f32 %v2709_v58, %v10020_v18  ;;  %v14653_v11 = vld [vmem:[#allocation333_spill] sm:$0xff]  ;;  %v14654_v16 = vld [vmem:[#allocation334_spill] sm:$0xff]  ;;  %v10521_v47 = vld [vmem:[%s13026_s1] sm:$0xff]  ;;  %v10535_v9 = vpop.permute.xlu1 %4595 }
 0x622   : > { %14647 = vst [vmem:[#allocation71_spill] sm:$0xff] %v10496_v20  ;;  %5019 = vperm.xlu1 %5787, %v5987_v52   ;;  %v2715_v48 = vmul.f32 %v10007_v22, %v14653_v11  ;;  %v2712_v28 = vmul.f32 %v10007_v22, %v14654_v16  ;;  %v10524_v31 = vrot.slane %v10521_v47, %v3216_v38  ;;  %v14655_v18 = vld [vmem:[#allocation335_spill] sm:$0xff]  ;;  %v14656_v52 = vld [vmem:[#allocation336_spill] sm:$0xff]  ;;  %v14657_v11 = vld [vmem:[#allocation337_spill] sm:$0xff]  ;;  %v10537_v17 = vpop.permute.xlu0 %4647 }
 0x623   : > { %5079 = vperm.xlu0 %5788, %v5988_v59   ;;  %14652 = vst [vmem:[#allocation74_spill] sm:$0xff] %v10512_v49  ;;  %v10527_v35 = vadd.f32 %v2706_v60, %v9982_v40  ;;  %v2717_v58 = vmul.f32 %v10007_v22, %v14655_v18  ;;  %v2714_v59 = vmul.f32 %v10007_v22, %v14656_v52  ;;  %14658 = vst [vmem:[#allocation196_spill] sm:$0xff] %v10535_v9  ;;  %v14661_v40 = vld [vmem:[#allocation338_spill] sm:$0xff]  ;;  %v14662_v18 = vld [vmem:[#allocation339_spill] sm:$0xff] }
 0x624   : > { %v2719_v16 = vmul.f32 %v10007_v22, %v14657_v11  ;;  %14659 = vst [vmem:[#allocation197_spill] sm:$0xff] %v10537_v17  ;;  %v10540_v38 = vadd.f32 %v2711_v24, %v10030_v27  ;;  %v10543_v49 = vadd.f32 %v2708_v56, %v10002_v54  ;;  %v2716_v60 = vmul.f32 %v10007_v22, %v14661_v40  ;;  %v14664_v9 = vld [vmem:[#allocation340_spill] sm:$0xff]  ;;  %v5991_v24 = vld [vmem:[%s6334_s29 + $0xc0] sm:$0xff]  ;;  %v14666_v40 = vld [vmem:[#allocation341_spill] sm:$0xff] }
 0x625   : > { %v2721_v20 = vmul.f32 %v10007_v22, %v14662_v18  ;;  %v10550_v52 = vadd.f32 %v2713_v0, %v10036_v1  ;;  %v10553_v11 = vadd.f32 %v2710_v14, %v10015_v8  ;;  %v2718_v17 = vmul.f32 %v10007_v22, %v14664_v9  ;;  %v5990_v27 = vld [vmem:[%s6334_s29 + $0x48] sm:$0xff]  ;;  %v14667_v0 = vld [vmem:[#allocation342_spill] sm:$0xff]  ;;  %v14669_v18 = vld [vmem:[#allocation169_spill] sm:$0xff] }
 0x626   : > { %14660 = vst [vmem:[#allocation73_spill] sm:$0xff] %v10540_v38  ;;  %5027 = vperm.xlu1 %5787, %v5990_v27   ;;  %v10560_v54 = vadd.f32 %v2715_v48, %v10054_v32  ;;  %v10563_v56 = vadd.f32 %v2712_v28, %v10023_v3  ;;  %v2723_v1 = vmul.f32 %v10007_v22, %v14666_v40  ;;  %v14671_v48 = vld [vmem:[#allocation343_spill] sm:$0xff]  ;;  %v10580_v28 = vpop.permute.xlu1 %4603  ;;  %v10582_v27 = vpop.permute.xlu0 %4655 }
 0x627   : > { %14663 = vst [vmem:[#allocation76_spill] sm:$0xff] %v10550_v52  ;;  %5087 = vperm.xlu0 %5788, %v5991_v24   ;;  %v2720_v8 = vmul.f32 %v10007_v22, %v14667_v0  ;;  %v10570_v9 = vadd.f32 %v2717_v58, %v10067_v43  ;;  %v10573_v14 = vadd.f32 %v2714_v59, %v10033_v2  ;;  %14672 = vst [vmem:[#allocation78_spill] sm:$0xff] %v10580_v28  ;;  %v14674_v24 = vld [vmem:[#allocation555_spill] sm:$0xff]  ;;  %v14676_v0 = vld [vmem:[#allocation32_spill] sm:$0xff] }
 0x628   : > { %14665 = vst [vmem:[#allocation3_spill] sm:$0xff] %v10560_v54  ;;  %v10576_v32 = vadd.f32 %v2719_v16, %v14669_v18  ;;  %v2725_v3 = vmul.f32 %v10007_v22, %v14671_v48  ;;  %14673 = vst [vmem:[#allocation77_spill] sm:$0xff] %v10582_v27  ;;  %v10585_v40 = vadd.f32 %v2716_v60, %v14674_v24  ;;  %v14678_v43 = vld [vmem:[#allocation344_spill] sm:$0xff]  ;;  %v14679_v58 = vld [vmem:[#allocation345_spill] sm:$0xff] }
 0x629   : > { %14668 = vst [vmem:[#allocation6_spill] sm:$0xff] %v10570_v9  ;;  %v10588_v54 = vadd.f32 %v2721_v20, %v14676_v0  ;;  %v2722_v2 = vmul.f32 %v10007_v22, %v14678_v43  ;;  %v2727_v59 = vmul.f32 %v10007_v22, %v14679_v58  ;;  %v14680_v16 = vld [vmem:[#allocation166_spill] sm:$0xff]  ;;  %v5993_v24 = vld [vmem:[%s6334_s29 + $0xd0] sm:$0xff]  ;;  %v14686_v43 = vld [vmem:[#allocation167_spill] sm:$0xff] }
 0x62a   : > { %14670 = vst [vmem:[#allocation75_spill] sm:$0xff] %v10576_v32  ;;  %14675 = vst [vmem:[#allocation4_spill] sm:$0xff] %v10585_v40  ;;  %v10595_v18 = vadd.f32 %v2718_v17, %v14680_v16  ;;  %v14682_v48 = vld [vmem:[#allocation346_spill] sm:$0xff]  ;;  %v14683_v32 = vld [vmem:[#allocation347_spill] sm:$0xff] }
 0x62b   : > { %14677 = vst [vmem:[#allocation82_spill] sm:$0xff] %v10588_v54  ;;  %v2724_v28 = vmul.f32 %v10007_v22, %v14682_v48  ;;  %v2729_v27 = vmul.f32 %v10007_v22, %v14683_v32  ;;  %v5992_v60 = vld [vmem:[%s6334_s29 + $0x58] sm:$0xff]  ;;  %5095 = vperm.xlu0 %5788, %v5993_v24   ;;  %v10607_v54 = vadd.f32 %v2720_v8, %v14686_v43  ;;  %v14688_v58 = vld [vmem:[#allocation348_spill] sm:$0xff]  ;;  %v14689_v16 = vld [vmem:[#allocation349_spill] sm:$0xff]  ;;  %v10622_v43 = vpop.permute.xlu1 %4611 }
 0x62c   : > { %14681 = vst [vmem:[#allocation81_spill] sm:$0xff] %v10595_v18  ;;  %5035 = vperm.xlu1 %5787, %v5992_v60   ;;  %v14684_v20 = vld [vmem:[#allocation170_spill] sm:$0xff]  ;;  %v2726_v17 = vmul.f32 %v10007_v22, %v14688_v58  ;;  %v2731_v48 = vmul.f32 %v10007_v22, %v14689_v16  ;;  %v14690_v9 = vld [vmem:[#allocation171_spill] sm:$0xff]  ;;  %14695 = vst [vmem:[#allocation84_spill] sm:$0xff] %v10622_v43 }
 0x62d   : > { %v10604_v0 = vadd.f32 %v2723_v1, %v14684_v20  ;;  %14687 = vst [vmem:[#allocation534_spill] sm:$0xff] %v10607_v54  ;;  %v10614_v32 = vadd.f32 %v2725_v3, %v14690_v9  ;;  %v14692_v60 = vld [vmem:[#allocation350_spill] sm:$0xff]  ;;  %v14693_v52 = vld [vmem:[#allocation351_spill] sm:$0xff]  ;;  %v14694_v20 = vld [vmem:[#allocation352_spill] sm:$0xff] }
 0x62e   : > { %v2728_v24 = vmul.f32 %v10007_v22, %v14692_v60  ;;  %v2733_v1 = vmul.f32 %v10007_v22, %v14693_v52  ;;  %v2730_v8 = vmul.f32 %v10007_v22, %v14694_v20  ;;  %v14697_v58 = vld [vmem:[#allocation27_spill] sm:$0xff]  ;;  %v14698_v16 = vld [vmem:[#allocation558_spill] sm:$0xff]  ;;  %v14700_v9 = vld [vmem:[#allocation353_spill] sm:$0xff] }
 0x62f   : > { %14685 = vst [vmem:[#allocation8_spill] sm:$0xff] %v10604_v0  ;;  %14691 = vst [vmem:[#allocation570_spill] sm:$0xff] %v10614_v32  ;;  %v10624_v0 = vpop.permute.xlu0 %4663  ;;  %v10627_v54 = vadd.f32 %v2722_v2, %v14697_v58  ;;  %v10630_v18 = vadd.f32 %v2727_v59, %v14698_v16  ;;  %v2735_v3 = vmul.f32 %v10007_v22, %v14700_v9  ;;  %v14701_v60 = vld [vmem:[#allocation354_spill] sm:$0xff]  ;;  %v14702_v52 = vld [vmem:[#allocation31_spill] sm:$0xff] }
 0x630   : > { %14696 = vst [vmem:[#allocation83_spill] sm:$0xff] %v10624_v0  ;;  %v2732_v32 = vmul.f32 %v10007_v22, %v14701_v60  ;;  %v10637_v38 = vadd.f32 %v2724_v28, %v14702_v52  ;;  %v14704_v20 = vld [vmem:[#allocation173_spill] sm:$0xff]  ;;  %v14706_v43 = vld [vmem:[#allocation355_spill] sm:$0xff]  ;;  %v5994_v2 = vld [vmem:[%s6334_s29 + $0x68] sm:$0xff] }
 0x631   : > { %14699 = vst [vmem:[#allocation5_spill] sm:$0xff] %v10630_v18  ;;  %v10640_v40 = vadd.f32 %v2729_v27, %v14704_v20  ;;  %v2737_v0 = vmul.f32 %v10007_v22, %v14706_v43  ;;  %5043 = vperm.xlu1 %5787, %v5994_v2   ;;  %v5995_v58 = vld [vmem:[%s6334_s29 + $0xe0] sm:$0xff]  ;;  %v14709_v9 = vld [vmem:[#allocation44_spill] sm:$0xff]  ;;  %v14712_v52 = vld [vmem:[#allocation357_spill] sm:$0xff] }
 0x632   : > { %14703 = vst [vmem:[#allocation10_spill] sm:$0xff] %v10637_v38  ;;  %5103 = vperm.xlu0 %5788, %v5995_v58   ;;  %v14707_v59 = vld [vmem:[#allocation39_spill] sm:$0xff]  ;;  %v10650_v18 = vadd.f32 %v2731_v48, %v14709_v9  ;;  %v14711_v60 = vld [vmem:[#allocation356_spill] sm:$0xff]  ;;  %v2739_v27 = vmul.f32 %v10007_v22, %v14712_v52  ;;  %v14713_v20 = vld [vmem:[#allocation522_spill] sm:$0xff]  ;;  %v10667_v9 = vpop.permute.xlu1 %4619 }
 0x633   : > { %14705 = vst [vmem:[#allocation86_spill] sm:$0xff] %v10640_v40  ;;  %v10647_v16 = vadd.f32 %v2726_v17, %v14707_v59  ;;  %v2734_v28 = vmul.f32 %v10007_v22, %v14711_v60  ;;  %v10657_v43 = vadd.f32 %v2728_v24, %v14713_v20  ;;  %v14715_v2 = vld [vmem:[#allocation175_spill] sm:$0xff]  ;;  %v14719_v59 = vld [vmem:[#allocation358_spill] sm:$0xff]  ;;  %14720 = vst [vmem:[#allocation14_spill] sm:$0xff] %v10667_v9 }
 0x634   : > { %14710 = vst [vmem:[#allocation7_spill] sm:$0xff] %v10650_v18  ;;  %v10660_v40 = vadd.f32 %v2733_v1, %v14715_v2  ;;  %v14717_v58 = vld [vmem:[#allocation43_spill] sm:$0xff]  ;;  %v2736_v48 = vmul.f32 %v10007_v22, %v14719_v59  ;;  %v10669_v18 = vpop.permute.xlu0 %4671  ;;  %v10672_v60 = vadd.f32 %v2735_v3, %v10179_v10  ;;  %v14726_v20 = vld [vmem:[#allocation360_spill] sm:$0xff]  ;;  %v14729_v59 = vld [vmem:[#allocation361_spill] sm:$0xff] }
 0x635   : > { %14708 = vst [vmem:[#allocation85_spill] sm:$0xff] %v10647_v16  ;;  %14714 = vst [vmem:[#allocation12_spill] sm:$0xff] %v10657_v43  ;;  %v10663_v17 = vadd.f32 %v2730_v8, %v14717_v58  ;;  %v14723_v52 = vld [vmem:[#allocation47_spill] sm:$0xff]  ;;  %v2738_v8 = vmul.f32 %v10007_v22, %v14726_v20  ;;  %v14727_v2 = vld [vmem:[#allocation48_spill] sm:$0xff]  ;;  %v2743_v9 = vmul.f32 %v10007_v22, %v14729_v59 }
 0x636   : > { %14716 = vst [vmem:[#allocation88_spill] sm:$0xff] %v10660_v40  ;;  %14721 = vst [vmem:[#allocation11_spill] sm:$0xff] %v10669_v18  ;;  %v10675_v16 = vadd.f32 %v2732_v32, %v14723_v52  ;;  %v14725_v24 = vld [vmem:[#allocation359_spill] sm:$0xff]  ;;  %v10682_v58 = vadd.f32 %v2737_v0, %v14727_v2  ;;  %v14730_v40 = vld [vmem:[#allocation362_spill] sm:$0xff] }
 0x637   : > { %14718 = vst [vmem:[#allocation9_spill] sm:$0xff] %v10663_v17  ;;  %14722 = vst [vmem:[#allocation87_spill] sm:$0xff] %v10672_v60  ;;  %v2741_v1 = vmul.f32 %v10007_v22, %v14725_v24  ;;  %v2740_v18 = vmul.f32 %v10007_v22, %v14730_v40  ;;  %v5996_v10 = vld [vmem:[%s6334_s29 + $0x78] sm:$0xff]  ;;  %v5997_v3 = vld [vmem:[%s6334_s29 + $0xf0] sm:$0xff] }
 0x638   : > { %14724 = vst [vmem:[#allocation16_spill] sm:$0xff] %v10675_v16  ;;  %14728 = vst [vmem:[#allocation13_spill] sm:$0xff] %v10682_v58  ;;  %5051 = vperm.xlu1 %5787, %v5996_v10   ;;  %5111 = vperm.xlu0 %5788, %v5997_v3   ;;  %v14731_v32 = vld [vmem:[#allocation174_spill] sm:$0xff]  ;;  %v14733_v24 = vld [vmem:[#allocation180_spill] sm:$0xff] }
 0x639   : > { %v10691_v52 = vadd.f32 %v2734_v28, %v14731_v32  ;;  %v10694_v60 = vadd.f32 %v2739_v27, %v14733_v24  ;;  %v14735_v20 = vld [vmem:[#allocation363_spill] sm:$0xff]  ;;  %v14736_v2 = vld [vmem:[#allocation364_spill] sm:$0xff]  ;;  %v14739_v10 = vld [vmem:[#allocation365_spill] sm:$0xff]  ;;  %v10709_v24 = vpop.permute.xlu1 %4627 }
 0x63a   : > { %v2745_v0 = vmul.f32 %v10007_v22, %v14735_v20  ;;  %v2742_v59 = vmul.f32 %v10007_v22, %v14736_v2  ;;  %v14737_v58 = vld [vmem:[#allocation51_spill] sm:$0xff]  ;;  %v2747_v3 = vmul.f32 %v10007_v22, %v14739_v10  ;;  %v14740_v16 = vld [vmem:[#allocation366_spill] sm:$0xff]  ;;  %14742 = vst [vmem:[#allocation89_spill] sm:$0xff] %v10709_v24  ;;  %v14744_v20 = vld [vmem:[#allocation561_spill] sm:$0xff] }
 0x63b   : > { %14732 = vst [vmem:[#allocation537_spill] sm:$0xff] %v10691_v52  ;;  %14734 = vst [vmem:[#allocation573_spill] sm:$0xff] %v10694_v60  ;;  %v10701_v40 = vadd.f32 %v2736_v48, %v14737_v58  ;;  %v2744_v28 = vmul.f32 %v10007_v22, %v14740_v16  ;;  %v14741_v32 = vld [vmem:[#allocation367_spill] sm:$0xff]  ;;  %v10711_v60 = vpop.permute.xlu0 %4679  ;;  %v10714_v52 = vadd.f32 %v2741_v1, %v14744_v20  ;;  %v14746_v2 = vld [vmem:[#allocation178_spill] sm:$0xff] }
 0x63c   : > { %v2749_v27 = vmul.f32 %v10007_v22, %v14741_v32  ;;  %14743 = vst [vmem:[#allocation18_spill] sm:$0xff] %v10711_v60  ;;  %v10717_v17 = vadd.f32 %v2738_v8, %v14746_v2  ;;  %v14747_v48 = vld [vmem:[#allocation368_spill] sm:$0xff]  ;;  %v14748_v10 = vld [vmem:[#allocation369_spill] sm:$0xff]  ;;  %v14751_v32 = vld [vmem:[#allocation179_spill] sm:$0xff] }
 0x63d   : > { %14738 = vst [vmem:[#allocation90_spill] sm:$0xff] %v10701_v40  ;;  %14745 = vst [vmem:[#allocation15_spill] sm:$0xff] %v10714_v52  ;;  %v2746_v58 = vmul.f32 %v10007_v22, %v14747_v48  ;;  %v2751_v40 = vmul.f32 %v10007_v22, %v14748_v10  ;;  %v14749_v16 = vld [vmem:[#allocation52_spill] sm:$0xff]  ;;  %v10727_v38 = vadd.f32 %v2740_v18, %v14751_v32  ;;  %v14753_v24 = vld [vmem:[#allocation370_spill] sm:$0xff] }
 0x63e   : > { %v10724_v43 = vadd.f32 %v2743_v9, %v14749_v16  ;;  %v2748_v60 = vmul.f32 %v10007_v22, %v14753_v24  ;;  %v5998_v1 = vld [vmem:[%s6334_s29 + $0x88] sm:$0xff]  ;;  %v5999_v20 = vld [vmem:[%s6334_s29 + $0x100] sm:$0xff]  ;;  %v14756_v48 = vld [vmem:[#allocation525_spill] sm:$0xff] }
 0x63f   : > { %14752 = vst [vmem:[#allocation91_spill] sm:$0xff] %v10727_v38  ;;  %5059 = vperm.xlu1 %5787, %v5998_v1   ;;  %5119 = vperm.xlu0 %5788, %v5999_v20   ;;  %v14754_v8 = vld [vmem:[#allocation56_spill] sm:$0xff]  ;;  %v10737_v52 = vadd.f32 %v2742_v59, %v14756_v48  ;;  %v14758_v10 = vld [vmem:[#allocation371_spill] sm:$0xff]  ;;  %v10754_v48 = vpop.permute.xlu1 %4635 }
 0x640   : > { %14750 = vst [vmem:[#allocation94_spill] sm:$0xff] %v10724_v43  ;;  %v10734_v2 = vadd.f32 %v2745_v0, %v14754_v8  ;;  %v2753_v9 = vmul.f32 %v10007_v22, %v14758_v10  ;;  %v14759_v16 = vld [vmem:[#allocation372_spill] sm:$0xff]  ;;  %v14762_v1 = vld [vmem:[#allocation55_spill] sm:$0xff]  ;;  %v14765_v8 = vld [vmem:[#allocation373_spill] sm:$0xff] }
 0x641   : > { %14757 = vst [vmem:[#allocation17_spill] sm:$0xff] %v10737_v52  ;;  %v2750_v18 = vmul.f32 %v10007_v22, %v14759_v16  ;;  %v14760_v32 = vld [vmem:[#allocation184_spill] sm:$0xff]  ;;  %v10747_v43 = vadd.f32 %v2744_v28, %v14762_v1  ;;  %v14763_v20 = vld [vmem:[#allocation59_spill] sm:$0xff]  ;;  %v2755_v59 = vmul.f32 %v10007_v22, %v14765_v8  ;;  %14766 = vst [vmem:[#allocation21_spill] sm:$0xff] %v10754_v48 }
 0x642   : > { %14755 = vst [vmem:[#allocation22_spill] sm:$0xff] %v10734_v2  ;;  %v10744_v24 = vadd.f32 %v2747_v3, %v14760_v32  ;;  %v10750_v0 = vadd.f32 %v2749_v27, %v14763_v20  ;;  %v10756_v2 = vpop.permute.xlu0 %4687  ;;  %v14768_v10 = vld [vmem:[#allocation181_spill] sm:$0xff]  ;;  %v14769_v16 = vld [vmem:[#allocation66_spill] sm:$0xff]  ;;  %v14772_v32 = vld [vmem:[#allocation375_spill] sm:$0xff] }
 0x643   : > { %14767 = vst [vmem:[#allocation540_spill] sm:$0xff] %v10756_v2  ;;  %v10759_v52 = vadd.f32 %v2746_v58, %v14768_v10  ;;  %v10762_v38 = vadd.f32 %v2751_v40, %v14769_v16  ;;  %v14771_v3 = vld [vmem:[#allocation374_spill] sm:$0xff]  ;;  %v2757_v27 = vmul.f32 %v10007_v22, %v14772_v32  ;;  %v14773_v1 = vld [vmem:[#allocation183_spill] sm:$0xff]  ;;  %v14774_v8 = vld [vmem:[#allocation376_spill] sm:$0xff]  ;;  %v10778_v40 = vadd.f32 %v2753_v9, %v10282_v5 }
 0x644   : > { %14761 = vst [vmem:[#allocation26_spill] sm:$0xff] %v10744_v24  ;;  %14764 = vst [vmem:[#allocation95_spill] sm:$0xff] %v10750_v0  ;;  %v2752_v28 = vmul.f32 %v10007_v22, %v14771_v3  ;;  %v10769_v20 = vadd.f32 %v2748_v60, %v14773_v1  ;;  %v2754_v48 = vmul.f32 %v10007_v22, %v14774_v8  ;;  %v14775_v0 = vld [vmem:[#allocation377_spill] sm:$0xff]  ;;  %v6000_v58 = vld [vmem:[%s6334_s29 + $0x98] sm:$0xff] }
 0x645   : > { %14770 = vst [vmem:[#allocation576_spill] sm:$0xff] %v10762_v38  ;;  %v2759_v2 = vmul.f32 %v10007_v22, %v14775_v0  ;;  %5067 = vperm.xlu1 %5787, %v6000_v58   ;;  %v6001_v10 = vld [vmem:[%s6334_s29 + $0x110] sm:$0xff]  ;;  %14776 = vst [vmem:[#allocation96_spill] sm:$0xff] %v10778_v40  ;;  %v14777_v16 = vld [vmem:[#allocation60_spill] sm:$0xff]  ;;  %v10788_v0 = vadd.f32 %v2755_v59, %v10288_v39 }
 0x646   : > { %5127 = vperm.xlu0 %5788, %v6001_v10   ;;  %v10781_v3 = vadd.f32 %v2750_v18, %v14777_v16  ;;  %v14779_v32 = vld [vmem:[#allocation378_spill] sm:$0xff]  ;;  %v14780_v1 = vld [vmem:[#allocation379_spill] sm:$0xff]  ;;  %v14782_v58 = vld [vmem:[#allocation380_spill] sm:$0xff]  ;;  %v10796_v16 = vpop.permute.xlu1 %4643  ;;  %v10798_v40 = vpop.permute.xlu0 %4695 }
 0x647   : > { %v2756_v60 = vmul.f32 %v10007_v22, %v14779_v32  ;;  %v2761_v8 = vmul.f32 %v10007_v22, %v14780_v1  ;;  %14781 = vst [vmem:[#allocation25_spill] sm:$0xff] %v10788_v0  ;;  %v2758_v10 = vmul.f32 %v10007_v22, %v14782_v58  ;;  %v14783_v38 = vld [vmem:[#allocation381_spill] sm:$0xff]  ;;  %v14784_v9 = vld [vmem:[#allocation382_spill] sm:$0xff]  ;;  %14785 = vst [vmem:[#allocation97_spill] sm:$0xff] %v10796_v16 }
 0x648   : > { %14778 = vst [vmem:[#allocation30_spill] sm:$0xff] %v10781_v3  ;;  %v2763_v5 = vmul.f32 %v10007_v22, %v14783_v38  ;;  %v2760_v18 = vmul.f32 %v10007_v22, %v14784_v9  ;;  %14786 = vst [vmem:[#allocation34_spill] sm:$0xff] %v10798_v40  ;;  %v14787_v32 = vld [vmem:[#allocation64_spill] sm:$0xff]  ;;  %v10804_v1 = vadd.f32 %v2757_v27, %v10297_v29  ;;  %v14788_v39 = vld [vmem:[#allocation383_spill] sm:$0xff] }
 0x649   : > { %v10801_v24 = vadd.f32 %v2752_v28, %v14787_v32  ;;  %v2765_v59 = vmul.f32 %v10007_v22, %v14788_v39  ;;  %v14789_v58 = vld [vmem:[#allocation384_spill] sm:$0xff]  ;;  %v14790_v38 = vld [vmem:[#allocation186_spill] sm:$0xff]  ;;  %v10814_v9 = vadd.f32 %v2759_v2, %v10307_v33  ;;  %v14792_v16 = vld [vmem:[#allocation385_spill] sm:$0xff]  ;;  %v10824_v39 = vadd.f32 %v2761_v8, %v10319_v7 }
 0x64a   : > { %v2762_v0 = vmul.f32 %v10007_v22, %v14789_v58  ;;  %v10811_v3 = vadd.f32 %v2754_v48, %v14790_v38  ;;  %v2767_v40 = vmul.f32 %v10007_v22, %v14792_v16  ;;  %v6002_v28 = vld [vmem:[%s6334_s29 + $0xa8] sm:$0xff]  ;;  %v6003_v32 = vld [vmem:[%s6334_s29 + $0x120] sm:$0xff]  ;;  %v14795_v58 = vld [vmem:[#allocation386_spill] sm:$0xff]  ;;  %v10841_v8 = vpop.permute.xlu1 %4651 }
 0x64b   : > { %14791 = vst [vmem:[#allocation29_spill] sm:$0xff] %v10814_v9  ;;  %5075 = vperm.xlu1 %5787, %v6002_v28   ;;  %5135 = vperm.xlu0 %5788, %v6003_v32   ;;  %v14793_v29 = vld [vmem:[#allocation528_spill] sm:$0xff]  ;;  %14794 = vst [vmem:[#allocation38_spill] sm:$0xff] %v10824_v39  ;;  %v2764_v48 = vmul.f32 %v10007_v22, %v14795_v58  ;;  %v14796_v38 = vld [vmem:[#allocation387_spill] sm:$0xff]  ;;  %v10834_v28 = vadd.f32 %v2763_v5, %v10330_v42  ;;  %v10843_v39 = vpop.permute.xlu0 %4703 }
 0x64c   : > { %v10821_v27 = vadd.f32 %v2756_v60, %v14793_v29  ;;  %v2769_v33 = vmul.f32 %v10007_v22, %v14796_v38  ;;  %v14797_v2 = vld [vmem:[#allocation564_spill] sm:$0xff]  ;;  %v14798_v32 = vld [vmem:[#allocation65_spill] sm:$0xff]  ;;  %v14799_v29 = vld [vmem:[#allocation258_spill] sm:$0xff]  ;;  %14800 = vst [vmem:[#allocation33_spill] sm:$0xff] %v10841_v8  ;;  %v10846_v58 = vadd.f32 %v2765_v59, %v10342_v46 }
 0x64d   : > { %v10831_v16 = vadd.f32 %v2758_v10, %v14797_v2  ;;  %v10837_v60 = vadd.f32 %v2760_v18, %v14798_v32  ;;  %v2766_v7 = vmul.f32 %v10007_v22, %v14799_v29  ;;  %14801 = vst [vmem:[#allocation42_spill] sm:$0xff] %v10843_v39  ;;  %v14803_v38 = vld [vmem:[#allocation68_spill] sm:$0xff]  ;;  %v14805_v5 = vld [vmem:[#allocation262_spill] sm:$0xff]  ;;  %v10856_v2 = vadd.f32 %v2767_v40, %v10362_v26  ;;  %v14807_v32 = vld [vmem:[#allocation389_spill] sm:$0xff] }
 0x64e   : > { %14802 = vst [vmem:[#allocation37_spill] sm:$0xff] %v10846_v58  ;;  %v10849_v9 = vadd.f32 %v2762_v0, %v14803_v38  ;;  %v14804_v10 = vld [vmem:[#allocation388_spill] sm:$0xff]  ;;  %v2768_v18 = vmul.f32 %v10007_v22, %v14805_v5  ;;  %v2773_v29 = vmul.f32 %v10007_v22, %v14807_v32  ;;  %v14808_v8 = vld [vmem:[#allocation390_spill] sm:$0xff]  ;;  %v6005_v59 = vld [vmem:[%s6334_s29 + $0x130] sm:$0xff] }
 0x64f   : > { %v2771_v42 = vmul.f32 %v10007_v22, %v14804_v10  ;;  %14806 = vst [vmem:[#allocation46_spill] sm:$0xff] %v10856_v2  ;;  %v2770_v39 = vmul.f32 %v10007_v22, %v14808_v8  ;;  %v6004_v46 = vld [vmem:[%s6334_s29 + $0xb8] sm:$0xff]  ;;  %5143 = vperm.xlu0 %5788, %v6005_v59   ;;  %v14809_v0 = vld [vmem:[#allocation67_spill] sm:$0xff]  ;;  %v10868_v10 = vadd.f32 %v2769_v33, %v10372_v62  ;;  %v14812_v40 = vld [vmem:[#allocation392_spill] sm:$0xff]  ;;  %v10883_v33 = vpop.permute.xlu1 %4659 }
 0x650   : > { %5083 = vperm.xlu1 %5787, %v6004_v46   ;;  %v10865_v38 = vadd.f32 %v2764_v48, %v14809_v0  ;;  %v14811_v5 = vld [vmem:[#allocation391_spill] sm:$0xff]  ;;  %v2772_v32 = vmul.f32 %v10007_v22, %v14812_v40  ;;  %v14813_v2 = vld [vmem:[#allocation70_spill] sm:$0xff]  ;;  %v14814_v46 = vld [vmem:[#allocation393_spill] sm:$0xff]  ;;  %14817 = vst [vmem:[#allocation579_spill] sm:$0xff] %v10883_v33  ;;  %v10891_v22 = vadd.f32 %v2768_v18, %v10349_v30 }
 0x651   : > { %14810 = vst [vmem:[#allocation543_spill] sm:$0xff] %v10868_v10  ;;  %v3219_v26 = vmul.f32 %v10524_v31, %v14811_v5  ;;  %v10875_v8 = vadd.f32 %v2766_v7, %v14813_v2  ;;  %v3222_v59 = vmul.f32 %v10524_v31, %v14814_v46  ;;  %v14815_v58 = vld [vmem:[#allocation394_spill] sm:$0xff]  ;;  %v14816_v0 = vld [vmem:[#allocation395_spill] sm:$0xff]  ;;  %v10885_v10 = vpop.permute.xlu0 %4711  ;;  %v10888_v5 = vadd.f32 %v2771_v42, %v10382_v41  ;;  %v14819_v7 = vld [vmem:[#allocation396_spill] sm:$0xff] }
 0x652   : > { %v3218_v48 = vmul.f32 %v10524_v31, %v14815_v58  ;;  %v3224_v62 = vmul.f32 %v10524_v31, %v14816_v0  ;;  %14818 = vst [vmem:[#allocation41_spill] sm:$0xff] %v10885_v10  ;;  %v3220_v2 = vmul.f32 %v10524_v31, %v14819_v7  ;;  %v14820_v40 = vld [vmem:[#allocation397_spill] sm:$0xff]  ;;  %v10898_v58 = vadd.f32 %v2773_v29, %v10392_v12  ;;  %v14821_v33 = vld [vmem:[#allocation398_spill] sm:$0xff]  ;;  %v6006_v41 = vld [vmem:[%s6334_s29 + $0xc8] sm:$0xff] }
 0x653   : > { %v3226_v46 = vmul.f32 %v10524_v31, %v14820_v40  ;;  %v10901_v0 = vadd.f32 %v2770_v39, %v10365_v57  ;;  %v3221_v10 = vmul.f32 %v10524_v31, %v14821_v33  ;;  %v6007_v42 = vld [vmem:[%s6334_s29 + $0x140] sm:$0xff]  ;;  %v10908_v30 = vadd.f32 %v3219_v26, %v10398_v23  ;;  %v14823_v29 = vld [vmem:[#allocation400_spill] sm:$0xff]  ;;  %v14824_v26 = vld [vmem:[#allocation401_spill] sm:$0xff] }
 0x654   : > { %5091 = vperm.xlu1 %5787, %v6006_v41   ;;  %5151 = vperm.xlu0 %5788, %v6007_v42   ;;  %v10911_v18 = vadd.f32 %v2772_v32, %v10375_v6  ;;  %v14822_v7 = vld [vmem:[#allocation399_spill] sm:$0xff]  ;;  %v3223_v57 = vmul.f32 %v10524_v31, %v14823_v29  ;;  %v10918_v39 = vadd.f32 %v3222_v59, %v10426_v50  ;;  %v10928_v32 = vpop.permute.xlu1 %4667  ;;  %v14828_v50 = vld [vmem:[#allocation402_spill] sm:$0xff]  ;;  %v14831_v29 = vld [vmem:[#allocation405_spill] sm:$0xff] }
 0x655   : > { %v3228_v12 = vmul.f32 %v10524_v31, %v14822_v7  ;;  %v10921_v33 = vadd.f32 %v3218_v48, %v10385_v13  ;;  %v10924_v23 = vadd.f32 %v3224_v62, %v10436_v4  ;;  %v3230_v6 = vmul.f32 %v10524_v31, %v14824_v26  ;;  %14825 = vst [vmem:[#allocation198_spill] sm:$0xff] %v10928_v32  ;;  %v10930_v40 = vpop.permute.xlu0 %4719  ;;  %v14829_v59 = vld [vmem:[#allocation403_spill] sm:$0xff]  ;;  %v14830_v62 = vld [vmem:[#allocation404_spill] sm:$0xff] }
 0x656   : > { %14826 = vst [vmem:[#allocation45_spill] sm:$0xff] %v10930_v40  ;;  %v10933_v41 = vadd.f32 %v3220_v2, %v10410_v45  ;;  %v10936_v42 = vadd.f32 %v3226_v46, %v10452_v34  ;;  %v3225_v13 = vmul.f32 %v10524_v31, %v14828_v50  ;;  %v3232_v4 = vmul.f32 %v10524_v31, %v14829_v59  ;;  %v6008_v45 = vld [vmem:[%s6334_s29 + $0xd8] sm:$0xff]  ;;  %v6009_v2 = vld [vmem:[%s6334_s29 + $0x150] sm:$0xff]  ;;  %v14833_v46 = vld [vmem:[#allocation192_spill] sm:$0xff] }
 0x657   : > { %v10943_v48 = vadd.f32 %v3221_v10, %v10395_v19  ;;  %v3227_v7 = vmul.f32 %v10524_v31, %v14830_v62  ;;  %v3234_v26 = vmul.f32 %v10524_v31, %v14831_v29  ;;  %v10952_v34 = vadd.f32 %v3228_v12, %v10462_v63  ;;  %v14834_v59 = vld [vmem:[#allocation298_spill] sm:$0xff]  ;;  %v14838_v40 = vld [vmem:[#allocation407_spill] sm:$0xff] }
 0x658   : > { %14827 = vst [vmem:[#allocation199_spill] sm:$0xff] %v10936_v42  ;;  %5099 = vperm.xlu1 %5787, %v6008_v45   ;;  %5159 = vperm.xlu0 %5788, %v6009_v2   ;;  %v10955_v50 = vadd.f32 %v3223_v57, %v14833_v46  ;;  %v3229_v19 = vmul.f32 %v10524_v31, %v14834_v59  ;;  %v14835_v10 = vld [vmem:[#allocation406_spill] sm:$0xff]  ;;  %v10970_v46 = vpop.permute.xlu1 %4675  ;;  %v14842_v59 = vld [vmem:[#allocation193_spill] sm:$0xff]  ;;  %v6010_v42 = vld [vmem:[%s6334_s29 + $0xe8] sm:$0xff] }
 0x659   : > { %14832 = vst [vmem:[#allocation200_spill] sm:$0xff] %v10952_v34  ;;  %v3236_v62 = vmul.f32 %v10524_v31, %v14835_v10  ;;  %v10962_v29 = vadd.f32 %v3230_v6, %v10472_v37  ;;  %v14837_v45 = vld [vmem:[#allocation302_spill] sm:$0xff]  ;;  %v3238_v63 = vmul.f32 %v10524_v31, %v14838_v40  ;;  %14840 = vst [vmem:[#allocation582_spill] sm:$0xff] %v10970_v46  ;;  %v10972_v32 = vpop.permute.xlu0 %4727  ;;  %v14843_v37 = vld [vmem:[#allocation408_spill] sm:$0xff] }
 0x65a   : > { %v3231_v2 = vmul.f32 %v10524_v31, %v14837_v45  ;;  %v14839_v12 = vld [vmem:[#allocation306_spill] sm:$0xff]  ;;  %14841 = vst [vmem:[#allocation53_spill] sm:$0xff] %v10972_v32  ;;  %v10975_v34 = vadd.f32 %v3225_v13, %v14842_v59  ;;  %v10978_v10 = vadd.f32 %v3232_v4, %v10481_v36  ;;  %v3240_v6 = vmul.f32 %v10524_v31, %v14843_v37  ;;  %v6011_v13 = vld [vmem:[%s6334_s29 + $0x160] sm:$0xff]  ;;  %v14847_v59 = vld [vmem:[#allocation409_spill] sm:$0xff] }
 0x65b   : > { %14836 = vst [vmem:[#allocation201_spill] sm:$0xff] %v10962_v29  ;;  %v3233_v57 = vmul.f32 %v10524_v31, %v14839_v12  ;;  %v3748_v45 = vsub.s32 5, %v8924_v55  ;;  %v14844_v29 = vld [vmem:[#allocation72_spill] sm:$0xff]  ;;  %v10987_v12 = vadd.f32 %v3234_v26, %v10493_v15  ;;  %v14845_v46 = vld [vmem:[#allocation310_spill] sm:$0xff]  ;;  %v10994_v36 = vadd.f32 %v3229_v19, %v10449_v61  ;;  %v14850_v19 = vld [vmem:[#allocation411_spill] sm:$0xff] }
 0x65c   : > { %v10984_v40 = vadd.f32 %v3227_v7, %v14844_v29  ;;  %v3235_v32 = vmul.f32 %v10524_v31, %v14845_v46  ;;  %5107 = vperm.xlu1 %5787, %v6010_v42   ;;  %5167 = vperm.xlu0 %5788, %v6011_v13   ;;  %v10997_v4 = vadd.f32 %v3236_v62, %v10503_v51  ;;  %v14848_v29 = vld [vmem:[#allocation410_spill] sm:$0xff]  ;;  %v11014_v62 = vpop.permute.xlu1 %4683 }
 0x65d   : > { %v3242_v7 = vmul.f32 %v10524_v31, %v14847_v59  ;;  %v3237_v15 = vmul.f32 %v10524_v31, %v14848_v29  ;;  %v11004_v26 = vadd.f32 %v3231_v2, %v10459_v25  ;;  %v11007_v42 = vadd.f32 %v3238_v63, %v10527_v35  ;;  %14851 = vst [vmem:[#allocation204_spill] sm:$0xff] %v11014_v62  ;;  %v11016_v46 = vpop.permute.xlu0 %4735  ;;  %v14854_v13 = vld [vmem:[#allocation318_spill] sm:$0xff]  ;;  %v14855_v2 = vld [vmem:[#allocation412_spill] sm:$0xff]  ;;  %v14857_v29 = vld [vmem:[#allocation413_spill] sm:$0xff] }
 0x65e   : > { %14846 = vst [vmem:[#allocation202_spill] sm:$0xff] %v10997_v4  ;;  %v11010_v61 = vadd.f32 %v3233_v57, %v10469_v21  ;;  %v3244_v51 = vmul.f32 %v10524_v31, %v14850_v19  ;;  %14852 = vst [vmem:[#allocation205_spill] sm:$0xff] %v11016_v46  ;;  %v11019_v37 = vadd.f32 %v3240_v6, %v10543_v49  ;;  %v14856_v57 = vld [vmem:[#allocation322_spill] sm:$0xff]  ;;  %v6013_v6 = vld [vmem:[%s6334_s29 + $0x170] sm:$0xff] }
 0x65f   : > { %14849 = vst [vmem:[#allocation203_spill] sm:$0xff] %v11007_v42  ;;  %v3239_v25 = vmul.f32 %v10524_v31, %v14854_v13  ;;  %v3246_v35 = vmul.f32 %v10524_v31, %v14855_v2  ;;  %v11026_v63 = vrot.slane %v10521_v47, %v3748_v45  ;;  %v11029_v21 = vadd.f32 %v3235_v32, %v10478_v53  ;;  %v6012_v49 = vld [vmem:[%s6334_s29 + $0xf8] sm:$0xff]  ;;  %v14860_v32 = vld [vmem:[#allocation415_spill] sm:$0xff]  ;;  %v14863_v46 = vld [vmem:[#allocation416_spill] sm:$0xff] }
 0x660   : > { %14853 = vst [vmem:[#allocation206_spill] sm:$0xff] %v11019_v37  ;;  %v3241_v59 = vmul.f32 %v10524_v31, %v14856_v57  ;;  %v3248_v19 = vmul.f32 %v10524_v31, %v14857_v29  ;;  %5115 = vperm.xlu1 %5787, %v6012_v49   ;;  %5175 = vperm.xlu0 %5788, %v6013_v6   ;;  %v14859_v45 = vld [vmem:[#allocation414_spill] sm:$0xff]  ;;  %v14862_v49 = vld [vmem:[#allocation207_spill] sm:$0xff] }
 0x661   : > { %v11038_v13 = vadd.f32 %v3242_v7, %v10553_v11  ;;  %v11041_v2 = vadd.f32 %v3237_v15, %v10484_v44  ;;  %v3243_v53 = vmul.f32 %v10524_v31, %v14859_v45  ;;  %v3250_v57 = vmul.f32 %v10524_v31, %v14860_v32  ;;  %v14864_v7 = vld [vmem:[#allocation417_spill] sm:$0xff]  ;;  %v11056_v15 = vpop.permute.xlu1 %4691  ;;  %v11058_v62 = vpop.permute.xlu0 %4743  ;;  %v14867_v45 = vld [vmem:[#allocation71_spill] sm:$0xff] }
 0x662   : > { %v11048_v29 = vadd.f32 %v3244_v51, %v10563_v56  ;;  %v3245_v6 = vmul.f32 %v10524_v31, %v14862_v49  ;;  %v3252_v11 = vmul.f32 %v10524_v31, %v14863_v46  ;;  %v3247_v44 = vmul.f32 %v10524_v31, %v14864_v7  ;;  %14865 = vst [vmem:[#allocation585_spill] sm:$0xff] %v11056_v15  ;;  %v14869_v56 = vld [vmem:[#allocation418_spill] sm:$0xff]  ;;  %v14870_v49 = vld [vmem:[#allocation212_spill] sm:$0xff]  ;;  %v14874_v15 = vld [vmem:[#allocation419_spill] sm:$0xff] }
 0x663   : > { %14858 = vst [vmem:[#allocation208_spill] sm:$0xff] %v11038_v13  ;;  %14866 = vst [vmem:[#allocation210_spill] sm:$0xff] %v11058_v62  ;;  %v11061_v13 = vadd.f32 %v3239_v25, %v14867_v45  ;;  %v11064_v32 = vadd.f32 %v3246_v35, %v10573_v14  ;;  %v3254_v51 = vmul.f32 %v10524_v31, %v14869_v56  ;;  %v14871_v46 = vld [vmem:[#allocation74_spill] sm:$0xff]  ;;  %v14872_v7 = vld [vmem:[#allocation4_spill] sm:$0xff] }
 0x664   : > { %14861 = vst [vmem:[#allocation209_spill] sm:$0xff] %v11048_v29  ;;  %v3249_v29 = vmul.f32 %v10524_v31, %v14870_v49  ;;  %v11071_v37 = vadd.f32 %v3241_v59, %v14871_v46  ;;  %v11074_v42 = vadd.f32 %v3248_v19, %v14872_v7  ;;  %v3256_v62 = vmul.f32 %v10524_v31, %v14874_v15  ;;  %v6014_v25 = vld [vmem:[%s6334_s29 + $0x108] sm:$0xff]  ;;  %v6015_v45 = vld [vmem:[%s6334_s29 + $0x180] sm:$0xff]  ;;  %v14875_v14 = vld [vmem:[#allocation73_spill] sm:$0xff] }
 0x665   : > { %14868 = vst [vmem:[#allocation211_spill] sm:$0xff] %v11064_v32  ;;  %5123 = vperm.xlu1 %5787, %v6014_v25   ;;  %5183 = vperm.xlu0 %5788, %v6015_v45   ;;  %v11081_v35 = vadd.f32 %v3243_v53, %v14875_v14  ;;  %v14877_v56 = vld [vmem:[#allocation81_spill] sm:$0xff]  ;;  %v14879_v49 = vld [vmem:[#allocation420_spill] sm:$0xff]  ;;  %v14883_v25 = vld [vmem:[#allocation534_spill] sm:$0xff] }
 0x666   : > { %14873 = vst [vmem:[#allocation213_spill] sm:$0xff] %v11074_v42  ;;  %v11084_v32 = vadd.f32 %v3250_v57, %v14877_v56  ;;  %v3251_v59 = vmul.f32 %v10524_v31, %v14879_v49  ;;  %v14880_v46 = vld [vmem:[#allocation421_spill] sm:$0xff]  ;;  %v14881_v7 = vld [vmem:[#allocation76_spill] sm:$0xff]  ;;  %v11094_v42 = vadd.f32 %v3252_v11, %v14883_v25  ;;  %v14885_v45 = vld [vmem:[#allocation3_spill] sm:$0xff]  ;;  %v11101_v56 = vpop.permute.xlu1 %4699  ;;  %v11106_v49 = vadd.f32 %v3254_v51, %v10627_v54 }
 0x667   : > { %14876 = vst [vmem:[#allocation214_spill] sm:$0xff] %v11081_v35  ;;  %v3258_v19 = vmul.f32 %v10524_v31, %v14880_v46  ;;  %v11091_v15 = vadd.f32 %v3245_v6, %v14881_v7  ;;  %v11097_v53 = vadd.f32 %v3247_v44, %v14885_v45  ;;  %v14887_v14 = vld [vmem:[#allocation422_spill] sm:$0xff]  ;;  %14888 = vst [vmem:[#allocation219_spill] sm:$0xff] %v11101_v56  ;;  %v14893_v6 = vld [vmem:[#allocation423_spill] sm:$0xff] }
 0x668   : > { %14878 = vst [vmem:[#allocation215_spill] sm:$0xff] %v11084_v32  ;;  %14884 = vst [vmem:[#allocation217_spill] sm:$0xff] %v11094_v42  ;;  %v3253_v57 = vmul.f32 %v10524_v31, %v14887_v14  ;;  %v11103_v32 = vpop.permute.xlu0 %4751  ;;  %v14891_v46 = vld [vmem:[#allocation6_spill] sm:$0xff]  ;;  %v3260_v11 = vmul.f32 %v10524_v31, %v14893_v6  ;;  %v14894_v7 = vld [vmem:[#allocation424_spill] sm:$0xff] }
 0x669   : > { %14882 = vst [vmem:[#allocation216_spill] sm:$0xff] %v11091_v15  ;;  %14886 = vst [vmem:[#allocation218_spill] sm:$0xff] %v11097_v53  ;;  %v11109_v4 = vadd.f32 %v3249_v29, %v14891_v46  ;;  %v3255_v44 = vmul.f32 %v10524_v31, %v14894_v7  ;;  %v14895_v25 = vld [vmem:[#allocation10_spill] sm:$0xff]  ;;  %v14897_v14 = vld [vmem:[#allocation425_spill] sm:$0xff] }
 0x66a   : > { %14889 = vst [vmem:[#allocation220_spill] sm:$0xff] %v11103_v32  ;;  %14890 = vst [vmem:[#allocation221_spill] sm:$0xff] %v11106_v49  ;;  %v11116_v45 = vadd.f32 %v3256_v62, %v14895_v25  ;;  %v3262_v56 = vmul.f32 %v10524_v31, %v14897_v14  ;;  %v14898_v42 = vld [vmem:[#allocation426_spill] sm:$0xff]  ;;  %v6017_v51 = vld [vmem:[%s6334_s29 + $0x190] sm:$0xff] }
 0x66b   : > { %14892 = vst [vmem:[#allocation222_spill] sm:$0xff] %v11109_v4  ;;  %v3257_v32 = vmul.f32 %v10524_v31, %v14898_v42  ;;  %v6016_v54 = vld [vmem:[%s6334_s29 + $0x118] sm:$0xff]  ;;  %5191 = vperm.xlu0 %5788, %v6017_v51   ;;  %v14899_v29 = vld [vmem:[#allocation75_spill] sm:$0xff]  ;;  %v14901_v6 = vld [vmem:[#allocation85_spill] sm:$0xff] }
 0x66c   : > { %14896 = vst [vmem:[#allocation223_spill] sm:$0xff] %v11116_v45  ;;  %5131 = vperm.xlu1 %5787, %v6016_v54   ;;  %v11125_v46 = vadd.f32 %v3251_v59, %v14899_v29  ;;  %v11128_v49 = vadd.f32 %v3258_v19, %v14901_v6  ;;  %v14903_v7 = vld [vmem:[#allocation427_spill] sm:$0xff]  ;;  %v14904_v25 = vld [vmem:[#allocation428_spill] sm:$0xff]  ;;  %v14905_v45 = vld [vmem:[#allocation82_spill] sm:$0xff]  ;;  %v11143_v6 = vpop.permute.xlu1 %4707 }
 0x66d   : > { %v3264_v62 = vmul.f32 %v10524_v31, %v14903_v7  ;;  %v3259_v14 = vmul.f32 %v10524_v31, %v14904_v25  ;;  %v11135_v42 = vadd.f32 %v3253_v57, %v14905_v45  ;;  %v14907_v54 = vld [vmem:[#allocation429_spill] sm:$0xff]  ;;  %v14908_v4 = vld [vmem:[#allocation430_spill] sm:$0xff]  ;;  %v14909_v29 = vld [vmem:[#allocation431_spill] sm:$0xff]  ;;  %14910 = vst [vmem:[#allocation226_spill] sm:$0xff] %v11143_v6 }
 0x66e   : > { %14900 = vst [vmem:[#allocation224_spill] sm:$0xff] %v11125_v46  ;;  %14902 = vst [vmem:[#allocation109_spill] sm:$0xff] %v11128_v49  ;;  %v3266_v51 = vmul.f32 %v10524_v31, %v14907_v54  ;;  %v3261_v59 = vmul.f32 %v10524_v31, %v14908_v4  ;;  %v3268_v19 = vmul.f32 %v10524_v31, %v14909_v29  ;;  %v11145_v49 = vpop.permute.xlu0 %4759  ;;  %v14912_v7 = vld [vmem:[#allocation12_spill] sm:$0xff]  ;;  %v14916_v54 = vld [vmem:[#allocation433_spill] sm:$0xff] }
 0x66f   : > { %14906 = vst [vmem:[#allocation225_spill] sm:$0xff] %v11135_v42  ;;  %14911 = vst [vmem:[#allocation108_spill] sm:$0xff] %v11145_v49  ;;  %v11148_v46 = vadd.f32 %v3260_v11, %v14912_v7  ;;  %v14914_v25 = vld [vmem:[#allocation8_spill] sm:$0xff]  ;;  %v3270_v42 = vmul.f32 %v10524_v31, %v14916_v54  ;;  %v14917_v4 = vld [vmem:[#allocation9_spill] sm:$0xff] }
 0x670   : > { %v11151_v53 = vadd.f32 %v3255_v44, %v14914_v25  ;;  %v14915_v57 = vld [vmem:[#allocation432_spill] sm:$0xff]  ;;  %v11158_v15 = vadd.f32 %v3262_v56, %v14917_v4  ;;  %v14919_v29 = vld [vmem:[#allocation570_spill] sm:$0xff]  ;;  %v6019_v7 = vld [vmem:[%s6334_s29 + $0x1a0] sm:$0xff] }
 0x671   : > { %14913 = vst [vmem:[#allocation110_spill] sm:$0xff] %v11148_v46  ;;  %v3263_v45 = vmul.f32 %v10524_v31, %v14915_v57  ;;  %v11161_v35 = vadd.f32 %v3257_v32, %v14919_v29  ;;  %v14920_v6 = vld [vmem:[#allocation434_spill] sm:$0xff]  ;;  %v6018_v11 = vld [vmem:[%s6334_s29 + $0x128] sm:$0xff]  ;;  %5199 = vperm.xlu0 %5788, %v6019_v7   ;;  %v14923_v57 = vld [vmem:[#allocation5_spill] sm:$0xff] }
 0x672   : > { %14918 = vst [vmem:[#allocation227_spill] sm:$0xff] %v11158_v15  ;;  %v3265_v49 = vmul.f32 %v10524_v31, %v14920_v6  ;;  %5139 = vperm.xlu1 %5787, %v6018_v11   ;;  %v14921_v44 = vld [vmem:[#allocation16_spill] sm:$0xff]  ;;  %v11171_v46 = vadd.f32 %v3259_v14, %v14923_v57  ;;  %v14925_v54 = vld [vmem:[#allocation435_spill] sm:$0xff]  ;;  %v14927_v29 = vld [vmem:[#allocation537_spill] sm:$0xff]  ;;  %v11188_v57 = vpop.permute.xlu1 %4715 }
 0x673   : > { %v11168_v25 = vadd.f32 %v3264_v62, %v14921_v44  ;;  %v3272_v56 = vmul.f32 %v10524_v31, %v14925_v54  ;;  %v14926_v4 = vld [vmem:[#allocation436_spill] sm:$0xff]  ;;  %v11178_v6 = vadd.f32 %v3266_v51, %v14927_v29  ;;  %v14929_v11 = vld [vmem:[#allocation86_spill] sm:$0xff]  ;;  %v14932_v44 = vld [vmem:[#allocation437_spill] sm:$0xff]  ;;  %14933 = vst [vmem:[#allocation116_spill] sm:$0xff] %v11188_v57 }
 0x674   : > { %14924 = vst [vmem:[#allocation112_spill] sm:$0xff] %v11171_v46  ;;  %v3267_v32 = vmul.f32 %v10524_v31, %v14926_v4  ;;  %v11181_v15 = vadd.f32 %v3261_v59, %v14929_v11  ;;  %v14930_v7 = vld [vmem:[#allocation90_spill] sm:$0xff]  ;;  %v3274_v14 = vmul.f32 %v10524_v31, %v14932_v44  ;;  %v14935_v54 = vld [vmem:[#allocation7_spill] sm:$0xff]  ;;  %v11196_v4 = vadd.f32 %v3270_v42, %v10717_v17  ;;  %v14940_v11 = vld [vmem:[#allocation88_spill] sm:$0xff] }
 0x675   : > { %14922 = vst [vmem:[#allocation113_spill] sm:$0xff] %v11168_v25  ;;  %14928 = vst [vmem:[#allocation228_spill] sm:$0xff] %v11178_v6  ;;  %v11184_v62 = vadd.f32 %v3268_v19, %v14930_v7  ;;  %v11190_v25 = vpop.permute.xlu0 %4767  ;;  %v11193_v46 = vadd.f32 %v3263_v45, %v14935_v54  ;;  %v14938_v51 = vld [vmem:[#allocation438_spill] sm:$0xff]  ;;  %v14939_v29 = vld [vmem:[#allocation439_spill] sm:$0xff]  ;;  %v11203_v7 = vadd.f32 %v3265_v49, %v14940_v11 }
 0x676   : > { %14934 = vst [vmem:[#allocation114_spill] sm:$0xff] %v11190_v25  ;;  %14937 = vst [vmem:[#allocation230_spill] sm:$0xff] %v11196_v4  ;;  %v3269_v59 = vmul.f32 %v10524_v31, %v14938_v51  ;;  %v3276_v19 = vmul.f32 %v10524_v31, %v14939_v29  ;;  %v14942_v44 = vld [vmem:[#allocation440_spill] sm:$0xff]  ;;  %v6020_v45 = vld [vmem:[%s6334_s29 + $0x138] sm:$0xff] }
 0x677   : > { %14931 = vst [vmem:[#allocation229_spill] sm:$0xff] %v11184_v62  ;;  %14936 = vst [vmem:[#allocation118_spill] sm:$0xff] %v11193_v46  ;;  %v3271_v57 = vmul.f32 %v10524_v31, %v14942_v44  ;;  %v14943_v62 = vld [vmem:[#allocation441_spill] sm:$0xff]  ;;  %5147 = vperm.xlu1 %5787, %v6020_v45   ;;  %v14944_v17 = vld [vmem:[#allocation91_spill] sm:$0xff] }
 0x678   : > { %14941 = vst [vmem:[#allocation117_spill] sm:$0xff] %v11203_v7  ;;  %v3278_v25 = vmul.f32 %v10524_v31, %v14943_v62  ;;  %v6021_v54 = vld [vmem:[%s6334_s29 + $0x1b0] sm:$0xff]  ;;  %v11212_v42 = vadd.f32 %v3272_v56, %v14944_v17  ;;  %v14946_v51 = vld [vmem:[#allocation87_spill] sm:$0xff]  ;;  %v14948_v29 = vld [vmem:[#allocation442_spill] sm:$0xff] }
 0x679   : > { %5207 = vperm.xlu0 %5788, %v6021_v54   ;;  %v11215_v4 = vadd.f32 %v3267_v32, %v14946_v51  ;;  %v3273_v49 = vmul.f32 %v10524_v31, %v14948_v29  ;;  %v14949_v11 = vld [vmem:[#allocation443_spill] sm:$0xff]  ;;  %v14950_v6 = vld [vmem:[#allocation17_spill] sm:$0xff]  ;;  %v14952_v45 = vld [vmem:[#allocation444_spill] sm:$0xff]  ;;  %v11230_v51 = vpop.permute.xlu1 %4723 }
 0x67a   : > { %14945 = vst [vmem:[#allocation127_spill] sm:$0xff] %v11212_v42  ;;  %v3280_v44 = vmul.f32 %v10524_v31, %v14949_v11  ;;  %v11222_v62 = vadd.f32 %v3274_v14, %v14950_v6  ;;  %v3275_v54 = vmul.f32 %v10524_v31, %v14952_v45  ;;  %v14953_v7 = vld [vmem:[#allocation445_spill] sm:$0xff]  ;;  %v14954_v17 = vld [vmem:[#allocation446_spill] sm:$0xff]  ;;  %14955 = vst [vmem:[#allocation126_spill] sm:$0xff] %v11230_v51  ;;  %v11232_v42 = vpop.permute.xlu0 %4775 }
 0x67b   : > { %14947 = vst [vmem:[#allocation231_spill] sm:$0xff] %v11215_v4  ;;  %v3282_v56 = vmul.f32 %v10524_v31, %v14953_v7  ;;  %v3277_v32 = vmul.f32 %v10524_v31, %v14954_v17  ;;  %14956 = vst [vmem:[#allocation233_spill] sm:$0xff] %v11232_v42  ;;  %v14957_v29 = vld [vmem:[#allocation13_spill] sm:$0xff]  ;;  %v11238_v11 = vadd.f32 %v3276_v19, %v10747_v43  ;;  %v14959_v6 = vld [vmem:[#allocation447_spill] sm:$0xff] }
 0x67c   : > { %14951 = vst [vmem:[#allocation232_spill] sm:$0xff] %v11222_v62  ;;  %v11235_v4 = vadd.f32 %v3269_v59, %v14957_v29  ;;  %v3284_v14 = vmul.f32 %v10524_v31, %v14959_v6  ;;  %v14960_v45 = vld [vmem:[#allocation448_spill] sm:$0xff]  ;;  %v14961_v7 = vld [vmem:[#allocation573_spill] sm:$0xff]  ;;  %v11248_v17 = vadd.f32 %v3278_v25, %v10759_v52  ;;  %v6023_v29 = vld [vmem:[%s6334_s29 + $0x1c0] sm:$0xff]  ;;  %v11258_v6 = vadd.f32 %v3280_v44, %v10769_v20 }
 0x67d   : > { %14958 = vst [vmem:[#allocation234_spill] sm:$0xff] %v11238_v11  ;;  %v3279_v62 = vmul.f32 %v10524_v31, %v14960_v45  ;;  %v11245_v46 = vadd.f32 %v3271_v57, %v14961_v7  ;;  %v14963_v51 = vld [vmem:[#allocation449_spill] sm:$0xff]  ;;  %v6022_v59 = vld [vmem:[%s6334_s29 + $0x148] sm:$0xff]  ;;  %5215 = vperm.xlu0 %5788, %v6023_v29   ;;  %v14964_v43 = vld [vmem:[#allocation15_spill] sm:$0xff]  ;;  %v11275_v44 = vpop.permute.xlu1 %4731 }
 0x67e   : > { %14962 = vst [vmem:[#allocation235_spill] sm:$0xff] %v11248_v17  ;;  %v3286_v42 = vmul.f32 %v10524_v31, %v14963_v51  ;;  %5155 = vperm.xlu1 %5787, %v6022_v59   ;;  %v11255_v19 = vadd.f32 %v3273_v49, %v14964_v43  ;;  %14965 = vst [vmem:[#allocation128_spill] sm:$0xff] %v11258_v6  ;;  %v14966_v45 = vld [vmem:[#allocation450_spill] sm:$0xff]  ;;  %v14967_v7 = vld [vmem:[#allocation451_spill] sm:$0xff]  ;;  %v11277_v6 = vpop.permute.xlu0 %4783 }
 0x67f   : > { %v3281_v57 = vmul.f32 %v10524_v31, %v14966_v45  ;;  %v3288_v52 = vmul.f32 %v10524_v31, %v14967_v7  ;;  %v14968_v25 = vld [vmem:[#allocation94_spill] sm:$0xff]  ;;  %v14972_v43 = vld [vmem:[#allocation452_spill] sm:$0xff]  ;;  %14973 = vst [vmem:[#allocation236_spill] sm:$0xff] %v11275_v44  ;;  %14974 = vst [vmem:[#allocation237_spill] sm:$0xff] %v11277_v6  ;;  %v11280_v45 = vadd.f32 %v3284_v14, %v10801_v24 }
 0x680   : > { %v11265_v51 = vadd.f32 %v3275_v54, %v14968_v25  ;;  %v14969_v59 = vld [vmem:[#allocation30_spill] sm:$0xff]  ;;  %v3283_v20 = vmul.f32 %v10524_v31, %v14972_v43  ;;  %v14977_v54 = vld [vmem:[#allocation453_spill] sm:$0xff]  ;;  %v14981_v44 = vld [vmem:[#allocation456_spill] sm:$0xff] }
 0x681   : > { %v11268_v17 = vadd.f32 %v3282_v56, %v14969_v59  ;;  %v14971_v29 = vld [vmem:[#allocation22_spill] sm:$0xff]  ;;  %14975 = vst [vmem:[#allocation122_spill] sm:$0xff] %v11280_v45  ;;  %v3290_v56 = vmul.f32 %v10524_v31, %v14977_v54  ;;  %v11290_v59 = vadd.f32 %v3286_v42, %v10811_v3  ;;  %v3287_v6 = vmul.f32 %v10524_v31, %v14981_v44  ;;  %v6025_v14 = vld [vmem:[%s6334_s29 + $0x1d0] sm:$0xff]  ;;  %v14990_v45 = vld [vmem:[#allocation460_spill] sm:$0xff] }
 0x682   : > { %v11271_v49 = vadd.f32 %v3277_v32, %v14971_v29  ;;  %v14976_v7 = vld [vmem:[#allocation26_spill] sm:$0xff]  ;;  %v14980_v29 = vld [vmem:[#allocation455_spill] sm:$0xff]  ;;  %5223 = vperm.xlu0 %5788, %v6025_v14   ;;  %v11302_v54 = vadd.f32 %v3288_v52, %v10821_v27  ;;  %v11317_v52 = vpop.permute.xlu1 %4739 }
 0x683   : > { %14970 = vst [vmem:[#allocation119_spill] sm:$0xff] %v11268_v17  ;;  %v11283_v11 = vadd.f32 %v3279_v62, %v14976_v7  ;;  %v14978_v25 = vld [vmem:[#allocation454_spill] sm:$0xff]  ;;  %14979 = vst [vmem:[#allocation238_spill] sm:$0xff] %v11290_v59  ;;  %v3292_v43 = vmul.f32 %v10524_v31, %v14980_v29  ;;  %v14982_v62 = vld [vmem:[#allocation95_spill] sm:$0xff] }
 0x684   : > { %v3285_v32 = vmul.f32 %v10524_v31, %v14978_v25  ;;  %v6024_v24 = vld [vmem:[%s6334_s29 + $0x158] sm:$0xff]  ;;  %v11299_v7 = vadd.f32 %v3281_v57, %v14982_v62  ;;  %14984 = vst [vmem:[#allocation240_spill] sm:$0xff] %v11302_v54  ;;  %v14985_v25 = vld [vmem:[#allocation457_spill] sm:$0xff]  ;;  %v14987_v59 = vld [vmem:[#allocation576_spill] sm:$0xff]  ;;  %v3291_v57 = vmul.f32 %v10524_v31, %v14990_v45  ;;  %v11319_v54 = vpop.permute.xlu0 %4791 }
 0x685   : > { %5163 = vperm.xlu1 %5787, %v6024_v24   ;;  %v3294_v3 = vmul.f32 %v10524_v31, %v14985_v25  ;;  %v14986_v42 = vld [vmem:[#allocation458_spill] sm:$0xff]  ;;  %v11309_v44 = vadd.f32 %v3283_v20, %v14987_v59  ;;  %v14989_v24 = vld [vmem:[#allocation459_spill] sm:$0xff]  ;;  %v14991_v62 = vld [vmem:[#allocation461_spill] sm:$0xff]  ;;  %14992 = vst [vmem:[#allocation130_spill] sm:$0xff] %v11317_v52  ;;  %v11322_v25 = vadd.f32 %v3290_v56, %v10831_v16 }
 0x686   : > { %14983 = vst [vmem:[#allocation239_spill] sm:$0xff] %v11299_v7  ;;  %v3289_v29 = vmul.f32 %v10524_v31, %v14986_v42  ;;  %v3296_v14 = vmul.f32 %v10524_v31, %v14989_v24  ;;  %v3298_v27 = vmul.f32 %v10524_v31, %v14991_v62  ;;  %14993 = vst [vmem:[#allocation241_spill] sm:$0xff] %v11319_v54  ;;  %v14995_v42 = vld [vmem:[#allocation96_spill] sm:$0xff]  ;;  %v14996_v20 = vld [vmem:[#allocation257_spill] sm:$0xff] }
 0x687   : > { %14988 = vst [vmem:[#allocation121_spill] sm:$0xff] %v11309_v44  ;;  %14994 = vst [vmem:[#allocation242_spill] sm:$0xff] %v11322_v25  ;;  %v11325_v17 = vadd.f32 %v3285_v32, %v14995_v42  ;;  %v3293_v59 = vmul.f32 %v10524_v31, %v14996_v20  ;;  %v14997_v24 = vld [vmem:[#allocation266_spill] sm:$0xff]  ;;  %v11332_v45 = vadd.f32 %v3292_v43, %v10837_v60  ;;  %v14999_v62 = vld [vmem:[#allocation25_spill] sm:$0xff] }
 0x688   : > { %v3300_v44 = vmul.f32 %v10524_v31, %v14997_v24  ;;  %v11335_v7 = vadd.f32 %v3287_v6, %v14999_v62  ;;  %v15000_v52 = vld [vmem:[#allocation261_spill] sm:$0xff]  ;;  %v6026_v16 = vld [vmem:[%s6334_s29 + $0x168] sm:$0xff]  ;;  %v6027_v56 = vld [vmem:[%s6334_s29 + $0x1e0] sm:$0xff]  ;;  %v11342_v32 = vadd.f32 %v3294_v3, %v10849_v9  ;;  %v11345_v42 = vadd.f32 %v3289_v29, %v10804_v1  ;;  %v11362_v29 = vpop.permute.xlu1 %4747 }
 0x689   : > { %14998 = vst [vmem:[#allocation123_spill] sm:$0xff] %v11332_v45  ;;  %v3295_v54 = vmul.f32 %v10524_v31, %v15000_v52  ;;  %5171 = vperm.xlu1 %5787, %v6026_v16   ;;  %5231 = vperm.xlu0 %5788, %v6027_v56   ;;  %v15002_v20 = vld [vmem:[#allocation270_spill] sm:$0xff]  ;;  %v15003_v43 = vld [vmem:[#allocation265_spill] sm:$0xff]  ;;  %v11352_v52 = vadd.f32 %v3296_v14, %v10865_v38  ;;  %15008 = vst [vmem:[#allocation133_spill] sm:$0xff] %v11362_v29  ;;  %v11364_v16 = vpop.permute.xlu0 %4799 }
 0x68a   : > { %15001 = vst [vmem:[#allocation131_spill] sm:$0xff] %v11342_v32  ;;  %v3302_v60 = vmul.f32 %v10524_v31, %v15002_v20  ;;  %v3297_v6 = vmul.f32 %v10524_v31, %v15003_v43  ;;  %v15005_v24 = vld [vmem:[#allocation29_spill] sm:$0xff]  ;;  %v11358_v9 = vadd.f32 %v3298_v27, %v10875_v8  ;;  %v15007_v3 = vld [vmem:[#allocation274_spill] sm:$0xff]  ;;  %15009 = vst [vmem:[#allocation132_spill] sm:$0xff] %v11364_v16 }
 0x68b   : > { %15004 = vst [vmem:[#allocation124_spill] sm:$0xff] %v11352_v52  ;;  %v11355_v62 = vadd.f32 %v3291_v57, %v15005_v24  ;;  %v3304_v1 = vmul.f32 %v10524_v31, %v15007_v3  ;;  %v15010_v56 = vld [vmem:[#allocation38_spill] sm:$0xff]  ;;  %v11370_v43 = vadd.f32 %v3300_v44, %v10891_v22  ;;  %v15012_v38 = vld [vmem:[#allocation269_spill] sm:$0xff]  ;;  %v11377_v27 = vadd.f32 %v3295_v54, %v10834_v28  ;;  %v15058_v52 = vld [vmem:[#allocation200_spill] sm:$0xff] }
 0x68c   : > { %15006 = vst [vmem:[#allocation243_spill] sm:$0xff] %v11358_v9  ;;  %v11367_v20 = vadd.f32 %v3293_v59, %v15010_v56  ;;  %v3299_v14 = vmul.f32 %v10524_v31, %v15012_v38  ;;  %v15013_v57 = vld [vmem:[#allocation278_spill] sm:$0xff]  ;;  %v15014_v24 = vld [vmem:[#allocation273_spill] sm:$0xff]  ;;  %v11386_v22 = vadd.f32 %v3302_v60, %v10901_v0 }
 0x68d   : > { %15011 = vst [vmem:[#allocation244_spill] sm:$0xff] %v11370_v43  ;;  %v3750_v8 = vmul.f32 %v11026_v63, %v15013_v57  ;;  %v3301_v3 = vmul.f32 %v10524_v31, %v15014_v24  ;;  %v15015_v29 = vld [vmem:[#allocation282_spill] sm:$0xff]  ;;  %v6029_v56 = vld [vmem:[%s6334_s29 + $0x1f0] sm:$0xff] }
 0x68e   : > { %v3753_v16 = vmul.f32 %v11026_v63, %v15015_v29  ;;  %v6028_v59 = vld [vmem:[%s6334_s29 + $0x178] sm:$0xff]  ;;  %5239 = vperm.xlu0 %5788, %v6029_v56   ;;  %15016 = vst [vmem:[#allocation245_spill] sm:$0xff] %v11386_v22  ;;  %v15017_v44 = vld [vmem:[#allocation37_spill] sm:$0xff]  ;;  %v11396_v29 = vadd.f32 %v3304_v1, %v10911_v18  ;;  %v11406_v22 = vpop.permute.xlu0 %4807 }
 0x68f   : > { %5179 = vperm.xlu1 %5787, %v6028_v59   ;;  %v11389_v38 = vadd.f32 %v3297_v6, %v15017_v44  ;;  %v15019_v57 = vld [vmem:[#allocation277_spill] sm:$0xff]  ;;  %v15020_v54 = vld [vmem:[#allocation286_spill] sm:$0xff]  ;;  %v11404_v44 = vpop.permute.xlu1 %4755  ;;  %15026 = vst [vmem:[#allocation246_spill] sm:$0xff] %v11406_v22 }
 0x690   : > { %v3303_v28 = vmul.f32 %v10524_v31, %v15019_v57  ;;  %v3755_v24 = vmul.f32 %v11026_v63, %v15020_v54  ;;  %15021 = vst [vmem:[#allocation135_spill] sm:$0xff] %v11396_v29  ;;  %v15022_v59 = vld [vmem:[#allocation281_spill] sm:$0xff]  ;;  %v15023_v43 = vld [vmem:[#allocation290_spill] sm:$0xff]  ;;  %15025 = vst [vmem:[#allocation138_spill] sm:$0xff] %v11404_v44  ;;  %v11412_v54 = vadd.f32 %v3750_v8, %v10921_v33 }
 0x691   : > { %15018 = vst [vmem:[#allocation136_spill] sm:$0xff] %v11389_v38  ;;  %v3305_v56 = vmul.f32 %v10524_v31, %v15022_v59  ;;  %v3757_v0 = vmul.f32 %v11026_v63, %v15023_v43  ;;  %v15024_v60 = vld [vmem:[#allocation285_spill] sm:$0xff]  ;;  %v15027_v57 = vld [vmem:[#allocation46_spill] sm:$0xff]  ;;  %v15031_v43 = vld [vmem:[#allocation543_spill] sm:$0xff] }
 0x692   : > { %v3751_v6 = vmul.f32 %v11026_v63, %v15024_v60  ;;  %v11409_v9 = vadd.f32 %v3299_v14, %v15027_v57  ;;  %v15029_v18 = vld [vmem:[#allocation294_spill] sm:$0xff]  ;;  %v15030_v31 = vld [vmem:[#allocation289_spill] sm:$0xff]  ;;  %v11419_v29 = vadd.f32 %v3301_v3, %v15031_v43  ;;  %v11422_v60 = vadd.f32 %v3753_v16, %v10943_v48  ;;  %v6030_v14 = vld [vmem:[%s6334_s29 + $0x188] sm:$0xff] }
 0x693   : > { %v3759_v1 = vmul.f32 %v11026_v63, %v15029_v18  ;;  %v3752_v59 = vmul.f32 %v11026_v63, %v15030_v31  ;;  %v15033_v44 = vld [vmem:[#allocation462_spill] sm:$0xff]  ;;  %5187 = vperm.xlu1 %5787, %v6030_v14   ;;  %v6031_v57 = vld [vmem:[%s6334_s29 + $0x200] sm:$0xff]  ;;  %v11429_v33 = vadd.f32 %v3303_v28, %v10888_v5  ;;  %v11432_v8 = vadd.f32 %v3755_v24, %v10955_v50  ;;  %v15035_v18 = vld [vmem:[#allocation293_spill] sm:$0xff]  ;;  %v11449_v24 = vpop.permute.xlu1 %4763 }
 0x694   : > { %15028 = vst [vmem:[#allocation137_spill] sm:$0xff] %v11409_v9  ;;  %15032 = vst [vmem:[#allocation140_spill] sm:$0xff] %v11419_v29  ;;  %v3761_v22 = vmul.f32 %v11026_v63, %v15033_v44  ;;  %5247 = vperm.xlu0 %5788, %v6031_v57   ;;  %v3754_v3 = vmul.f32 %v11026_v63, %v15035_v18  ;;  %v15036_v31 = vld [vmem:[#allocation463_spill] sm:$0xff]  ;;  %v11439_v16 = vadd.f32 %v3305_v56, %v10898_v58  ;;  %v15038_v28 = vld [vmem:[#allocation297_spill] sm:$0xff] }
 0x695   : > { %15034 = vst [vmem:[#allocation247_spill] sm:$0xff] %v11429_v33  ;;  %v3763_v48 = vmul.f32 %v11026_v63, %v15036_v31  ;;  %v11442_v44 = vadd.f32 %v3757_v0, %v10975_v34  ;;  %v11445_v5 = vadd.f32 %v3751_v6, %v10908_v30  ;;  %v3756_v50 = vmul.f32 %v11026_v63, %v15038_v28  ;;  %v15041_v57 = vld [vmem:[#allocation464_spill] sm:$0xff]  ;;  %v15042_v56 = vld [vmem:[#allocation301_spill] sm:$0xff]  ;;  %v11461_v0 = vpop.permute.xlu0 %4995  ;;  %v15080_v29 = vld [vmem:[#allocation475_spill] sm:$0xff] }
 0x696   : > { %15037 = vst [vmem:[#allocation248_spill] sm:$0xff] %v11439_v16  ;;  %15039 = vst [vmem:[#allocation139_spill] sm:$0xff] %v11449_v24  ;;  %v11452_v43 = vadd.f32 %v3759_v1, %v10984_v40  ;;  %v11455_v14 = vadd.f32 %v3752_v59, %v10933_v41  ;;  %v3765_v58 = vmul.f32 %v11026_v63, %v15041_v57  ;;  %v15045_v6 = vld [vmem:[#allocation465_spill] sm:$0xff]  ;;  %v6032_v1 = vld [vmem:[%s6334_s29 + $0x198] sm:$0xff] }
 0x697   : > { %v3758_v34 = vmul.f32 %v11026_v63, %v15042_v56  ;;  %15043 = vst [vmem:[#allocation250_spill] sm:$0xff] %v11461_v0  ;;  %v11464_v30 = vadd.f32 %v3761_v22, %v10994_v36  ;;  %v3767_v18 = vmul.f32 %v11026_v63, %v15045_v6  ;;  %v15046_v31 = vld [vmem:[#allocation305_spill] sm:$0xff]  ;;  %5195 = vperm.xlu1 %5787, %v6032_v1   ;;  %v15048_v57 = vld [vmem:[#allocation314_spill] sm:$0xff]  ;;  %v15055_v16 = vld [vmem:[#allocation199_spill] sm:$0xff] }
 0x698   : > { %15040 = vst [vmem:[#allocation249_spill] sm:$0xff] %v11452_v43  ;;  %v3760_v40 = vmul.f32 %v11026_v63, %v15046_v31  ;;  %v6033_v41 = vld [vmem:[%s6334_s29 + $0x210] sm:$0xff]  ;;  %v11473_v59 = vadd.f32 %v3754_v3, %v10918_v39  ;;  %v11476_v28 = vadd.f32 %v3763_v48, %v11004_v26  ;;  %v3769_v36 = vmul.f32 %v11026_v63, %v15048_v57  ;;  %v15050_v31 = vld [vmem:[#allocation466_spill] sm:$0xff]  ;;  %v15052_v3 = vld [vmem:[#allocation467_spill] sm:$0xff]  ;;  %v11491_v48 = vpop.permute.xlu1 %4771 }
 0x699   : > { %15044 = vst [vmem:[#allocation251_spill] sm:$0xff] %v11464_v30  ;;  %5255 = vperm.xlu0 %5788, %v6033_v41   ;;  %v15049_v22 = vld [vmem:[#allocation309_spill] sm:$0xff]  ;;  %v11483_v6 = vadd.f32 %v3756_v50, %v10924_v23  ;;  %v3771_v1 = vmul.f32 %v11026_v63, %v15050_v31  ;;  %v3773_v26 = vmul.f32 %v11026_v63, %v15052_v3  ;;  %15053 = vst [vmem:[#allocation142_spill] sm:$0xff] %v11491_v48  ;;  %v11502_v31 = vpop.permute.xlu0 %5007  ;;  %v15059_v48 = vld [vmem:[#allocation468_spill] sm:$0xff] }
 0x69a   : > { %15047 = vst [vmem:[#allocation50_spill] sm:$0xff] %v11476_v28  ;;  %v3762_v56 = vmul.f32 %v11026_v63, %v15049_v22  ;;  %v15051_v41 = vld [vmem:[#allocation313_spill] sm:$0xff]  ;;  %v11494_v57 = vadd.f32 %v3765_v58, %v11010_v61  ;;  %v11497_v22 = vadd.f32 %v3758_v34, %v15055_v16  ;;  %v4280_v50 = vsub.s32 6, %v8924_v55  ;;  %v6034_v58 = vld [vmem:[%s6334_s29 + $0x1a8] sm:$0xff]  ;;  %v6035_v16 = vld [vmem:[%s6334_s29 + $0x220] sm:$0xff] }
 0x69b   : > { %v3764_v39 = vmul.f32 %v11026_v63, %v15051_v41  ;;  %v15056_v24 = vld [vmem:[#allocation317_spill] sm:$0xff]  ;;  %v11505_v41 = vadd.f32 %v3767_v18, %v11029_v21  ;;  %v11508_v3 = vadd.f32 %v3760_v40, %v15058_v52  ;;  %v3775_v61 = vmul.f32 %v11026_v63, %v15059_v48  ;;  %5203 = vperm.xlu1 %5787, %v6034_v58   ;;  %v15085_v45 = vld [vmem:[#allocation206_spill] sm:$0xff]  ;;  %v15095_v43 = vld [vmem:[#allocation480_spill] sm:$0xff] }
 0x69c   : > { %15054 = vst [vmem:[#allocation252_spill] sm:$0xff] %v11494_v57  ;;  %v3766_v23 = vmul.f32 %v11026_v63, %v15056_v24  ;;  %v11515_v34 = vadd.f32 %v3769_v36, %v11041_v2  ;;  %v15061_v24 = vld [vmem:[#allocation201_spill] sm:$0xff]  ;;  %v11525_v40 = vadd.f32 %v3771_v1, %v11061_v13  ;;  %v11531_v2 = vadd.f32 %v3773_v26, %v11071_v37  ;;  %v11535_v58 = vpop.permute.xlu1 %4779  ;;  %v15069_v37 = vld [vmem:[#allocation214_spill] sm:$0xff]  ;;  %v15071_v26 = vld [vmem:[#allocation471_spill] sm:$0xff] }
 0x69d   : > { %15057 = vst [vmem:[#allocation253_spill] sm:$0xff] %v11505_v41  ;;  %5263 = vperm.xlu0 %5788, %v6035_v16   ;;  %v11518_v33 = vadd.f32 %v3762_v56, %v15061_v24  ;;  %v15062_v32 = vld [vmem:[#allocation321_spill] sm:$0xff]  ;;  %v11528_v48 = vadd.f32 %v3764_v39, %v10978_v10  ;;  %15066 = vst [vmem:[#allocation255_spill] sm:$0xff] %v11535_v58  ;;  %v15067_v16 = vld [vmem:[#allocation470_spill] sm:$0xff]  ;;  %v11545_v10 = vrot.slane %v10521_v47, %v4280_v50  ;;  %v11547_v1 = vpop.permute.xlu0 %5015 }
 0x69e   : > { %15060 = vst [vmem:[#allocation54_spill] sm:$0xff] %v11515_v34  ;;  %v3768_v21 = vmul.f32 %v11026_v63, %v15062_v32  ;;  %v15063_v18 = vld [vmem:[#allocation469_spill] sm:$0xff]  ;;  %15064 = vst [vmem:[#allocation254_spill] sm:$0xff] %v11525_v40  ;;  %v11538_v32 = vadd.f32 %v3766_v23, %v10987_v12  ;;  %v3779_v24 = vmul.f32 %v11026_v63, %v15067_v16  ;;  %v15072_v58 = vld [vmem:[#allocation331_spill] sm:$0xff] }
 0x69f   : > { %v3777_v52 = vmul.f32 %v11026_v63, %v15063_v18  ;;  %v15065_v36 = vld [vmem:[#allocation325_spill] sm:$0xff]  ;;  %v15068_v18 = vld [vmem:[#allocation328_spill] sm:$0xff]  ;;  %v11550_v39 = vadd.f32 %v3775_v61, %v15069_v37  ;;  %v3774_v12 = vmul.f32 %v11026_v63, %v15072_v58  ;;  %v6036_v23 = vld [vmem:[%s6334_s29 + $0x1b8] sm:$0xff] }
 0x6a0   : > { %v3770_v56 = vmul.f32 %v11026_v63, %v15065_v36  ;;  %v3772_v13 = vmul.f32 %v11026_v63, %v15068_v18  ;;  %v3781_v36 = vmul.f32 %v11026_v63, %v15071_v26  ;;  %5211 = vperm.xlu1 %5787, %v6036_v23   ;;  %v6037_v16 = vld [vmem:[%s6334_s29 + $0x230] sm:$0xff]  ;;  %v15073_v40 = vld [vmem:[#allocation202_spill] sm:$0xff]  ;;  %v15074_v47 = vld [vmem:[#allocation216_spill] sm:$0xff] }
 0x6a1   : > { %15070 = vst [vmem:[#allocation256_spill] sm:$0xff] %v11550_v39  ;;  %5271 = vperm.xlu0 %5788, %v6037_v16   ;;  %v11559_v18 = vadd.f32 %v3768_v21, %v15073_v40  ;;  %v11562_v50 = vadd.f32 %v3777_v52, %v15074_v47  ;;  %v15076_v34 = vld [vmem:[#allocation472_spill] sm:$0xff]  ;;  %v15077_v37 = vld [vmem:[#allocation473_spill] sm:$0xff]  ;;  %v15078_v41 = vld [vmem:[#allocation203_spill] sm:$0xff]  ;;  %v3778_v21 = vmul.f32 %v11026_v63, %v15080_v29  ;;  %v11577_v47 = vpop.permute.xlu1 %4787  ;;  %v11589_v28 = vpop.permute.xlu0 %5023 }
 0x6a2   : > { %v3783_v61 = vmul.f32 %v11026_v63, %v15076_v34  ;;  %v3776_v26 = vmul.f32 %v11026_v63, %v15077_v37  ;;  %v11569_v58 = vadd.f32 %v3770_v56, %v15078_v41  ;;  %v15079_v23 = vld [vmem:[#allocation474_spill] sm:$0xff]  ;;  %v15081_v40 = vld [vmem:[#allocation476_spill] sm:$0xff]  ;;  %15082 = vst [vmem:[#allocation144_spill] sm:$0xff] %v11577_v47  ;;  %v11583_v37 = vadd.f32 %v3772_v13, %v15085_v45  ;;  %v15086_v9 = vld [vmem:[#allocation477_spill] sm:$0xff] }
 0x6a3   : > { %15075 = vst [vmem:[#allocation49_spill] sm:$0xff] %v11562_v50  ;;  %v3785_v16 = vmul.f32 %v11026_v63, %v15079_v23  ;;  %v3787_v52 = vmul.f32 %v11026_v63, %v15081_v40  ;;  %v15083_v57 = vld [vmem:[#allocation218_spill] sm:$0xff]  ;;  %v3780_v41 = vmul.f32 %v11026_v63, %v15086_v9  ;;  %v15090_v40 = vld [vmem:[#allocation208_spill] sm:$0xff]  ;;  %v15091_v47 = vld [vmem:[#allocation479_spill] sm:$0xff] }
 0x6a4   : > { %v11580_v34 = vadd.f32 %v3779_v24, %v15083_v57  ;;  %v15087_v56 = vld [vmem:[#allocation478_spill] sm:$0xff]  ;;  %v11595_v30 = vadd.f32 %v3774_v12, %v15090_v40  ;;  %v3782_v57 = vmul.f32 %v11026_v63, %v15091_v47  ;;  %v6038_v24 = vld [vmem:[%s6334_s29 + $0x1c8] sm:$0xff]  ;;  %v6039_v45 = vld [vmem:[%s6334_s29 + $0x240] sm:$0xff] }
 0x6a5   : > { %v3789_v23 = vmul.f32 %v11026_v63, %v15087_v56  ;;  %v15088_v29 = vld [vmem:[#allocation222_spill] sm:$0xff]  ;;  %5219 = vperm.xlu1 %5787, %v6038_v24   ;;  %5279 = vperm.xlu0 %5788, %v6039_v45   ;;  %v15092_v13 = vld [vmem:[#allocation224_spill] sm:$0xff]  ;;  %v15094_v38 = vld [vmem:[#allocation209_spill] sm:$0xff] }
 0x6a6   : > { %15084 = vst [vmem:[#allocation259_spill] sm:$0xff] %v11580_v34  ;;  %v11592_v25 = vadd.f32 %v3781_v36, %v15088_v29  ;;  %v11602_v9 = vadd.f32 %v3783_v61, %v15092_v13  ;;  %v11605_v56 = vadd.f32 %v3776_v26, %v15094_v38  ;;  %v3791_v36 = vmul.f32 %v11026_v63, %v15095_v43  ;;  %v15096_v29 = vld [vmem:[#allocation481_spill] sm:$0xff]  ;;  %v15099_v24 = vld [vmem:[#allocation211_spill] sm:$0xff]  ;;  %v15101_v45 = vld [vmem:[#allocation482_spill] sm:$0xff]  ;;  %v11622_v26 = vpop.permute.xlu1 %4795 }
 0x6a7   : > { %v3784_v12 = vmul.f32 %v11026_v63, %v15096_v29  ;;  %v15097_v40 = vld [vmem:[#allocation225_spill] sm:$0xff]  ;;  %v11618_v61 = vadd.f32 %v3787_v52, %v11151_v53  ;;  %v3793_v38 = vmul.f32 %v11026_v63, %v15101_v45  ;;  %15102 = vst [vmem:[#allocation148_spill] sm:$0xff] %v11622_v26  ;;  %v11628_v29 = vadd.f32 %v3789_v23, %v11161_v35  ;;  %v15107_v53 = vld [vmem:[#allocation215_spill] sm:$0xff]  ;;  %v15110_v23 = vld [vmem:[#allocation112_spill] sm:$0xff] }
 0x6a8   : > { %15089 = vst [vmem:[#allocation260_spill] sm:$0xff] %v11592_v25  ;;  %15093 = vst [vmem:[#allocation546_spill] sm:$0xff] %v11602_v9  ;;  %v11612_v47 = vadd.f32 %v3785_v16, %v15097_v40  ;;  %v11615_v25 = vadd.f32 %v3778_v21, %v15099_v24  ;;  %v15103_v13 = vld [vmem:[#allocation213_spill] sm:$0xff]  ;;  %v15105_v9 = vld [vmem:[#allocation483_spill] sm:$0xff]  ;;  %v11634_v24 = vpop.permute.xlu0 %5031  ;;  %v11637_v52 = vadd.f32 %v3782_v57, %v15107_v53 }
 0x6a9   : > { %15100 = vst [vmem:[#allocation263_spill] sm:$0xff] %v11618_v61  ;;  %v11625_v43 = vadd.f32 %v3780_v41, %v15103_v13  ;;  %15104 = vst [vmem:[#allocation145_spill] sm:$0xff] %v11628_v29  ;;  %v3786_v16 = vmul.f32 %v11026_v63, %v15105_v9  ;;  %v15106_v40 = vld [vmem:[#allocation484_spill] sm:$0xff]  ;;  %v15108_v45 = vld [vmem:[#allocation485_spill] sm:$0xff]  ;;  %v11646_v9 = vadd.f32 %v3791_v36, %v15110_v23 }
 0x6aa   : > { %15098 = vst [vmem:[#allocation57_spill] sm:$0xff] %v11612_v47  ;;  %v3795_v21 = vmul.f32 %v11026_v63, %v15106_v40  ;;  %v3788_v26 = vmul.f32 %v11026_v63, %v15108_v45  ;;  %v15109_v61 = vld [vmem:[#allocation486_spill] sm:$0xff]  ;;  %v6041_v35 = vld [vmem:[%s6334_s29 + $0x250] sm:$0xff]  ;;  %v15114_v47 = vld [vmem:[#allocation487_spill] sm:$0xff] }
 0x6ab   : > { %v3797_v41 = vmul.f32 %v11026_v63, %v15109_v61  ;;  %v6040_v13 = vld [vmem:[%s6334_s29 + $0x1d8] sm:$0xff]  ;;  %5287 = vperm.xlu0 %5788, %v6041_v35   ;;  %15111 = vst [vmem:[#allocation264_spill] sm:$0xff] %v11646_v9  ;;  %v15112_v29 = vld [vmem:[#allocation217_spill] sm:$0xff]  ;;  %v3790_v57 = vmul.f32 %v11026_v63, %v15114_v47  ;;  %v15115_v53 = vld [vmem:[#allocation488_spill] sm:$0xff]  ;;  %v11656_v61 = vadd.f32 %v3793_v38, %v11181_v15 }
 0x6ac   : > { %5227 = vperm.xlu1 %5787, %v6040_v13   ;;  %v11649_v40 = vadd.f32 %v3784_v12, %v15112_v29  ;;  %v3799_v45 = vmul.f32 %v11026_v63, %v15115_v53  ;;  %v15117_v13 = vld [vmem:[#allocation489_spill] sm:$0xff]  ;;  %v15118_v34 = vld [vmem:[#allocation490_spill] sm:$0xff]  ;;  %v15119_v23 = vld [vmem:[#allocation491_spill] sm:$0xff]  ;;  %v11664_v29 = vpop.permute.xlu1 %4803 }
 0x6ad   : > { %15116 = vst [vmem:[#allocation150_spill] sm:$0xff] %v11656_v61  ;;  %v3792_v35 = vmul.f32 %v11026_v63, %v15117_v13  ;;  %v3801_v36 = vmul.f32 %v11026_v63, %v15118_v34  ;;  %v3794_v12 = vmul.f32 %v11026_v63, %v15119_v23  ;;  %15120 = vst [vmem:[#allocation149_spill] sm:$0xff] %v11664_v29  ;;  %v15121_v9 = vld [vmem:[#allocation221_spill] sm:$0xff]  ;;  %v15122_v0 = vld [vmem:[#allocation118_spill] sm:$0xff]  ;;  %v11676_v61 = vpop.permute.xlu0 %5039 }
 0x6ae   : > { %15113 = vst [vmem:[#allocation267_spill] sm:$0xff] %v11649_v40  ;;  %v11667_v47 = vadd.f32 %v3786_v16, %v15121_v9  ;;  %v11670_v53 = vadd.f32 %v3795_v21, %v15122_v0  ;;  %v15124_v50 = vld [vmem:[#allocation492_spill] sm:$0xff]  ;;  %v15125_v38 = vld [vmem:[#allocation493_spill] sm:$0xff]  ;;  %15126 = vst [vmem:[#allocation268_spill] sm:$0xff] %v11676_v61 }
 0x6af   : > { %v3803_v15 = vmul.f32 %v11026_v63, %v15124_v50  ;;  %v3796_v13 = vmul.f32 %v11026_v63, %v15125_v38  ;;  %v15127_v34 = vld [vmem:[#allocation223_spill] sm:$0xff]  ;;  %v15128_v23 = vld [vmem:[#allocation117_spill] sm:$0xff]  ;;  %v15130_v29 = vld [vmem:[#allocation494_spill] sm:$0xff] }
 0x6b0   : > { %15123 = vst [vmem:[#allocation549_spill] sm:$0xff] %v11670_v53  ;;  %v11679_v39 = vadd.f32 %v3788_v26, %v15127_v34  ;;  %v11682_v40 = vadd.f32 %v3797_v41, %v15128_v23  ;;  %v3805_v16 = vmul.f32 %v11026_v63, %v15130_v29  ;;  %v6042_v9 = vld [vmem:[%s6334_s29 + $0x1e8] sm:$0xff]  ;;  %v6043_v0 = vld [vmem:[%s6334_s29 + $0x260] sm:$0xff]  ;;  %v15131_v21 = vld [vmem:[#allocation109_spill] sm:$0xff] }
 0x6b1   : > { %5235 = vperm.xlu1 %5787, %v6042_v9   ;;  %5295 = vperm.xlu0 %5788, %v6043_v0   ;;  %v11689_v50 = vadd.f32 %v3790_v57, %v15131_v21  ;;  %v15132_v53 = vld [vmem:[#allocation231_spill] sm:$0xff]  ;;  %v15135_v34 = vld [vmem:[#allocation496_spill] sm:$0xff]  ;;  %v15136_v23 = vld [vmem:[#allocation110_spill] sm:$0xff]  ;;  %v11702_v9 = vadd.f32 %v3801_v36, %v11235_v4  ;;  %v11719_v4 = vpop.permute.xlu1 %4991  ;;  %v11721_v36 = vpop.permute.xlu0 %5047 }
 0x6b2   : > { %15129 = vst [vmem:[#allocation513_spill] sm:$0xff] %v11682_v40  ;;  %v11692_v38 = vadd.f32 %v3799_v45, %v15132_v53  ;;  %v15134_v61 = vld [vmem:[#allocation495_spill] sm:$0xff]  ;;  %v3807_v41 = vmul.f32 %v11026_v63, %v15135_v34  ;;  %v11699_v29 = vadd.f32 %v3792_v35, %v15136_v23  ;;  %v15140_v21 = vld [vmem:[#allocation497_spill] sm:$0xff]  ;;  %v11710_v53 = vadd.f32 %v3803_v15, %v11245_v46  ;;  %v15144_v34 = vld [vmem:[#allocation498_spill] sm:$0xff] }
 0x6b3   : > { %v3798_v26 = vmul.f32 %v11026_v63, %v15134_v61  ;;  %15137 = vst [vmem:[#allocation271_spill] sm:$0xff] %v11702_v9  ;;  %v15138_v0 = vld [vmem:[#allocation227_spill] sm:$0xff]  ;;  %v3800_v45 = vmul.f32 %v11026_v63, %v15140_v21  ;;  %v15142_v61 = vld [vmem:[#allocation113_spill] sm:$0xff]  ;;  %v3809_v40 = vmul.f32 %v11026_v63, %v15144_v34  ;;  %v6044_v21 = vld [vmem:[%s6334_s29 + $0x1f8] sm:$0xff] }
 0x6b4   : > { %15133 = vst [vmem:[#allocation152_spill] sm:$0xff] %v11692_v38  ;;  %v11705_v57 = vadd.f32 %v3794_v12, %v15138_v0  ;;  %15141 = vst [vmem:[#allocation151_spill] sm:$0xff] %v11710_v53  ;;  %v11713_v38 = vadd.f32 %v3796_v13, %v15142_v61  ;;  %v15145_v35 = vld [vmem:[#allocation499_spill] sm:$0xff]  ;;  %v11724_v12 = vadd.f32 %v3805_v16, %v11255_v19  ;;  %v15147_v0 = vld [vmem:[#allocation500_spill] sm:$0xff] }
 0x6b5   : > { %v3802_v23 = vmul.f32 %v11026_v63, %v15145_v35  ;;  %v3811_v46 = vmul.f32 %v11026_v63, %v15147_v0  ;;  %v15148_v15 = vld [vmem:[#allocation501_spill] sm:$0xff]  ;;  %5243 = vperm.xlu1 %5787, %v6044_v21   ;;  %v15149_v34 = vld [vmem:[#allocation228_spill] sm:$0xff]  ;;  %v11736_v35 = vadd.f32 %v3807_v41, %v11265_v51  ;;  %v15152_v9 = vld [vmem:[#allocation502_spill] sm:$0xff]  ;;  %v11752_v41 = vadd.f32 %v3809_v40, %v11271_v49 }
 0x6b6   : > { %15139 = vst [vmem:[#allocation272_spill] sm:$0xff] %v11705_v57  ;;  %15143 = vst [vmem:[#allocation275_spill] sm:$0xff] %v11713_v38  ;;  %v3804_v13 = vmul.f32 %v11026_v63, %v15148_v15  ;;  %v6045_v61 = vld [vmem:[%s6334_s29 + $0x270] sm:$0xff]  ;;  %v11733_v53 = vadd.f32 %v3798_v26, %v15149_v34  ;;  %v3813_v19 = vmul.f32 %v11026_v63, %v15152_v9  ;;  %v15153_v16 = vld [vmem:[#allocation503_spill] sm:$0xff] }
 0x6b7   : > { %15146 = vst [vmem:[#allocation276_spill] sm:$0xff] %v11724_v12  ;;  %5303 = vperm.xlu0 %5788, %v6045_v61   ;;  %15151 = vst [vmem:[#allocation279_spill] sm:$0xff] %v11736_v35  ;;  %v3806_v0 = vmul.f32 %v11026_v63, %v15153_v16  ;;  %v15154_v12 = vld [vmem:[#allocation229_spill] sm:$0xff]  ;;  %v15156_v21 = vld [vmem:[#allocation504_spill] sm:$0xff] }
 0x6b8   : > { %15150 = vst [vmem:[#allocation155_spill] sm:$0xff] %v11733_v53  ;;  %v11743_v15 = vadd.f32 %v3800_v45, %v15154_v12  ;;  %v3815_v61 = vmul.f32 %v11026_v63, %v15156_v21  ;;  %v15157_v38 = vld [vmem:[#allocation505_spill] sm:$0xff]  ;;  %v15158_v34 = vld [vmem:[#allocation506_spill] sm:$0xff]  ;;  %15159 = vst [vmem:[#allocation283_spill] sm:$0xff] %v11752_v41  ;;  %v4812_v45 = vsub.s32 7, %v8924_v55  ;;  %v11760_v12 = vpop.permute.xlu1 %4999  ;;  %v11762_v21 = vpop.permute.xlu0 %5055 }
 0x6b9   : > { %v3808_v26 = vmul.f32 %v11026_v63, %v15157_v38  ;;  %v3817_v51 = vmul.f32 %v11026_v63, %v15158_v34  ;;  %v15160_v9 = vld [vmem:[#allocation230_spill] sm:$0xff]  ;;  %v15162_v16 = vld [vmem:[#allocation507_spill] sm:$0xff]  ;;  %v11765_v38 = vadd.f32 %v3811_v46, %v11283_v11  ;;  %v15165_v49 = vld [vmem:[#allocation508_spill] sm:$0xff] }
 0x6ba   : > { %15155 = vst [vmem:[#allocation280_spill] sm:$0xff] %v11743_v15  ;;  %v11755_v35 = vadd.f32 %v3802_v23, %v15160_v9  ;;  %v3810_v53 = vmul.f32 %v11026_v63, %v15162_v16  ;;  %v15164_v15 = vld [vmem:[#allocation127_spill] sm:$0xff]  ;;  %v3819_v40 = vmul.f32 %v11026_v63, %v15165_v49  ;;  %v6046_v23 = vld [vmem:[%s6334_s29 + $0x208] sm:$0xff]  ;;  %v15170_v57 = vld [vmem:[#allocation509_spill] sm:$0xff] }
 0x6bb   : > { %15163 = vst [vmem:[#allocation287_spill] sm:$0xff] %v11765_v38  ;;  %v11768_v34 = vadd.f32 %v3804_v13, %v15164_v15  ;;  %5251 = vperm.xlu1 %5787, %v6046_v23   ;;  %v6047_v9 = vld [vmem:[%s6334_s29 + $0x280] sm:$0xff]  ;;  %v15168_v55 = vld [vmem:[#allocation232_spill] sm:$0xff]  ;;  %v3812_v11 = vmul.f32 %v11026_v63, %v15170_v57  ;;  %v15171_v46 = vld [vmem:[#allocation510_spill] sm:$0xff] }
 0x6bc   : > { %15161 = vst [vmem:[#allocation284_spill] sm:$0xff] %v11755_v35  ;;  %5311 = vperm.xlu0 %5788, %v6047_v9   ;;  %v15166_v16 = vld [vmem:[#allocation239_spill] sm:$0xff]  ;;  %v11778_v35 = vadd.f32 %v3806_v0, %v15168_v55  ;;  %v3821_v13 = vmul.f32 %v11026_v63, %v15171_v46  ;;  %v15172_v15 = vld [vmem:[#allocation121_spill] sm:$0xff]  ;;  %v15174_v49 = vld [vmem:[#allocation234_spill] sm:$0xff] }
 0x6bd   : > { %v11775_v41 = vadd.f32 %v3813_v19, %v15166_v16  ;;  %v11785_v38 = vadd.f32 %v3815_v61, %v15172_v15  ;;  %v11788_v23 = vadd.f32 %v3808_v26, %v15174_v49  ;;  %v11791_v19 = vadd.f32 %v3817_v51, %v11325_v17  ;;  %v15177_v9 = vld [vmem:[#allocation511_spill] sm:$0xff]  ;;  %v15180_v57 = vld [vmem:[#allocation512_spill] sm:$0xff]  ;;  %v15181_v46 = vld [vmem:[#allocation514_spill] sm:$0xff]  ;;  %v11807_v17 = vpop.permute.xlu1 %5003  ;;  %v11809_v51 = vpop.permute.xlu0 %5063 }
 0x6be   : > { %15169 = vst [vmem:[#allocation291_spill] sm:$0xff] %v11778_v35  ;;  %v3814_v0 = vmul.f32 %v11026_v63, %v15177_v9  ;;  %v15178_v16 = vld [vmem:[#allocation235_spill] sm:$0xff]  ;;  %v3816_v61 = vmul.f32 %v11026_v63, %v15181_v46  ;;  %v11812_v49 = vadd.f32 %v3819_v40, %v11335_v7  ;;  %v6049_v46 = vld [vmem:[%s6334_s29 + $0x218] sm:$0xff] }
 0x6bf   : > { %15167 = vst [vmem:[#allocation288_spill] sm:$0xff] %v11775_v41  ;;  %15173 = vst [vmem:[#allocation292_spill] sm:$0xff] %v11785_v38  ;;  %v11796_v55 = vadd.f32 %v3810_v53, %v15178_v16  ;;  %v3823_v41 = vmul.f32 %v11026_v63, %v15180_v57  ;;  %v6048_v26 = vld [vmem:[%s13026_s1] sm:$0xff]  ;;  %v15184_v16 = vld [vmem:[#allocation517_spill] sm:$0xff]  ;;  %5259 = vperm.xlu1 %5787, %v6049_v46  }
 0x6c0   : > { %15175 = vst [vmem:[#allocation295_spill] sm:$0xff] %v11788_v23  ;;  %15176 = vst [vmem:[#allocation296_spill] sm:$0xff] %v11791_v19  ;;  %v11805_v15 = vrot.slane %v6048_v26, %v4812_v45  ;;  %v15183_v53 = vld [vmem:[#allocation515_spill] sm:$0xff]  ;;  %v3818_v57 = vmul.f32 %v11026_v63, %v15184_v16  ;;  %v6050_v38 = vld [vmem:[%s6334_s29 + $0x290] sm:$0xff]  ;;  %v11824_v26 = vadd.f32 %v3821_v13, %v11345_v42 }
 0x6c1   : > { %15179 = vst [vmem:[#allocation299_spill] sm:$0xff] %v11796_v55  ;;  %15182 = vst [vmem:[#allocation552_spill] sm:$0xff] %v11812_v49  ;;  %v3825_v9 = vmul.f32 %v11026_v63, %v15183_v53  ;;  %5319 = vperm.xlu0 %5788, %v6050_v38   ;;  %v15185_v19 = vld [vmem:[#allocation128_spill] sm:$0xff]  ;;  %v15188_v55 = vld [vmem:[#allocation518_spill] sm:$0xff]  ;;  %v11840_v13 = vadd.f32 %v3823_v41, %v11355_v62 }
 0x6c2   : > { %v11821_v45 = vadd.f32 %v3812_v11, %v15185_v19  ;;  %15187 = vst [vmem:[#allocation303_spill] sm:$0xff] %v11824_v26  ;;  %v3827_v7 = vmul.f32 %v11026_v63, %v15188_v55  ;;  %v15189_v40 = vld [vmem:[#allocation547_spill] sm:$0xff]  ;;  %v15192_v46 = vld [vmem:[#allocation536_spill] sm:$0xff]  ;;  %v15194_v19 = vld [vmem:[#allocation566_spill] sm:$0xff] }
 0x6c3   : > { %v4282_v53 = vmul.f32 %v11545_v10, %v15189_v40  ;;  %v15190_v49 = vld [vmem:[#allocation119_spill] sm:$0xff]  ;;  %v4283_v38 = vmul.f32 %v11545_v10, %v15192_v46  ;;  %v4304_v42 = vmul.f32 %v11545_v10, %v15194_v19  ;;  %15195 = vst [vmem:[#allocation307_spill] sm:$0xff] %v11840_v13  ;;  %v15196_v55 = vld [vmem:[#allocation122_spill] sm:$0xff]  ;;  %v11851_v46 = vpop.permute.xlu0 %5071  ;;  %v15202_v62 = vld [vmem:[#allocation185_spill] sm:$0xff] }
 0x6c4   : > { %15186 = vst [vmem:[#allocation300_spill] sm:$0xff] %v11821_v45  ;;  %v11831_v16 = vadd.f32 %v3814_v0, %v15190_v49  ;;  %v15193_v23 = vld [vmem:[#allocation539_spill] sm:$0xff]  ;;  %v11843_v26 = vadd.f32 %v3816_v61, %v15196_v55  ;;  %v15198_v40 = vld [vmem:[#allocation542_spill] sm:$0xff]  ;;  %v15199_v0 = vld [vmem:[#allocation105_spill] sm:$0xff]  ;;  %v4836_v41 = vmul.f32 %v11805_v15, %v15202_v62 }
 0x6c5   : > { %v4286_v11 = vmul.f32 %v11545_v10, %v15193_v23  ;;  %v4288_v45 = vmul.f32 %v11545_v10, %v15198_v40  ;;  %v4814_v49 = vmul.f32 %v11805_v15, %v15199_v0  ;;  %v11854_v23 = vadd.f32 %v3825_v9, %v11367_v20  ;;  %v15201_v19 = vld [vmem:[#allocation238_spill] sm:$0xff]  ;;  %v6051_v61 = vld [vmem:[%s6334_s29 + $0x228] sm:$0xff]  ;;  %v6052_v55 = vld [vmem:[%s6334_s29 + $0x2a0] sm:$0xff] }
 0x6c6   : > { %15191 = vst [vmem:[#allocation304_spill] sm:$0xff] %v11831_v16  ;;  %15197 = vst [vmem:[#allocation157_spill] sm:$0xff] %v11843_v26  ;;  %v11849_v16 = vpop.permute.xlu1 %5011  ;;  %v11857_v35 = vadd.f32 %v3818_v57, %v15201_v19  ;;  %5267 = vperm.xlu1 %5787, %v6051_v61   ;;  %5327 = vperm.xlu0 %5788, %v6052_v55   ;;  %v11864_v40 = vadd.f32 %v3827_v7, %v11377_v27  ;;  %v15204_v13 = vld [vmem:[#allocation550_spill] sm:$0xff]  ;;  %v15205_v20 = vld [vmem:[#allocation569_spill] sm:$0xff] }
 0x6c7   : > { %15200 = vst [vmem:[#allocation308_spill] sm:$0xff] %v11854_v23  ;;  %v4370_v0 = vadd.f32 %v4282_v53, %v11412_v54  ;;  %v4284_v26 = vmul.f32 %v11545_v10, %v15204_v13  ;;  %v4306_v9 = vmul.f32 %v11545_v10, %v15205_v20  ;;  %v11874_v57 = vld [vmem:[%s13026_s1 + $0x8] ss:$0 sm:$0xff]  ;;  %v11877_v19 = vadd.f32 %v4283_v38, %v11445_v5  ;;  %v15206_v13 = vld [vmem:[#allocation545_spill] sm:$0xff]  ;;  %v5080_v5 = vpop.permute.xlu0 %5079 }
 0x6c8   : > { %15203 = vst [vmem:[#allocation311_spill] sm:$0xff] %v11864_v40  ;;  %v4374_v27 = vadd.f32 %v4286_v11, %v11473_v59  ;;  %v4392_v54 = vadd.f32 %v4304_v42, %v11583_v37  ;;  %v5346_v7 = vmul.f32 %v11874_v57, %v11719_v4  ;;  %v11884_v53 = vadd.f32 %v4288_v45, %v11483_v6  ;;  %v15207_v55 = vld [vmem:[#allocation153_spill] sm:$0xff]  ;;  %v15208_v59 = vld [vmem:[#allocation187_spill] sm:$0xff]  ;;  %v6053_v4 = vld [vmem:[%s6334_s29 + $0x238] sm:$0xff] }
 0x6c9   : > { %v4290_v62 = vmul.f32 %v11545_v10, %v15206_v13  ;;  %v4902_v61 = vadd.f32 %v4814_v49, %v4370_v0  ;;  %v4816_v20 = vmul.f32 %v11805_v15, %v15207_v55  ;;  %v4838_v37 = vmul.f32 %v11805_v15, %v15208_v59  ;;  %v6054_v6 = vld [vmem:[%s6334_s29 + $0x2b0] sm:$0xff]  ;;  %v15209_v45 = vld [vmem:[#allocation548_spill] sm:$0xff]  ;;  %v15210_v0 = vld [vmem:[#allocation551_spill] sm:$0xff] }
 0x6ca   : > { %v11890_v40 = vpop.permute.xlu1 %5019  ;;  %v4924_v38 = vadd.f32 %v4836_v41, %v4392_v54  ;;  %v5368_v11 = vmul.f32 %v11874_v57, %v5080_v5  ;;  %5275 = vperm.xlu1 %5787, %v6053_v4   ;;  %5335 = vperm.xlu0 %5788, %v6054_v6   ;;  %v4292_v42 = vmul.f32 %v11545_v10, %v15209_v45  ;;  %v15211_v54 = vld [vmem:[#allocation572_spill] sm:$0xff]  ;;  %v15212_v45 = vld [vmem:[#allocation553_spill] sm:$0xff] }
 0x6cb   : > { %v4372_v49 = vadd.f32 %v4284_v26, %v11455_v14  ;;  %v4294_v13 = vmul.f32 %v11545_v10, %v15210_v0  ;;  %v4394_v41 = vadd.f32 %v4306_v9, %v11595_v30  ;;  %v4308_v55 = vmul.f32 %v11545_v10, %v15211_v54  ;;  %v15213_v0 = vld [vmem:[#allocation156_spill] sm:$0xff]  ;;  %v5088_v9 = vpop.permute.xlu0 %5087 }
 0x6cc   : > { %v11905_v59 = vadd.f32 %v5346_v7, %v4902_v61  ;;  %v5348_v5 = vmul.f32 %v11874_v57, %v11760_v12  ;;  %v11909_v4 = vadd.f32 %v5368_v11, %v4924_v38  ;;  %v4378_v6 = vadd.f32 %v4290_v62, %v11497_v22  ;;  %v15214_v7 = vld [vmem:[#allocation189_spill] sm:$0xff]  ;;  %v6055_v22 = vld [vmem:[%s6334_s29 + $0x248] sm:$0xff]  ;;  %v15215_v11 = vld [vmem:[#allocation554_spill] sm:$0xff] }
 0x6cd   : > { %v4285_v14 = vmul.f32 %v11545_v10, %v15212_v45  ;;  %v4904_v26 = vadd.f32 %v4816_v20, %v4372_v49  ;;  %v4818_v23 = vmul.f32 %v11805_v15, %v15213_v0  ;;  %v4926_v54 = vadd.f32 %v4838_v37, %v4394_v41  ;;  %v15216_v37 = vld [vmem:[#allocation575_spill] sm:$0xff]  ;;  %v15219_v12 = vld [vmem:[#allocation69_spill] sm:$0xff] }
 0x6ce   : > { %v11916_v30 = vpop.permute.xlu1 %5027  ;;  %v4840_v61 = vmul.f32 %v11805_v15, %v15214_v7  ;;  %v5370_v38 = vmul.f32 %v11874_v57, %v5088_v9  ;;  %5283 = vperm.xlu1 %5787, %v6055_v22   ;;  %v11925_v62 = vadd.f32 %v4292_v42, %v11508_v3  ;;  %v11928_v20 = vadd.f32 %v4294_v13, %v11518_v33  ;;  %v15217_v33 = vld [vmem:[#allocation556_spill] sm:$0xff]  ;;  %v15218_v22 = vld [vmem:[#allocation159_spill] sm:$0xff] }
 0x6cf   : > { %v4296_v49 = vmul.f32 %v11545_v10, %v15215_v11  ;;  %v4310_v41 = vmul.f32 %v11545_v10, %v15216_v37  ;;  %v4396_v45 = vadd.f32 %v4308_v55, %v11605_v56  ;;  %v5350_v0 = vmul.f32 %v11874_v57, %v11502_v31  ;;  %v5096_v56 = vpop.permute.xlu0 %5095 }
 0x6d0   : > { %v11937_v9 = vadd.f32 %v5348_v5, %v4904_v26  ;;  %v11939_v7 = vadd.f32 %v5370_v38, %v4926_v54  ;;  %v11942_v3 = vadd.f32 %v4285_v14, %v11422_v60  ;;  %v4287_v42 = vmul.f32 %v11545_v10, %v15217_v33  ;;  %v6056_v14 = vld [vmem:[%s6334_s29 + $0x258] sm:$0xff]  ;;  %v15221_v54 = vld [vmem:[#allocation559_spill] sm:$0xff] }
 0x6d1   : > { %v4906_v13 = vadd.f32 %v4818_v23, %v4374_v27  ;;  %v4820_v11 = vmul.f32 %v11805_v15, %v15218_v22  ;;  %v4928_v55 = vadd.f32 %v4840_v61, %v4396_v45  ;;  %v4842_v31 = vmul.f32 %v11805_v15, %v15219_v12  ;;  %v15220_v23 = vld [vmem:[#allocation557_spill] sm:$0xff]  ;;  %v15222_v12 = vld [vmem:[#allocation578_spill] sm:$0xff] }
 0x6d2   : > { %v11948_v37 = vpop.permute.xlu1 %5035  ;;  %v5372_v60 = vmul.f32 %v11874_v57, %v5096_v56  ;;  %5291 = vperm.xlu1 %5787, %v6056_v14   ;;  %v11957_v26 = vadd.f32 %v4296_v49, %v11528_v48  ;;  %v4298_v27 = vmul.f32 %v11545_v10, %v15220_v23  ;;  %v4289_v38 = vmul.f32 %v11545_v10, %v15221_v54  ;;  %v15223_v49 = vld [vmem:[#allocation560_spill] sm:$0xff]  ;;  %v15224_v54 = vld [vmem:[#allocation161_spill] sm:$0xff] }
 0x6d3   : > { %v4398_v61 = vadd.f32 %v4310_v41, %v11615_v25  ;;  %v4312_v45 = vmul.f32 %v11545_v10, %v15222_v12  ;;  %v11966_v33 = vadd.f32 %v5350_v0, %v4906_v13  ;;  %v5352_v22 = vmul.f32 %v11874_v57, %v11547_v1  ;;  %v5104_v0 = vpop.permute.xlu0 %5103  ;;  %v15225_v12 = vld [vmem:[#allocation194_spill] sm:$0xff] }
 0x6d4   : > { %v11970_v56 = vadd.f32 %v5372_v60, %v4928_v55  ;;  %v11973_v48 = vadd.f32 %v4287_v42, %v11432_v8  ;;  %v4300_v14 = vmul.f32 %v11545_v10, %v15223_v49  ;;  %v4908_v23 = vadd.f32 %v4820_v11, %v11884_v53  ;;  %v6057_v42 = vld [vmem:[%s6334_s29 + $0x268] sm:$0xff]  ;;  %v15226_v11 = vld [vmem:[#allocation563_spill] sm:$0xff] }
 0x6d5   : > { %v4822_v25 = vmul.f32 %v11805_v15, %v15224_v54  ;;  %v4930_v13 = vadd.f32 %v4842_v31, %v4398_v61  ;;  %v4844_v1 = vmul.f32 %v11805_v15, %v15225_v12  ;;  %v5374_v8 = vmul.f32 %v11874_v57, %v5104_v0  ;;  %v15227_v31 = vld [vmem:[#allocation581_spill] sm:$0xff] }
 0x6d6   : > { %v11980_v41 = vpop.permute.xlu1 %5043  ;;  %5299 = vperm.xlu1 %5787, %v6057_v42   ;;  %v11989_v60 = vadd.f32 %v4298_v27, %v11538_v32  ;;  %v11992_v53 = vadd.f32 %v4289_v38, %v11442_v44  ;;  %v4302_v49 = vmul.f32 %v11545_v10, %v15226_v11  ;;  %v4314_v61 = vmul.f32 %v11545_v10, %v15227_v31  ;;  %v15229_v44 = vld [vmem:[#allocation583_spill] sm:$0xff] }
 0x6d7   : > { %v4400_v54 = vadd.f32 %v4312_v45, %v11625_v43  ;;  %v11999_v12 = vadd.f32 %v5352_v22, %v4908_v23  ;;  %v5354_v0 = vmul.f32 %v11874_v57, %v11589_v28  ;;  %v12003_v42 = vadd.f32 %v5374_v8, %v4930_v13  ;;  %v15230_v11 = vld [vmem:[#allocation163_spill] sm:$0xff]  ;;  %v5112_v43 = vpop.permute.xlu0 %5111 }
 0x6d8   : > { %v12006_v32 = vadd.f32 %v4300_v14, %v11559_v18  ;;  %v4305_v27 = vmul.f32 %v11545_v10, %v15229_v44  ;;  %v4910_v38 = vadd.f32 %v4822_v25, %v4378_v6  ;;  %v4824_v55 = vmul.f32 %v11805_v15, %v15230_v11  ;;  %v15231_v22 = vld [vmem:[#allocation531_spill] sm:$0xff]  ;;  %v6058_v14 = vld [vmem:[%s6334_s29 + $0x278] sm:$0xff]  ;;  %v15232_v25 = vld [vmem:[#allocation584_spill] sm:$0xff] }
 0x6d9   : > { %15228 = vst [vmem:[#allocation158_spill] sm:$0xff] %v12003_v42  ;;  %v4932_v45 = vadd.f32 %v4844_v1, %v4400_v54  ;;  %v4846_v23 = vmul.f32 %v11805_v15, %v15231_v22  ;;  %v5376_v18 = vmul.f32 %v11874_v57, %v5112_v43  ;;  %v12021_v13 = vadd.f32 %v4302_v49, %v11569_v58  ;;  %v15233_v44 = vld [vmem:[#allocation586_spill] sm:$0xff]  ;;  %v15234_v54 = vld [vmem:[#allocation587_spill] sm:$0xff] }
 0x6da   : > { %v12012_v31 = vpop.permute.xlu1 %5051  ;;  %5307 = vperm.xlu1 %5787, %v6058_v14   ;;  %v4402_v6 = vadd.f32 %v4314_v61, %v11637_v52  ;;  %v4316_v8 = vmul.f32 %v11545_v10, %v15232_v25  ;;  %v4307_v1 = vmul.f32 %v11545_v10, %v15233_v44  ;;  %v4318_v11 = vmul.f32 %v11545_v10, %v15234_v54  ;;  %v15237_v52 = vld [vmem:[#allocation588_spill] sm:$0xff]  ;;  %v15238_v25 = vld [vmem:[#allocation165_spill] sm:$0xff]  ;;  %v15243_v42 = vld [vmem:[#allocation591_spill] sm:$0xff] }
 0x6db   : > { %v12030_v22 = vadd.f32 %v5354_v0, %v4910_v38  ;;  %v5356_v43 = vmul.f32 %v11874_v57, %v11634_v24  ;;  %v12034_v14 = vadd.f32 %v5376_v18, %v4932_v45  ;;  %v4393_v58 = vadd.f32 %v4305_v27, %v11531_v2  ;;  %v5120_v54 = vpop.permute.xlu0 %5119  ;;  %v15239_v38 = vld [vmem:[#allocation196_spill] sm:$0xff]  ;;  %v15240_v45 = vld [vmem:[#allocation267_spill] sm:$0xff] }
 0x6dc   : > { %v4309_v49 = vmul.f32 %v11545_v10, %v15237_v52  ;;  %v4912_v61 = vadd.f32 %v4824_v55, %v11925_v62  ;;  %v4826_v44 = vmul.f32 %v11805_v15, %v15238_v25  ;;  %v4934_v0 = vadd.f32 %v4846_v23, %v4402_v6  ;;  %v6059_v27 = vld [vmem:[%s6334_s29 + $0x288] sm:$0xff]  ;;  %v15242_v52 = vld [vmem:[#allocation589_spill] sm:$0xff] }
 0x6dd   : > { %15235 = vst [vmem:[#allocation312_spill] sm:$0xff] %v12030_v22  ;;  %15236 = vst [vmem:[#allocation315_spill] sm:$0xff] %v12034_v14  ;;  %v4848_v5 = vmul.f32 %v11805_v15, %v15239_v38  ;;  %v5378_v2 = vmul.f32 %v11874_v57, %v5120_v54  ;;  %v4404_v18 = vadd.f32 %v4316_v8, %v15240_v45  ;;  %v15241_v62 = vld [vmem:[#allocation256_spill] sm:$0xff] }
 0x6de   : > { %v12042_v28 = vpop.permute.xlu1 %5059  ;;  %5315 = vperm.xlu1 %5787, %v6059_v27   ;;  %v4395_v55 = vadd.f32 %v4307_v1, %v15241_v62  ;;  %v4320_v25 = vmul.f32 %v11545_v10, %v15242_v52  ;;  %v4322_v23 = vmul.f32 %v11545_v10, %v15243_v42  ;;  %v4406_v6 = vadd.f32 %v4318_v11, %v11667_v47  ;;  %v15245_v24 = vld [vmem:[#allocation268_spill] sm:$0xff]  ;;  %v15247_v27 = vld [vmem:[#allocation49_spill] sm:$0xff] }
 0x6df   : > { %v12057_v38 = vadd.f32 %v5356_v43, %v4912_v61  ;;  %v5358_v54 = vmul.f32 %v11874_v57, %v15245_v24  ;;  %v12061_v14 = vadd.f32 %v5378_v2, %v4934_v0  ;;  %v12064_v8 = vadd.f32 %v4309_v49, %v15247_v27  ;;  %v15248_v1 = vld [vmem:[#allocation593_spill] sm:$0xff]  ;;  %v15249_v52 = vld [vmem:[#allocation28_spill] sm:$0xff]  ;;  %v5128_v47 = vpop.permute.xlu0 %5127  ;;  %v15250_v43 = vld [vmem:[#allocation78_spill] sm:$0xff] }
 0x6e0   : > { %v4324_v45 = vmul.f32 %v11545_v10, %v15248_v1  ;;  %v4914_v62 = vadd.f32 %v4826_v44, %v11928_v20  ;;  %v4828_v42 = vmul.f32 %v11805_v15, %v15249_v52  ;;  %v4936_v11 = vadd.f32 %v4848_v5, %v4404_v18  ;;  %v6060_v24 = vld [vmem:[%s6334_s29 + $0x298] sm:$0xff]  ;;  %v15252_v1 = vld [vmem:[#allocation107_spill] sm:$0xff] }
 0x6e1   : > { %15244 = vst [vmem:[#allocation316_spill] sm:$0xff] %v12057_v38  ;;  %15246 = vst [vmem:[#allocation319_spill] sm:$0xff] %v12061_v14  ;;  %v4850_v61 = vmul.f32 %v11805_v15, %v15250_v43  ;;  %v5380_v49 = vmul.f32 %v11874_v57, %v5128_v47  ;;  %v4408_v2 = vadd.f32 %v4320_v25, %v11679_v39  ;;  %v15251_v20 = vld [vmem:[#allocation590_spill] sm:$0xff]  ;;  %v15256_v25 = vld [vmem:[#allocation164_spill] sm:$0xff] }
 0x6e2   : > { %v12071_v22 = vpop.permute.xlu1 %5067  ;;  %5323 = vperm.xlu1 %5787, %v6060_v24   ;;  %v12082_v44 = vmul.f32 %v11545_v10, %v15251_v20  ;;  %v4410_v27 = vadd.f32 %v4322_v23, %v11689_v50  ;;  %v4817_v5 = vmul.f32 %v11805_v15, %v15252_v1  ;;  %v15253_v18 = vld [vmem:[#allocation146_spill] sm:$0xff]  ;;  %v12089_v43 = vadd.f32 %v5358_v54, %v4914_v62  ;;  %v15257_v23 = vld [vmem:[#allocation40_spill] sm:$0xff] }
 0x6e3   : > { %v4815_v52 = vmul.f32 %v11805_v15, %v15253_v18  ;;  %v5360_v47 = vmul.f32 %v11874_v57, %v11721_v36  ;;  %v12093_v24 = vadd.f32 %v5380_v49, %v4936_v11  ;;  %v4412_v39 = vadd.f32 %v4324_v45, %v11699_v29  ;;  %v5136_v18 = vpop.permute.xlu0 %5135  ;;  %v15258_v62 = vld [vmem:[#allocation84_spill] sm:$0xff]  ;;  %v15260_v49 = vld [vmem:[#allocation519_spill] sm:$0xff] }
 0x6e4   : > { %15254 = vst [vmem:[#allocation320_spill] sm:$0xff] %v12089_v43  ;;  %v4837_v20 = vmul.f32 %v11805_v15, %v15256_v25  ;;  %v4916_v50 = vadd.f32 %v4828_v42, %v11957_v26  ;;  %v4830_v1 = vmul.f32 %v11805_v15, %v15257_v23  ;;  %v4938_v54 = vadd.f32 %v4850_v61, %v4406_v6  ;;  %v6061_v45 = vld [vmem:[%s6334_s29 + $0x2a8] sm:$0xff]  ;;  %v15259_v26 = vld [vmem:[#allocation115_spill] sm:$0xff]  ;;  %v15261_v23 = vld [vmem:[#allocation250_spill] sm:$0xff] }
 0x6e5   : > { %15255 = vst [vmem:[#allocation323_spill] sm:$0xff] %v12093_v24  ;;  %v4852_v14 = vmul.f32 %v11805_v15, %v15258_v62  ;;  %v5382_v29 = vmul.f32 %v11874_v57, %v5136_v18  ;;  %v4905_v11 = vadd.f32 %v4817_v5, %v11942_v3  ;;  %v4819_v42 = vmul.f32 %v11805_v15, %v15259_v26  ;;  %v15264_v26 = vld [vmem:[#allocation176_spill] sm:$0xff] }
 0x6e6   : > { %v12101_v0 = vpop.permute.xlu1 %5075  ;;  %5331 = vperm.xlu1 %5787, %v6061_v45   ;;  %v4839_v25 = vmul.f32 %v11805_v15, %v15260_v49  ;;  %v5347_v6 = vmul.f32 %v11874_v57, %v15261_v23  ;;  %v4903_v61 = vadd.f32 %v4815_v52, %v11877_v19  ;;  %v12117_v62 = vadd.f32 %v5360_v47, %v4916_v50  ;;  %v15265_v49 = vld [vmem:[#allocation14_spill] sm:$0xff] }
 0x6e7   : > { %v5362_v18 = vmul.f32 %v11874_v57, %v11762_v21  ;;  %v12121_v45 = vadd.f32 %v5382_v29, %v4938_v54  ;;  %v4925_v3 = vadd.f32 %v4837_v20, %v4393_v58  ;;  %v4918_v5 = vadd.f32 %v4830_v1, %v11989_v60  ;;  %v5144_v23 = vpop.permute.xlu0 %5143  ;;  %v6062_v47 = vld [vmem:[%s6334_s29 + $0x2b8] sm:$0xff]  ;;  %v15266_v60 = vld [vmem:[#allocation168_spill] sm:$0xff] }
 0x6e8   : > { %15262 = vst [vmem:[#allocation324_spill] sm:$0xff] %v12117_v62  ;;  %v4832_v36 = vmul.f32 %v11805_v15, %v15264_v26  ;;  %v4854_v24 = vmul.f32 %v11805_v15, %v15265_v49  ;;  %v4940_v38 = vadd.f32 %v4852_v14, %v4408_v2  ;;  %v5384_v21 = vmul.f32 %v11874_v57, %v5144_v23 }
 0x6e9   : > { %15263 = vst [vmem:[#allocation326_spill] sm:$0xff] %v12121_v45  ;;  %v4927_v58 = vadd.f32 %v4839_v25, %v4395_v55  ;;  %v4841_v20 = vmul.f32 %v11805_v15, %v15266_v60  ;;  %v12135_v50 = vadd.f32 %v5347_v6, %v4903_v61  ;;  %v5349_v1 = vmul.f32 %v11874_v57, %v11807_v17  ;;  %v15271_v55 = vld [vmem:[#allocation182_spill] sm:$0xff]  ;;  %v15272_v6 = vld [vmem:[#allocation89_spill] sm:$0xff]  ;;  %v15410_v45 = vld [vmem:[#allocation24_spill] sm:$0xff] }
 0x6ea   : > { %v5084_v43 = vpop.permute.xlu1 %5083  ;;  %5339 = vperm.xlu1 %5787, %v6062_v47   ;;  %v12139_v54 = vadd.f32 %v5362_v18, %v4918_v5  ;;  %v5364_v14 = vmul.f32 %v11874_v57, %v11809_v51  ;;  %v4920_v29 = vadd.f32 %v4832_v36, %v12006_v32  ;;  %v4834_v25 = vmul.f32 %v11805_v15, %v15271_v55  ;;  %v15273_v36 = vld [vmem:[#allocation129_spill] sm:$0xff]  ;;  %v15305_v51 = vld [vmem:[#allocation596_spill] sm:$0xff] }
 0x6eb   : > { %v5369_v52 = vmul.f32 %v11874_v57, %v5084_v43  ;;  %15267 = vst [vmem:[#allocation327_spill] sm:$0xff] %v12135_v50  ;;  %v12145_v43 = vadd.f32 %v5384_v21, %v4940_v38  ;;  %v4942_v26 = vadd.f32 %v4854_v24, %v4410_v27  ;;  %v4856_v61 = vmul.f32 %v11805_v15, %v15272_v6  ;;  %v5152_v17 = vpop.permute.xlu0 %5151 }
 0x6ec   : > { %15268 = vst [vmem:[#allocation329_spill] sm:$0xff] %v12139_v54  ;;  %v4907_v32 = vadd.f32 %v4819_v42, %v11973_v48  ;;  %v4821_v27 = vmul.f32 %v11805_v15, %v15273_v36  ;;  %v12161_v24 = vadd.f32 %v5349_v1, %v4905_v11  ;;  %v5351_v5 = vmul.f32 %v11874_v57, %v11849_v16  ;;  %v15278_v48 = vld [vmem:[#allocation172_spill] sm:$0xff] }
 0x6ed   : > { %v12143_v2 = vadd.f32 %v5369_v52, %v4925_v3  ;;  %15270 = vst [vmem:[#allocation332_spill] sm:$0xff] %v12145_v43  ;;  %v5386_v3 = vmul.f32 %v11874_v57, %v5152_v17  ;;  %v12165_v23 = vadd.f32 %v5364_v14, %v4920_v29  ;;  %v5366_v52 = vmul.f32 %v11874_v57, %v11851_v46  ;;  %v15279_v29 = vld [vmem:[#allocation562_spill] sm:$0xff] }
 0x6ee   : > { %v5092_v49 = vpop.permute.xlu1 %5091  ;;  %15274 = vst [vmem:[#allocation333_spill] sm:$0xff] %v12161_v24  ;;  %v4929_v60 = vadd.f32 %v4841_v20, %v12064_v8  ;;  %v4843_v42 = vmul.f32 %v11805_v15, %v15278_v48  ;;  %v4922_v11 = vadd.f32 %v4834_v25, %v12021_v13  ;;  %v4944_v1 = vadd.f32 %v4856_v61, %v4412_v39  ;;  %v15280_v20 = vld [vmem:[#allocation259_spill] sm:$0xff]  ;;  %v15281_v13 = vld [vmem:[#allocation592_spill] sm:$0xff] }
 0x6ef   : > { %15269 = vst [vmem:[#allocation330_spill] sm:$0xff] %v12143_v2  ;;  %v5371_v38 = vmul.f32 %v11874_v57, %v5092_v49  ;;  %15275 = vst [vmem:[#allocation334_spill] sm:$0xff] %v12165_v23  ;;  %v12171_v47 = vadd.f32 %v5386_v3, %v4942_v26  ;;  %v5160_v6 = vpop.permute.xlu0 %5159  ;;  %v4291_v8 = vmul.f32 %v11545_v10, %v15279_v29  ;;  %v15286_v3 = vld [vmem:[#allocation520_spill] sm:$0xff]  ;;  %v15405_v2 = vld [vmem:[#allocation271_spill] sm:$0xff] }
 0x6f0   : > { %v5388_v14 = vmul.f32 %v11874_v57, %v5160_v6  ;;  %v4399_v26 = vadd.f32 %v12082_v44, %v15280_v20  ;;  %v4313_v39 = vmul.f32 %v11545_v10, %v15281_v13  ;;  %v12189_v25 = vadd.f32 %v5351_v5, %v4907_v32  ;;  %v15287_v44 = vld [vmem:[#allocation134_spill] sm:$0xff]  ;;  %v15293_v13 = vld [vmem:[#allocation260_spill] sm:$0xff] }
 0x6f1   : > { %v12169_v21 = vadd.f32 %v5371_v38, %v4927_v58  ;;  %15277 = vst [vmem:[#allocation336_spill] sm:$0xff] %v12171_v47  ;;  %v12191_v61 = vadd.f32 %v5366_v52, %v4922_v11  ;;  %v5353_v49 = vmul.f32 %v11874_v57, %v11890_v40  ;;  %v3820_v36 = vmul.f32 %v11026_v63, %v15286_v3  ;;  %v15288_v52 = vld [vmem:[#allocation177_spill] sm:$0xff]  ;;  %v15292_v20 = vld [vmem:[#allocation594_spill] sm:$0xff]  ;;  %v15390_v47 = vld [vmem:[#allocation280_spill] sm:$0xff] }
 0x6f2   : > { %v5100_v55 = vpop.permute.xlu1 %5099  ;;  %15282 = vst [vmem:[#allocation337_spill] sm:$0xff] %v12189_v25  ;;  %v12197_v38 = vadd.f32 %v5388_v14, %v4944_v1  ;;  %v4909_v48 = vadd.f32 %v4821_v27, %v11992_v53  ;;  %v4931_v6 = vadd.f32 %v4843_v42, %v4399_v26  ;;  %v4845_v11 = vmul.f32 %v11805_v15, %v15288_v52  ;;  %v15290_v27 = vld [vmem:[#allocation249_spill] sm:$0xff]  ;;  %v15391_v23 = vld [vmem:[#allocation284_spill] sm:$0xff] }
 0x6f3   : > { %15276 = vst [vmem:[#allocation335_spill] sm:$0xff] %v12169_v21  ;;  %v5373_v58 = vmul.f32 %v11874_v57, %v5100_v55  ;;  %15283 = vst [vmem:[#allocation338_spill] sm:$0xff] %v12191_v61  ;;  %v4823_v55 = vmul.f32 %v11805_v15, %v15287_v44  ;;  %v12204_v5 = vpop.permute.xlu0 %5167  ;;  %v4379_v14 = vadd.f32 %v4291_v8, %v15290_v27  ;;  %v15291_v42 = vld [vmem:[#allocation565_spill] sm:$0xff]  ;;  %v15375_v61 = vld [vmem:[#allocation603_spill] sm:$0xff] }
 0x6f4   : > { %15285 = vst [vmem:[#allocation340_spill] sm:$0xff] %v12197_v38  ;;  %v4293_v29 = vmul.f32 %v11545_v10, %v15291_v42  ;;  %v4315_v26 = vmul.f32 %v11545_v10, %v15292_v20  ;;  %v4401_v3 = vadd.f32 %v4313_v39, %v15293_v13  ;;  %v12221_v44 = vadd.f32 %v5353_v49, %v4909_v48  ;;  %v15298_v42 = vld [vmem:[#allocation143_spill] sm:$0xff]  ;;  %v15299_v49 = vld [vmem:[#allocation58_spill] sm:$0xff]  ;;  %v15403_v24 = vld [vmem:[#allocation152_spill] sm:$0xff] }
 0x6f5   : > { %v12195_v17 = vadd.f32 %v5373_v58, %v4929_v60  ;;  %v15289_v58 = vld [vmem:[#allocation521_spill] sm:$0xff]  ;;  %v5355_v52 = vmul.f32 %v11874_v57, %v11916_v30  ;;  %v4911_v27 = vadd.f32 %v4823_v55, %v4379_v14  ;;  %v4825_v46 = vmul.f32 %v11805_v15, %v15298_v42  ;;  %v15302_v13 = vld [vmem:[#allocation251_spill] sm:$0xff]  ;;  %v15303_v14 = vld [vmem:[#allocation568_spill] sm:$0xff] }
 0x6f6   : > { %v5108_v32 = vpop.permute.xlu1 %5107  ;;  %v3829_v53 = vmul.f32 %v11026_v63, %v15289_v58  ;;  %15294 = vst [vmem:[#allocation341_spill] sm:$0xff] %v12221_v44  ;;  %v15297_v58 = vld [vmem:[#allocation523_spill] sm:$0xff]  ;;  %v4933_v39 = vadd.f32 %v4845_v11, %v4401_v3  ;;  %v4847_v48 = vmul.f32 %v11805_v15, %v15299_v49  ;;  %v4381_v55 = vadd.f32 %v4293_v29, %v15302_v13  ;;  %v15395_v21 = vld [vmem:[#allocation614_spill] sm:$0xff] }
 0x6f7   : > { %15284 = vst [vmem:[#allocation339_spill] sm:$0xff] %v12195_v17  ;;  %v5375_v1 = vmul.f32 %v11874_v57, %v5108_v32  ;;  %v15296_v32 = vld [vmem:[#allocation240_spill] sm:$0xff]  ;;  %v3822_v8 = vmul.f32 %v11026_v63, %v15297_v58  ;;  %v12234_v16 = vpop.permute.xlu0 %5175  ;;  %v15304_v58 = vld [vmem:[#allocation546_spill] sm:$0xff]  ;;  %v4317_v11 = vmul.f32 %v11545_v10, %v15305_v51  ;;  %v12250_v3 = vadd.f32 %v5355_v52, %v4911_v27  ;;  %v15311_v52 = vld [vmem:[#allocation61_spill] sm:$0xff] }
 0x6f8   : > { %v12228_v40 = vadd.f32 %v3820_v36, %v15296_v32  ;;  %v4295_v32 = vmul.f32 %v11545_v10, %v15303_v14  ;;  %v4403_v42 = vadd.f32 %v4315_v26, %v15304_v58  ;;  %v5357_v49 = vmul.f32 %v11874_v57, %v11948_v37  ;;  %v15310_v14 = vld [vmem:[#allocation147_spill] sm:$0xff] }
 0x6f9   : > { %v12225_v60 = vadd.f32 %v5375_v1, %v4931_v6  ;;  %v15300_v6 = vld [vmem:[#allocation136_spill] sm:$0xff]  ;;  %15306 = vst [vmem:[#allocation343_spill] sm:$0xff] %v12250_v3  ;;  %v4913_v13 = vadd.f32 %v4825_v46, %v4381_v55  ;;  %v4827_v26 = vmul.f32 %v11805_v15, %v15310_v14  ;;  %v4849_v27 = vmul.f32 %v11805_v15, %v15311_v52  ;;  %v15314_v55 = vld [vmem:[#allocation571_spill] sm:$0xff]  ;;  %v15315_v14 = vld [vmem:[#allocation598_spill] sm:$0xff] }
 0x6fa   : > { %v5116_v20 = vpop.permute.xlu1 %5115  ;;  %v12242_v1 = vadd.f32 %v3829_v53, %v15300_v6  ;;  %v15309_v6 = vld [vmem:[#allocation524_spill] sm:$0xff]  ;;  %v4935_v51 = vadd.f32 %v4847_v48, %v4403_v42  ;;  %v4319_v19 = vmul.f32 %v11545_v10, %v15315_v14  ;;  %v15316_v48 = vld [vmem:[#allocation57_spill] sm:$0xff]  ;;  %v5359_v52 = vmul.f32 %v11874_v57, %v11980_v41  ;;  %v15388_v17 = vld [vmem:[#allocation611_spill] sm:$0xff] }
 0x6fb   : > { %15295 = vst [vmem:[#allocation342_spill] sm:$0xff] %v12225_v60  ;;  %v5377_v36 = vmul.f32 %v11874_v57, %v5116_v20  ;;  %v15308_v20 = vld [vmem:[#allocation242_spill] sm:$0xff]  ;;  %v3831_v29 = vmul.f32 %v11026_v63, %v15309_v6  ;;  %v12263_v18 = vpop.permute.xlu0 %5183  ;;  %v4297_v6 = vmul.f32 %v11545_v10, %v15314_v55  ;;  %v4405_v42 = vadd.f32 %v4317_v11, %v15316_v48  ;;  %v15325_v48 = vld [vmem:[#allocation252_spill] sm:$0xff] }
 0x6fc   : > { %15301 = vst [vmem:[#allocation169_spill] sm:$0xff] %v12242_v1  ;;  %v12257_v53 = vadd.f32 %v3822_v8, %v15308_v20  ;;  %v15313_v20 = vld [vmem:[#allocation50_spill] sm:$0xff]  ;;  %v12278_v1 = vadd.f32 %v5357_v49, %v4913_v13  ;;  %v15323_v49 = vld [vmem:[#allocation188_spill] sm:$0xff]  ;;  %v4342_v25 = vmul.f32 %v11545_v10, %v15388_v17 }
 0x6fd   : > { %v12254_v30 = vadd.f32 %v5377_v36, %v4933_v39  ;;  %v15312_v39 = vld [vmem:[#allocation526_spill] sm:$0xff]  ;;  %v4383_v46 = vadd.f32 %v4295_v32, %v15313_v20  ;;  %v4937_v11 = vadd.f32 %v4849_v27, %v4405_v42  ;;  %v4851_v13 = vmul.f32 %v11805_v15, %v15323_v49 }
 0x6fe   : > { %v5124_v58 = vpop.permute.xlu1 %5123  ;;  %v3824_v36 = vmul.f32 %v11026_v63, %v15312_v39  ;;  %15317 = vst [vmem:[#allocation32_spill] sm:$0xff] %v12278_v1  ;;  %v15321_v39 = vld [vmem:[#allocation527_spill] sm:$0xff]  ;;  %v15322_v55 = vld [vmem:[#allocation154_spill] sm:$0xff]  ;;  %v5361_v49 = vmul.f32 %v11874_v57, %v12012_v31 }
 0x6ff   : > { %15307 = vst [vmem:[#allocation555_spill] sm:$0xff] %v12254_v30  ;;  %v5379_v8 = vmul.f32 %v11874_v57, %v5124_v58  ;;  %v15319_v58 = vld [vmem:[#allocation137_spill] sm:$0xff]  ;;  %v3833_v32 = vmul.f32 %v11026_v63, %v15321_v39  ;;  %v4915_v20 = vadd.f32 %v4827_v26, %v4383_v46  ;;  %v4829_v3 = vmul.f32 %v11805_v15, %v15322_v55  ;;  %v12291_v60 = vpop.permute.xlu0 %5191  ;;  %v15326_v46 = vld [vmem:[#allocation574_spill] sm:$0xff]  ;;  %v15327_v39 = vld [vmem:[#allocation263_spill] sm:$0xff] }
 0x700   : > { %v12285_v30 = vadd.f32 %v3831_v29, %v15319_v58  ;;  %v4385_v26 = vadd.f32 %v4297_v6, %v15325_v48  ;;  %v4299_v58 = vmul.f32 %v11545_v10, %v15326_v46  ;;  %v4407_v55 = vadd.f32 %v4319_v19, %v15327_v39  ;;  %v15333_v46 = vld [vmem:[#allocation516_spill] sm:$0xff]  ;;  %v15339_v1 = vld [vmem:[#allocation602_spill] sm:$0xff] }
 0x701   : > { %v12282_v37 = vadd.f32 %v5379_v8, %v4935_v51  ;;  %v15324_v51 = vld [vmem:[#allocation123_spill] sm:$0xff]  ;;  %v12307_v42 = vadd.f32 %v5359_v52, %v4915_v20  ;;  %v4831_v19 = vmul.f32 %v11805_v15, %v15333_v46  ;;  %v15334_v52 = vld [vmem:[#allocation190_spill] sm:$0xff]  ;;  %v4323_v44 = vmul.f32 %v11545_v10, %v15339_v1 }
 0x702   : > { %15320 = vst [vmem:[#allocation345_spill] sm:$0xff] %v12285_v30  ;;  %v5132_v14 = vpop.permute.xlu1 %5131  ;;  %v12299_v8 = vadd.f32 %v3824_v36, %v15324_v51  ;;  %v15328_v30 = vld [vmem:[#allocation600_spill] sm:$0xff]  ;;  %v15332_v51 = vld [vmem:[#allocation530_spill] sm:$0xff]  ;;  %v4917_v48 = vadd.f32 %v4829_v3, %v4385_v26  ;;  %v4853_v20 = vmul.f32 %v11805_v15, %v15334_v52  ;;  %v15338_v26 = vld [vmem:[#allocation577_spill] sm:$0xff]  ;;  %v5363_v52 = vmul.f32 %v11874_v57, %v12042_v28 }
 0x703   : > { %15318 = vst [vmem:[#allocation344_spill] sm:$0xff] %v12282_v37  ;;  %v5381_v29 = vmul.f32 %v11874_v57, %v5132_v14  ;;  %v4321_v27 = vmul.f32 %v11545_v10, %v15328_v30  ;;  %15329 = vst [vmem:[#allocation166_spill] sm:$0xff] %v12307_v42  ;;  %v15331_v14 = vld [vmem:[#allocation529_spill] sm:$0xff]  ;;  %v3835_v6 = vmul.f32 %v11026_v63, %v15332_v51  ;;  %v12319_v37 = vpop.permute.xlu0 %5199 }
 0x704   : > { %v3826_v36 = vmul.f32 %v11026_v63, %v15331_v14  ;;  %v4939_v30 = vadd.f32 %v4851_v13, %v4407_v55  ;;  %v15337_v51 = vld [vmem:[#allocation253_spill] sm:$0xff]  ;;  %v4301_v46 = vmul.f32 %v11545_v10, %v15338_v26  ;;  %v12335_v38 = vadd.f32 %v5361_v49, %v4917_v48  ;;  %v15346_v26 = vld [vmem:[#allocation160_spill] sm:$0xff]  ;;  %v15347_v49 = vld [vmem:[#allocation191_spill] sm:$0xff] }
 0x705   : > { %v12311_v41 = vadd.f32 %v5381_v29, %v4937_v11  ;;  %v15335_v29 = vld [vmem:[#allocation140_spill] sm:$0xff]  ;;  %v4387_v3 = vadd.f32 %v4299_v58, %v15337_v51  ;;  %v15340_v13 = vld [vmem:[#allocation145_spill] sm:$0xff]  ;;  %v4855_v48 = vmul.f32 %v11805_v15, %v15347_v49  ;;  %v5365_v49 = vmul.f32 %v11874_v57, %v12071_v22 }
 0x706   : > { %v5140_v39 = vpop.permute.xlu1 %5139  ;;  %v12327_v14 = vadd.f32 %v3833_v32, %v15335_v29  ;;  %v4409_v55 = vadd.f32 %v4321_v27, %v15340_v13  ;;  %15341 = vst [vmem:[#allocation170_spill] sm:$0xff] %v12335_v38  ;;  %v15344_v29 = vld [vmem:[#allocation247_spill] sm:$0xff]  ;;  %v15363_v38 = vld [vmem:[#allocation254_spill] sm:$0xff] }
 0x707   : > { %15330 = vst [vmem:[#allocation346_spill] sm:$0xff] %v12311_v41  ;;  %v5383_v11 = vmul.f32 %v11874_v57, %v5140_v39  ;;  %v15343_v39 = vld [vmem:[#allocation131_spill] sm:$0xff]  ;;  %v12345_v58 = vadd.f32 %v3835_v6, %v15344_v29  ;;  %v4919_v51 = vadd.f32 %v4831_v19, %v4387_v3  ;;  %v4833_v41 = vmul.f32 %v11805_v15, %v15346_v26  ;;  %v12349_v42 = vpop.permute.xlu0 %5207  ;;  %v15350_v3 = vld [vmem:[#allocation580_spill] sm:$0xff] }
 0x708   : > { %15336 = vst [vmem:[#allocation347_spill] sm:$0xff] %v12327_v14  ;;  %v12342_v32 = vadd.f32 %v3826_v36, %v15343_v39  ;;  %v4941_v27 = vadd.f32 %v4853_v20, %v4409_v55  ;;  %v4303_v13 = vmul.f32 %v11545_v10, %v15350_v3  ;;  %v15351_v39 = vld [vmem:[#allocation264_spill] sm:$0xff] }
 0x709   : > { %v12339_v31 = vadd.f32 %v5383_v11, %v4939_v30  ;;  %15345 = vst [vmem:[#allocation348_spill] sm:$0xff] %v12345_v58  ;;  %v15348_v30 = vld [vmem:[#allocation532_spill] sm:$0xff]  ;;  %v15349_v11 = vld [vmem:[#allocation54_spill] sm:$0xff]  ;;  %v4411_v29 = vadd.f32 %v4323_v44, %v15351_v39  ;;  %v12364_v55 = vadd.f32 %v5363_v52, %v4919_v51  ;;  %v15359_v51 = vld [vmem:[#allocation195_spill] sm:$0xff] }
 0x70a   : > { %v5148_v1 = vpop.permute.xlu1 %5147  ;;  %v3828_v6 = vmul.f32 %v11026_v63, %v15348_v30  ;;  %v4389_v19 = vadd.f32 %v4301_v46, %v15349_v11  ;;  %v15352_v26 = vld [vmem:[#allocation604_spill] sm:$0xff]  ;;  %v15357_v46 = vld [vmem:[#allocation535_spill] sm:$0xff]  ;;  %v4857_v22 = vmul.f32 %v11805_v15, %v15359_v51  ;;  %v4391_v58 = vadd.f32 %v4303_v13, %v15363_v38 }
 0x70b   : > { %15342 = vst [vmem:[#allocation167_spill] sm:$0xff] %v12339_v31  ;;  %v5385_v36 = vmul.f32 %v11874_v57, %v5148_v1  ;;  %v4325_v20 = vmul.f32 %v11545_v10, %v15352_v26  ;;  %15353 = vst [vmem:[#allocation349_spill] sm:$0xff] %v12364_v55  ;;  %v15355_v1 = vld [vmem:[#allocation533_spill] sm:$0xff]  ;;  %v3830_v11 = vmul.f32 %v11026_v63, %v15357_v46  ;;  %v15358_v31 = vld [vmem:[#allocation162_spill] sm:$0xff]  ;;  %v12378_v26 = vpop.permute.xlu0 %5215 }
 0x70c   : > { %v12372_v30 = vmul.f32 %v11026_v63, %v15355_v1  ;;  %v4921_v3 = vadd.f32 %v4833_v41, %v4389_v19  ;;  %v4835_v44 = vmul.f32 %v11805_v15, %v15358_v31  ;;  %v4943_v52 = vadd.f32 %v4855_v48, %v4411_v29  ;;  %v15360_v1 = vld [vmem:[#allocation124_spill] sm:$0xff]  ;;  %v15361_v46 = vld [vmem:[#allocation538_spill] sm:$0xff]  ;;  %v15362_v19 = vld [vmem:[#allocation541_spill] sm:$0xff] }
 0x70d   : > { %v12368_v28 = vadd.f32 %v5385_v36, %v4941_v27  ;;  %v3832_v41 = vmul.f32 %v11026_v63, %v15361_v46  ;;  %v3834_v31 = vmul.f32 %v11026_v63, %v15362_v19  ;;  %v15364_v48 = vld [vmem:[#allocation150_spill] sm:$0xff]  ;;  %v5367_v51 = vmul.f32 %v11874_v57, %v12101_v0  ;;  %v15370_v55 = vld [vmem:[#allocation597_spill] sm:$0xff] }
 0x70e   : > { %15356 = vst [vmem:[#allocation350_spill] sm:$0xff] %v12372_v30  ;;  %v5156_v39 = vpop.permute.xlu1 %5155  ;;  %v12386_v30 = vadd.f32 %v3828_v6, %v15360_v1  ;;  %v4413_v29 = vadd.f32 %v4325_v20, %v15364_v48  ;;  %v12394_v14 = vadd.f32 %v5365_v49, %v4921_v3  ;;  %v15368_v1 = vld [vmem:[#allocation544_spill] sm:$0xff]  ;;  %v4328_v38 = vmul.f32 %v11545_v10, %v15370_v55  ;;  %v15374_v55 = vld [vmem:[#allocation601_spill] sm:$0xff]  ;;  %v15381_v0 = vld [vmem:[#allocation606_spill] sm:$0xff] }
 0x70f   : > { %15354 = vst [vmem:[#allocation171_spill] sm:$0xff] %v12368_v28  ;;  %v5387_v36 = vmul.f32 %v11874_v57, %v5156_v39  ;;  %v15367_v39 = vld [vmem:[#allocation243_spill] sm:$0xff]  ;;  %v3836_v46 = vmul.f32 %v11026_v63, %v15368_v1  ;;  %v12409_v20 = vpop.permute.xlu0 %5223  ;;  %v4923_v49 = vadd.f32 %v4835_v44, %v4391_v58  ;;  %v15372_v63 = vld [vmem:[#allocation245_spill] sm:$0xff]  ;;  %v4332_v1 = vmul.f32 %v11545_v10, %v15374_v55 }
 0x710   : > { %15365 = vst [vmem:[#allocation351_spill] sm:$0xff] %v12394_v14  ;;  %v12401_v6 = vadd.f32 %v3830_v11, %v15367_v39  ;;  %v15369_v28 = vld [vmem:[#allocation595_spill] sm:$0xff]  ;;  %v4945_v3 = vadd.f32 %v4857_v22, %v4413_v29  ;;  %v12418_v48 = vadd.f32 %v3834_v31, %v15372_v63  ;;  %v4334_v58 = vmul.f32 %v11545_v10, %v15375_v61  ;;  %v15376_v44 = vld [vmem:[#allocation605_spill] sm:$0xff]  ;;  %v15380_v31 = vld [vmem:[#allocation272_spill] sm:$0xff] }
 0x711   : > { %v12398_v27 = vadd.f32 %v5387_v36, %v4943_v52  ;;  %v4326_v19 = vmul.f32 %v11545_v10, %v15369_v28  ;;  %v15371_v52 = vld [vmem:[#allocation244_spill] sm:$0xff]  ;;  %v15373_v28 = vld [vmem:[#allocation599_spill] sm:$0xff]  ;;  %v4336_v22 = vmul.f32 %v11545_v10, %v15376_v44  ;;  %v12428_v29 = vadd.f32 %v5367_v51, %v4923_v49 }
 0x712   : > { %v5164_v13 = vpop.permute.xlu1 %5163  ;;  %v12415_v36 = vadd.f32 %v3832_v41, %v15371_v52  ;;  %v4330_v39 = vmul.f32 %v11545_v10, %v15373_v28  ;;  %v15379_v41 = vld [vmem:[#allocation135_spill] sm:$0xff]  ;;  %v4327_v28 = vmul.f32 %v11545_v10, %v15381_v0  ;;  %v15384_v49 = vld [vmem:[#allocation608_spill] sm:$0xff] }
 0x713   : > { %15366 = vst [vmem:[#allocation352_spill] sm:$0xff] %v12398_v27  ;;  %v5389_v11 = vmul.f32 %v11874_v57, %v5164_v13  ;;  %15377 = vst [vmem:[#allocation27_spill] sm:$0xff] %v12428_v29  ;;  %v12433_v52 = vadd.f32 %v3836_v46, %v15379_v41  ;;  %v4414_v63 = vadd.f32 %v4326_v19, %v15380_v31  ;;  %v15382_v27 = vld [vmem:[#allocation607_spill] sm:$0xff]  ;;  %v12442_v61 = vpop.permute.xlu0 %5231  ;;  %v15385_v46 = vld [vmem:[#allocation609_spill] sm:$0xff] }
 0x714   : > { %v4338_v55 = vmul.f32 %v11545_v10, %v15382_v27  ;;  %v15383_v44 = vld [vmem:[#allocation275_spill] sm:$0xff]  ;;  %v15387_v27 = vld [vmem:[#allocation610_spill] sm:$0xff]  ;;  %v12469_v19 = vadd.f32 %v4336_v22, %v11768_v34 }
 0x715   : > { %v12430_v13 = vadd.f32 %v5389_v11, %v4945_v3  ;;  %v12445_v51 = vadd.f32 %v4328_v38, %v15383_v44  ;;  %v4329_v3 = vmul.f32 %v11545_v10, %v15384_v49  ;;  %v4340_v11 = vmul.f32 %v11545_v10, %v15385_v46  ;;  %v15386_v0 = vld [vmem:[#allocation155_spill] sm:$0xff]  ;;  %v15389_v38 = vld [vmem:[#allocation612_spill] sm:$0xff] }
 0x716   : > { %v12440_v14 = vpop.permute.xlu1 %5171  ;;  %v12454_v41 = vadd.f32 %v4330_v39, %v15386_v0  ;;  %v4331_v31 = vmul.f32 %v11545_v10, %v15387_v27  ;;  %v4333_v44 = vmul.f32 %v11545_v10, %v15389_v38  ;;  %v12463_v49 = vadd.f32 %v4332_v1, %v15390_v47  ;;  %v15392_v39 = vld [vmem:[#allocation613_spill] sm:$0xff]  ;;  %v15394_v29 = vld [vmem:[#allocation291_spill] sm:$0xff] }
 0x717   : > { %15378 = vst [vmem:[#allocation558_spill] sm:$0xff] %v12430_v13  ;;  %v12466_v46 = vadd.f32 %v4334_v58, %v15391_v23  ;;  %v4344_v0 = vmul.f32 %v11545_v10, %v15392_v39  ;;  %v15393_v13 = vld [vmem:[#allocation549_spill] sm:$0xff]  ;;  %v12477_v17 = vadd.f32 %v4338_v55, %v15394_v29  ;;  %v4335_v38 = vmul.f32 %v11545_v10, %v15395_v21  ;;  %v15396_v47 = vld [vmem:[#allocation615_spill] sm:$0xff]  ;;  %v12485_v34 = vpop.permute.xlu0 %5239 }
 0x718   : > { %v12474_v27 = vadd.f32 %v4327_v28, %v15393_v13  ;;  %v4346_v23 = vmul.f32 %v11545_v10, %v15396_v47  ;;  %15398 = vst [vmem:[#allocation354_spill] sm:$0xff] %v12485_v34  ;;  %v15399_v58 = vld [vmem:[#allocation513_spill] sm:$0xff]  ;;  %v15400_v39 = vld [vmem:[#allocation295_spill] sm:$0xff]  ;;  %v15401_v28 = vld [vmem:[#allocation616_spill] sm:$0xff]  ;;  %v12498_v43 = vadd.f32 %v4331_v31, %v15403_v24  ;;  %v12504_v50 = vadd.f32 %v4333_v44, %v15405_v2 }
 0x719   : > { %v12488_v22 = vadd.f32 %v4329_v3, %v15399_v58  ;;  %v12491_v13 = vadd.f32 %v4340_v11, %v15400_v39  ;;  %v4337_v29 = vmul.f32 %v11545_v10, %v15401_v28  ;;  %v15402_v55 = vld [vmem:[#allocation617_spill] sm:$0xff]  ;;  %v15404_v47 = vld [vmem:[#allocation299_spill] sm:$0xff]  ;;  %v15407_v11 = vld [vmem:[#allocation300_spill] sm:$0xff] }
 0x71a   : > { %v12483_v1 = vpop.permute.xlu1 %5179  ;;  %v4348_v21 = vmul.f32 %v11545_v10, %v15402_v55  ;;  %v12501_v54 = vadd.f32 %v4342_v25, %v15404_v47  ;;  %v15406_v3 = vld [vmem:[#allocation619_spill] sm:$0xff]  ;;  %v12509_v39 = vadd.f32 %v4344_v0, %v15407_v11  ;;  %v15409_v34 = vld [vmem:[#allocation20_spill] sm:$0xff]  ;;  %v4354_v55 = vmul.f32 %v11545_v10, %v15410_v45  ;;  %v15417_v11 = vld [vmem:[#allocation21_spill] sm:$0xff] }
 0x71b   : > { %15397 = vst [vmem:[#allocation353_spill] sm:$0xff] %v12483_v1  ;;  %v4350_v58 = vmul.f32 %v11545_v10, %v15406_v3  ;;  %v4352_v28 = vmul.f32 %v11545_v10, %v15409_v34  ;;  %v15411_v24 = vld [vmem:[#allocation36_spill] sm:$0xff]  ;;  %v15412_v2 = vld [vmem:[#allocation151_spill] sm:$0xff]  ;;  %v4858_v34 = vmul.f32 %v11805_v15, %v15417_v11  ;;  %v15422_v1 = vld [vmem:[#allocation157_spill] sm:$0xff] }
 0x71c   : > { %15408 = vst [vmem:[#allocation31_spill] sm:$0xff] %v12509_v39  ;;  %v4356_v31 = vmul.f32 %v11545_v10, %v15411_v24  ;;  %v12522_v25 = vadd.f32 %v4335_v38, %v15412_v2  ;;  %v15414_v44 = vld [vmem:[#allocation304_spill] sm:$0xff]  ;;  %v15416_v0 = vld [vmem:[#allocation63_spill] sm:$0xff]  ;;  %v12533_v39 = vpop.permute.xlu0 %5247  ;;  %v4436_v38 = vadd.f32 %v4348_v21, %v15422_v1  ;;  %v15423_v2 = vld [vmem:[#allocation618_spill] sm:$0xff]  ;;  %v12556_v21 = vadd.f32 %v4354_v55, %v12257_v53 }
 0x71d   : > { %v12525_v47 = vadd.f32 %v4346_v23, %v15414_v44  ;;  %v4358_v3 = vmul.f32 %v11545_v10, %v15416_v0  ;;  %15419 = vst [vmem:[#allocation44_spill] sm:$0xff] %v12533_v39  ;;  %v15420_v24 = vld [vmem:[#allocation276_spill] sm:$0xff]  ;;  %v12541_v23 = vmul.f32 %v11545_v10, %v15423_v2  ;;  %v15425_v44 = vld [vmem:[#allocation126_spill] sm:$0xff]  ;;  %v4440_v1 = vadd.f32 %v4352_v28, %v12228_v40  ;;  %v15433_v55 = vld [vmem:[#allocation97_spill] sm:$0xff] }
 0x71e   : > { %15413 = vst [vmem:[#allocation173_spill] sm:$0xff] %v12522_v25  ;;  %v12531_v45 = vpop.permute.xlu1 %5187  ;;  %v12536_v62 = vadd.f32 %v4337_v29, %v15420_v24  ;;  %v4880_v0 = vmul.f32 %v11805_v15, %v15425_v44  ;;  %v4438_v25 = vadd.f32 %v4350_v58, %v11857_v35  ;;  %v15429_v29 = vld [vmem:[#allocation80_spill] sm:$0xff]  ;;  %v12559_v2 = vadd.f32 %v4356_v31, %v12299_v8  ;;  %v15431_v44 = vld [vmem:[#allocation93_spill] sm:$0xff] }
 0x71f   : > { %15415 = vst [vmem:[#allocation355_spill] sm:$0xff] %v12525_v47  ;;  %15418 = vst [vmem:[#allocation39_spill] sm:$0xff] %v12531_v45  ;;  %v15426_v47 = vld [vmem:[#allocation19_spill] sm:$0xff]  ;;  %v4360_v24 = vmul.f32 %v11545_v10, %v15429_v29  ;;  %v5390_v35 = vmul.f32 %v11874_v57, %v12204_v5  ;;  %v12565_v58 = vadd.f32 %v4358_v3, %v12342_v32  ;;  %v15434_v29 = vld [vmem:[#allocation236_spill] sm:$0xff] }
 0x720   : > { %15421 = vst [vmem:[#allocation356_spill] sm:$0xff] %v12536_v62  ;;  %15424 = vst [vmem:[#allocation357_spill] sm:$0xff] %v12541_v23  ;;  %v12548_v11 = vmul.f32 %v11545_v10, %v15426_v47  ;;  %v15428_v45 = vld [vmem:[#allocation79_spill] sm:$0xff]  ;;  %v15430_v47 = vld [vmem:[#allocation92_spill] sm:$0xff]  ;;  %v4362_v40 = vmul.f32 %v11545_v10, %v15431_v44  ;;  %v4946_v53 = vadd.f32 %v4858_v34, %v4414_v63  ;;  %v5256_v8 = vpop.permute.xlu0 %5255 }
 0x721   : > { %v4349_v39 = vmul.f32 %v11545_v10, %v15428_v45  ;;  %v4351_v45 = vmul.f32 %v11545_v10, %v15430_v47  ;;  %v4860_v31 = vmul.f32 %v11805_v15, %v15433_v55  ;;  %v4968_v5 = vadd.f32 %v4880_v0, %v4436_v38  ;;  %v15436_v44 = vld [vmem:[#allocation98_spill] sm:$0xff]  ;;  %v15437_v34 = vld [vmem:[#allocation99_spill] sm:$0xff] }
 0x722   : > { %15427 = vst [vmem:[#allocation522_spill] sm:$0xff] %v12548_v11  ;;  %v12571_v28 = vpop.permute.xlu1 %5195  ;;  %v4882_v32 = vmul.f32 %v11805_v15, %v15434_v29  ;;  %v5412_v3 = vmul.f32 %v11874_v57, %v5256_v8  ;;  %v15435_v11 = vld [vmem:[#allocation296_spill] sm:$0xff]  ;;  %v12582_v23 = vadd.f32 %v4360_v24, %v12386_v30  ;;  %v4353_v63 = vmul.f32 %v11545_v10, %v15436_v44  ;;  %v15440_v8 = vld [vmem:[#allocation33_spill] sm:$0xff]  ;;  %v15441_v44 = vld [vmem:[#allocation130_spill] sm:$0xff] }
 0x723   : > { %15432 = vst [vmem:[#allocation175_spill] sm:$0xff] %v12571_v28  ;;  %v12579_v47 = vadd.f32 %v4349_v39, %v15435_v11  ;;  %v4364_v62 = vmul.f32 %v11545_v10, %v15437_v34  ;;  %v15438_v28 = vld [vmem:[#allocation100_spill] sm:$0xff]  ;;  %v5478_v0 = vadd.f32 %v5390_v35, %v4946_v53  ;;  %v5392_v55 = vmul.f32 %v11874_v57, %v12234_v16 }
 0x724   : > { %v4355_v38 = vmul.f32 %v11545_v10, %v15438_v28  ;;  %v5500_v39 = vadd.f32 %v5412_v3, %v4968_v5  ;;  %v15439_v11 = vld [vmem:[#allocation552_spill] sm:$0xff]  ;;  %v12601_v24 = vadd.f32 %v4362_v40, %v12401_v6  ;;  %v4862_v29 = vmul.f32 %v11805_v15, %v15440_v8  ;;  %v5264_v16 = vpop.permute.xlu0 %5263  ;;  %v15443_v3 = vld [vmem:[#allocation303_spill] sm:$0xff]  ;;  %v15444_v40 = vld [vmem:[#allocation101_spill] sm:$0xff] }
 0x725   : > { %v12598_v30 = vadd.f32 %v4351_v45, %v15439_v11  ;;  %v4884_v35 = vmul.f32 %v11805_v15, %v15441_v44  ;;  %v4948_v28 = vadd.f32 %v4860_v31, %v12445_v51  ;;  %v4970_v34 = vadd.f32 %v4882_v32, %v4438_v25  ;;  %v12624_v51 = vld [vmem:[%s13027_s2] ss:$0 sm:$0xff] }
 0x726   : > { %v12607_v53 = vpop.permute.xlu1 %5203  ;;  %v5544_v5 = vmax.f32 %v5478_v0, %v5500_v39  ;;  %v5414_v45 = vmul.f32 %v11874_v57, %v5264_v16  ;;  %v12612_v11 = vadd.f32 %v4353_v63, %v15443_v3  ;;  %v12615_v6 = vadd.f32 %v4364_v62, %v12415_v36  ;;  %v15445_v25 = vld [vmem:[#allocation307_spill] sm:$0xff]  ;;  %v15447_v0 = vld [vmem:[#allocation102_spill] sm:$0xff] }
 0x727   : > { %15442 = vst [vmem:[#allocation43_spill] sm:$0xff] %v12607_v53  ;;  %v4366_v8 = vmul.f32 %v11545_v10, %v15444_v40  ;;  %v5394_v44 = vmul.f32 %v11874_v57, %v12263_v18  ;;  %v12627_v31 = vadd.f32 %v4355_v38, %v15445_v25  ;;  %v5480_v32 = vadd.f32 %v5392_v55, %v4948_v28  ;;  %v15448_v16 = vld [vmem:[#allocation579_spill] sm:$0xff]  ;;  %v15449_v25 = vld [vmem:[#allocation133_spill] sm:$0xff] }
 0x728   : > { %v15446_v62 = vmax.f32 %v11905_v59, %v11909_v4  ;;  %v5502_v63 = vadd.f32 %v5414_v45, %v4970_v34  ;;  %v4357_v39 = vmul.f32 %v11545_v10, %v15447_v0  ;;  %v4950_v18 = vadd.f32 %v4862_v29, %v12454_v41  ;;  %v5272_v38 = vpop.permute.xlu0 %5271  ;;  %v15454_v0 = vld [vmem:[#allocation138_spill] sm:$0xff] }
 0x729   : > { %v4864_v3 = vmul.f32 %v11805_v15, %v15448_v16  ;;  %v4972_v40 = vadd.f32 %v4884_v35, %v4440_v1  ;;  %v4886_v55 = vmul.f32 %v11805_v15, %v15449_v25  ;;  %v5416_v4 = vmul.f32 %v11874_v57, %v5272_v38  ;;  %v15456_v25 = vld [vmem:[#allocation567_spill] sm:$0xff] }
 0x72a   : > { %v5566_v36 = vmax.f32 %v15446_v62, %v5544_v5  ;;  %v12638_v53 = vpop.permute.xlu1 %5211  ;;  %v5546_v59 = vmax.f32 %v5480_v32, %v5502_v63  ;;  %v12645_v34 = vadd.f32 %v4366_v8, %v12418_v48  ;;  %v15450_v5 = vld [vmem:[#allocation103_spill] sm:$0xff]  ;;  %v5482_v29 = vadd.f32 %v5394_v44, %v4950_v18  ;;  %v15452_v32 = vld [vmem:[#allocation308_spill] sm:$0xff] }
 0x72b   : > { %v4368_v41 = vmul.f32 %v11545_v10, %v15450_v5  ;;  %v5396_v1 = vmul.f32 %v11874_v57, %v12291_v60  ;;  %v15451_v45 = vmax.f32 %v11937_v9, %v11939_v7  ;;  %v5504_v8 = vadd.f32 %v5416_v4, %v4972_v40 }
 0x72c   : > { %v5595_v28 = vadd.f32 %v12624_v51, %v5566_v36  ;;  %v12660_v62 = vadd.f32 %v4357_v39, %v15452_v32  ;;  %v4952_v44 = vadd.f32 %v4864_v3, %v12463_v49  ;;  %v15453_v36 = vld [vmem:[#allocation198_spill] sm:$0xff]  ;;  %v4888_v18 = vmul.f32 %v11805_v15, %v15454_v0  ;;  %v5280_v60 = vpop.permute.xlu0 %5279  ;;  %v15455_v3 = vld [vmem:[#allocation104_spill] sm:$0xff]  ;;  %v15462_v0 = vld [vmem:[#allocation83_spill] sm:$0xff] }
 0x72d   : > { %v5568_v48 = vmax.f32 %v15451_v45, %v5546_v59  ;;  %v4866_v63 = vmul.f32 %v11805_v15, %v15453_v36  ;;  %v4974_v38 = vadd.f32 %v4886_v55, %v12556_v21  ;;  %v5548_v7 = vmax.f32 %v5482_v29, %v5504_v8  ;;  %v15459_v45 = vld [vmem:[#allocation582_spill] sm:$0xff] }
 0x72e   : > { %v5617_v35 = vmax.f32 %v5595_v28, 0.0  ;;  %v12667_v16 = vpop.permute.xlu1 %5219  ;;  %v5418_v39 = vmul.f32 %v11874_v57, %v5280_v60  ;;  %v12675_v49 = vadd.f32 %v4368_v41, %v12433_v52  ;;  %v12679_v40 = vmul.f32 %v11545_v10, %v15455_v3 }
 0x72f   : > { %v5597_v9 = vadd.f32 %v12624_v51, %v5568_v48  ;;  %v4859_v28 = vmul.f32 %v11805_v15, %v15456_v25  ;;  %v5398_v21 = vmul.f32 %v11874_v57, %v12319_v37  ;;  %v5484_v55 = vadd.f32 %v5396_v1, %v4952_v44  ;;  %v15460_v1 = vld [vmem:[#allocation139_spill] sm:$0xff] }
 0x730   : > { %5640 = vst.msk [vmem:[%s12652_s20] sm:$0xff] %vm5639_vm0, %v5617_v35  ;;  %v15457_v4 = vmax.f32 %v11966_v33, %v11970_v56  ;;  %v5506_v29 = vadd.f32 %v5418_v39, %v4974_v38  ;;  %v15458_v35 = vld [vmem:[#allocation197_spill] sm:$0xff]  ;;  %v4954_v41 = vadd.f32 %v4866_v63, %v12466_v46  ;;  %v4868_v48 = vmul.f32 %v11805_v15, %v15459_v45  ;;  %v5288_v37 = vpop.permute.xlu0 %5287 }
 0x731   : > { %v5619_v59 = vmax.f32 %v5597_v9, 0.0  ;;  %v4861_v52 = vmul.f32 %v11805_v15, %v15458_v35  ;;  %v4976_v8 = vadd.f32 %v4888_v18, %v12559_v2  ;;  %v4890_v44 = vmul.f32 %v11805_v15, %v15460_v1  ;;  %v15461_v63 = vld [vmem:[#allocation77_spill] sm:$0xff]  ;;  %v15469_v1 = vld [vmem:[#allocation315_spill] sm:$0xff] }
 0x732   : > { %v5570_v5 = vmax.f32 %v15457_v4, %v5548_v7  ;;  %v12694_v32 = vpop.permute.xlu1 %5227  ;;  %v5550_v56 = vmax.f32 %v5484_v55, %v5506_v29  ;;  %v5420_v36 = vmul.f32 %v11874_v57, %v5288_v37  ;;  %v12703_v46 = vadd.f32 %v4859_v28, %v12474_v27  ;;  %v15463_v7 = vld [vmem:[#allocation158_spill] sm:$0xff]  ;;  %v15465_v28 = vld [vmem:[#allocation204_spill] sm:$0xff] }
 0x733   : > { %5642 = vst.msk [vmem:[%s12652_s20 + $0x10] sm:$0xff] %vm5639_vm0, %v5619_v59  ;;  %v4863_v2 = vmul.f32 %v11805_v15, %v15461_v63  ;;  %v4865_v18 = vmul.f32 %v11805_v15, %v15462_v0  ;;  %v5486_v60 = vadd.f32 %v5398_v21, %v4954_v41  ;;  %v5400_v38 = vmul.f32 %v11874_v57, %v12349_v42  ;;  %v15466_v4 = vld [vmem:[#allocation142_spill] sm:$0xff]  ;;  %v15468_v37 = vld [vmem:[#allocation312_spill] sm:$0xff] }
 0x734   : > { %v5599_v33 = vadd.f32 %v12624_v51, %v5570_v5  ;;  %v15464_v39 = vmax.f32 %v11999_v12, %v15463_v7  ;;  %v5508_v25 = vadd.f32 %v5420_v36, %v4976_v8  ;;  %v12715_v55 = vadd.f32 %v4861_v52, %v12488_v22  ;;  %v5296_v57 = vpop.permute.xlu0 %5295 }
 0x735   : > { %v4956_v27 = vadd.f32 %v4868_v48, %v12469_v19  ;;  %v4870_v59 = vmul.f32 %v11805_v15, %v15465_v28  ;;  %v4892_v21 = vmul.f32 %v11805_v15, %v15466_v4  ;;  %v4978_v42 = vadd.f32 %v4890_v44, %v12565_v58  ;;  %v12731_v19 = vld [vmem:[%s13026_s1 + $0x8] ss:$0 sm:$0xff]  ;;  %v15467_v58 = vld [vmem:[#allocation53_spill] sm:$0xff] }
 0x736   : > { %v5621_v9 = vmax.f32 %v5599_v33, 0.0  ;;  %v5572_v3 = vmax.f32 %v15464_v39, %v5550_v56  ;;  %v12722_v5 = vpop.permute.xlu1 %5235  ;;  %v5552_v29 = vmax.f32 %v5486_v60, %v5508_v25  ;;  %v5422_v22 = vmul.f32 %v12731_v19, %v5296_v57  ;;  %v15473_v60 = vld [vmem:[#allocation255_spill] sm:$0xff]  ;;  %v15475_v25 = vld [vmem:[#allocation210_spill] sm:$0xff] }
 0x737   : > { %v12735_v35 = vadd.f32 %v4863_v2, %v12498_v43  ;;  %v12738_v52 = vadd.f32 %v4865_v18, %v12504_v50  ;;  %v4881_v41 = vmul.f32 %v11805_v15, %v15467_v58  ;;  %v5402_v45 = vmul.f32 %v12731_v19, %v12378_v26  ;;  %v15471_v43 = vld [vmem:[#allocation205_spill] sm:$0xff]  ;;  %v15474_v39 = vld [vmem:[#allocation11_spill] sm:$0xff] }
 0x738   : > { %5644 = vst.msk [vmem:[%s12652_s20 + $0x20] sm:$0xff] %vm5639_vm0, %v5621_v9  ;;  %v5601_v12 = vadd.f32 %v12624_v51, %v5572_v3  ;;  %v5488_v48 = vadd.f32 %v5400_v38, %v4956_v27  ;;  %v15470_v44 = vmax.f32 %v15468_v37, %v15469_v1  ;;  %v5510_v56 = vadd.f32 %v5422_v22, %v4978_v42  ;;  %v15472_v50 = vld [vmem:[#allocation585_spill] sm:$0xff]  ;;  %v5304_v26 = vpop.permute.xlu0 %5303  ;;  %v15477_v57 = vld [vmem:[#allocation319_spill] sm:$0xff] }
 0x739   : > { %v4958_v36 = vadd.f32 %v4870_v59, %v12477_v17  ;;  %v4883_v63 = vmul.f32 %v11805_v15, %v15471_v43  ;;  %v4872_v2 = vmul.f32 %v11805_v15, %v15472_v50  ;;  %v4980_v0 = vadd.f32 %v4892_v21, %v12582_v23  ;;  %v15476_v21 = vld [vmem:[#allocation316_spill] sm:$0xff] }
 0x73a   : > { %v5623_v8 = vmax.f32 %v5601_v12, 0.0  ;;  %v5574_v33 = vmax.f32 %v15470_v44, %v5552_v29  ;;  %v12753_v18 = vpop.permute.xlu1 %5243  ;;  %v4894_v38 = vmul.f32 %v11805_v15, %v15473_v60  ;;  %v5554_v7 = vmax.f32 %v5488_v48, %v5510_v56  ;;  %v15479_v48 = vld [vmem:[#allocation219_spill] sm:$0xff]  ;;  %v15482_v50 = vld [vmem:[#allocation320_spill] sm:$0xff] }
 0x73b   : > { %v5424_v17 = vmul.f32 %v12731_v19, %v5304_v26  ;;  %v12763_v3 = vmul.f32 %v11805_v15, %v15474_v39  ;;  %v4969_v23 = vadd.f32 %v4881_v41, %v12579_v47  ;;  %v4885_v27 = vmul.f32 %v11805_v15, %v15475_v25  ;;  %v15480_v41 = vld [vmem:[#allocation144_spill] sm:$0xff] }
 0x73c   : > { %5646 = vst.msk [vmem:[%s12652_s20 + $0x30] sm:$0xff] %vm5639_vm0, %v5623_v8  ;;  %v5603_v9 = vadd.f32 %v12624_v51, %v5574_v33  ;;  %v5490_v28 = vadd.f32 %v5402_v45, %v4958_v36  ;;  %v5404_v59 = vmul.f32 %v12731_v19, %v12409_v20  ;;  %v15478_v42 = vmax.f32 %v15476_v21, %v15477_v57  ;;  %v5312_v37 = vpop.permute.xlu0 %5311  ;;  %v15481_v33 = vld [vmem:[#allocation220_spill] sm:$0xff] }
 0x73d   : > { %v5512_v29 = vadd.f32 %v5424_v17, %v4980_v0  ;;  %v4971_v22 = vadd.f32 %v4883_v63, %v12598_v30  ;;  %v4960_v58 = vadd.f32 %v4872_v2, %v12491_v13  ;;  %v4874_v47 = vmul.f32 %v11805_v15, %v15479_v48  ;;  %v15483_v2 = vld [vmem:[#allocation323_spill] sm:$0xff] }
 0x73e   : > { %v5625_v4 = vmax.f32 %v5603_v9, 0.0  ;;  %v5576_v12 = vmax.f32 %v15478_v42, %v5554_v7  ;;  %v4896_v8 = vmul.f32 %v11805_v15, %v15480_v41  ;;  %v12779_v45 = vpop.permute.xlu1 %5251  ;;  %v4982_v20 = vadd.f32 %v4894_v38, %v12601_v24  ;;  %v15485_v38 = vld [vmem:[#allocation226_spill] sm:$0xff]  ;;  %v15486_v7 = vld [vmem:[#allocation116_spill] sm:$0xff]  ;;  %v15488_v42 = vld [vmem:[#allocation353_spill] sm:$0xff] }
 0x73f   : > { %v5556_v44 = vmax.f32 %v5490_v28, %v5512_v29  ;;  %v5426_v30 = vmul.f32 %v12731_v19, %v5312_v37  ;;  %v12787_v13 = vadd.f32 %v4885_v27, %v12612_v11  ;;  %v12791_v56 = vmul.f32 %v11805_v15, %v15481_v33  ;;  %v15489_v29 = vld [vmem:[#allocation324_spill] sm:$0xff]  ;;  %v15492_v37 = vld [vmem:[#allocation31_spill] sm:$0xff] }
 0x740   : > { %5648 = vst.msk [vmem:[%s12652_s20 + $0x40] sm:$0xff] %vm5639_vm0, %v5625_v4  ;;  %v5605_v1 = vadd.f32 %v12624_v51, %v5576_v12  ;;  %v5391_v36 = vmul.f32 %v12731_v19, %v12440_v14  ;;  %v5406_v24 = vmul.f32 %v12731_v19, %v12442_v61  ;;  %v5492_v43 = vadd.f32 %v5404_v59, %v4960_v58  ;;  %v5320_v25 = vpop.permute.xlu0 %5319  ;;  %v15487_v59 = vld [vmem:[#allocation148_spill] sm:$0xff]  ;;  %v15490_v58 = vld [vmem:[#allocation326_spill] sm:$0xff] }
 0x741   : > { %v15484_v0 = vmax.f32 %v15482_v50, %v15483_v2  ;;  %v5514_v60 = vadd.f32 %v5426_v30, %v4982_v20  ;;  %v4962_v11 = vadd.f32 %v4874_v47, %v12501_v54  ;;  %v4876_v9 = vmul.f32 %v11805_v15, %v15485_v38  ;;  %v15494_v30 = vld [vmem:[#allocation149_spill] sm:$0xff] }
 0x742   : > { %v5627_v63 = vmax.f32 %v5605_v1, 0.0  ;;  %v4878_v17 = vmul.f32 %v11805_v15, %v15486_v7  ;;  %v4984_v14 = vadd.f32 %v4896_v8, %v12615_v6  ;;  %v5260_v39 = vpop.permute.xlu1 %5259  ;;  %v5428_v54 = vmul.f32 %v12731_v19, %v5320_v25  ;;  %v15493_v1 = vld [vmem:[#allocation355_spill] sm:$0xff]  ;;  %v15500_v25 = vld [vmem:[#allocation329_spill] sm:$0xff] }
 0x743   : > { %v5578_v26 = vmax.f32 %v15484_v0, %v5556_v44  ;;  %v5558_v27 = vmax.f32 %v5492_v43, %v5514_v60  ;;  %v5413_v28 = vmul.f32 %v12731_v19, %v5260_v39  ;;  %v4898_v4 = vmul.f32 %v11805_v15, %v15487_v59  ;;  %v15495_v43 = vld [vmem:[#allocation354_spill] sm:$0xff]  ;;  %v15496_v60 = vld [vmem:[#allocation39_spill] sm:$0xff] }
 0x744   : > { %5650 = vst.msk [vmem:[%s12652_s20 + $0x50] sm:$0xff] %vm5639_vm0, %v5627_v63  ;;  %v5479_v21 = vadd.f32 %v5391_v36, %v12703_v46  ;;  %v5494_v57 = vadd.f32 %v5406_v24, %v4962_v11  ;;  %v5393_v6 = vmul.f32 %v12731_v19, %v15488_v42  ;;  %v15491_v48 = vmax.f32 %v15489_v29, %v15490_v58  ;;  %v15497_v7 = vld [vmem:[#allocation327_spill] sm:$0xff] }
 0x745   : > { %v5607_v61 = vadd.f32 %v12624_v51, %v5578_v26  ;;  %v5501_v41 = vadd.f32 %v5413_v28, %v4969_v23  ;;  %v5516_v8 = vadd.f32 %v5428_v54, %v4984_v14  ;;  %v4964_v20 = vadd.f32 %v4876_v9, %v15492_v37  ;;  %v5328_v24 = vpop.permute.xlu0 %5327 }
 0x746   : > { %v5580_v47 = vmax.f32 %v15491_v48, %v5558_v27  ;;  %v4966_v44 = vadd.f32 %v4878_v17, %v15493_v1  ;;  %v4900_v33 = vmul.f32 %v11805_v15, %v15494_v30  ;;  %v5408_v46 = vmul.f32 %v12731_v19, %v15495_v43  ;;  %v5268_v36 = vpop.permute.xlu1 %5267  ;;  %v15498_v17 = vld [vmem:[#allocation330_spill] sm:$0xff]  ;;  %v15506_v1 = vld [vmem:[#allocation335_spill] sm:$0xff] }
 0x747   : > { %v5629_v12 = vmax.f32 %v5607_v61, 0.0  ;;  %v5545_v50 = vmax.f32 %v5479_v21, %v5501_v41  ;;  %v5560_v2 = vmax.f32 %v5494_v57, %v5516_v8  ;;  %v5415_v23 = vmul.f32 %v12731_v19, %v5268_v36  ;;  %v15501_v61 = vld [vmem:[#allocation332_spill] sm:$0xff] }
 0x748   : > { %v5609_v63 = vadd.f32 %v12624_v51, %v5580_v47  ;;  %v4986_v0 = vadd.f32 %v4898_v4, %v12645_v34  ;;  %v5481_v26 = vadd.f32 %v5393_v6, %v12715_v55  ;;  %v5395_v11 = vmul.f32 %v12731_v19, %v15496_v60  ;;  %v15503_v4 = vld [vmem:[#allocation44_spill] sm:$0xff] }
 0x749   : > { %5652 = vst.msk [vmem:[%s12652_s20 + $0x60] sm:$0xff] %vm5639_vm0, %v5629_v12  ;;  %v5430_v38 = vmul.f32 %v12731_v19, %v5328_v24  ;;  %v15499_v14 = vmax.f32 %v15497_v7, %v15498_v17  ;;  %v15502_v27 = vmax.f32 %v15500_v25, %v15501_v61  ;;  %v5503_v54 = vadd.f32 %v5415_v23, %v4971_v22  ;;  %v5336_v42 = vpop.permute.xlu0 %5335  ;;  %v15504_v22 = vld [vmem:[#allocation175_spill] sm:$0xff]  ;;  %v15508_v24 = vld [vmem:[#allocation334_spill] sm:$0xff] }
 0x74a   : > { %v5631_v9 = vmax.f32 %v5609_v63, 0.0  ;;  %v4988_v59 = vadd.f32 %v4900_v33, %v12675_v49  ;;  %v5496_v34 = vadd.f32 %v5408_v46, %v4964_v20  ;;  %v5410_v55 = vmul.f32 %v12731_v19, %v15503_v4  ;;  %v5276_v57 = vpop.permute.xlu1 %5275  ;;  %v15505_v20 = vld [vmem:[#allocation333_spill] sm:$0xff]  ;;  %v15513_v7 = vld [vmem:[#allocation43_spill] sm:$0xff]  ;;  %v15519_v4 = vld [vmem:[#allocation338_spill] sm:$0xff] }
 0x74b   : > { %v5567_v39 = vmax.f32 %v15499_v14, %v5545_v50  ;;  %v5582_v28 = vmax.f32 %v15502_v27, %v5560_v2  ;;  %v5518_v21 = vadd.f32 %v5430_v38, %v4986_v0  ;;  %v5547_v29 = vmax.f32 %v5481_v26, %v5503_v54  ;;  %v15511_v0 = vld [vmem:[#allocation108_spill] sm:$0xff]  ;;  %v15515_v25 = vld [vmem:[#allocation339_spill] sm:$0xff]  ;;  %v15517_v54 = vld [vmem:[#allocation18_spill] sm:$0xff] }
 0x74c   : > { %5654 = vst.msk [vmem:[%s12652_s20 + $0x70] sm:$0xff] %vm5639_vm0, %v5631_v9  ;;  %v5417_v58 = vmul.f32 %v12731_v19, %v5276_v57  ;;  %v5483_v49 = vadd.f32 %v5395_v11, %v12735_v35  ;;  %v5397_v48 = vmul.f32 %v12731_v19, %v15504_v22  ;;  %v5432_v41 = vmul.f32 %v12731_v19, %v5336_v42  ;;  %v15509_v35 = vld [vmem:[#allocation336_spill] sm:$0xff] }
 0x74d   : > { %v5596_v6 = vadd.f32 %v12624_v51, %v5567_v39  ;;  %v5611_v12 = vadd.f32 %v12624_v51, %v5582_v28  ;;  %v5562_v47 = vmax.f32 %v5496_v34, %v5518_v21  ;;  %v15507_v30 = vmax.f32 %v15505_v20, %v15506_v1  ;;  %v15514_v39 = vld [vmem:[#allocation337_spill] sm:$0xff]  ;;  %v15518_v34 = vld [vmem:[#allocation114_spill] sm:$0xff] }
 0x74e   : > { %v5505_v43 = vadd.f32 %v5417_v58, %v12787_v13  ;;  %v4975_v46 = vadd.f32 %v12791_v56, %v12627_v31  ;;  %v5498_v36 = vadd.f32 %v5410_v55, %v4966_v44  ;;  %v15510_v63 = vmax.f32 %v15508_v24, %v15509_v35  ;;  %v5284_v23 = vpop.permute.xlu1 %5283  ;;  %v15512_v56 = vld [vmem:[#allocation173_spill] sm:$0xff]  ;;  %v15520_v55 = vld [vmem:[#allocation340_spill] sm:$0xff]  ;;  %v15525_v1 = vld [vmem:[#allocation342_spill] sm:$0xff] }
 0x74f   : > { %v5618_v8 = vmax.f32 %v5596_v6, 0.0  ;;  %v5633_v37 = vmax.f32 %v5611_v12, 0.0  ;;  %v5569_v33 = vmax.f32 %v15507_v30, %v5547_v29  ;;  %v5520_v2 = vadd.f32 %v5432_v41, %v4988_v59  ;;  %v15524_v20 = vld [vmem:[#allocation341_spill] sm:$0xff] }
 0x750   : > { %v5584_v50 = vmax.f32 %v15510_v63, %v5562_v47  ;;  %v4889_v26 = vmul.f32 %v11805_v15, %v15511_v0  ;;  %v5549_v13 = vmax.f32 %v5483_v49, %v5505_v43  ;;  %v5419_v31 = vmul.f32 %v12731_v19, %v5284_v23  ;;  %v15522_v49 = vld [vmem:[#allocation311_spill] sm:$0xff] }
 0x751   : > { %5641 = vst.msk [vmem:[%s12652_s20 + $0x8] sm:$0xff] %vm5639_vm0, %v5618_v8  ;;  %5656 = vst.msk [vmem:[%s12652_s20 + $0x80] sm:$0xff] %vm5639_vm0, %v5633_v37  ;;  %v5598_v60 = vadd.f32 %v12624_v51, %v5569_v33  ;;  %v4955_v44 = vadd.f32 %v12763_v3, %v15512_v56  ;;  %v5485_v11 = vadd.f32 %v5397_v48, %v12738_v52  ;;  %v15523_v48 = vld [vmem:[#allocation106_spill] sm:$0xff]  ;;  %v15532_v56 = vld [vmem:[#allocation169_spill] sm:$0xff] }
 0x752   : > { %v5613_v38 = vadd.f32 %v12624_v51, %v5584_v50  ;;  %v5564_v9 = vmax.f32 %v5498_v36, %v5520_v2  ;;  %v5399_v17 = vmul.f32 %v12731_v19, %v15513_v7  ;;  %v15516_v61 = vmax.f32 %v15514_v39, %v15515_v25  ;;  %v5292_v42 = vpop.permute.xlu1 %5291  ;;  %v15528_v36 = vld [vmem:[#allocation540_spill] sm:$0xff]  ;;  %v15529_v50 = vld [vmem:[#allocation233_spill] sm:$0xff]  ;;  %v15535_v39 = vld [vmem:[#allocation555_spill] sm:$0xff] }
 0x753   : > { %v5620_v14 = vmax.f32 %v5598_v60, 0.0  ;;  %v5507_v28 = vadd.f32 %v5419_v31, %v4975_v46  ;;  %v4869_v59 = vmul.f32 %v11805_v15, %v15517_v54  ;;  %v4891_v3 = vmul.f32 %v11805_v15, %v15518_v34  ;;  %v15527_v46 = vld [vmem:[#allocation356_spill] sm:$0xff]  ;;  %v15530_v60 = vld [vmem:[#allocation279_spill] sm:$0xff]  ;;  %v15538_v54 = vld [vmem:[#allocation522_spill] sm:$0xff] }
 0x754   : > { %v5571_v27 = vmax.f32 %v15516_v61, %v5549_v13  ;;  %v5635_v52 = vmax.f32 %v5613_v38, 0.0  ;;  %v15521_v21 = vmax.f32 %v15519_v4, %v15520_v55  ;;  %v4977_v6 = vadd.f32 %v4889_v26, %v12660_v62  ;;  %v15531_v13 = vld [vmem:[#allocation357_spill] sm:$0xff] }
 0x755   : > { %5643 = vst.msk [vmem:[%s12652_s20 + $0x18] sm:$0xff] %vm5639_vm0, %v5620_v14  ;;  %v5551_v29 = vmax.f32 %v5485_v11, %v5507_v28  ;;  %v5421_v58 = vmul.f32 %v12731_v19, %v5292_v42  ;;  %v4447_v22 = vadd.f32 %v12679_v40, %v15522_v49  ;;  %v4361_v47 = vmul.f32 %v11545_v10, %v15523_v48  ;;  %v15533_v11 = vld [vmem:[#allocation111_spill] sm:$0xff]  ;;  %v15540_v4 = vld [vmem:[#allocation237_spill] sm:$0xff] }
 0x756   : > { %v5586_v57 = vmax.f32 %v15521_v21, %v5564_v9  ;;  %v5600_v12 = vadd.f32 %v12624_v51, %v5571_v27  ;;  %v5401_v41 = vmul.f32 %v12731_v19, %v12638_v53  ;;  %5658 = vst.msk [vmem:[%s12652_s20 + $0x90] sm:$0xff] %vm5639_vm0, %v5635_v52  ;;  %v5487_v8 = vadd.f32 %v5399_v17, %v4955_v44  ;;  %v5300_v53 = vpop.permute.xlu1 %5299  ;;  %v15534_v14 = vld [vmem:[#allocation343_spill] sm:$0xff] }
 0x757   : > { %v15526_v30 = vmax.f32 %v15524_v20, %v15525_v1  ;;  %v5509_v43 = vadd.f32 %v5421_v58, %v4977_v6  ;;  %v4957_v40 = vadd.f32 %v4869_v59, %v15527_v46  ;;  %v4871_v24 = vmul.f32 %v11805_v15, %v15528_v36  ;;  %v15537_v28 = vld [vmem:[#allocation283_spill] sm:$0xff]  ;;  %v15542_v58 = vld [vmem:[#allocation345_spill] sm:$0xff] }
 0x758   : > { %v5615_v62 = vadd.f32 %v12624_v51, %v5586_v57  ;;  %v5622_v37 = vmax.f32 %v5600_v12, 0.0  ;;  %v4979_v35 = vadd.f32 %v4891_v3, %v4447_v22  ;;  %v4893_v2 = vmul.f32 %v11805_v15, %v15529_v50  ;;  %v15539_v3 = vld [vmem:[#allocation34_spill] sm:$0xff]  ;;  %v15541_v12 = vld [vmem:[#allocation23_spill] sm:$0xff]  ;;  %v15543_v22 = vld [vmem:[#allocation120_spill] sm:$0xff] }
 0x759   : > { %v5573_v33 = vmax.f32 %v15526_v30, %v5551_v29  ;;  %v5553_v0 = vmax.f32 %v5487_v8, %v5509_v43  ;;  %v5423_v26 = vmul.f32 %v12731_v19, %v5300_v53  ;;  %v4427_v31 = vadd.f32 %v15531_v13, %v15530_v60  ;;  %v15544_v8 = vld [vmem:[#allocation32_spill] sm:$0xff]  ;;  %v15552_v13 = vld [vmem:[#allocation125_spill] sm:$0xff] }
 0x75a   : > { %v5637_v63 = vmax.f32 %v5615_v62, 0.0  ;;  %5645 = vst.msk [vmem:[%s12652_s20 + $0x28] sm:$0xff] %vm5639_vm0, %v5622_v37  ;;  %v4449_v44 = vadd.f32 %v4361_v47, %v15532_v56  ;;  %v4363_v38 = vmul.f32 %v11545_v10, %v15533_v11  ;;  %v5489_v9 = vadd.f32 %v5401_v41, %v4957_v40  ;;  %v5308_v21 = vpop.permute.xlu1 %5307  ;;  %v15545_v37 = vld [vmem:[#allocation344_spill] sm:$0xff]  ;;  %v15548_v40 = vld [vmem:[#allocation42_spill] sm:$0xff] }
 0x75b   : > { %v5602_v23 = vadd.f32 %v12624_v51, %v5573_v33  ;;  %v5403_v7 = vmul.f32 %v12731_v19, %v12667_v16  ;;  %v15536_v25 = vmax.f32 %v15534_v14, %v15535_v39  ;;  %v5511_v27 = vadd.f32 %v5423_v26, %v4979_v35  ;;  %v15547_v33 = vld [vmem:[#allocation35_spill] sm:$0xff]  ;;  %v15556_v39 = vld [vmem:[#allocation288_spill] sm:$0xff] }
 0x75c   : > { %5660 = vst.msk [vmem:[%s12652_s20 + $0xa0] sm:$0xff] %vm5639_vm0, %v5637_v63  ;;  %v4429_v59 = vadd.f32 %v15538_v54, %v15537_v28  ;;  %v4959_v34 = vadd.f32 %v4871_v24, %v4427_v31  ;;  %v4873_v52 = vmul.f32 %v11805_v15, %v15539_v3  ;;  %v4895_v55 = vmul.f32 %v11805_v15, %v15540_v4  ;;  %v15549_v63 = vld [vmem:[#allocation241_spill] sm:$0xff]  ;;  %v15551_v26 = vld [vmem:[#allocation347_spill] sm:$0xff]  ;;  %v15558_v54 = vld [vmem:[#allocation132_spill] sm:$0xff] }
 0x75d   : > { %v5624_v17 = vmax.f32 %v5602_v23, 0.0  ;;  %v5575_v61 = vmax.f32 %v15536_v25, %v5553_v0  ;;  %v4981_v57 = vadd.f32 %v4893_v2, %v4449_v44  ;;  %v5555_v42 = vmax.f32 %v5489_v9, %v5511_v27  ;;  %v15550_v23 = vld [vmem:[#allocation287_spill] sm:$0xff]  ;;  %v15554_v9 = vld [vmem:[#allocation346_spill] sm:$0xff]  ;;  %v15557_v27 = vld [vmem:[#allocation41_spill] sm:$0xff] }
 0x75e   : > { %v5425_v6 = vmul.f32 %v12731_v19, %v5308_v21  ;;  %v4343_v29 = vmul.f32 %v11545_v10, %v15541_v12  ;;  %v4451_v49 = vadd.f32 %v4363_v38, %v15542_v58  ;;  %v4365_v48 = vmul.f32 %v11545_v10, %v15543_v22  ;;  %v5316_v35 = vpop.permute.xlu1 %5315  ;;  %v15553_v38 = vld [vmem:[#allocation166_spill] sm:$0xff]  ;;  %v15563_v22 = vld [vmem:[#allocation167_spill] sm:$0xff] }
 0x75f   : > { %5647 = vst.msk [vmem:[%s12652_s20 + $0x38] sm:$0xff] %vm5639_vm0, %v5624_v17  ;;  %v5604_v16 = vadd.f32 %v12624_v51, %v5575_v61  ;;  %v5405_v47 = vmul.f32 %v12731_v19, %v12694_v32  ;;  %v5491_v41 = vadd.f32 %v5403_v7, %v4959_v34  ;;  %v15546_v20 = vmax.f32 %v15544_v8, %v15545_v37  ;;  %v15566_v8 = vld [vmem:[#allocation350_spill] sm:$0xff] }
 0x760   : > { %v5513_v30 = vadd.f32 %v5425_v6, %v4981_v57  ;;  %v4345_v43 = vmul.f32 %v11545_v10, %v15547_v33  ;;  %v4961_v46 = vadd.f32 %v4873_v52, %v4429_v59  ;;  %v4875_v36 = vmul.f32 %v11805_v15, %v15548_v40  ;;  %v15560_v57 = vld [vmem:[#allocation348_spill] sm:$0xff] }
 0x761   : > { %v5626_v62 = vmax.f32 %v5604_v16, 0.0  ;;  %v5577_v1 = vmax.f32 %v15546_v20, %v5555_v42  ;;  %v4983_v24 = vadd.f32 %v4895_v55, %v4451_v49  ;;  %v4897_v53 = vmul.f32 %v11805_v15, %v15549_v63  ;;  %v15559_v55 = vld [vmem:[#allocation62_spill] sm:$0xff]  ;;  %v15561_v42 = vld [vmem:[#allocation141_spill] sm:$0xff] }
 0x762   : > { %v5557_v50 = vmax.f32 %v5491_v41, %v5513_v30  ;;  %v5427_v2 = vmul.f32 %v12731_v19, %v5316_v35  ;;  %v4431_v0 = vadd.f32 %v4343_v29, %v15550_v23  ;;  %v4453_v60 = vadd.f32 %v4365_v48, %v15551_v26  ;;  %v5324_v34 = vpop.permute.xlu1 %5323  ;;  %v15562_v49 = vld [vmem:[#allocation170_spill] sm:$0xff]  ;;  %v15571_v23 = vld [vmem:[#allocation171_spill] sm:$0xff] }
 0x763   : > { %5649 = vst.msk [vmem:[%s12652_s20 + $0x48] sm:$0xff] %vm5639_vm0, %v5626_v62  ;;  %v5606_v32 = vadd.f32 %v12624_v51, %v5577_v1  ;;  %v4367_v31 = vmul.f32 %v11545_v10, %v15552_v13  ;;  %v5493_v56 = vadd.f32 %v5405_v47, %v4961_v46  ;;  %v5407_v44 = vmul.f32 %v12731_v19, %v12722_v5  ;;  %v15565_v62 = vld [vmem:[#allocation248_spill] sm:$0xff]  ;;  %v15567_v1 = vld [vmem:[#allocation45_spill] sm:$0xff] }
 0x764   : > { %v15555_v7 = vmax.f32 %v15553_v38, %v15554_v9  ;;  %v5515_v14 = vadd.f32 %v5427_v2, %v4983_v24  ;;  %v4433_v25 = vadd.f32 %v4345_v43, %v15556_v39  ;;  %v4963_v61 = vadd.f32 %v4875_v36, %v4431_v0  ;;  %v15569_v24 = vld [vmem:[#allocation292_spill] sm:$0xff]  ;;  %v15570_v2 = vld [vmem:[#allocation349_spill] sm:$0xff]  ;;  %v15573_v9 = vld [vmem:[#allocation351_spill] sm:$0xff] }
 0x765   : > { %v5628_v11 = vmax.f32 %v5606_v32, 0.0  ;;  %v4877_v28 = vmul.f32 %v11805_v15, %v15557_v27  ;;  %v4899_v59 = vmul.f32 %v11805_v15, %v15558_v54  ;;  %v4985_v3 = vadd.f32 %v4897_v53, %v4453_v60  ;;  %v15577_v54 = vld [vmem:[#allocation558_spill] sm:$0xff] }
 0x766   : > { %v5579_v17 = vmax.f32 %v15555_v7, %v5557_v50  ;;  %v5559_v52 = vmax.f32 %v5493_v56, %v5515_v14  ;;  %v5429_v4 = vmul.f32 %v12731_v19, %v5324_v34  ;;  %v4347_v21 = vmul.f32 %v11545_v10, %v15559_v55  ;;  %v5332_v43 = vpop.permute.xlu1 %5331  ;;  %v15574_v7 = vld [vmem:[#allocation352_spill] sm:$0xff] }
 0x767   : > { %5651 = vst.msk [vmem:[%s12652_s20 + $0x58] sm:$0xff] %vm5639_vm0, %v5628_v11  ;;  %v4455_v16 = vadd.f32 %v4367_v31, %v15560_v57  ;;  %v4369_v6 = vmul.f32 %v11545_v10, %v15561_v42  ;;  %v5409_v12 = vmul.f32 %v12731_v19, %v12753_v18  ;;  %v5495_v29 = vadd.f32 %v5407_v44, %v4963_v61  ;;  %v15568_v10 = vld [vmem:[#allocation246_spill] sm:$0xff] }
 0x768   : > { %v5608_v5 = vadd.f32 %v12624_v51, %v5579_v17  ;;  %v15564_v48 = vmax.f32 %v15562_v49, %v15563_v22  ;;  %v5517_v41 = vadd.f32 %v5429_v4, %v4985_v3  ;;  %v3925_v37 = vadd.f32 %v15566_v8, %v15565_v62 }
 0x769   : > { %v4965_v20 = vadd.f32 %v4877_v28, %v4433_v25  ;;  %v4879_v30 = vmul.f32 %v11805_v15, %v15567_v1  ;;  %v4987_v33 = vadd.f32 %v4899_v59, %v4455_v16  ;;  %v4901_v18 = vmul.f32 %v11805_v15, %v15568_v10  ;;  %v15576_v28 = vld [vmem:[#allocation27_spill] sm:$0xff] }
 0x76a   : > { %v5630_v58 = vmax.f32 %v5608_v5, 0.0  ;;  %v5581_v47 = vmax.f32 %v15564_v48, %v5559_v52  ;;  %v5561_v40 = vmax.f32 %v5495_v29, %v5517_v41  ;;  %v5431_v36 = vmul.f32 %v12731_v19, %v5332_v43  ;;  %v5340_v13 = vpop.permute.xlu1 %5339 }
 0x76b   : > { %v4435_v35 = vadd.f32 %v4347_v21, %v15569_v24  ;;  %v4457_v63 = vadd.f32 %v4369_v6, %v3925_v37  ;;  %v5497_v53 = vadd.f32 %v5409_v12, %v4965_v20  ;;  %v5411_v32 = vmul.f32 %v12731_v19, %v12779_v45 }
 0x76c   : > { %5653 = vst.msk [vmem:[%s12652_s20 + $0x68] sm:$0xff] %vm5639_vm0, %v5630_v58  ;;  %v5610_v46 = vadd.f32 %v12624_v51, %v5581_v47  ;;  %v15572_v0 = vmax.f32 %v15570_v2, %v15571_v23  ;;  %v5519_v26 = vadd.f32 %v5431_v36, %v4987_v33  ;;  %v5433_v11 = vmul.f32 %v12731_v19, %v5340_v13 }
 0x76d   : > { %v4967_v60 = vadd.f32 %v4879_v30, %v4435_v35  ;;  %v4989_v31 = vadd.f32 %v4901_v18, %v4457_v63  ;;  %v15575_v17 = vmax.f32 %v15573_v9, %v15574_v7  ;;  %v15578_v59 = vmax.f32 %v15576_v28, %v15577_v54 }
 0x76e   : > { %v5632_v50 = vmax.f32 %v5610_v46, 0.0  ;;  %v5583_v15 = vmax.f32 %v15572_v0, %v5561_v40  ;;  %v5563_v44 = vmax.f32 %v5497_v53, %v5519_v26 }
 0x76f   : > { %v5499_v38 = vadd.f32 %v5411_v32, %v4967_v60  ;;  %v5521_v39 = vadd.f32 %v5433_v11, %v4989_v31 }
 0x770   : > { %5655 = vst.msk [vmem:[%s12652_s20 + $0x78] sm:$0xff] %vm5639_vm0, %v5632_v50  ;;  %v5612_v56 = vadd.f32 %v12624_v51, %v5583_v15  ;;  %v5585_v14 = vmax.f32 %v15575_v17, %v5563_v44 }
 0x771   : > { %v5565_v61 = vmax.f32 %v5499_v38, %v5521_v39 }
 0x772   : > { %v5634_v45 = vmax.f32 %v5612_v56, 0.0  ;;  %v5614_v25 = vadd.f32 %v12624_v51, %v5585_v14 }
 0x773   : > { %v5587_v34 = vmax.f32 %v15578_v59, %v5565_v61 }
 0x774   : > { %5657 = vst.msk [vmem:[%s12652_s20 + $0x88] sm:$0xff] %vm5639_vm0, %v5634_v45  ;;  %v5636_v27 = vmax.f32 %v5614_v25, 0.0 }
 0x775   : > { %v5616_v19 = vadd.f32 %v12624_v51, %v5587_v34 }
 0x776   : > { %5659 = vst.msk [vmem:[%s12652_s20 + $0x98] sm:$0xff] %vm5639_vm0, %v5636_v27 }
 0x777   : > { %v5638_v3 = vmax.f32 %v5616_v19, 0.0 }
 0x779   : > { %5661 = vst.msk [vmem:[%s12652_s20 + $0xa8] sm:$0xff] %vm5639_vm0, %v5638_v3 }
 0x77a PF: > { %p10_p9 = scmp.ge.s32.totalorder %s6134_s16, 4   ;;  %s15579_s12 = smov %s6082_s13 }
 0x77b   : > { %s15580_s13 = smov %s6143_s19  ;;  %s15581_s14 = smov %s6134_s16 }
 0x77c   :  { %12 = sbr.rel (!%p10_p9) target bundleno = 2 (0x2), region = 105 }

</bundles_post_ra>
